<compile_context>
chip_gen: v7x
topology: tpu7x:2x2x1
jax: 0.10.0
libtpu: 0.0.40
codegen_flags: <defaults>
</compile_context>

<pallas_src>
import jax
import jax.numpy as jnp
from jax.experimental import pallas as pl
from jax.experimental.pallas import tpu as pltpu

# logical (PyTorch) dims
D_IN = 512
D_HID = 1000
D_LAT = 200
# lane-dense padded dims
D_HID_P = 1024
D_LAT_P = 256
D_HEAD_P = 2 * D_LAT_P   # fused mu|sigma head -> 512 lanes


def _softplus(x):
    # numerically stable softplus: max(x,0) + log1p(exp(-|x|))
    return jnp.maximum(x, 0.0) + jnp.log1p(jnp.exp(-jnp.abs(x)))


def _mm(a_f32, w_bf16):
    # bf16 x bf16 MXU matmul with f32 accumulation.
    return jnp.dot(a_f32.astype(jnp.bfloat16), w_bf16,
                   preferred_element_type=jnp.float32)


def vae_kernel(x_ref, eps_ref,
               w1_ref, b1_ref, w2_ref, b2_ref, w3_ref, b3_ref,
               wh_ref, bh_ref, wf1_ref, bf1_ref, wf2_ref, bf2_ref,
               recon_ref, mu_ref, sigma_ref):
    x = x_ref[...]

    # ----- encoder -----
    h = jnp.maximum(_mm(x, w1_ref[...]) + b1_ref[...], 0.0)
    h = jnp.maximum(_mm(h, w2_ref[...]) + b2_ref[...], 0.0)
    h = jnp.maximum(_mm(h, w3_ref[...]) + b3_ref[...], 0.0)

    # fused mu|sigma head: lanes [0:256) = mu, lanes [256:512) = softplus pre-act
    head = _mm(h, wh_ref[...]) + bh_ref[...]
    mu = head[:, :D_LAT_P]                 # 128-aligned slice
    sigma = _softplus(head[:, D_LAT_P:])   # 128-aligned slice

    # ----- reparameterize -----
    # (eps padded lanes are zero and mu padded lanes are zero, so z padded
    #  lanes stay exactly 0; wf1 padded rows are zero as well)
    z = mu + eps_ref[...] * jnp.exp(0.5 * sigma)

    # ----- decoder -----
    d = jnp.maximum(_mm(z, wf1_ref[...]) + bf1_ref[...], 0.0)
    logits = _mm(d, wf2_ref[...]) + bf2_ref[...]
    # sigmoid via EUP approx reciprocal (free bundle slot)
    recon = pl.reciprocal(1.0 + jnp.exp(-logits), approx=True)

    recon_ref[...] = recon
    mu_ref[...] = mu
    sigma_ref[...] = sigma


# ----------------------------------------------------------------------------
# Parameter construction / padding glue
# ----------------------------------------------------------------------------
def init_linear(key, fan_in, fan_out):
    """PyTorch nn.Linear default init: U(-1/sqrt(fan_in), 1/sqrt(fan_in)).
    Returns (W_T, b) with W_T of shape (fan_in, fan_out), b of shape (fan_out,)."""
    k = 1.0 / jnp.sqrt(jnp.float32(fan_in))
    kw, kb = jax.random.split(key)
    w_t = jax.random.uniform(kw, (fan_in, fan_out), jnp.float32, -k, k)
    b = jax.random.uniform(kb, (fan_out,), jnp.float32, -k, k)
    return w_t, b


def make_params(key):
    keys = jax.random.split(key, 6)
    w1, b1 = init_linear(keys[0], 512, 1000)     # g1
    w2, b2 = init_linear(keys[1], 1000, 1000)    # g2
    w3, b3 = init_linear(keys[2], 1000, 1000)    # g3
    wo, bo = init_linear(keys[3], 1000, 400)     # g_out
    wf1, bf1 = init_linear(keys[4], 200, 1000)   # f1
    wf2, bf2 = init_linear(keys[5], 1000, 512)   # f2
    return (w1, b1, w2, b2, w3, b3, wo, bo, wf1, bf1, wf2, bf2)


def _pad_w(w, rows, cols):
    out = jnp.zeros((rows, cols), jnp.bfloat16)
    return out.at[:w.shape[0], :w.shape[1]].set(w.astype(jnp.bfloat16))


def _pad_b(b, cols):
    out = jnp.zeros((1, cols), jnp.float32)
    return out.at[0, :b.shape[0]].set(b)


def prepare_kernel_params(params):
    """Zero-pad to lane-dense shapes, fuse the mu|sigma head, cast weights bf16."""
    (w1, b1, w2, b2, w3, b3, wo, bo, wf1, bf1, wf2, bf2) = params
    bf16 = jnp.bfloat16

    w1_p = _pad_w(w1, D_IN, D_HID_P)
    w2_p = _pad_w(w2, D_HID_P, D_HID_P)
    w3_p = _pad_w(w3, D_HID_P, D_HID_P)

    # fused head: mu columns -> lanes [0:200), sigma columns -> lanes [256:456)
    wh_p = jnp.zeros((D_HID_P, D_HEAD_P), bf16)
    wh_p = wh_p.at[:D_HID, :D_LAT].set(wo[:, :D_LAT].astype(bf16))
    wh_p = wh_p.at[:D_HID, D_LAT_P:D_LAT_P + D_LAT].set(wo[:, D_LAT:].astype(bf16))
    bh_p = jnp.zeros((1, D_HEAD_P), jnp.float32)
    bh_p = bh_p.at[0, :D_LAT].set(bo[:D_LAT])
    bh_p = bh_p.at[0, D_LAT_P:D_LAT_P + D_LAT].set(bo[D_LAT:])

    wf1_p = _pad_w(wf1, D_LAT_P, D_HID_P)
    wf2_p = _pad_w(wf2, D_HID_P, D_IN)

    return (w1_p, _pad_b(b1, D_HID_P),
            w2_p, _pad_b(b2, D_HID_P),
            w3_p, _pad_b(b3, D_HID_P),
            wh_p, bh_p,
            wf1_p, _pad_b(bf1, D_HID_P),
            wf2_p, _pad_b(bf2, D_IN))


# ----------------------------------------------------------------------------
# pallas_call wrapper
# ----------------------------------------------------------------------------
def vae_forward(x2d, eps, kernel_params):
    """x2d: (B, 512) f32, eps: (B, 200) f32. Returns (recon, mu, sigma)."""
    B = x2d.shape[0]
    # pad eps to lane-dense 256 with zeros (padded lanes must stay exactly 0)
    eps_p = jnp.zeros((B, D_LAT_P), jnp.float32).at[:, :D_LAT].set(eps)

    inputs = (x2d, eps_p) + tuple(kernel_params)
    vmem_spec = pl.BlockSpec(memory_space=pltpu.MemorySpace.VMEM)

    recon, mu_p, sigma_p = pl.pallas_call(
        vae_kernel,
        out_shape=(
            jax.ShapeDtypeStruct((B, D_IN), jnp.float32),
            jax.ShapeDtypeStruct((B, D_LAT_P), jnp.float32),
            jax.ShapeDtypeStruct((B, D_LAT_P), jnp.float32),
        ),
        in_specs=[vmem_spec] * len(inputs),
        out_specs=(vmem_spec, vmem_spec, vmem_spec),
        # real footprint ~8 MiB (bf16 weights); must stay < 64 MiB for v7x.
        compiler_params=pltpu.CompilerParams(vmem_limit_bytes=32 * 1024 * 1024),
    )(*inputs)

    # strip lane padding back to the logical latent width
    return recon, mu_p[:, :D_LAT], sigma_p[:, :D_LAT]


def vae_forward_ref(x2d, eps, params):
    """Pure-jnp reference with the same bf16-operand / f32-accumulate matmuls."""
    (w1, b1, w2, b2, w3, b3, wo, bo, wf1, bf1, wf2, bf2) = params

    def mm(a, w):
        return jnp.dot(a.astype(jnp.bfloat16), w.astype(jnp.bfloat16),
                       preferred_element_type=jnp.float32)

    h = jnp.maximum(mm(x2d, w1) + b1, 0.0)
    h = jnp.maximum(mm(h, w2) + b2, 0.0)
    h = jnp.maximum(mm(h, w3) + b3, 0.0)
    g = mm(h, wo) + bo
    mu = g[:, :D_LAT]
    sigma = jax.nn.softplus(g[:, D_LAT:])
    z = mu + eps * jnp.exp(0.5 * sigma)
    d = jnp.maximum(mm(z, wf1) + bf1, 0.0)
    recon = jax.nn.sigmoid(mm(d, wf2) + bf2)
    return recon, mu, sigma


if __name__ == "__main__":
    key = jax.random.PRNGKey(0)
    k_x, k_eps, k_params = jax.random.split(key, 3)

    # Input shaped like an image batch; forward flattens to (-1, 512): 2*16*16 = 512.
    x = jax.random.normal(k_x, (4, 2, 16, 16), jnp.float32)
    x2d = x.reshape(-1, D_IN)                      # (4, 512)
    B = x2d.shape[0]
    # eps for the reparameterization trick (torch.randn_like equivalent),
    # generated deterministically in JAX and passed into the kernel.
    eps = jax.random.normal(k_eps, (B, D_LAT), jnp.float32)

    params = make_params(k_params)
    kernel_params = prepare_kernel_params(params)

    recon, mu, sigma = vae_forward(x2d, eps, kernel_params)
    jax.block_until_ready((recon, mu, sigma))

    recon_r, mu_r, sigma_r = vae_forward_ref(x2d, eps, params)
    assert recon.shape == (B, D_IN) and mu.shape == (B, D_LAT) and sigma.shape == (B, D_LAT)
    assert jnp.allclose(recon, recon_r, rtol=2e-2, atol=2e-2)
    assert jnp.allclose(mu, mu_r, rtol=2e-2, atol=2e-2)
    assert jnp.allclose(sigma, sigma_r, rtol=2e-2, atol=2e-2)

    print("KERNEL_OK")
</pallas_src>

<mosaic_0001>
module attributes {stable_mosaic.version = 11 : i64} {
  func.func @vae_kernel(%arg0: memref<4x512xf32, #tpu.memory_space<vmem>>, %arg1: memref<4x256xf32, #tpu.memory_space<vmem>>, %arg2: memref<512x1024xbf16, #tpu.memory_space<vmem>>, %arg3: memref<1x1024xf32, #tpu.memory_space<vmem>>, %arg4: memref<1024x1024xbf16, #tpu.memory_space<vmem>>, %arg5: memref<1x1024xf32, #tpu.memory_space<vmem>>, %arg6: memref<1024x1024xbf16, #tpu.memory_space<vmem>>, %arg7: memref<1x1024xf32, #tpu.memory_space<vmem>>, %arg8: memref<1024x512xbf16, #tpu.memory_space<vmem>>, %arg9: memref<1x512xf32, #tpu.memory_space<vmem>>, %arg10: memref<256x1024xbf16, #tpu.memory_space<vmem>>, %arg11: memref<1x1024xf32, #tpu.memory_space<vmem>>, %arg12: memref<1024x512xbf16, #tpu.memory_space<vmem>>, %arg13: memref<1x512xf32, #tpu.memory_space<vmem>>, %arg14: memref<4x512xf32, #tpu.memory_space<vmem>>, %arg15: memref<4x256xf32, #tpu.memory_space<vmem>>, %arg16: memref<4x256xf32, #tpu.memory_space<vmem>>) attributes {dimension_semantics = [], scalar_prefetch = 0 : i64, scratch_operands = 0 : i64, tpu.core_type = #tpu.core_type<tc>} {
    %c0 = arith.constant 0 : index
    %c0_0 = arith.constant 0 : index
    %0 = vector.load %arg0[%c0, %c0_0] : memref<4x512xf32, #tpu.memory_space<vmem>>, vector<4x512xf32>
    %c0_1 = arith.constant 0 : index
    %c0_2 = arith.constant 0 : index
    %1 = vector.load %arg2[%c0_1, %c0_2] : memref<512x1024xbf16, #tpu.memory_space<vmem>>, vector<512x1024xbf16>
    %2 = arith.truncf %0 : vector<4x512xf32> to vector<4x512xbf16>
    %cst = arith.constant dense<0.000000e+00> : vector<4x1024xf32>
    %3 = tpu.matmul %2, %1, %cst {dimension_numbers = #tpu.dot_dimension_numbers<[1], [0], [0], [1], [0, 0, 1, 1], [], []>} : vector<4x512xbf16>, vector<512x1024xbf16>, vector<4x1024xf32> -> vector<4x1024xf32>
    %c0_3 = arith.constant 0 : index
    %c0_4 = arith.constant 0 : index
    %4 = vector.load %arg3[%c0_3, %c0_4] : memref<1x1024xf32, #tpu.memory_space<vmem>>, vector<1x1024xf32>
    %5 = vector.broadcast %4 : vector<1x1024xf32> to vector<4x1024xf32>
    %6 = arith.addf %3, %5 : vector<4x1024xf32>
    %cst_5 = arith.constant 0.000000e+00 : f32
    %7 = vector.broadcast %cst_5 : f32 to vector<4x1024xf32>
    %8 = arith.maximumf %6, %7 : vector<4x1024xf32>
    %c0_6 = arith.constant 0 : index
    %c0_7 = arith.constant 0 : index
    %9 = vector.load %arg4[%c0_6, %c0_7] : memref<1024x1024xbf16, #tpu.memory_space<vmem>>, vector<1024x1024xbf16>
    %10 = arith.truncf %8 : vector<4x1024xf32> to vector<4x1024xbf16>
    %cst_8 = arith.constant dense<0.000000e+00> : vector<4x1024xf32>
    %11 = tpu.matmul %10, %9, %cst_8 {dimension_numbers = #tpu.dot_dimension_numbers<[1], [0], [0], [1], [0, 0, 1, 1], [], []>} : vector<4x1024xbf16>, vector<1024x1024xbf16>, vector<4x1024xf32> -> vector<4x1024xf32>
    %c0_9 = arith.constant 0 : index
    %c0_10 = arith.constant 0 : index
    %12 = vector.load %arg5[%c0_9, %c0_10] : memref<1x1024xf32, #tpu.memory_space<vmem>>, vector<1x1024xf32>
    %13 = vector.broadcast %12 : vector<1x1024xf32> to vector<4x1024xf32>
    %14 = arith.addf %11, %13 : vector<4x1024xf32>
    %cst_11 = arith.constant 0.000000e+00 : f32
    %15 = vector.broadcast %cst_11 : f32 to vector<4x1024xf32>
    %16 = arith.maximumf %14, %15 : vector<4x1024xf32>
    %c0_12 = arith.constant 0 : index
    %c0_13 = arith.constant 0 : index
    %17 = vector.load %arg6[%c0_12, %c0_13] : memref<1024x1024xbf16, #tpu.memory_space<vmem>>, vector<1024x1024xbf16>
    %18 = arith.truncf %16 : vector<4x1024xf32> to vector<4x1024xbf16>
    %cst_14 = arith.constant dense<0.000000e+00> : vector<4x1024xf32>
    %19 = tpu.matmul %18, %17, %cst_14 {dimension_numbers = #tpu.dot_dimension_numbers<[1], [0], [0], [1], [0, 0, 1, 1], [], []>} : vector<4x1024xbf16>, vector<1024x1024xbf16>, vector<4x1024xf32> -> vector<4x1024xf32>
    %c0_15 = arith.constant 0 : index
    %c0_16 = arith.constant 0 : index
    %20 = vector.load %arg7[%c0_15, %c0_16] : memref<1x1024xf32, #tpu.memory_space<vmem>>, vector<1x1024xf32>
    %21 = vector.broadcast %20 : vector<1x1024xf32> to vector<4x1024xf32>
    %22 = arith.addf %19, %21 : vector<4x1024xf32>
    %cst_17 = arith.constant 0.000000e+00 : f32
    %23 = vector.broadcast %cst_17 : f32 to vector<4x1024xf32>
    %24 = arith.maximumf %22, %23 : vector<4x1024xf32>
    %c0_18 = arith.constant 0 : index
    %c0_19 = arith.constant 0 : index
    %25 = vector.load %arg8[%c0_18, %c0_19] : memref<1024x512xbf16, #tpu.memory_space<vmem>>, vector<1024x512xbf16>
    %26 = arith.truncf %24 : vector<4x1024xf32> to vector<4x1024xbf16>
    %cst_20 = arith.constant dense<0.000000e+00> : vector<4x512xf32>
    %27 = tpu.matmul %26, %25, %cst_20 {dimension_numbers = #tpu.dot_dimension_numbers<[1], [0], [0], [1], [0, 0, 1, 1], [], []>} : vector<4x1024xbf16>, vector<1024x512xbf16>, vector<4x512xf32> -> vector<4x512xf32>
    %c0_21 = arith.constant 0 : index
    %c0_22 = arith.constant 0 : index
    %28 = vector.load %arg9[%c0_21, %c0_22] : memref<1x512xf32, #tpu.memory_space<vmem>>, vector<1x512xf32>
    %29 = vector.broadcast %28 : vector<1x512xf32> to vector<4x512xf32>
    %30 = arith.addf %27, %29 : vector<4x512xf32>
    %31 = vector.extract_strided_slice %30 {offsets = [0, 0], sizes = [4, 256], strides = [1, 1]} : vector<4x512xf32> to vector<4x256xf32>
    %32 = vector.extract_strided_slice %30 {offsets = [0, 256], sizes = [4, 256], strides = [1, 1]} : vector<4x512xf32> to vector<4x256xf32>
    %cst_23 = arith.constant 0.000000e+00 : f32
    %33 = vector.broadcast %cst_23 : f32 to vector<4x256xf32>
    %34 = arith.maximumf %32, %33 : vector<4x256xf32>
    %35 = math.absf %32 : vector<4x256xf32>
    %cst_24 = arith.constant 0.000000e+00 : f32
    %36 = vector.broadcast %cst_24 : f32 to vector<4x256xf32>
    %37 = arith.subf %36, %35 : vector<4x256xf32>
    %38 = math.exp %37 : vector<4x256xf32>
    %39 = math.log1p %38 : vector<4x256xf32>
    %40 = arith.addf %34, %39 : vector<4x256xf32>
    %c0_25 = arith.constant 0 : index
    %c0_26 = arith.constant 0 : index
    %41 = vector.load %arg1[%c0_25, %c0_26] : memref<4x256xf32, #tpu.memory_space<vmem>>, vector<4x256xf32>
    %cst_27 = arith.constant 5.000000e-01 : f32
    %42 = vector.broadcast %cst_27 : f32 to vector<4x256xf32>
    %43 = arith.mulf %42, %40 : vector<4x256xf32>
    %44 = math.exp %43 : vector<4x256xf32>
    %45 = arith.mulf %41, %44 : vector<4x256xf32>
    %46 = arith.addf %31, %45 : vector<4x256xf32>
    %c0_28 = arith.constant 0 : index
    %c0_29 = arith.constant 0 : index
    %47 = vector.load %arg10[%c0_28, %c0_29] : memref<256x1024xbf16, #tpu.memory_space<vmem>>, vector<256x1024xbf16>
    %48 = arith.truncf %46 : vector<4x256xf32> to vector<4x256xbf16>
    %cst_30 = arith.constant dense<0.000000e+00> : vector<4x1024xf32>
    %49 = tpu.matmul %48, %47, %cst_30 {dimension_numbers = #tpu.dot_dimension_numbers<[1], [0], [0], [1], [0, 0, 1, 1], [], []>} : vector<4x256xbf16>, vector<256x1024xbf16>, vector<4x1024xf32> -> vector<4x1024xf32>
    %c0_31 = arith.constant 0 : index
    %c0_32 = arith.constant 0 : index
    %50 = vector.load %arg11[%c0_31, %c0_32] : memref<1x1024xf32, #tpu.memory_space<vmem>>, vector<1x1024xf32>
    %51 = vector.broadcast %50 : vector<1x1024xf32> to vector<4x1024xf32>
    %52 = arith.addf %49, %51 : vector<4x1024xf32>
    %cst_33 = arith.constant 0.000000e+00 : f32
    %53 = vector.broadcast %cst_33 : f32 to vector<4x1024xf32>
    %54 = arith.maximumf %52, %53 : vector<4x1024xf32>
    %c0_34 = arith.constant 0 : index
    %c0_35 = arith.constant 0 : index
    %55 = vector.load %arg12[%c0_34, %c0_35] : memref<1024x512xbf16, #tpu.memory_space<vmem>>, vector<1024x512xbf16>
    %56 = arith.truncf %54 : vector<4x1024xf32> to vector<4x1024xbf16>
    %cst_36 = arith.constant dense<0.000000e+00> : vector<4x512xf32>
    %57 = tpu.matmul %56, %55, %cst_36 {dimension_numbers = #tpu.dot_dimension_numbers<[1], [0], [0], [1], [0, 0, 1, 1], [], []>} : vector<4x1024xbf16>, vector<1024x512xbf16>, vector<4x512xf32> -> vector<4x512xf32>
    %c0_37 = arith.constant 0 : index
    %c0_38 = arith.constant 0 : index
    %58 = vector.load %arg13[%c0_37, %c0_38] : memref<1x512xf32, #tpu.memory_space<vmem>>, vector<1x512xf32>
    %59 = vector.broadcast %58 : vector<1x512xf32> to vector<4x512xf32>
    %60 = arith.addf %57, %59 : vector<4x512xf32>
    %cst_39 = arith.constant 0.000000e+00 : f32
    %61 = vector.broadcast %cst_39 : f32 to vector<4x512xf32>
    %62 = arith.subf %61, %60 : vector<4x512xf32>
    %63 = math.exp %62 : vector<4x512xf32>
    %cst_40 = arith.constant 1.000000e+00 : f32
    %64 = vector.broadcast %cst_40 : f32 to vector<4x512xf32>
    %65 = arith.addf %64, %63 : vector<4x512xf32>
    %66 = tpu.reciprocal %65 {approx = true} : vector<4x512xf32> -> vector<4x512xf32>
    %c0_41 = arith.constant 0 : index
    %c0_42 = arith.constant 0 : index
    %67 = vector.load %arg14[%c0_41, %c0_42] : memref<4x512xf32, #tpu.memory_space<vmem>>, vector<4x512xf32>
    tpu.vector_store %arg14[%c0_41, %c0_42], %66 {strides = array<i32>} : memref<4x512xf32, #tpu.memory_space<vmem>>, vector<4x512xf32>,
    %c0_43 = arith.constant 0 : index
    %c0_44 = arith.constant 0 : index
    %68 = vector.load %arg15[%c0_43, %c0_44] : memref<4x256xf32, #tpu.memory_space<vmem>>, vector<4x256xf32>
    tpu.vector_store %arg15[%c0_43, %c0_44], %31 {strides = array<i32>} : memref<4x256xf32, #tpu.memory_space<vmem>>, vector<4x256xf32>,
    %c0_45 = arith.constant 0 : index
    %c0_46 = arith.constant 0 : index
    %69 = vector.load %arg16[%c0_45, %c0_46] : memref<4x256xf32, #tpu.memory_space<vmem>>, vector<4x256xf32>
    tpu.vector_store %arg16[%c0_45, %c0_46], %40 {strides = array<i32>} : memref<4x256xf32, #tpu.memory_space<vmem>>, vector<4x256xf32>,
    return
  }
}

</mosaic_0001>

<bundles_post_ra>
// kernel: tpu_custom_call.1
= control target key start
LH: loop header
LB: loop body
LE: loop exit
PB: predicated region body
PF: predicated region fallthrough
CT: control target
= control target key end

     0   :  { %s18616_s0 = inlined_call_operand.hbm [shape: f32[4,512], index: 0, kind: input, shape index: {}]   ;;  %s18617_s1 = inlined_call_operand.hbm [shape: f32[4,256], index: 1, kind: input, shape index: {}]   ;;  %s18618_s2 = inlined_call_operand.hbm [shape: bf16[512,1024], index: 2, kind: input, shape index: {}]   ;;  %s18619_s3 = inlined_call_operand.hbm [shape: f32[1,1024], index: 3, kind: input, shape index: {}]   ;;  %s18620_s4 = inlined_call_operand.hbm [shape: bf16[1024,1024], index: 4, kind: input, shape index: {}]   ;;  %s18621_s5 = inlined_call_operand.hbm [shape: f32[1,1024], index: 5, kind: input, shape index: {}]   ;;  %s18622_s6 = inlined_call_operand.hbm [shape: bf16[1024,1024], index: 6, kind: input, shape index: {}]   ;;  %s18623_s7 = inlined_call_operand.hbm [shape: f32[1,1024], index: 7, kind: input, shape index: {}]   ;;  %s18624_s8 = inlined_call_operand.hbm [shape: bf16[1024,512], index: 8, kind: input, shape index: {}]   ;;  %s18625_s9 = inlined_call_operand.hbm [shape: f32[1,512], index: 9, kind: input, shape index: {}]   ;;  %s18626_s10 = inlined_call_operand.hbm [shape: bf16[256,1024], index: 10, kind: input, shape index: {}]   ;;  %s18627_s11 = inlined_call_operand.hbm [shape: f32[1,1024], index: 11, kind: input, shape index: {}]   ;;  %s18628_s12 = inlined_call_operand.hbm [shape: bf16[1024,512], index: 12, kind: input, shape index: {}]   ;;  %s18629_s13 = inlined_call_operand.hbm [shape: f32[1,512], index: 13, kind: input, shape index: {}]   ;;  %s18630_s14 = inlined_call_operand.hbm [shape: f32[4,512], index: 14, kind: output, shape index: {0}]   ;;  %s18631_s15 = inlined_call_operand.hbm [shape: f32[4,256], index: 15, kind: output, shape index: {1}]   ;;  %s18632_s16 = inlined_call_operand.hbm [shape: f32[4,256], index: 16, kind: output, shape index: {2}]  }
   0x1   :  { %18634 = sst [smem:[#allocation39_spill]] %s18616_s0 }
   0x2   :  { %22 = vsyncpa [#allocation3], 0 }
   0x3   :  { %23 = vsyncpa [#allocation6], 0 }
   0x4   :  { %24 = vsyncpa [#allocation9], 0 }
   0x5   :  { %25 = vsyncpa [#allocation12], 0 }
   0x6   :  { %26 = vsyncpa [#allocation15], 0 }
   0x7   :  { %27 = vsyncpa [#allocation18], 0 }
   0x8   :  { %28 = vsyncpa [#allocation21], 0 }
   0x9   :  { %29 = vsyncpa [#allocation24], 0 }
   0xa   :  { %30 = vsyncpa [#allocation4], 0 }
   0xb   :  { %31 = vsyncpa [#allocation27], 0  ;;  %s17960_s21 = smov [#allocation5]   ;;  %s17961_s23 = smov [#allocation8]  }
   0xc   :  { %s48_s22 = sshll.u32 %s17960_s21, 4  ;;  %s70_s24 = sshll.u32 %s17961_s23, 4  ;;  %s49_s22 = int_to_ptr.vmem [resolvable:$true] %s48_s22  ;;  %s71_s24 = int_to_ptr.vmem [resolvable:$true] %s70_s24 }
   0xd   :  { %s17566_s27 = scalar_lea.hbm %s18617_s1, 128 }
   0xe   :  { %p17567_p0 = scmp.ne.s32.totalorder %s18617_s1, %s17566_s27  ;;  %p17570_p1 = scmp.lt.u32.totalorder %s17566_s27, %s18617_s1 }
  0x10   :  { %p17572_p2 = pnand %p17570_p1, %p17567_p0 }
  0x12   :  { %17575 = shalt.err (!%p17572_p2)
}
  0x13   :  { %s17576_s17 = scalar_lea.vmem %s49_s22, 128  ;;  %p17581_p4 = scmp.lt.s32.totalorder %s49_s22, %s49_s22 }
  0x14   :  { %p17577_p3 = scmp.ne.s32.totalorder %s49_s22, %s17576_s17  ;;  %p17582_p5 = scmp.lt.s32.totalorder %s17576_s17, %s17576_s17 }
  0x16   :  { %p17583_p6 = por %p17582_p5, %p17581_p4 }
  0x18   :  { %p17584_p7 = pnand %p17583_p6, %p17577_p3 }
  0x1a   :  { %17587 = shalt.err (!%p17584_p7)
}
  0x1b   :  { %51 = dma.hbm_to_vmem [thread:$0]  %s18617_s1, 128, %s49_s22, [#allocation6]  }
  0x1c   :  { %s17588_s23 = scalar_lea.hbm %s18619_s3, 128 }
  0x1d   :  { %p17589_p8 = scmp.ne.s32.totalorder %s18619_s3, %s17588_s23  ;;  %p17592_p9 = scmp.lt.u32.totalorder %s17588_s23, %s18619_s3 }
  0x1f   :  { %p17594_p10 = pnand %p17592_p9, %p17589_p8 }
  0x21   :  { %17597 = shalt.err (!%p17594_p10)
}
  0x22   :  { %s17598_s29 = scalar_lea.vmem %s71_s24, 128  ;;  %p17603_p12 = scmp.lt.s32.totalorder %s71_s24, %s71_s24 }
  0x23   :  { %p17599_p11 = scmp.ne.s32.totalorder %s71_s24, %s17598_s29  ;;  %p17604_p13 = scmp.lt.s32.totalorder %s17598_s29, %s17598_s29 }
  0x25   :  { %p17605_p0 = por %p17604_p13, %p17603_p12 }
  0x27   :  { %p17606_p1 = pnand %p17605_p0, %p17599_p11 }
  0x29   :  { %17609 = shalt.err (!%p17606_p1)
}
  0x2a   :  { %73 = dma.hbm_to_vmem [thread:$0]  %s18619_s3, 128, %s71_s24, [#allocation9]  }
  0x2b   :  { %s17962_s30 = smov [#allocation11]   ;;  %s17963_s17 = smov [#allocation14]  }
  0x2c   :  { %s92_s0 = sshll.u32 %s17962_s30, 4  ;;  %s114_s18 = sshll.u32 %s17963_s17, 4  ;;  %s93_s0 = int_to_ptr.vmem [resolvable:$true] %s92_s0  ;;  %s115_s18 = int_to_ptr.vmem [resolvable:$true] %s114_s18 }
  0x2d   :  { %s17610_s21 = scalar_lea.hbm %s18621_s5, 128 }
  0x2e   :  { %p17611_p2 = scmp.ne.s32.totalorder %s18621_s5, %s17610_s21  ;;  %p17614_p3 = scmp.lt.u32.totalorder %s17610_s21, %s18621_s5 }
  0x30   :  { %p17616_p4 = pnand %p17614_p3, %p17611_p2 }
  0x32   :  { %17619 = shalt.err (!%p17616_p4)
}
  0x33   :  { %s17620_s3 = scalar_lea.vmem %s93_s0, 128  ;;  %p17625_p6 = scmp.lt.s32.totalorder %s93_s0, %s93_s0 }
  0x34   :  { %p17621_p5 = scmp.ne.s32.totalorder %s93_s0, %s17620_s3  ;;  %p17626_p7 = scmp.lt.s32.totalorder %s17620_s3, %s17620_s3 }
  0x36   :  { %p17627_p8 = por %p17626_p7, %p17625_p6 }
  0x38   :  { %p17628_p9 = pnand %p17627_p8, %p17621_p5 }
  0x3a   :  { %17631 = shalt.err (!%p17628_p9)
}
  0x3b   :  { %95 = dma.hbm_to_vmem [thread:$0]  %s18621_s5, 128, %s93_s0, [#allocation12]  }
  0x3c   :  { %s17632_s22 = scalar_lea.hbm %s18623_s7, 128 }
  0x3d   :  { %p17633_p10 = scmp.ne.s32.totalorder %s18623_s7, %s17632_s22  ;;  %p17636_p11 = scmp.lt.u32.totalorder %s17632_s22, %s18623_s7 }
  0x3f   :  { %p17638_p12 = pnand %p17636_p11, %p17633_p10 }
  0x41   :  { %17641 = shalt.err (!%p17638_p12)
}
  0x42   :  { %s17642_s21 = scalar_lea.vmem %s115_s18, 128  ;;  %p17647_p0 = scmp.lt.s32.totalorder %s115_s18, %s115_s18 }
  0x43   :  { %p17643_p13 = scmp.ne.s32.totalorder %s115_s18, %s17642_s21  ;;  %p17648_p1 = scmp.lt.s32.totalorder %s17642_s21, %s17642_s21 }
  0x45   :  { %p17649_p2 = por %p17648_p1, %p17647_p0 }
  0x47   :  { %p17650_p3 = pnand %p17649_p2, %p17643_p13 }
  0x49   :  { %17653 = shalt.err (!%p17650_p3)
}
  0x4a   :  { %117 = dma.hbm_to_vmem [thread:$0]  %s18623_s7, 128, %s115_s18, [#allocation15]  }
  0x4b   :  { %s17964_s23 = smov [#allocation17]   ;;  %s17965_s26 = smov [#allocation20]  }
  0x4c   :  { %s136_s25 = sshll.u32 %s17964_s23, 4  ;;  %s158_s27 = sshll.u32 %s17965_s26, 4  ;;  %s137_s25 = int_to_ptr.vmem [resolvable:$true] %s136_s25  ;;  %s159_s27 = int_to_ptr.vmem [resolvable:$true] %s158_s27 }
  0x4d   :  { %s17654_s28 = scalar_lea.hbm %s18625_s9, 64 }
  0x4e   :  { %p17655_p4 = scmp.ne.s32.totalorder %s18625_s9, %s17654_s28  ;;  %p17658_p5 = scmp.lt.u32.totalorder %s17654_s28, %s18625_s9 }
  0x50   :  { %p17660_p6 = pnand %p17658_p5, %p17655_p4 }
  0x52   :  { %17663 = shalt.err (!%p17660_p6)
}
  0x53   :  { %s17664_s7 = scalar_lea.vmem %s137_s25, 64  ;;  %p17669_p8 = scmp.lt.s32.totalorder %s137_s25, %s137_s25 }
  0x54   :  { %p17665_p7 = scmp.ne.s32.totalorder %s137_s25, %s17664_s7  ;;  %p17670_p9 = scmp.lt.s32.totalorder %s17664_s7, %s17664_s7 }
  0x56   :  { %p17671_p10 = por %p17670_p9, %p17669_p8 }
  0x58   :  { %p17672_p11 = pnand %p17671_p10, %p17665_p7 }
  0x5a   :  { %17675 = shalt.err (!%p17672_p11)
}
  0x5b   :  { %139 = dma.hbm_to_vmem [thread:$0]  %s18625_s9, 64, %s137_s25, [#allocation18]  }
  0x5c   :  { %s17676_s21 = scalar_lea.hbm %s18627_s11, 128 }
  0x5d   :  { %p17677_p12 = scmp.ne.s32.totalorder %s18627_s11, %s17676_s21  ;;  %p17680_p13 = scmp.lt.u32.totalorder %s17676_s21, %s18627_s11 }
  0x5f   :  { %p17682_p0 = pnand %p17680_p13, %p17677_p12 }
  0x61   :  { %17685 = shalt.err (!%p17682_p0)
}
  0x62   :  { %s17686_s3 = scalar_lea.vmem %s159_s27, 128  ;;  %p17691_p2 = scmp.lt.s32.totalorder %s159_s27, %s159_s27 }
  0x63   :  { %p17687_p1 = scmp.ne.s32.totalorder %s159_s27, %s17686_s3  ;;  %p17692_p3 = scmp.lt.s32.totalorder %s17686_s3, %s17686_s3 }
  0x65   :  { %p17693_p4 = por %p17692_p3, %p17691_p2 }
  0x67   :  { %p17694_p5 = pnand %p17693_p4, %p17687_p1 }
  0x69   :  { %17697 = shalt.err (!%p17694_p5)
}
  0x6a   :  { %161 = dma.hbm_to_vmem [thread:$0]  %s18627_s11, 128, %s159_s27, [#allocation21]  }
  0x6b   :  { %s17966_s24 = smov [#allocation2]   ;;  %s17967_s29 = smov [#allocation7]  }
  0x6c   :  { %s38_s28 = sshll.u32 %s17966_s24, 4  ;;  %s57_s1 = sshll.u32 %s17967_s29, 4  ;;  %s39_s28 = int_to_ptr.vmem [resolvable:$true] %s38_s28  ;;  %s18138_s1 = int_to_ptr.vmem [resolvable:$true] %s57_s1 }
  0x6d   :  { %s18635_s7 = sld [smem:[#allocation39_spill]] }
  0x73   :  { %s17698_s18 = scalar_lea.hbm %s18635_s7, 256 }
  0x74   :  { %p17699_p6 = scmp.ne.s32.totalorder %s18635_s7, %s17698_s18  ;;  %p17702_p7 = scmp.lt.u32.totalorder %s17698_s18, %s18635_s7 }
  0x76   :  { %p17704_p8 = pnand %p17702_p7, %p17699_p6 }
  0x78   :  { %17707 = shalt.err (!%p17704_p8)
}
  0x79   :  { %s17708_s11 = scalar_lea.vmem %s39_s28, 256  ;;  %p17713_p10 = scmp.lt.s32.totalorder %s39_s28, %s39_s28 }
  0x7a   :  { %p17709_p9 = scmp.ne.s32.totalorder %s39_s28, %s17708_s11  ;;  %p17714_p11 = scmp.lt.s32.totalorder %s17708_s11, %s17708_s11 }
  0x7c   :  { %p17715_p12 = por %p17714_p11, %p17713_p10 }
  0x7e   :  { %p17716_p13 = pnand %p17715_p12, %p17709_p9 }
  0x80   :  { %17719 = shalt.err (!%p17716_p13)
}
  0x81   :  { %41 = dma.hbm_to_vmem [thread:$0]  %s18635_s7, 256, %s39_s28, [#allocation3]  }
  0x82   :  { %s17720_s26 = scalar_lea.hbm %s18618_s2, 32768 }
  0x83   :  { %p17721_p0 = scmp.ne.s32.totalorder %s18618_s2, %s17720_s26  ;;  %p17724_p1 = scmp.lt.u32.totalorder %s17720_s26, %s18618_s2 }
  0x85   :  { %p17726_p2 = pnand %p17724_p1, %p17721_p0 }
  0x87   :  { %17729 = shalt.err (!%p17726_p2)
}
  0x88   :  { %s17730_s29 = scalar_lea.vmem %s18138_s1, 32768  ;;  %p17735_p4 = scmp.lt.s32.totalorder %s18138_s1, %s18138_s1 }
  0x89   :  { %p17731_p3 = scmp.ne.s32.totalorder %s18138_s1, %s17730_s29  ;;  %p17736_p5 = scmp.lt.s32.totalorder %s17730_s29, %s17730_s29 }
  0x8b   :  { %p17737_p6 = por %p17736_p5, %p17735_p4 }
  0x8d   :  { %p17738_p7 = pnand %p17737_p6, %p17731_p3 }
  0x8f   :  { %17741 = shalt.err (!%p17738_p7)
}
  0x90   :  { %s17968_s28 = smov 512   ;;  %s17969_s22 = smov 32  }
  0x91   :  { %63 = dma.hbm_to_vmem [thread:$0]  %s18618_s2, 32768, %s18138_s1, [#allocation6], %s17968_s28, %s17968_s28, %s17969_s22  }
  0x92   :  { %s17970_s18 = smov [#allocation10]   ;;  %s17971_s19 = smov [#allocation13]  }
  0x93   :  { %s79_s17 = sshll.u32 %s17970_s18, 4  ;;  %s101_s20 = sshll.u32 %s17971_s19, 4  ;;  %s80_s17 = int_to_ptr.vmem [resolvable:$true] %s79_s17  ;;  %s18172_s20 = int_to_ptr.vmem [resolvable:$true] %s101_s20 }
  0x94   :  { %s17742_s27 = scalar_lea.hbm %s18620_s4, 65536 }
  0x95   :  { %p17743_p8 = scmp.ne.s32.totalorder %s18620_s4, %s17742_s27  ;;  %p17746_p9 = scmp.lt.u32.totalorder %s17742_s27, %s18620_s4 }
  0x97   :  { %p17748_p10 = pnand %p17746_p9, %p17743_p8 }
  0x99   :  { %17751 = shalt.err (!%p17748_p10)
}
  0x9a   :  { %s17752_s2 = scalar_lea.vmem %s80_s17, 65536  ;;  %p17757_p12 = scmp.lt.s32.totalorder %s80_s17, %s80_s17 }
  0x9b   :  { %p17753_p11 = scmp.ne.s32.totalorder %s80_s17, %s17752_s2  ;;  %p17758_p13 = scmp.lt.s32.totalorder %s17752_s2, %s17752_s2 }
  0x9d   :  { %p17759_p0 = por %p17758_p13, %p17757_p12 }
  0x9f   :  { %p17760_p1 = pnand %p17759_p0, %p17753_p11 }
  0xa1   :  { %17763 = shalt.err (!%p17760_p1)
}
  0xa2   :  { %85 = dma.hbm_to_vmem [thread:$0]  %s18620_s4, 65536, %s80_s17, [#allocation9], %s17968_s28, %s17968_s28, %s17969_s22  }
  0xa3   :  { %s17764_s24 = scalar_lea.hbm %s18622_s6, 65536 }
  0xa4   :  { %p17765_p2 = scmp.ne.s32.totalorder %s18622_s6, %s17764_s24  ;;  %p17768_p3 = scmp.lt.u32.totalorder %s17764_s24, %s18622_s6 }
  0xa6   :  { %p17770_p4 = pnand %p17768_p3, %p17765_p2 }
  0xa8   :  { %17773 = shalt.err (!%p17770_p4)
}
  0xa9   :  { %s17774_s19 = scalar_lea.vmem %s18172_s20, 65536  ;;  %p17779_p6 = scmp.lt.s32.totalorder %s18172_s20, %s18172_s20 }
  0xaa   :  { %p17775_p5 = scmp.ne.s32.totalorder %s18172_s20, %s17774_s19  ;;  %p17780_p7 = scmp.lt.s32.totalorder %s17774_s19, %s17774_s19 }
  0xac   :  { %p17781_p8 = por %p17780_p7, %p17779_p6 }
  0xae   :  { %p17782_p9 = pnand %p17781_p8, %p17775_p5 }
  0xb0   :  { %17785 = shalt.err (!%p17782_p9)
}
  0xb1   :  { %107 = dma.hbm_to_vmem [thread:$0]  %s18622_s6, 65536, %s18172_s20, [#allocation12], %s17968_s28, %s17968_s28, %s17969_s22  }
  0xb2   :  { %s17972_s21 = smov [#allocation16]   ;;  %s17786_s0 = scalar_lea.hbm %s18624_s8, 32768 }
  0xb3   :  { %s123_s11 = sshll.u32 %s17972_s21, 4  ;;  %p17787_p10 = scmp.ne.s32.totalorder %s18624_s8, %s17786_s0  ;;  %s124_s11 = int_to_ptr.vmem [resolvable:$true] %s123_s11 }
  0xb4   :  { %p17790_p11 = scmp.lt.u32.totalorder %s17786_s0, %s18624_s8 }
  0xb6   :  { %p17792_p12 = pnand %p17790_p11, %p17787_p10 }
  0xb8   :  { %17795 = shalt.err (!%p17792_p12)
}
  0xb9   :  { %s17796_s3 = scalar_lea.vmem %s124_s11, 32768  ;;  %p17801_p0 = scmp.lt.s32.totalorder %s124_s11, %s124_s11 }
  0xba   :  { %p17797_p13 = scmp.ne.s32.totalorder %s124_s11, %s17796_s3  ;;  %p17802_p1 = scmp.lt.s32.totalorder %s17796_s3, %s17796_s3 }
  0xbc   :  { %p17803_p2 = por %p17802_p1, %p17801_p0 }
  0xbe   :  { %p17804_p3 = pnand %p17803_p2, %p17797_p13 }
  0xc0   :  { %17807 = shalt.err (!%p17804_p3)
}
  0xc1   :  { %s17973_s6 = smov 256   ;;  %s17974_s20 = smov 16  }
  0xc2   :  { %129 = dma.hbm_to_vmem [thread:$0]  %s18624_s8, 32768, %s124_s11, [#allocation15], %s17973_s6, %s17973_s6, %s17974_s20  }
  0xc3   :  { %s17975_s24 = smov [#allocation19]   ;;  %s17976_s30 = smov [#allocation22]  }
  0xc4   :  { %s145_s29 = sshll.u32 %s17975_s24, 4  ;;  %s167_s7 = sshll.u32 %s17976_s30, 4  ;;  %s146_s29 = int_to_ptr.vmem [resolvable:$true] %s145_s29  ;;  %s168_s7 = int_to_ptr.vmem [resolvable:$true] %s167_s7 }
  0xc5   :  { %s17808_s4 = scalar_lea.hbm %s18626_s10, 16384 }
  0xc6   :  { %p17809_p4 = scmp.ne.s32.totalorder %s18626_s10, %s17808_s4  ;;  %p17812_p5 = scmp.lt.u32.totalorder %s17808_s4, %s18626_s10 }
  0xc8   :  { %p17814_p6 = pnand %p17812_p5, %p17809_p4 }
  0xca   :  { %17817 = shalt.err (!%p17814_p6)
}
  0xcb   :  { %s17818_s8 = scalar_lea.vmem %s146_s29, 16384  ;;  %p17823_p8 = scmp.lt.s32.totalorder %s146_s29, %s146_s29 }
  0xcc   :  { %p17819_p7 = scmp.ne.s32.totalorder %s146_s29, %s17818_s8  ;;  %p17824_p9 = scmp.lt.s32.totalorder %s17818_s8, %s17818_s8 }
  0xce   :  { %p17825_p10 = por %p17824_p9, %p17823_p8 }
  0xd0   :  { %p17826_p11 = pnand %p17825_p10, %p17819_p7 }
  0xd2   :  { %17829 = shalt.err (!%p17826_p11)
}
  0xd3   :  { %151 = dma.hbm_to_vmem [thread:$0]  %s18626_s10, 16384, %s146_s29, [#allocation18], %s17968_s28, %s17968_s28, %s17969_s22  }
  0xd4   :  { %s17830_s2 = scalar_lea.hbm %s18628_s12, 32768 }
  0xd5   :  { %p17831_p12 = scmp.ne.s32.totalorder %s18628_s12, %s17830_s2  ;;  %p17834_p13 = scmp.lt.u32.totalorder %s17830_s2, %s18628_s12 }
  0xd7   :  { %p17836_p0 = pnand %p17834_p13, %p17831_p12 }
  0xd9   :  { %17839 = shalt.err (!%p17836_p0)
}
  0xda   :  { %s17840_s24 = scalar_lea.vmem %s168_s7, 32768  ;;  %p17845_p2 = scmp.lt.s32.totalorder %s168_s7, %s168_s7 }
  0xdb   :  { %p17841_p1 = scmp.ne.s32.totalorder %s168_s7, %s17840_s24  ;;  %p17846_p3 = scmp.lt.s32.totalorder %s17840_s24, %s17840_s24 }
  0xdd   :  { %p17847_p4 = por %p17846_p3, %p17845_p2 }
  0xdf   :  { %p17848_p5 = pnand %p17847_p4, %p17841_p1 }
  0xe1   :  { %17851 = shalt.err (!%p17848_p5)
}
  0xe2   :  { %173 = dma.hbm_to_vmem [thread:$0]  %s18628_s12, 32768, %s168_s7, [#allocation21], %s17973_s6, %s17973_s6, %s17974_s20  }
  0xe3   :  { %s17977_s22 = smov [#allocation23]   ;;  %s17852_s19 = scalar_lea.hbm %s18629_s13, 64 }
  0xe4   :  { %s180_s29 = sshll.u32 %s17977_s22, 4  ;;  %p17853_p6 = scmp.ne.s32.totalorder %s18629_s13, %s17852_s19  ;;  %s181_s29 = int_to_ptr.vmem [resolvable:$true] %s180_s29 }
  0xe5   :  { %p17856_p7 = scmp.lt.u32.totalorder %s17852_s19, %s18629_s13 }
  0xe7   :  { %p17858_p8 = pnand %p17856_p7, %p17853_p6 }
  0xe9   :  { %17861 = shalt.err (!%p17858_p8)
}
  0xea   :  { %s17862_s5 = scalar_lea.vmem %s181_s29, 64  ;;  %p17867_p10 = scmp.lt.s32.totalorder %s181_s29, %s181_s29 }
  0xeb   :  { %p17863_p9 = scmp.ne.s32.totalorder %s181_s29, %s17862_s5  ;;  %p17868_p11 = scmp.lt.s32.totalorder %s17862_s5, %s17862_s5 }
  0xed   :  { %p17869_p12 = por %p17868_p11, %p17867_p10 }
  0xef   :  { %p17870_p13 = pnand %p17869_p12, %p17863_p9 }
  0xf1   :  { %17873 = shalt.err (!%p17870_p13)
}
  0xf2   :  { %183 = dma.hbm_to_vmem [thread:$0]  %s18629_s13, 64, %s181_s29, [#allocation24]  }
  0xf3   :  { %17940 = dma.done.wait [#allocation3], 256  }
  0xf4   :  { %17941 = vsyncadd [#allocation3], 4294967040 }
  0xf5   :  { %17942 = dma.done.wait [#allocation6], 32896  }
  0xf6   :  { %17943 = vsyncadd [#allocation6], 4294934400 }
  0xf7   :  { %17944 = dma.done.wait [#allocation9], 65664  }
  0xf8   :  { %17945 = vsyncadd [#allocation9], 4294901632 }
  0xf9   :  { %17946 = dma.done.wait [#allocation12], 65664  }
  0xfa   :  { %17947 = vsyncadd [#allocation12], 4294901632 }
  0xfb   :  { %17948 = dma.done.wait [#allocation15], 32896  }
  0xfc   :  { %17949 = vsyncadd [#allocation15], 4294934400 }
  0xfd   :  { %17950 = dma.done.wait [#allocation18], 16448  }
  0xfe   :  { %17951 = vsyncadd [#allocation18], 4294950848 }
  0xff   :  { %17952 = dma.done.wait [#allocation21], 32896  }
 0x100   :  { %17953 = vsyncadd [#allocation21], 4294934400 }
 0x101   :  { %17954 = dma.done.wait [#allocation24], 64  }
 0x102   :  { %17955 = vsyncadd [#allocation24], 4294967232  ;;  %v228_v0 = vld [vmem:[#allocation7] sm:$0xff]  ;;  %v229_v2 = vld [vmem:[#allocation7 + $0x8] sm:$0xff]  ;;  %s17978_s13 = smov [#allocation26]  }
 0x103   :  { %v232_v1 = vld [vmem:[#allocation7 + $0x20] sm:$0xff]  ;;  %v233_v4 = vld [vmem:[#allocation7 + $0x28] sm:$0xff]  ;;  %s14599_s20 = sshll.u32 %s17978_s13, 4  ;;  %s14600_s20 = int_to_ptr.vmem [resolvable:$true] %s14599_s20 }
 0x104   :  { %v14633_v3 = vcombine.high %v228_v0, %v232_v1  ;;  %v14632_v5 = vcombine.low %v228_v0, %v232_v1  ;;  %v236_v6 = vld [vmem:[#allocation7 + $0x40] sm:$0xff]  ;;  %v14635_v8 = vcombine.high %v229_v2, %v233_v4  ;;  %v14634_v9 = vcombine.low %v229_v2, %v233_v4  ;;  %v237_v11 = vld [vmem:[#allocation7 + $0x48] sm:$0xff]  ;;  %s17874_s7 = scalar_lea.vmem %s14600_s20, 128  ;;  %p17879_p1 = scmp.lt.s32.totalorder %s14600_s20, %s14600_s20 }
 0x105   :  { %v240_v7 = vld [vmem:[#allocation7 + $0x60] sm:$0xff]  ;;  %v241_v12 = vld [vmem:[#allocation7 + $0x68] sm:$0xff]  ;;  %p17875_p0 = scmp.ne.s32.totalorder %s14600_s20, %s17874_s7  ;;  %p17880_p2 = scmp.lt.s32.totalorder %s17874_s7, %s17874_s7 }
 0x106   :  { %v14641_v10 = vcombine.high %v236_v6, %v240_v7  ;;  %v244_v13 = vld [vmem:[#allocation7 + $0x80] sm:$0xff]  ;;  %1816 = vmatprep.subr.bf16.mxu0 %v14633_v3  ;;  %v14643_v14 = vcombine.high %v237_v11, %v241_v12  ;;  %v245_v16 = vld [vmem:[#allocation7 + $0x88] sm:$0xff]  ;;  %1898 = vmatprep.subr.bf16.mxu1 %v14635_v8  ;;  %v14640_v18 = vcombine.low %v236_v6, %v240_v7 }
 0x107   :  { %v248_v15 = vld [vmem:[#allocation7 + $0xa0] sm:$0xff]  ;;  %v249_v17 = vld [vmem:[#allocation7 + $0xa8] sm:$0xff]  ;;  %1817 = vmatpush1.bf16.msra.mxu0 %v14632_v5  ;;  %1899 = vmatpush1.bf16.msra.mxu1 %v14634_v9  ;;  %v14642_v19 = vcombine.low %v237_v11, %v241_v12  ;;  %p17881_p3 = por %p17880_p2, %p17879_p1 }
 0x108   :  { %1818 = vmatprep.subr.bf16.mxu0 %v14641_v10  ;;  %v14649_v20 = vcombine.high %v244_v13, %v248_v15  ;;  %1900 = vmatprep.subr.bf16.mxu1 %v14643_v14  ;;  %v14651_v21 = vcombine.high %v245_v16, %v249_v17  ;;  %v252_v22 = vld [vmem:[#allocation7 + $0xc0] sm:$0xff]  ;;  %v253_v24 = vld [vmem:[#allocation7 + $0xc8] sm:$0xff]  ;;  %v14648_v26 = vcombine.low %v244_v13, %v248_v15 }
 0x109   :  { %v256_v23 = vld [vmem:[#allocation7 + $0xe0] sm:$0xff]  ;;  %v257_v25 = vld [vmem:[#allocation7 + $0xe8] sm:$0xff]  ;;  %v14650_v27 = vcombine.low %v245_v16, %v249_v17  ;;  %p17882_p4 = pnand %p17881_p3, %p17875_p0 }
 0x10a   :  { %v14657_v28 = vcombine.high %v252_v22, %v256_v23  ;;  %v14659_v29 = vcombine.high %v253_v24, %v257_v25  ;;  %v260_v30 = vld [vmem:[#allocation7 + $0x100] sm:$0xff]  ;;  %v261_v32 = vld [vmem:[#allocation7 + $0x108] sm:$0xff]  ;;  %v14656_v34 = vcombine.low %v252_v22, %v256_v23  ;;  %v14658_v35 = vcombine.low %v253_v24, %v257_v25 }
 0x10b   :  { %1819 = vmatpush1.bf16.msra.mxu0 %v14640_v18  ;;  %1901 = vmatpush1.bf16.msra.mxu1 %v14642_v19  ;;  %v264_v31 = vld [vmem:[#allocation7 + $0x120] sm:$0xff]  ;;  %v265_v33 = vld [vmem:[#allocation7 + $0x128] sm:$0xff] }
 0x10c   :  { %1820 = vmatprep.subr.bf16.mxu0 %v14649_v20  ;;  %1902 = vmatprep.subr.bf16.mxu1 %v14651_v21  ;;  %v14665_v36 = vcombine.high %v260_v30, %v264_v31  ;;  %v14667_v37 = vcombine.high %v261_v32, %v265_v33  ;;  %v268_v38 = vld [vmem:[#allocation7 + $0x140] sm:$0xff]  ;;  %v269_v40 = vld [vmem:[#allocation7 + $0x148] sm:$0xff]  ;;  %v14664_v42 = vcombine.low %v260_v30, %v264_v31 }
 0x10d   :  { %v272_v39 = vld [vmem:[#allocation7 + $0x160] sm:$0xff]  ;;  %v273_v41 = vld [vmem:[#allocation7 + $0x168] sm:$0xff]  ;;  %v14666_v43 = vcombine.low %v261_v32, %v265_v33 }
 0x10e   :  { %v14673_v44 = vcombine.high %v268_v38, %v272_v39  ;;  %v14675_v45 = vcombine.high %v269_v40, %v273_v41  ;;  %v276_v46 = vld [vmem:[#allocation7 + $0x180] sm:$0xff]  ;;  %v277_v48 = vld [vmem:[#allocation7 + $0x188] sm:$0xff]  ;;  %v14672_v50 = vcombine.low %v268_v38, %v272_v39  ;;  %v14674_v51 = vcombine.low %v269_v40, %v273_v41 }
 0x10f   :  { %1821 = vmatpush1.bf16.msra.mxu0 %v14648_v26  ;;  %1903 = vmatpush1.bf16.msra.mxu1 %v14650_v27  ;;  %v280_v47 = vld [vmem:[#allocation7 + $0x1a0] sm:$0xff]  ;;  %v281_v49 = vld [vmem:[#allocation7 + $0x1a8] sm:$0xff] }
 0x110   :  { %1822 = vmatprep.subr.bf16.mxu0 %v14657_v28  ;;  %1904 = vmatprep.subr.bf16.mxu1 %v14659_v29  ;;  %v14681_v52 = vcombine.high %v276_v46, %v280_v47  ;;  %v18266_v53 = vld [vmem:[#allocation2] sm:$0xff]  ;;  %v14683_v54 = vcombine.high %v277_v48, %v281_v49  ;;  %v284_v55 = vld [vmem:[#allocation7 + $0x1c0] sm:$0xff]  ;;  %v14680_v60 = vcombine.low %v276_v46, %v280_v47 }
 0x111   :  { %v288_v56 = vld [vmem:[#allocation7 + $0x1e0] sm:$0xff]  ;;  %v486_v57 = vcombine.high %v18266_v53, %v18266_v53  ;;  %v285_v58 = vld [vmem:[#allocation7 + $0x1c8] sm:$0xff]  ;;  %v14682_v62 = vcombine.low %v277_v48, %v281_v49 }
 0x112   :  { %v289_v59 = vld [vmem:[#allocation7 + $0x1e8] sm:$0xff]  ;;  %v14689_v63 = vcombine.high %v284_v55, %v288_v56  ;;  %v292_v1 = vld [vmem:[#allocation7 + $0x200] sm:$0xff]  ;;  %v14688_v5 = vcombine.low %v284_v55, %v288_v56 }
 0x113   :  { %1823 = vmatpush1.bf16.msra.mxu0 %v14656_v34  ;;  %1905 = vmatpush1.bf16.msra.mxu1 %v14658_v35  ;;  %v18270_v61 = vpack.c.bf16 %v486_v57, %v486_v57  ;;  %v14691_v0 = vcombine.high %v285_v58, %v289_v59  ;;  %v296_v2 = vld [vmem:[#allocation7 + $0x220] sm:$0xff]  ;;  %v293_v3 = vld [vmem:[#allocation7 + $0x208] sm:$0xff]  ;;  %v14690_v6 = vcombine.low %v285_v58, %v289_v59 }
 0x114   :  { %1824 = vmatprep.subr.bf16.mxu0 %v14665_v36  ;;  %1906 = vmatprep.subr.bf16.mxu1 %v14667_v37  ;;  %v297_v4 = vld [vmem:[#allocation7 + $0x228] sm:$0xff]  ;;  %v14697_v7 = vcombine.high %v292_v1, %v296_v2  ;;  %v300_v9 = vld [vmem:[#allocation7 + $0x240] sm:$0xff]  ;;  %v14696_v13 = vcombine.low %v292_v1, %v296_v2 }
 0x115   :  { %1848 = vmatprep.mubr.bf16.mxu0 %v18270_v61  ;;  %1930 = vmatprep.mubr.bf16.mxu1 %v18270_v61  ;;  %v14699_v8 = vcombine.high %v293_v3, %v297_v4  ;;  %v304_v10 = vld [vmem:[#allocation7 + $0x260] sm:$0xff]  ;;  %v301_v11 = vld [vmem:[#allocation7 + $0x248] sm:$0xff]  ;;  %v14698_v14 = vcombine.low %v293_v3, %v297_v4 }
 0x116   :  { %v305_v12 = vld [vmem:[#allocation7 + $0x268] sm:$0xff]  ;;  %v14705_v15 = vcombine.high %v300_v9, %v304_v10  ;;  %v308_v17 = vld [vmem:[#allocation7 + $0x280] sm:$0xff]  ;;  %v14704_v21 = vcombine.low %v300_v9, %v304_v10 }
 0x117   :  { %1825 = vmatpush1.bf16.msra.mxu0 %v14664_v42  ;;  %1907 = vmatpush1.bf16.msra.mxu1 %v14666_v43  ;;  %v14707_v16 = vcombine.high %v301_v11, %v305_v12  ;;  %v312_v18 = vld [vmem:[#allocation7 + $0x2a0] sm:$0xff]  ;;  %v309_v19 = vld [vmem:[#allocation7 + $0x288] sm:$0xff]  ;;  %v14706_v22 = vcombine.low %v301_v11, %v305_v12 }
 0x118   :  { %1826 = vmatprep.subr.bf16.mxu0 %v14673_v44  ;;  %1908 = vmatprep.subr.bf16.mxu1 %v14675_v45  ;;  %v313_v20 = vld [vmem:[#allocation7 + $0x2a8] sm:$0xff]  ;;  %v14713_v23 = vcombine.high %v308_v17, %v312_v18  ;;  %v316_v25 = vld [vmem:[#allocation7 + $0x2c0] sm:$0xff]  ;;  %v14712_v29 = vcombine.low %v308_v17, %v312_v18 }
 0x119   :  { %v14715_v24 = vcombine.high %v309_v19, %v313_v20  ;;  %v320_v26 = vld [vmem:[#allocation7 + $0x2e0] sm:$0xff]  ;;  %v317_v27 = vld [vmem:[#allocation7 + $0x2c8] sm:$0xff]  ;;  %v14714_v30 = vcombine.low %v309_v19, %v313_v20 }
 0x11a   :  { %v321_v28 = vld [vmem:[#allocation7 + $0x2e8] sm:$0xff]  ;;  %v14721_v31 = vcombine.high %v316_v25, %v320_v26  ;;  %v324_v33 = vld [vmem:[#allocation7 + $0x300] sm:$0xff]  ;;  %v14720_v37 = vcombine.low %v316_v25, %v320_v26 }
 0x11b   :  { %1827 = vmatpush1.bf16.msra.mxu0 %v14672_v50  ;;  %1909 = vmatpush1.bf16.msra.mxu1 %v14674_v51  ;;  %v14723_v32 = vcombine.high %v317_v27, %v321_v28  ;;  %v328_v34 = vld [vmem:[#allocation7 + $0x320] sm:$0xff]  ;;  %v325_v35 = vld [vmem:[#allocation7 + $0x308] sm:$0xff]  ;;  %v14722_v38 = vcombine.low %v317_v27, %v321_v28 }
 0x11c   :  { %1828 = vmatprep.subr.bf16.mxu0 %v14681_v52  ;;  %1910 = vmatprep.subr.bf16.mxu1 %v14683_v54  ;;  %v329_v36 = vld [vmem:[#allocation7 + $0x328] sm:$0xff]  ;;  %v14729_v39 = vcombine.high %v324_v33, %v328_v34  ;;  %v332_v41 = vld [vmem:[#allocation7 + $0x340] sm:$0xff]  ;;  %v14728_v45 = vcombine.low %v324_v33, %v328_v34 }
 0x11d   :  { %v14731_v40 = vcombine.high %v325_v35, %v329_v36  ;;  %v336_v42 = vld [vmem:[#allocation7 + $0x360] sm:$0xff]  ;;  %v333_v43 = vld [vmem:[#allocation7 + $0x348] sm:$0xff]  ;;  %v14730_v46 = vcombine.low %v325_v35, %v329_v36 }
 0x11e   :  { %v337_v44 = vld [vmem:[#allocation7 + $0x368] sm:$0xff]  ;;  %v14737_v47 = vcombine.high %v332_v41, %v336_v42  ;;  %v340_v49 = vld [vmem:[#allocation7 + $0x380] sm:$0xff]  ;;  %v14736_v54 = vcombine.low %v332_v41, %v336_v42 }
 0x11f   :  { %1829 = vmatpush1.bf16.msra.mxu0 %v14680_v60  ;;  %1911 = vmatpush1.bf16.msra.mxu1 %v14682_v62  ;;  %v14739_v48 = vcombine.high %v333_v43, %v337_v44  ;;  %v344_v50 = vld [vmem:[#allocation7 + $0x3a0] sm:$0xff]  ;;  %v341_v51 = vld [vmem:[#allocation7 + $0x388] sm:$0xff]  ;;  %v14738_v55 = vcombine.low %v333_v43, %v337_v44 }
 0x120   :  { %1830 = vmatprep.subr.bf16.mxu0 %v14689_v63  ;;  %1912 = vmatprep.subr.bf16.mxu1 %v14691_v0  ;;  %v345_v52 = vld [vmem:[#allocation7 + $0x3a8] sm:$0xff]  ;;  %v14745_v56 = vcombine.high %v340_v49, %v344_v50  ;;  %v348_v58 = vld [vmem:[#allocation7 + $0x3c0] sm:$0xff]  ;;  %v14744_v63 = vcombine.low %v340_v49, %v344_v50 }
 0x121   :  { %v14747_v57 = vcombine.high %v341_v51, %v345_v52  ;;  %v352_v59 = vld [vmem:[#allocation7 + $0x3e0] sm:$0xff]  ;;  %v349_v60 = vld [vmem:[#allocation7 + $0x3c8] sm:$0xff]  ;;  %v14746_v0 = vcombine.low %v341_v51, %v345_v52 }
 0x122   :  { %v353_v62 = vld [vmem:[#allocation7 + $0x3e8] sm:$0xff]  ;;  %v14753_v1 = vcombine.high %v348_v58, %v352_v59  ;;  %v356_v3 = vld [vmem:[#allocation7 + $0x400] sm:$0xff] }
 0x123   :  { %1831 = vmatpush1.bf16.msra.mxu0 %v14688_v5  ;;  %1913 = vmatpush1.bf16.msra.mxu1 %v14690_v6  ;;  %v14755_v2 = vcombine.high %v349_v60, %v353_v62  ;;  %v360_v4 = vld [vmem:[#allocation7 + $0x420] sm:$0xff]  ;;  %v357_v5 = vld [vmem:[#allocation7 + $0x408] sm:$0xff]  ;;  %v14754_v9 = vcombine.low %v349_v60, %v353_v62 }
 0x124   :  { %1832 = vmatprep.subr.bf16.mxu0 %v14697_v7  ;;  %1914 = vmatprep.subr.bf16.mxu1 %v14699_v8  ;;  %v361_v6 = vld [vmem:[#allocation7 + $0x428] sm:$0xff]  ;;  %v18274_v7 = vld [vmem:[#allocation2 + $0x8] sm:$0xff]  ;;  %v14752_v8 = vcombine.low %v348_v58, %v352_v59  ;;  %v14761_v10 = vcombine.high %v356_v3, %v360_v4  ;;  %v364_v12 = vld [vmem:[#allocation7 + $0x440] sm:$0xff]  ;;  %v14760_v18 = vcombine.low %v356_v3, %v360_v4 }
 0x125   :  { %v14763_v11 = vcombine.high %v357_v5, %v361_v6  ;;  %v369_v17 = vld [vmem:[#allocation7 + $0x468] sm:$0xff]  ;;  %v14762_v19 = vcombine.low %v357_v5, %v361_v6 }
 0x126   :  { %v377_v25 = vld [vmem:[#allocation7 + $0x4a8] sm:$0xff] }
 0x127   :  { %1833 = vmatpush1.bf16.msra.mxu0 %v14696_v13  ;;  %1915 = vmatpush1.bf16.msra.mxu1 %v14698_v14  ;;  %v368_v13 = vld [vmem:[#allocation7 + $0x460] sm:$0xff]  ;;  %v487_v14 = vcombine.high %v18274_v7, %v18274_v7  ;;  %v385_v33 = vld [vmem:[#allocation7 + $0x4e8] sm:$0xff] }
 0x128   :  { %1834 = vmatprep.subr.bf16.mxu0 %v14705_v15  ;;  %1916 = vmatprep.subr.bf16.mxu1 %v14707_v16  ;;  %v18280_v15 = vpack.c.bf16 %v18266_v53, %v18266_v53  ;;  %v365_v16 = vld [vmem:[#allocation7 + $0x448] sm:$0xff]  ;;  %v14769_v20 = vcombine.high %v364_v12, %v368_v13  ;;  %v14768_v53 = vcombine.low %v364_v12, %v368_v13 }
 0x129   :  { %v18282_v26 = vpack.c.bf16 %v487_v14, %v487_v14  ;;  %v14770_v27 = vcombine.low %v365_v16, %v369_v17  ;;  %v393_v41 = vld [vmem:[#allocation7 + $0x528] sm:$0xff] }
 0x12a   :  { %v401_v49 = vld [vmem:[#allocation7 + $0x568] sm:$0xff] }
 0x12b   :  { %1835 = vmatpush1.bf16.msra.mxu0 %v14704_v21  ;;  %1917 = vmatpush1.bf16.msra.mxu1 %v14706_v22  ;;  %v372_v21 = vld [vmem:[#allocation7 + $0x480] sm:$0xff]  ;;  %v409_v58 = vld [vmem:[#allocation7 + $0x5a8] sm:$0xff] }
 0x12c   :  { %1836 = vmatprep.subr.bf16.mxu0 %v14713_v23  ;;  %1918 = vmatprep.subr.bf16.mxu1 %v14715_v24  ;;  %v376_v22 = vld [vmem:[#allocation7 + $0x4a0] sm:$0xff]  ;;  %v373_v23 = vld [vmem:[#allocation7 + $0x488] sm:$0xff]  ;;  %v14771_v24 = vcombine.high %v365_v16, %v369_v17 }
 0x12d   :  { %v14777_v28 = vcombine.high %v372_v21, %v376_v22  ;;  %v14776_v34 = vcombine.low %v372_v21, %v376_v22  ;;  %v14778_v35 = vcombine.low %v373_v23, %v377_v25  ;;  %v417_v3 = vld [vmem:[#allocation7 + $0x5e8] sm:$0xff]  ;;  %v428_v17 = vld [vmem:[#allocation7 + $0x640] sm:$0xff] }
 0x12e   :  { %v425_v12 = vld [vmem:[#allocation7 + $0x628] sm:$0xff] }
 0x12f   :  { %1837 = vmatpush1.bf16.msra.mxu0 %v14712_v29  ;;  %1919 = vmatpush1.bf16.msra.mxu1 %v14714_v30  ;;  %v380_v29 = vld [vmem:[#allocation7 + $0x4c0] sm:$0xff]  ;;  %v433_v21 = vld [vmem:[#allocation7 + $0x668] sm:$0xff] }
 0x130   :  { %1838 = vmatprep.subr.bf16.mxu0 %v14721_v31  ;;  %1920 = vmatprep.subr.bf16.mxu1 %v14723_v32  ;;  %v384_v30 = vld [vmem:[#allocation7 + $0x4e0] sm:$0xff]  ;;  %v381_v31 = vld [vmem:[#allocation7 + $0x4c8] sm:$0xff]  ;;  %v14779_v32 = vcombine.high %v373_v23, %v377_v25 }
 0x131   :  { %v14785_v36 = vcombine.high %v380_v29, %v384_v30  ;;  %v14784_v42 = vcombine.low %v380_v29, %v384_v30  ;;  %v14786_v43 = vcombine.low %v381_v31, %v385_v33  ;;  %v436_v25 = vld [vmem:[#allocation7 + $0x680] sm:$0xff]  ;;  %v441_v29 = vld [vmem:[#allocation7 + $0x6a8] sm:$0xff] }
 0x133   :  { %1839 = vmatpush1.bf16.msra.mxu0 %v14720_v37  ;;  %1921 = vmatpush1.bf16.msra.mxu1 %v14722_v38  ;;  %v388_v37 = vld [vmem:[#allocation7 + $0x500] sm:$0xff] }
 0x134   :  { %1840 = vmatprep.subr.bf16.mxu0 %v14729_v39  ;;  %1922 = vmatprep.subr.bf16.mxu1 %v14731_v40  ;;  %v392_v38 = vld [vmem:[#allocation7 + $0x520] sm:$0xff]  ;;  %v389_v39 = vld [vmem:[#allocation7 + $0x508] sm:$0xff]  ;;  %v14787_v40 = vcombine.high %v381_v31, %v385_v33 }
 0x135   :  { %v14793_v44 = vcombine.high %v388_v37, %v392_v38  ;;  %v14792_v50 = vcombine.low %v388_v37, %v392_v38  ;;  %v14794_v51 = vcombine.low %v389_v39, %v393_v41  ;;  %v444_v33 = vld [vmem:[#allocation7 + $0x6c0] sm:$0xff]  ;;  %v449_v37 = vld [vmem:[#allocation7 + $0x6e8] sm:$0xff] }
 0x137   :  { %1841 = vmatpush1.bf16.msra.mxu0 %v14728_v45  ;;  %1923 = vmatpush1.bf16.msra.mxu1 %v14730_v46  ;;  %v396_v45 = vld [vmem:[#allocation7 + $0x540] sm:$0xff] }
 0x138   :  { %1842 = vmatprep.subr.bf16.mxu0 %v14737_v47  ;;  %1924 = vmatprep.subr.bf16.mxu1 %v14739_v48  ;;  %v400_v46 = vld [vmem:[#allocation7 + $0x560] sm:$0xff]  ;;  %v397_v47 = vld [vmem:[#allocation7 + $0x548] sm:$0xff]  ;;  %v14795_v48 = vcombine.high %v389_v39, %v393_v41 }
 0x139   :  { %v14801_v52 = vcombine.high %v396_v45, %v400_v46  ;;  %v14800_v59 = vcombine.low %v396_v45, %v400_v46  ;;  %v14802_v60 = vcombine.low %v397_v47, %v401_v49  ;;  %v452_v41 = vld [vmem:[#allocation7 + $0x700] sm:$0xff]  ;;  %v457_v45 = vld [vmem:[#allocation7 + $0x728] sm:$0xff] }
 0x13b   :  { %1843 = vmatpush1.bf16.msra.mxu0 %v14736_v54  ;;  %1925 = vmatpush1.bf16.msra.mxu1 %v14738_v55  ;;  %v404_v54 = vld [vmem:[#allocation7 + $0x580] sm:$0xff] }
 0x13c   :  { %1844 = vmatprep.subr.bf16.mxu0 %v14745_v56  ;;  %1926 = vmatprep.subr.bf16.mxu1 %v14747_v57  ;;  %v408_v55 = vld [vmem:[#allocation7 + $0x5a0] sm:$0xff]  ;;  %v405_v56 = vld [vmem:[#allocation7 + $0x588] sm:$0xff]  ;;  %v14803_v57 = vcombine.high %v397_v47, %v401_v49 }
 0x13d   :  { %v14809_v62 = vcombine.high %v404_v54, %v408_v55  ;;  %v14808_v4 = vcombine.low %v404_v54, %v408_v55  ;;  %v14810_v5 = vcombine.low %v405_v56, %v409_v58  ;;  %v460_v49 = vld [vmem:[#allocation7 + $0x740] sm:$0xff]  ;;  %v465_v54 = vld [vmem:[#allocation7 + $0x768] sm:$0xff] }
 0x13f   :  { %1845 = vmatpush1.bf16.msra.mxu0 %v14744_v63  ;;  %1927 = vmatpush1.bf16.msra.mxu1 %v14746_v0  ;;  %v412_v63 = vld [vmem:[#allocation7 + $0x5c0] sm:$0xff] }
 0x140   :  { %1846 = vmatprep.subr.bf16.mxu0 %v14753_v1  ;;  %1928 = vmatprep.subr.bf16.mxu1 %v14755_v2  ;;  %v416_v0 = vld [vmem:[#allocation7 + $0x5e0] sm:$0xff]  ;;  %v413_v1 = vld [vmem:[#allocation7 + $0x5c8] sm:$0xff]  ;;  %v14811_v2 = vcombine.high %v405_v56, %v409_v58 }
 0x141   :  { %v14817_v6 = vcombine.high %v412_v63, %v416_v0  ;;  %v14816_v13 = vcombine.low %v412_v63, %v416_v0  ;;  %v14818_v14 = vcombine.low %v413_v1, %v417_v3  ;;  %v468_v58 = vld [vmem:[#allocation7 + $0x780] sm:$0xff]  ;;  %v473_v63 = vld [vmem:[#allocation7 + $0x7a8] sm:$0xff] }
 0x143   :  { %1847 = vmatpush1.bf16.msra.mxu0 %v14752_v8  ;;  %1929 = vmatpush1.bf16.msra.mxu1 %v14754_v9  ;;  %v420_v8 = vld [vmem:[#allocation7 + $0x600] sm:$0xff] }
 0x144   :  { %1857 = vmatprep.subr.bf16.mxu0 %v14761_v10  ;;  %1939 = vmatprep.subr.bf16.mxu1 %v14763_v11  ;;  %v424_v9 = vld [vmem:[#allocation7 + $0x620] sm:$0xff]  ;;  %v421_v10 = vld [vmem:[#allocation7 + $0x608] sm:$0xff]  ;;  %v14819_v11 = vcombine.high %v413_v1, %v417_v3 }
 0x145   :  { %v14825_v16 = vcombine.high %v420_v8, %v424_v9  ;;  %v14824_v22 = vcombine.low %v420_v8, %v424_v9  ;;  %v14826_v23 = vcombine.low %v421_v10, %v425_v12  ;;  %v476_v3 = vld [vmem:[#allocation7 + $0x7c0] sm:$0xff]  ;;  %v481_v8 = vld [vmem:[#allocation7 + $0x7e8] sm:$0xff] }
 0x146   :  { %1849 = vmatmul.mubr.bf16.vlgmr.msra.gmra.mrb[0].mxu0 %v18280_v15  ;;  %1931 = vmatmul.mubr.bf16.vlgmr.msra.gmra.mrb[0].mxu1 %v18280_v15 }
 0x147   :  { %1858 = vmatpush1.bf16.msra.mxu0 %v14760_v18  ;;  %1940 = vmatpush1.bf16.msra.mxu1 %v14762_v19  ;;  %v432_v18 = vld [vmem:[#allocation7 + $0x660] sm:$0xff]  ;;  %v429_v19 = vld [vmem:[#allocation7 + $0x648] sm:$0xff] }
 0x148   :  { %1859 = vmatprep.subr.bf16.mxu0 %v14769_v20  ;;  %1941 = vmatprep.subr.bf16.mxu1 %v14771_v24  ;;  %v14827_v20 = vcombine.high %v421_v10, %v425_v12  ;;  %v14833_v24 = vcombine.high %v428_v17, %v432_v18  ;;  %v14832_v30 = vcombine.low %v428_v17, %v432_v18  ;;  %v230_v12 = vld [vmem:[#allocation7 + $0x10] sm:$0xff]  ;;  %v235_v17 = vld [vmem:[#allocation7 + $0x38] sm:$0xff] }
 0x149   :  { %1889 = vmatprep.mubr.bf16.mxu0 %v18282_v26  ;;  %1971 = vmatprep.mubr.bf16.mxu1 %v18282_v26  ;;  %v14834_v31 = vcombine.low %v429_v19, %v433_v21 }
 0x14b   :  { %1860 = vmatpush1.bf16.msra.mxu0 %v14768_v53  ;;  %1942 = vmatpush1.bf16.msra.mxu1 %v14770_v27  ;;  %v440_v53 = vld [vmem:[#allocation7 + $0x6a0] sm:$0xff]  ;;  %v437_v27 = vld [vmem:[#allocation7 + $0x688] sm:$0xff] }
 0x14c   :  { %1861 = vmatprep.subr.bf16.mxu0 %v14777_v28  ;;  %1943 = vmatprep.subr.bf16.mxu1 %v14779_v32  ;;  %v14835_v28 = vcombine.high %v429_v19, %v433_v21  ;;  %v14841_v32 = vcombine.high %v436_v25, %v440_v53  ;;  %v14840_v38 = vcombine.low %v436_v25, %v440_v53  ;;  %v238_v21 = vld [vmem:[#allocation7 + $0x50] sm:$0xff]  ;;  %v243_v25 = vld [vmem:[#allocation7 + $0x78] sm:$0xff] }
 0x14d   :  { %v14842_v39 = vcombine.low %v437_v27, %v441_v29  ;;  %v18290_v53 = vpack.c.bf16 %v18274_v7, %v18274_v7 }
 0x14f   :  { %1862 = vmatpush1.bf16.msra.mxu0 %v14776_v34  ;;  %1944 = vmatpush1.bf16.msra.mxu1 %v14778_v35  ;;  %v448_v34 = vld [vmem:[#allocation7 + $0x6e0] sm:$0xff]  ;;  %v445_v35 = vld [vmem:[#allocation7 + $0x6c8] sm:$0xff] }
 0x150   :  { %1863 = vmatprep.subr.bf16.mxu0 %v14785_v36  ;;  %1945 = vmatprep.subr.bf16.mxu1 %v14787_v40  ;;  %v14843_v36 = vcombine.high %v437_v27, %v441_v29  ;;  %v14849_v40 = vcombine.high %v444_v33, %v448_v34  ;;  %v14848_v46 = vcombine.low %v444_v33, %v448_v34  ;;  %v250_v29 = vld [vmem:[#allocation7 + $0xb0] sm:$0xff]  ;;  %v251_v33 = vld [vmem:[#allocation7 + $0xb8] sm:$0xff] }
 0x151   :  { %v14850_v47 = vcombine.low %v445_v35, %v449_v37 }
 0x153   :  { %1864 = vmatpush1.bf16.msra.mxu0 %v14784_v42  ;;  %1946 = vmatpush1.bf16.msra.mxu1 %v14786_v43  ;;  %v456_v42 = vld [vmem:[#allocation7 + $0x720] sm:$0xff]  ;;  %v453_v43 = vld [vmem:[#allocation7 + $0x708] sm:$0xff] }
 0x154   :  { %1865 = vmatprep.subr.bf16.mxu0 %v14793_v44  ;;  %1947 = vmatprep.subr.bf16.mxu1 %v14795_v48  ;;  %v14851_v44 = vcombine.high %v445_v35, %v449_v37  ;;  %v14857_v48 = vcombine.high %v452_v41, %v456_v42  ;;  %v14856_v55 = vcombine.low %v452_v41, %v456_v42  ;;  %v254_v37 = vld [vmem:[#allocation7 + $0xd0] sm:$0xff]  ;;  %v259_v41 = vld [vmem:[#allocation7 + $0xf8] sm:$0xff] }
 0x155   :  { %v14858_v56 = vcombine.low %v453_v43, %v457_v45 }
 0x157   :  { %1866 = vmatpush1.bf16.msra.mxu0 %v14792_v50  ;;  %1948 = vmatpush1.bf16.msra.mxu1 %v14794_v51  ;;  %v464_v50 = vld [vmem:[#allocation7 + $0x760] sm:$0xff]  ;;  %v461_v51 = vld [vmem:[#allocation7 + $0x748] sm:$0xff] }
 0x158   :  { %1867 = vmatprep.subr.bf16.mxu0 %v14801_v52  ;;  %1949 = vmatprep.subr.bf16.mxu1 %v14803_v57  ;;  %v14859_v52 = vcombine.high %v453_v43, %v457_v45  ;;  %v14865_v57 = vcombine.high %v460_v49, %v464_v50  ;;  %v14864_v0 = vcombine.low %v460_v49, %v464_v50  ;;  %v262_v45 = vld [vmem:[#allocation7 + $0x110] sm:$0xff]  ;;  %v267_v49 = vld [vmem:[#allocation7 + $0x138] sm:$0xff] }
 0x159   :  { %v14866_v1 = vcombine.low %v461_v51, %v465_v54 }
 0x15b   :  { %1868 = vmatpush1.bf16.msra.mxu0 %v14800_v59  ;;  %1950 = vmatpush1.bf16.msra.mxu1 %v14802_v60  ;;  %v472_v59 = vld [vmem:[#allocation7 + $0x7a0] sm:$0xff]  ;;  %v469_v60 = vld [vmem:[#allocation7 + $0x788] sm:$0xff] }
 0x15c   :  { %1869 = vmatprep.subr.bf16.mxu0 %v14809_v62  ;;  %1951 = vmatprep.subr.bf16.mxu1 %v14811_v2  ;;  %v14867_v62 = vcombine.high %v461_v51, %v465_v54  ;;  %v14873_v2 = vcombine.high %v468_v58, %v472_v59  ;;  %v14872_v9 = vcombine.low %v468_v58, %v472_v59  ;;  %v270_v54 = vld [vmem:[#allocation7 + $0x150] sm:$0xff] }
 0x15d   :  { %v14874_v10 = vcombine.low %v469_v60, %v473_v63 }
 0x15f   :  { %1870 = vmatpush1.bf16.msra.mxu0 %v14808_v4  ;;  %1952 = vmatpush1.bf16.msra.mxu1 %v14810_v5  ;;  %v480_v4 = vld [vmem:[#allocation7 + $0x7e0] sm:$0xff]  ;;  %v477_v5 = vld [vmem:[#allocation7 + $0x7c8] sm:$0xff] }
 0x160   :  { %1871 = vmatprep.subr.bf16.mxu0 %v14817_v6  ;;  %1953 = vmatprep.subr.bf16.mxu1 %v14819_v11  ;;  %v14875_v6 = vcombine.high %v469_v60, %v473_v63  ;;  %v14881_v11 = vcombine.high %v476_v3, %v480_v4  ;;  %v14880_v18 = vcombine.low %v476_v3, %v480_v4  ;;  %v282_v63 = vld [vmem:[#allocation7 + $0x1b0] sm:$0xff] }
 0x161   :  { %v14882_v19 = vcombine.low %v477_v5, %v481_v8 }
 0x163   :  { %1872 = vmatpush1.bf16.msra.mxu0 %v14816_v13  ;;  %1954 = vmatpush1.bf16.msra.mxu1 %v14818_v14  ;;  %v234_v13 = vld [vmem:[#allocation7 + $0x30] sm:$0xff]  ;;  %v231_v14 = vld [vmem:[#allocation7 + $0x18] sm:$0xff] }
 0x164   :  { %1873 = vmatprep.subr.bf16.mxu0 %v14825_v16  ;;  %1955 = vmatprep.subr.bf16.mxu1 %v14827_v20  ;;  %v14883_v16 = vcombine.high %v477_v5, %v481_v8  ;;  %v14637_v20 = vcombine.high %v230_v12, %v234_v13  ;;  %v14636_v27 = vcombine.low %v230_v12, %v234_v13  ;;  %v290_v8 = vld [vmem:[#allocation7 + $0x1f0] sm:$0xff] }
 0x167   :  { %1874 = vmatpush1.bf16.msra.mxu0 %v14824_v22  ;;  %1956 = vmatpush1.bf16.msra.mxu1 %v14826_v23  ;;  %v242_v22 = vld [vmem:[#allocation7 + $0x70] sm:$0xff]  ;;  %v239_v23 = vld [vmem:[#allocation7 + $0x58] sm:$0xff] }
 0x168   :  { %1875 = vmatprep.subr.bf16.mxu0 %v14833_v24  ;;  %1957 = vmatprep.subr.bf16.mxu1 %v14835_v28  ;;  %v14639_v24 = vcombine.high %v231_v14, %v235_v17  ;;  %v246_v28 = vld [vmem:[#allocation7 + $0x90] sm:$0xff]  ;;  %v14647_v34 = vcombine.high %v239_v23, %v243_v25  ;;  %v14644_v35 = vcombine.low %v238_v21, %v242_v22 }
 0x169   :  { %v14646_v7 = vcombine.low %v239_v23, %v243_v25  ;;  %v14652_v42 = vcombine.low %v246_v28, %v250_v29  ;;  %v306_v25 = vld [vmem:[#allocation7 + $0x270] sm:$0xff] }
 0x16b   :  { %1876 = vmatpush1.bf16.msra.mxu0 %v14832_v30  ;;  %1958 = vmatpush1.bf16.msra.mxu1 %v14834_v31  ;;  %v14638_v30 = vcombine.low %v231_v14, %v235_v17  ;;  %v14645_v31 = vcombine.high %v238_v21, %v242_v22  ;;  %v298_v17 = vld [vmem:[#allocation7 + $0x230] sm:$0xff] }
 0x16c   :  { %1877 = vmatprep.subr.bf16.mxu0 %v14841_v32  ;;  %1959 = vmatprep.subr.bf16.mxu1 %v14843_v36  ;;  %v247_v32 = vld [vmem:[#allocation7 + $0x98] sm:$0xff]  ;;  %v14653_v36 = vcombine.high %v246_v28, %v250_v29 }
 0x16d   :  { %v14654_v43 = vcombine.low %v247_v32, %v251_v33  ;;  %v307_v29 = vld [vmem:[#allocation7 + $0x278] sm:$0xff] }
 0x16f   :  { %1878 = vmatpush1.bf16.msra.mxu0 %v14840_v38  ;;  %1960 = vmatpush1.bf16.msra.mxu1 %v14842_v39  ;;  %v258_v38 = vld [vmem:[#allocation7 + $0xf0] sm:$0xff]  ;;  %v14655_v39 = vcombine.high %v247_v32, %v251_v33 }
 0x170   :  { %1879 = vmatprep.subr.bf16.mxu0 %v14849_v40  ;;  %1961 = vmatprep.subr.bf16.mxu1 %v14851_v44  ;;  %v255_v40 = vld [vmem:[#allocation7 + $0xd8] sm:$0xff]  ;;  %v14661_v44 = vcombine.high %v254_v37, %v258_v38  ;;  %v14660_v50 = vcombine.low %v254_v37, %v258_v38  ;;  %v310_v33 = vld [vmem:[#allocation7 + $0x290] sm:$0xff] }
 0x171   :  { %v14662_v51 = vcombine.low %v255_v40, %v259_v41 }
 0x173   :  { %1880 = vmatpush1.bf16.msra.mxu0 %v14848_v46  ;;  %1962 = vmatpush1.bf16.msra.mxu1 %v14850_v47  ;;  %v266_v46 = vld [vmem:[#allocation7 + $0x130] sm:$0xff]  ;;  %v263_v47 = vld [vmem:[#allocation7 + $0x118] sm:$0xff] }
 0x174   :  { %1881 = vmatprep.subr.bf16.mxu0 %v14857_v48  ;;  %1963 = vmatprep.subr.bf16.mxu1 %v14859_v52  ;;  %v14663_v48 = vcombine.high %v255_v40, %v259_v41  ;;  %v14669_v52 = vcombine.high %v262_v45, %v266_v46  ;;  %v14668_v58 = vcombine.low %v262_v45, %v266_v46  ;;  %v318_v40 = vld [vmem:[#allocation7 + $0x2d0] sm:$0xff] }
 0x175   :  { %v14670_v59 = vcombine.low %v263_v47, %v267_v49  ;;  %v322_v41 = vld [vmem:[#allocation7 + $0x2f0] sm:$0xff] }
 0x177   :  { %1882 = vmatpush1.bf16.msra.mxu0 %v14856_v55  ;;  %1964 = vmatpush1.bf16.msra.mxu1 %v14858_v56  ;;  %v271_v55 = vld [vmem:[#allocation7 + $0x158] sm:$0xff]  ;;  %v14671_v56 = vcombine.high %v263_v47, %v267_v49  ;;  %v14725_v47 = vcombine.high %v318_v40, %v322_v41  ;;  %v330_v49 = vld [vmem:[#allocation7 + $0x330] sm:$0xff] }
 0x178   :  { %1883 = vmatprep.subr.bf16.mxu0 %v14865_v57  ;;  %1965 = vmatprep.subr.bf16.mxu1 %v14867_v62  ;;  %v275_v57 = vld [vmem:[#allocation7 + $0x178] sm:$0xff]  ;;  %v278_v62 = vld [vmem:[#allocation7 + $0x190] sm:$0xff] }
 0x179   :  { %v14678_v4 = vcombine.low %v271_v55, %v275_v57  ;;  %v14685_v5 = vcombine.high %v278_v62, %v282_v63  ;;  %v14684_v12 = vcombine.low %v278_v62, %v282_v63 }
 0x17b   :  { %1884 = vmatpush1.bf16.msra.mxu0 %v14864_v0  ;;  %1966 = vmatpush1.bf16.msra.mxu1 %v14866_v1  ;;  %v279_v0 = vld [vmem:[#allocation7 + $0x198] sm:$0xff]  ;;  %v14679_v1 = vcombine.high %v271_v55, %v275_v57  ;;  %v338_v57 = vld [vmem:[#allocation7 + $0x370] sm:$0xff] }
 0x17c   :  { %1885 = vmatprep.subr.bf16.mxu0 %v14873_v2  ;;  %1967 = vmatprep.subr.bf16.mxu1 %v14875_v6  ;;  %v283_v2 = vld [vmem:[#allocation7 + $0x1b8] sm:$0xff]  ;;  %v286_v6 = vld [vmem:[#allocation7 + $0x1d0] sm:$0xff] }
 0x17d   :  { %v14686_v13 = vcombine.low %v279_v0, %v283_v2  ;;  %v14693_v14 = vcombine.high %v286_v6, %v290_v8  ;;  %v14692_v21 = vcombine.low %v286_v6, %v290_v8 }
 0x17f   :  { %1886 = vmatpush1.bf16.msra.mxu0 %v14872_v9  ;;  %1968 = vmatpush1.bf16.msra.mxu1 %v14874_v10  ;;  %v287_v9 = vld [vmem:[#allocation7 + $0x1d8] sm:$0xff]  ;;  %v14687_v10 = vcombine.high %v279_v0, %v283_v2  ;;  %v346_v2 = vld [vmem:[#allocation7 + $0x3b0] sm:$0xff] }
 0x180   :  { %1887 = vmatprep.subr.bf16.mxu0 %v14881_v11  ;;  %1969 = vmatprep.subr.bf16.mxu1 %v14883_v16  ;;  %v291_v11 = vld [vmem:[#allocation7 + $0x1f8] sm:$0xff]  ;;  %v294_v16 = vld [vmem:[#allocation7 + $0x210] sm:$0xff] }
 0x181   :  { %v14694_v22 = vcombine.low %v287_v9, %v291_v11  ;;  %v14701_v23 = vcombine.high %v294_v16, %v298_v17 }
 0x183   :  { %1888 = vmatpush1.bf16.msra.mxu0 %v14880_v18  ;;  %1970 = vmatpush1.bf16.msra.mxu1 %v14882_v19  ;;  %v295_v18 = vld [vmem:[#allocation7 + $0x218] sm:$0xff]  ;;  %v14695_v19 = vcombine.high %v287_v9, %v291_v11  ;;  %v354_v11 = vld [vmem:[#allocation7 + $0x3f0] sm:$0xff] }
 0x184   :  { %1980 = vmatprep.subr.bf16.mxu0 %v14637_v20  ;;  %2062 = vmatprep.subr.bf16.mxu1 %v14639_v24  ;;  %v299_v20 = vld [vmem:[#allocation7 + $0x238] sm:$0xff]  ;;  %v302_v24 = vld [vmem:[#allocation7 + $0x250] sm:$0xff] }
 0x185   :  { %v14703_v28 = vcombine.high %v295_v18, %v299_v20  ;;  %v14709_v32 = vcombine.high %v302_v24, %v306_v25  ;;  %v14708_v37 = vcombine.low %v302_v24, %v306_v25  ;;  %v366_v25 = vld [vmem:[#allocation7 + $0x450] sm:$0xff] }
 0x186   :  { %1890 = vmatmul.mubr.bf16.vlgmr.msra.gmra.mrb[0].mxu0 %v18290_v53  ;;  %1972 = vmatmul.mubr.bf16.vlgmr.msra.gmra.mrb[0].mxu1 %v18290_v53 }
 0x187   :  { %1981 = vmatpush1.bf16.msra.mxu0 %v14636_v27  ;;  %2063 = vmatpush1.bf16.msra.mxu1 %v14638_v30  ;;  %v303_v27 = vld [vmem:[#allocation7 + $0x258] sm:$0xff]  ;;  %v14700_v30 = vcombine.low %v294_v16, %v298_v17  ;;  %v358_v17 = vld [vmem:[#allocation7 + $0x410] sm:$0xff] }
 0x188   :  { %1982 = vmatprep.subr.bf16.mxu0 %v14645_v31  ;;  %2064 = vmatprep.subr.bf16.mxu1 %v14647_v34  ;;  %v14702_v31 = vcombine.low %v295_v18, %v299_v20  ;;  %v314_v34 = vld [vmem:[#allocation7 + $0x2b0] sm:$0xff]  ;;  %v14710_v38 = vcombine.low %v303_v27, %v307_v29 }
 0x189   :  { %2012 = vmatprep.mubr.bf16.mxu0 %v18270_v61  ;;  %2094 = vmatprep.mubr.bf16.mxu1 %v18270_v61  ;;  %v274_v61 = vld [vmem:[#allocation7 + $0x170] sm:$0xff]  ;;  %v14716_v45 = vcombine.low %v310_v33, %v314_v34 }
 0x18a   :  { %v14677_v60 = vcombine.high %v270_v54, %v274_v61  ;;  %v14676_v3 = vcombine.low %v270_v54, %v274_v61  ;;  %v14724_v54 = vcombine.low %v318_v40, %v322_v41  ;;  %v362_v18 = vld [vmem:[#allocation7 + $0x430] sm:$0xff] }
 0x18b   :  { %1983 = vmatpush1.bf16.msra.mxu0 %v14644_v35  ;;  %2065 = vmatpush1.bf16.msra.mxu1 %v14646_v7  ;;  %v311_v35 = vld [vmem:[#allocation7 + $0x298] sm:$0xff]  ;;  %v14711_v7 = vcombine.high %v303_v27, %v307_v29  ;;  %v370_v27 = vld [vmem:[#allocation7 + $0x470] sm:$0xff]  ;;  %v14765_v29 = vcombine.high %v358_v17, %v362_v18 }
 0x18c   :  { %1984 = vmatprep.subr.bf16.mxu0 %v14653_v36  ;;  %2066 = vmatprep.subr.bf16.mxu1 %v14655_v39  ;;  %v315_v36 = vld [vmem:[#allocation7 + $0x2b8] sm:$0xff]  ;;  %v14717_v39 = vcombine.high %v310_v33, %v314_v34  ;;  %v14764_v33 = vcombine.low %v358_v17, %v362_v18  ;;  %v374_v34 = vld [vmem:[#allocation7 + $0x490] sm:$0xff]  ;;  %v14772_v40 = vcombine.low %v366_v25, %v370_v27 }
 0x18d   :  { %v14718_v46 = vcombine.low %v311_v35, %v315_v36  ;;  %v382_v41 = vld [vmem:[#allocation7 + $0x4d0] sm:$0xff] }
 0x18e   :  { %v422_v18 = vld [vmem:[#allocation7 + $0x610] sm:$0xff] }
 0x18f   :  { %1985 = vmatpush1.bf16.msra.mxu0 %v14652_v42  ;;  %2067 = vmatpush1.bf16.msra.mxu1 %v14654_v43  ;;  %v319_v42 = vld [vmem:[#allocation7 + $0x2d8] sm:$0xff]  ;;  %v14719_v43 = vcombine.high %v311_v35, %v315_v36  ;;  %v378_v35 = vld [vmem:[#allocation7 + $0x4b0] sm:$0xff]  ;;  %v14773_v36 = vcombine.high %v366_v25, %v370_v27 }
 0x190   :  { %1986 = vmatprep.subr.bf16.mxu0 %v14661_v44  ;;  %2068 = vmatprep.subr.bf16.mxu1 %v14663_v48  ;;  %v323_v44 = vld [vmem:[#allocation7 + $0x2f8] sm:$0xff]  ;;  %v326_v48 = vld [vmem:[#allocation7 + $0x310] sm:$0xff] }
 0x191   :  { %v14726_v61 = vcombine.low %v319_v42, %v323_v44  ;;  %v14733_v55 = vcombine.high %v326_v48, %v330_v49  ;;  %v14732_v62 = vcombine.low %v326_v48, %v330_v49  ;;  %v14780_v48 = vcombine.low %v374_v34, %v378_v35  ;;  %v390_v49 = vld [vmem:[#allocation7 + $0x510] sm:$0xff] }
 0x192   :  { %v430_v27 = vld [vmem:[#allocation7 + $0x650] sm:$0xff] }
 0x193   :  { %1987 = vmatpush1.bf16.msra.mxu0 %v14660_v50  ;;  %2069 = vmatpush1.bf16.msra.mxu1 %v14662_v51  ;;  %v327_v50 = vld [vmem:[#allocation7 + $0x318] sm:$0xff]  ;;  %v14727_v51 = vcombine.high %v319_v42, %v323_v44  ;;  %v386_v42 = vld [vmem:[#allocation7 + $0x4f0] sm:$0xff]  ;;  %v14781_v44 = vcombine.high %v374_v34, %v378_v35 }
 0x194   :  { %1988 = vmatprep.subr.bf16.mxu0 %v14669_v52  ;;  %2070 = vmatprep.subr.bf16.mxu1 %v14671_v56  ;;  %v331_v52 = vld [vmem:[#allocation7 + $0x338] sm:$0xff]  ;;  %v334_v56 = vld [vmem:[#allocation7 + $0x350] sm:$0xff] }
 0x195   :  { %v14734_v63 = vcombine.low %v327_v50, %v331_v52  ;;  %v14741_v0 = vcombine.high %v334_v56, %v338_v57  ;;  %v14740_v6 = vcombine.low %v334_v56, %v338_v57  ;;  %v398_v56 = vld [vmem:[#allocation7 + $0x550] sm:$0xff] }
 0x196   :  { %v402_v57 = vld [vmem:[#allocation7 + $0x570] sm:$0xff] }
 0x197   :  { %1989 = vmatpush1.bf16.msra.mxu0 %v14668_v58  ;;  %2071 = vmatpush1.bf16.msra.mxu1 %v14670_v59  ;;  %v335_v58 = vld [vmem:[#allocation7 + $0x358] sm:$0xff]  ;;  %v14735_v59 = vcombine.high %v327_v50, %v331_v52  ;;  %v394_v50 = vld [vmem:[#allocation7 + $0x530] sm:$0xff] }
 0x198   :  { %1990 = vmatprep.subr.bf16.mxu0 %v14677_v60  ;;  %2072 = vmatprep.subr.bf16.mxu1 %v14679_v1  ;;  %v339_v60 = vld [vmem:[#allocation7 + $0x378] sm:$0xff]  ;;  %v342_v1 = vld [vmem:[#allocation7 + $0x390] sm:$0xff] }
 0x199   :  { %v14742_v8 = vcombine.low %v335_v58, %v339_v60  ;;  %v14749_v9 = vcombine.high %v342_v1, %v346_v2  ;;  %v14748_v16 = vcombine.low %v342_v1, %v346_v2  ;;  %v391_v52 = vld [vmem:[#allocation7 + $0x518] sm:$0xff]  ;;  %v410_v1 = vld [vmem:[#allocation7 + $0x5b0] sm:$0xff] }
 0x19a   :  { %v438_v35 = vld [vmem:[#allocation7 + $0x690] sm:$0xff] }
 0x19b   :  { %1991 = vmatpush1.bf16.msra.mxu0 %v14676_v3  ;;  %2073 = vmatpush1.bf16.msra.mxu1 %v14678_v4  ;;  %v343_v3 = vld [vmem:[#allocation7 + $0x398] sm:$0xff]  ;;  %v14743_v4 = vcombine.high %v335_v58, %v339_v60 }
 0x19c   :  { %1992 = vmatprep.subr.bf16.mxu0 %v14685_v5  ;;  %2074 = vmatprep.subr.bf16.mxu1 %v14687_v10  ;;  %v347_v5 = vld [vmem:[#allocation7 + $0x3b8] sm:$0xff]  ;;  %v350_v10 = vld [vmem:[#allocation7 + $0x3d0] sm:$0xff] }
 0x19d   :  { %v14757_v20 = vcombine.high %v350_v10, %v354_v11  ;;  %v14756_v24 = vcombine.low %v350_v10, %v354_v11  ;;  %v403_v60 = vld [vmem:[#allocation7 + $0x578] sm:$0xff]  ;;  %v418_v10 = vld [vmem:[#allocation7 + $0x5f0] sm:$0xff] }
 0x19f   :  { %1993 = vmatpush1.bf16.msra.mxu0 %v14684_v12  ;;  %2075 = vmatpush1.bf16.msra.mxu1 %v14686_v13  ;;  %v351_v12 = vld [vmem:[#allocation7 + $0x3d8] sm:$0xff]  ;;  %v14751_v13 = vcombine.high %v343_v3, %v347_v5 }
 0x1a0   :  { %1994 = vmatprep.subr.bf16.mxu0 %v14693_v14  ;;  %2076 = vmatprep.subr.bf16.mxu1 %v14695_v19  ;;  %v355_v14 = vld [vmem:[#allocation7 + $0x3f8] sm:$0xff]  ;;  %v14750_v19 = vcombine.low %v343_v3, %v347_v5  ;;  %v14805_v3 = vcombine.high %v398_v56, %v402_v57 }
 0x1a1   :  { %v411_v5 = vld [vmem:[#allocation7 + $0x5b8] sm:$0xff] }
 0x1a3   :  { %1995 = vmatpush1.bf16.msra.mxu0 %v14692_v21  ;;  %2077 = vmatpush1.bf16.msra.mxu1 %v14694_v22  ;;  %v359_v21 = vld [vmem:[#allocation7 + $0x418] sm:$0xff] }
 0x1a4   :  { %1996 = vmatprep.subr.bf16.mxu0 %v14701_v23  ;;  %2078 = vmatprep.subr.bf16.mxu1 %v14703_v28  ;;  %v363_v22 = vld [vmem:[#allocation7 + $0x438] sm:$0xff]  ;;  %v14759_v23 = vcombine.high %v351_v12, %v355_v14  ;;  %v14758_v28 = vcombine.low %v351_v12, %v355_v14 }
 0x1a5   :  { %v419_v14 = vld [vmem:[#allocation7 + $0x5f8] sm:$0xff] }
 0x1a7   :  { %1997 = vmatpush1.bf16.msra.mxu0 %v14700_v30  ;;  %2079 = vmatpush1.bf16.msra.mxu1 %v14702_v31  ;;  %v367_v30 = vld [vmem:[#allocation7 + $0x458] sm:$0xff] }
 0x1a8   :  { %1998 = vmatprep.subr.bf16.mxu0 %v14709_v32  ;;  %2080 = vmatprep.subr.bf16.mxu1 %v14711_v7  ;;  %v371_v31 = vld [vmem:[#allocation7 + $0x478] sm:$0xff]  ;;  %v14767_v32 = vcombine.high %v359_v21, %v363_v22  ;;  %v14766_v7 = vcombine.low %v359_v21, %v363_v22 }
 0x1a9   :  { %v423_v22 = vld [vmem:[#allocation7 + $0x618] sm:$0xff] }
 0x1ab   :  { %1999 = vmatpush1.bf16.msra.mxu0 %v14708_v37  ;;  %2081 = vmatpush1.bf16.msra.mxu1 %v14710_v38  ;;  %v375_v37 = vld [vmem:[#allocation7 + $0x498] sm:$0xff] }
 0x1ac   :  { %2000 = vmatprep.subr.bf16.mxu0 %v14717_v39  ;;  %2082 = vmatprep.subr.bf16.mxu1 %v14719_v43  ;;  %v379_v38 = vld [vmem:[#allocation7 + $0x4b8] sm:$0xff]  ;;  %v14775_v39 = vcombine.high %v367_v30, %v371_v31  ;;  %v14774_v43 = vcombine.low %v367_v30, %v371_v31 }
 0x1ad   :  { %v431_v31 = vld [vmem:[#allocation7 + $0x658] sm:$0xff] }
 0x1af   :  { %2001 = vmatpush1.bf16.msra.mxu0 %v14716_v45  ;;  %2083 = vmatpush1.bf16.msra.mxu1 %v14718_v46  ;;  %v383_v45 = vld [vmem:[#allocation7 + $0x4d8] sm:$0xff] }
 0x1b0   :  { %2002 = vmatprep.subr.bf16.mxu0 %v14725_v47  ;;  %2084 = vmatprep.subr.bf16.mxu1 %v14727_v51  ;;  %v387_v46 = vld [vmem:[#allocation7 + $0x4f8] sm:$0xff]  ;;  %v14783_v47 = vcombine.high %v375_v37, %v379_v38  ;;  %v14789_v51 = vcombine.high %v382_v41, %v386_v42 }
 0x1b1   :  { %v14790_v58 = vcombine.low %v383_v45, %v387_v46 }
 0x1b3   :  { %2003 = vmatpush1.bf16.msra.mxu0 %v14724_v54  ;;  %2085 = vmatpush1.bf16.msra.mxu1 %v14726_v61  ;;  %v395_v54 = vld [vmem:[#allocation7 + $0x538] sm:$0xff]  ;;  %v14791_v61 = vcombine.high %v383_v45, %v387_v46 }
 0x1b4   :  { %2004 = vmatprep.subr.bf16.mxu0 %v14733_v55  ;;  %2086 = vmatprep.subr.bf16.mxu1 %v14735_v59  ;;  %v14788_v55 = vcombine.low %v382_v41, %v386_v42  ;;  %v399_v59 = vld [vmem:[#allocation7 + $0x558] sm:$0xff]  ;;  %v14798_v2 = vcombine.low %v391_v52, %v395_v54  ;;  %v446_v42 = vld [vmem:[#allocation7 + $0x6d0] sm:$0xff] }
 0x1b5   :  { %v14806_v11 = vcombine.low %v399_v59, %v403_v60  ;;  %v447_v46 = vld [vmem:[#allocation7 + $0x6d8] sm:$0xff] }
 0x1b7   :  { %2005 = vmatpush1.bf16.msra.mxu0 %v14732_v62  ;;  %2087 = vmatpush1.bf16.msra.mxu1 %v14734_v63  ;;  %v14799_v62 = vcombine.high %v391_v52, %v395_v54  ;;  %v14796_v63 = vcombine.low %v390_v49, %v394_v50  ;;  %v455_v54 = vld [vmem:[#allocation7 + $0x718] sm:$0xff] }
 0x1b8   :  { %2006 = vmatprep.subr.bf16.mxu0 %v14741_v0  ;;  %2088 = vmatprep.subr.bf16.mxu1 %v14743_v4  ;;  %v406_v0 = vld [vmem:[#allocation7 + $0x590] sm:$0xff]  ;;  %v407_v4 = vld [vmem:[#allocation7 + $0x598] sm:$0xff] }
 0x1b9   :  { %v14813_v12 = vcombine.high %v406_v0, %v410_v1  ;;  %v14812_v17 = vcombine.low %v406_v0, %v410_v1  ;;  %v470_v1 = vld [vmem:[#allocation7 + $0x790] sm:$0xff] }
 0x1bb   :  { %2007 = vmatpush1.bf16.msra.mxu0 %v14740_v6  ;;  %2089 = vmatpush1.bf16.msra.mxu1 %v14742_v8  ;;  %v14807_v6 = vcombine.high %v399_v59, %v403_v60  ;;  %v14804_v8 = vcombine.low %v398_v56, %v402_v57  ;;  %v462_v57 = vld [vmem:[#allocation7 + $0x750] sm:$0xff]  ;;  %v463_v60 = vld [vmem:[#allocation7 + $0x758] sm:$0xff] }
 0x1bc   :  { %2008 = vmatprep.subr.bf16.mxu0 %v14749_v9  ;;  %2090 = vmatprep.subr.bf16.mxu1 %v14751_v13  ;;  %v414_v9 = vld [vmem:[#allocation7 + $0x5d0] sm:$0xff]  ;;  %v415_v13 = vld [vmem:[#allocation7 + $0x5d8] sm:$0xff] }
 0x1bd   :  { %v14821_v21 = vcombine.high %v414_v9, %v418_v10  ;;  %v14820_v25 = vcombine.low %v414_v9, %v418_v10  ;;  %v478_v10 = vld [vmem:[#allocation7 + $0x7d0] sm:$0xff] }
 0x1bf   :  { %2009 = vmatpush1.bf16.msra.mxu0 %v14748_v16  ;;  %2091 = vmatpush1.bf16.msra.mxu1 %v14750_v19  ;;  %v14815_v16 = vcombine.high %v407_v4, %v411_v5  ;;  %v426_v19 = vld [vmem:[#allocation7 + $0x630] sm:$0xff] }
 0x1c0   :  { %2010 = vmatprep.subr.bf16.mxu0 %v14757_v20  ;;  %2092 = vmatprep.subr.bf16.mxu1 %v14759_v23  ;;  %v14814_v20 = vcombine.low %v407_v4, %v411_v5  ;;  %v427_v23 = vld [vmem:[#allocation7 + $0x638] sm:$0xff]  ;;  %v14829_v30 = vcombine.high %v422_v18, %v426_v19  ;;  %v14828_v34 = vcombine.low %v422_v18, %v426_v19  ;;  %v2152_v19 = vld [vmem:[#allocation10] sm:$0xff] }
 0x1c1   :  { %v471_v5 = vld [vmem:[#allocation7 + $0x798] sm:$0xff] }
 0x1c3   :  { %2011 = vmatpush1.bf16.msra.mxu0 %v14756_v24  ;;  %2093 = vmatpush1.bf16.msra.mxu1 %v14758_v28  ;;  %v14823_v24 = vcombine.high %v415_v13, %v419_v14  ;;  %v434_v28 = vld [vmem:[#allocation7 + $0x670] sm:$0xff] }
 0x1c4   :  { %2021 = vmatprep.subr.bf16.mxu0 %v14765_v29  ;;  %2103 = vmatprep.subr.bf16.mxu1 %v14767_v32  ;;  %v14822_v29 = vcombine.low %v415_v13, %v419_v14  ;;  %v435_v32 = vld [vmem:[#allocation7 + $0x678] sm:$0xff]  ;;  %v14836_v41 = vcombine.low %v430_v27, %v434_v28 }
 0x1c5   :  { %v479_v14 = vld [vmem:[#allocation7 + $0x7d8] sm:$0xff] }
 0x1c6   :  { %2013 = vmatmul.mubr.bf16.vlgmr.msra.gmra.mrb[4].mxu0 %v18280_v15  ;;  %2095 = vmatmul.mubr.bf16.vlgmr.msra.gmra.mrb[4].mxu1 %v18280_v15  ;;  %v14782_v15 = vcombine.low %v375_v37, %v379_v38  ;;  %v14837_v37 = vcombine.high %v430_v27, %v434_v28  ;;  %v439_v38 = vld [vmem:[#allocation7 + $0x698] sm:$0xff]  ;;  %v2160_v28 = vld [vmem:[#allocation10 + $0x40] sm:$0xff] }
 0x1c7   :  { %2022 = vmatpush1.bf16.msra.mxu0 %v14764_v33  ;;  %2104 = vmatpush1.bf16.msra.mxu1 %v14766_v7  ;;  %v14831_v33 = vcombine.high %v423_v22, %v427_v23  ;;  %v442_v7 = vld [vmem:[#allocation7 + $0x6b0] sm:$0xff] }
 0x1c8   :  { %2023 = vmatprep.subr.bf16.mxu0 %v14773_v36  ;;  %2105 = vmatprep.subr.bf16.mxu1 %v14775_v39  ;;  %v14830_v36 = vcombine.low %v423_v22, %v427_v23  ;;  %v443_v39 = vld [vmem:[#allocation7 + $0x6b8] sm:$0xff]  ;;  %v14845_v45 = vcombine.high %v438_v35, %v442_v7  ;;  %v2153_v23 = vld [vmem:[#allocation10 + $0x8] sm:$0xff] }
 0x1c9   :  { %2053 = vmatprep.mubr.bf16.mxu0 %v18282_v26  ;;  %2135 = vmatprep.mubr.bf16.mxu1 %v18282_v26  ;;  %v14797_v26 = vcombine.high %v390_v49, %v394_v50  ;;  %v14844_v49 = vcombine.low %v438_v35, %v442_v7  ;;  %v454_v50 = vld [vmem:[#allocation7 + $0x710] sm:$0xff]  ;;  %v2168_v7 = vld [vmem:[#allocation10 + $0x80] sm:$0xff] }
 0x1cb   :  { %2024 = vmatpush1.bf16.msra.mxu0 %v14772_v40  ;;  %2106 = vmatpush1.bf16.msra.mxu1 %v14774_v43  ;;  %v14839_v40 = vcombine.high %v431_v31, %v435_v32  ;;  %v450_v43 = vld [vmem:[#allocation7 + $0x6f0] sm:$0xff] }
 0x1cc   :  { %2025 = vmatprep.subr.bf16.mxu0 %v14781_v44  ;;  %2107 = vmatprep.subr.bf16.mxu1 %v14783_v47  ;;  %v14838_v44 = vcombine.low %v431_v31, %v435_v32  ;;  %v451_v47 = vld [vmem:[#allocation7 + $0x6f8] sm:$0xff]  ;;  %v14853_v52 = vcombine.high %v446_v42, %v450_v43  ;;  %v14852_v56 = vcombine.low %v446_v42, %v450_v43  ;;  %v2161_v32 = vld [vmem:[#allocation10 + $0x48] sm:$0xff]  ;;  %v2176_v43 = vld [vmem:[#allocation10 + $0xc0] sm:$0xff] }
 0x1cf   :  { %2026 = vmatpush1.bf16.msra.mxu0 %v14780_v48  ;;  %2108 = vmatpush1.bf16.msra.mxu1 %v14782_v15  ;;  %v14847_v48 = vcombine.high %v439_v38, %v443_v39  ;;  %v458_v15 = vld [vmem:[#allocation7 + $0x730] sm:$0xff] }
 0x1d0   :  { %2027 = vmatprep.subr.bf16.mxu0 %v14789_v51  ;;  %2109 = vmatprep.subr.bf16.mxu1 %v14791_v61  ;;  %v14846_v51 = vcombine.low %v439_v38, %v443_v39  ;;  %v459_v61 = vld [vmem:[#allocation7 + $0x738] sm:$0xff]  ;;  %v14861_v59 = vcombine.high %v454_v50, %v458_v15  ;;  %v14860_v0 = vcombine.low %v454_v50, %v458_v15  ;;  %v2169_v39 = vld [vmem:[#allocation10 + $0x88] sm:$0xff]  ;;  %v2184_v15 = vld [vmem:[#allocation10 + $0x100] sm:$0xff] }
 0x1d3   :  { %2028 = vmatpush1.bf16.msra.mxu0 %v14788_v55  ;;  %2110 = vmatpush1.bf16.msra.mxu1 %v14790_v58  ;;  %v14855_v55 = vcombine.high %v447_v46, %v451_v47  ;;  %v466_v58 = vld [vmem:[#allocation7 + $0x770] sm:$0xff] }
 0x1d4   :  { %2029 = vmatprep.subr.bf16.mxu0 %v14797_v26  ;;  %2111 = vmatprep.subr.bf16.mxu1 %v14799_v62  ;;  %v14854_v26 = vcombine.low %v447_v46, %v451_v47  ;;  %v467_v62 = vld [vmem:[#allocation7 + $0x778] sm:$0xff]  ;;  %v14869_v4 = vcombine.high %v462_v57, %v466_v58  ;;  %v14868_v9 = vcombine.low %v462_v57, %v466_v58  ;;  %v2177_v47 = vld [vmem:[#allocation10 + $0xc8] sm:$0xff]  ;;  %v2192_v57 = vld [vmem:[#allocation10 + $0x140] sm:$0xff] }
 0x1d5   :  { %v2196_v58 = vld [vmem:[#allocation10 + $0x160] sm:$0xff] }
 0x1d7   :  { %2030 = vmatpush1.bf16.msra.mxu0 %v14796_v63  ;;  %2112 = vmatpush1.bf16.msra.mxu1 %v14798_v2  ;;  %v14863_v63 = vcombine.high %v455_v54, %v459_v61  ;;  %v474_v2 = vld [vmem:[#allocation7 + $0x7b0] sm:$0xff] }
 0x1d8   :  { %2031 = vmatprep.subr.bf16.mxu0 %v14805_v3  ;;  %2113 = vmatprep.subr.bf16.mxu1 %v14807_v6  ;;  %v14862_v3 = vcombine.low %v455_v54, %v459_v61  ;;  %v475_v6 = vld [vmem:[#allocation7 + $0x7b8] sm:$0xff]  ;;  %v14877_v13 = vcombine.high %v470_v1, %v474_v2  ;;  %v14876_v18 = vcombine.low %v470_v1, %v474_v2  ;;  %v2185_v54 = vld [vmem:[#allocation10 + $0x108] sm:$0xff]  ;;  %v2200_v1 = vld [vmem:[#allocation10 + $0x180] sm:$0xff] }
 0x1d9   :  { %v2189_v61 = vld [vmem:[#allocation10 + $0x128] sm:$0xff]  ;;  %v2204_v2 = vld [vmem:[#allocation10 + $0x1a0] sm:$0xff] }
 0x1db   :  { %2032 = vmatpush1.bf16.msra.mxu0 %v14804_v8  ;;  %2114 = vmatpush1.bf16.msra.mxu1 %v14806_v11  ;;  %v14871_v8 = vcombine.high %v463_v60, %v467_v62  ;;  %v482_v11 = vld [vmem:[#allocation7 + $0x7f0] sm:$0xff] }
 0x1dc   :  { %2033 = vmatprep.subr.bf16.mxu0 %v14813_v12  ;;  %2115 = vmatprep.subr.bf16.mxu1 %v14815_v16  ;;  %v14870_v12 = vcombine.low %v463_v60, %v467_v62  ;;  %v483_v16 = vld [vmem:[#allocation7 + $0x7f8] sm:$0xff]  ;;  %v14885_v22 = vcombine.high %v478_v10, %v482_v11  ;;  %v14884_v27 = vcombine.low %v478_v10, %v482_v11  ;;  %v2193_v60 = vld [vmem:[#allocation10 + $0x148] sm:$0xff]  ;;  %v2208_v10 = vld [vmem:[#allocation10 + $0x1c0] sm:$0xff] }
 0x1dd   :  { %v2197_v62 = vld [vmem:[#allocation10 + $0x168] sm:$0xff]  ;;  %v2212_v11 = vld [vmem:[#allocation10 + $0x1e0] sm:$0xff] }
 0x1df   :  { %2034 = vmatpush1.bf16.msra.mxu0 %v14812_v17  ;;  %2116 = vmatpush1.bf16.msra.mxu1 %v14814_v20  ;;  %v14879_v17 = vcombine.high %v471_v5, %v475_v6  ;;  %v2156_v20 = vld [vmem:[#allocation10 + $0x20] sm:$0xff] }
 0x1e0   :  { %2035 = vmatprep.subr.bf16.mxu0 %v14821_v21  ;;  %2117 = vmatprep.subr.bf16.mxu1 %v14823_v24  ;;  %v14878_v21 = vcombine.low %v471_v5, %v475_v6  ;;  %v2157_v24 = vld [vmem:[#allocation10 + $0x28] sm:$0xff]  ;;  %v14889_v31 = vcombine.high %v2152_v19, %v2156_v20  ;;  %v14888_v35 = vcombine.low %v2152_v19, %v2156_v20  ;;  %v2216_v19 = vld [vmem:[#allocation10 + $0x200] sm:$0xff] }
 0x1e1   :  { %v2201_v5 = vld [vmem:[#allocation10 + $0x188] sm:$0xff]  ;;  %v2220_v20 = vld [vmem:[#allocation10 + $0x220] sm:$0xff] }
 0x1e2   :  { %v2205_v6 = vld [vmem:[#allocation10 + $0x1a8] sm:$0xff] }
 0x1e3   :  { %2036 = vmatpush1.bf16.msra.mxu0 %v14820_v25  ;;  %2118 = vmatpush1.bf16.msra.mxu1 %v14822_v29  ;;  %v14887_v25 = vcombine.high %v479_v14, %v483_v16  ;;  %v2164_v29 = vld [vmem:[#allocation10 + $0x60] sm:$0xff] }
 0x1e4   :  { %2037 = vmatprep.subr.bf16.mxu0 %v14829_v30  ;;  %2119 = vmatprep.subr.bf16.mxu1 %v14831_v33  ;;  %v14886_v30 = vcombine.low %v479_v14, %v483_v16  ;;  %v2165_v33 = vld [vmem:[#allocation10 + $0x68] sm:$0xff]  ;;  %v14897_v38 = vcombine.high %v2160_v28, %v2164_v29  ;;  %v14896_v42 = vcombine.low %v2160_v28, %v2164_v29  ;;  %v2224_v28 = vld [vmem:[#allocation10 + $0x240] sm:$0xff] }
 0x1e5   :  { %v2209_v14 = vld [vmem:[#allocation10 + $0x1c8] sm:$0xff]  ;;  %v2228_v29 = vld [vmem:[#allocation10 + $0x260] sm:$0xff] }
 0x1e6   :  { %v2213_v16 = vld [vmem:[#allocation10 + $0x1e8] sm:$0xff] }
 0x1e7   :  { %2038 = vmatpush1.bf16.msra.mxu0 %v14828_v34  ;;  %2120 = vmatpush1.bf16.msra.mxu1 %v14830_v36  ;;  %v14891_v34 = vcombine.high %v2153_v23, %v2157_v24  ;;  %v2172_v36 = vld [vmem:[#allocation10 + $0xa0] sm:$0xff] }
 0x1e8   :  { %2039 = vmatprep.subr.bf16.mxu0 %v14837_v37  ;;  %2121 = vmatprep.subr.bf16.mxu1 %v14839_v40  ;;  %v14890_v37 = vcombine.low %v2153_v23, %v2157_v24  ;;  %v2173_v40 = vld [vmem:[#allocation10 + $0xa8] sm:$0xff]  ;;  %v14905_v46 = vcombine.high %v2168_v7, %v2172_v36  ;;  %v14904_v50 = vcombine.low %v2168_v7, %v2172_v36  ;;  %v2232_v7 = vld [vmem:[#allocation10 + $0x280] sm:$0xff] }
 0x1e9   :  { %v2217_v23 = vld [vmem:[#allocation10 + $0x208] sm:$0xff]  ;;  %v2236_v36 = vld [vmem:[#allocation10 + $0x2a0] sm:$0xff] }
 0x1ea   :  { %v2221_v24 = vld [vmem:[#allocation10 + $0x228] sm:$0xff] }
 0x1eb   :  { %2040 = vmatpush1.bf16.msra.mxu0 %v14836_v41  ;;  %2122 = vmatpush1.bf16.msra.mxu1 %v14838_v44  ;;  %v14899_v41 = vcombine.high %v2161_v32, %v2165_v33  ;;  %v2180_v44 = vld [vmem:[#allocation10 + $0xe0] sm:$0xff] }
 0x1ec   :  { %2041 = vmatprep.subr.bf16.mxu0 %v14845_v45  ;;  %2123 = vmatprep.subr.bf16.mxu1 %v14847_v48  ;;  %v14898_v45 = vcombine.low %v2161_v32, %v2165_v33  ;;  %v2181_v48 = vld [vmem:[#allocation10 + $0xe8] sm:$0xff] }
 0x1ed   :  { %v2225_v32 = vld [vmem:[#allocation10 + $0x248] sm:$0xff] }
 0x1ee   :  { %v2229_v33 = vld [vmem:[#allocation10 + $0x268] sm:$0xff] }
 0x1ef   :  { %2042 = vmatpush1.bf16.msra.mxu0 %v14844_v49  ;;  %2124 = vmatpush1.bf16.msra.mxu1 %v14846_v51  ;;  %v14907_v49 = vcombine.high %v2169_v39, %v2173_v40  ;;  %v2188_v51 = vld [vmem:[#allocation10 + $0x120] sm:$0xff] }
 0x1f0   :  { %2043 = vmatprep.subr.bf16.mxu0 %v14853_v52  ;;  %2125 = vmatprep.subr.bf16.mxu1 %v14855_v55  ;;  %v14906_v52 = vcombine.low %v2169_v39, %v2173_v40  ;;  %v14915_v55 = vcombine.high %v2177_v47, %v2181_v48  ;;  %v2233_v39 = vld [vmem:[#allocation10 + $0x288] sm:$0xff] }
 0x1f1   :  { %v2237_v40 = vld [vmem:[#allocation10 + $0x2a8] sm:$0xff] }
 0x1f3   :  { %2044 = vmatpush1.bf16.msra.mxu0 %v14852_v56  ;;  %2126 = vmatpush1.bf16.msra.mxu1 %v14854_v26  ;;  %v14912_v56 = vcombine.low %v2176_v43, %v2180_v44  ;;  %v14914_v26 = vcombine.low %v2177_v47, %v2181_v48  ;;  %v2241_v47 = vld [vmem:[#allocation10 + $0x2c8] sm:$0xff] }
 0x1f4   :  { %2045 = vmatprep.subr.bf16.mxu0 %v14861_v59  ;;  %2127 = vmatprep.subr.bf16.mxu1 %v14863_v63  ;;  %v14921_v59 = vcombine.high %v2184_v15, %v2188_v51  ;;  %v14923_v63 = vcombine.high %v2185_v54, %v2189_v61  ;;  %v2245_v48 = vld [vmem:[#allocation10 + $0x2e8] sm:$0xff] }
 0x1f7   :  { %2046 = vmatpush1.bf16.msra.mxu0 %v14860_v0  ;;  %2128 = vmatpush1.bf16.msra.mxu1 %v14862_v3  ;;  %v14920_v0 = vcombine.low %v2184_v15, %v2188_v51  ;;  %v14922_v3 = vcombine.low %v2185_v54, %v2189_v61  ;;  %v2248_v15 = vld [vmem:[#allocation10 + $0x300] sm:$0xff]  ;;  %v2249_v54 = vld [vmem:[#allocation10 + $0x308] sm:$0xff] }
 0x1f8   :  { %2047 = vmatprep.subr.bf16.mxu0 %v14869_v4  ;;  %2129 = vmatprep.subr.bf16.mxu1 %v14871_v8  ;;  %v14929_v4 = vcombine.high %v2192_v57, %v2196_v58  ;;  %v14931_v8 = vcombine.high %v2193_v60, %v2197_v62  ;;  %v2252_v51 = vld [vmem:[#allocation10 + $0x320] sm:$0xff]  ;;  %v2253_v61 = vld [vmem:[#allocation10 + $0x328] sm:$0xff] }
 0x1fb   :  { %2048 = vmatpush1.bf16.msra.mxu0 %v14868_v9  ;;  %2130 = vmatpush1.bf16.msra.mxu1 %v14870_v12  ;;  %v14928_v9 = vcombine.low %v2192_v57, %v2196_v58  ;;  %v14930_v12 = vcombine.low %v2193_v60, %v2197_v62  ;;  %v2256_v57 = vld [vmem:[#allocation10 + $0x340] sm:$0xff]  ;;  %v2257_v60 = vld [vmem:[#allocation10 + $0x348] sm:$0xff] }
 0x1fc   :  { %2049 = vmatprep.subr.bf16.mxu0 %v14877_v13  ;;  %2131 = vmatprep.subr.bf16.mxu1 %v14879_v17  ;;  %v14937_v13 = vcombine.high %v2200_v1, %v2204_v2  ;;  %v14939_v17 = vcombine.high %v2201_v5, %v2205_v6  ;;  %v2260_v58 = vld [vmem:[#allocation10 + $0x360] sm:$0xff]  ;;  %v2261_v62 = vld [vmem:[#allocation10 + $0x368] sm:$0xff] }
 0x1ff   :  { %2050 = vmatpush1.bf16.msra.mxu0 %v14876_v18  ;;  %2132 = vmatpush1.bf16.msra.mxu1 %v14878_v21  ;;  %v14936_v18 = vcombine.low %v2200_v1, %v2204_v2  ;;  %v14938_v21 = vcombine.low %v2201_v5, %v2205_v6  ;;  %v2264_v1 = vld [vmem:[#allocation10 + $0x380] sm:$0xff]  ;;  %v2265_v5 = vld [vmem:[#allocation10 + $0x388] sm:$0xff]  ;;  %v14995_v6 = vcombine.high %v2257_v60, %v2261_v62 }
 0x200   :  { %2051 = vmatprep.subr.bf16.mxu0 %v14885_v22  ;;  %2133 = vmatprep.subr.bf16.mxu1 %v14887_v25  ;;  %v14945_v22 = vcombine.high %v2208_v10, %v2212_v11  ;;  %v14947_v25 = vcombine.high %v2209_v14, %v2213_v16  ;;  %v2268_v2 = vld [vmem:[#allocation10 + $0x3a0] sm:$0xff] }
 0x203   :  { %2052 = vmatpush1.bf16.msra.mxu0 %v14884_v27  ;;  %2134 = vmatpush1.bf16.msra.mxu1 %v14886_v30  ;;  %v14944_v27 = vcombine.low %v2208_v10, %v2212_v11  ;;  %v14946_v30 = vcombine.low %v2209_v14, %v2213_v16  ;;  %v14994_v10 = vcombine.low %v2257_v60, %v2261_v62  ;;  %v2276_v14 = vld [vmem:[#allocation10 + $0x3e0] sm:$0xff]  ;;  %v2273_v16 = vld [vmem:[#allocation10 + $0x3c8] sm:$0xff] }
 0x204   :  { %5274 = vmatprep.subr.bf16.mxu0 %v14889_v31  ;;  %5438 = vmatprep.subr.bf16.mxu1 %v14891_v34  ;;  %v14953_v31 = vcombine.high %v2216_v19, %v2220_v20  ;;  %v14955_v34 = vcombine.high %v2217_v23, %v2221_v24  ;;  %v15001_v11 = vcombine.high %v2264_v1, %v2268_v2  ;;  %v2300_v62 = vld [vmem:[#allocation10 + $0x4a0] sm:$0xff] }
 0x206   :  { %2054 = vmatmul.mubr.bf16.vlgmr.msra.gmra.mrb[4].mxu0 %v18290_v53  ;;  %2136 = vmatmul.mubr.bf16.vlgmr.msra.gmra.mrb[4].mxu1 %v18290_v53  ;;  %v14913_v53 = vcombine.high %v2176_v43, %v2180_v44  ;;  %v2240_v43 = vld [vmem:[#allocation10 + $0x2c0] sm:$0xff] }
 0x207   :  { %5275 = vmatpush1.bf16.msra.mxu0 %v14888_v35  ;;  %5439 = vmatpush1.bf16.msra.mxu1 %v14890_v37  ;;  %v14952_v35 = vcombine.low %v2216_v19, %v2220_v20  ;;  %v14954_v37 = vcombine.low %v2217_v23, %v2221_v24  ;;  %v2244_v44 = vld [vmem:[#allocation10 + $0x2e0] sm:$0xff]  ;;  %v2281_v24 = vld [vmem:[#allocation10 + $0x408] sm:$0xff] }
 0x208   :  { %5276 = vmatprep.subr.bf16.mxu0 %v14897_v38  ;;  %5440 = vmatprep.subr.bf16.mxu1 %v14899_v41  ;;  %v14961_v38 = vcombine.high %v2224_v28, %v2228_v29  ;;  %v14963_v41 = vcombine.high %v2225_v32, %v2229_v33  ;;  %v2284_v23 = vld [vmem:[#allocation10 + $0x420] sm:$0xff] }
 0x20b   :  { %5277 = vmatpush1.bf16.msra.mxu0 %v14896_v42  ;;  %5441 = vmatpush1.bf16.msra.mxu1 %v14898_v45  ;;  %v14960_v42 = vcombine.low %v2224_v28, %v2228_v29  ;;  %v14962_v45 = vcombine.low %v2225_v32, %v2229_v33 }
 0x20c   :  { %5278 = vmatprep.subr.bf16.mxu0 %v14905_v46  ;;  %5442 = vmatprep.subr.bf16.mxu1 %v14907_v49  ;;  %v14969_v46 = vcombine.high %v2232_v7, %v2236_v36  ;;  %v14971_v49 = vcombine.high %v2233_v39, %v2237_v40 }
 0x20f   :  { %5279 = vmatpush1.bf16.msra.mxu0 %v14904_v50  ;;  %5443 = vmatpush1.bf16.msra.mxu1 %v14906_v52  ;;  %v14968_v50 = vcombine.low %v2232_v7, %v2236_v36  ;;  %v14970_v52 = vcombine.low %v2233_v39, %v2237_v40 }
 0x210   :  { %5280 = vmatprep.subr.bf16.mxu0 %v14913_v53  ;;  %5444 = vmatprep.subr.bf16.mxu1 %v14915_v55  ;;  %v14977_v53 = vcombine.high %v2240_v43, %v2244_v44  ;;  %v14979_v55 = vcombine.high %v2241_v47, %v2245_v48 }
 0x213   :  { %5281 = vmatpush1.bf16.msra.mxu0 %v14912_v56  ;;  %5445 = vmatpush1.bf16.msra.mxu1 %v14914_v26  ;;  %v14976_v56 = vcombine.low %v2240_v43, %v2244_v44  ;;  %v14978_v26 = vcombine.low %v2241_v47, %v2245_v48 }
 0x214   :  { %5282 = vmatprep.subr.bf16.mxu0 %v14921_v59  ;;  %5446 = vmatprep.subr.bf16.mxu1 %v14923_v63  ;;  %v14985_v59 = vcombine.high %v2248_v15, %v2252_v51  ;;  %v14987_v63 = vcombine.high %v2249_v54, %v2253_v61 }
 0x217   :  { %5283 = vmatpush1.bf16.msra.mxu0 %v14920_v0  ;;  %5447 = vmatpush1.bf16.msra.mxu1 %v14922_v3  ;;  %v14984_v0 = vcombine.low %v2248_v15, %v2252_v51  ;;  %v14986_v3 = vcombine.low %v2249_v54, %v2253_v61  ;;  %v2288_v51 = vld [vmem:[#allocation10 + $0x440] sm:$0xff]  ;;  %v2289_v54 = vld [vmem:[#allocation10 + $0x448] sm:$0xff] }
 0x218   :  { %5284 = vmatprep.subr.bf16.mxu0 %v14929_v4  ;;  %5448 = vmatprep.subr.bf16.mxu1 %v14931_v8  ;;  %v14993_v4 = vcombine.high %v2256_v57, %v2260_v58  ;;  %v2269_v8 = vld [vmem:[#allocation10 + $0x3a8] sm:$0xff] }
 0x219   :  { %v15002_v19 = vcombine.low %v2265_v5, %v2269_v8  ;;  %v2293_v61 = vld [vmem:[#allocation10 + $0x468] sm:$0xff] }
 0x21a   :  { %v15027_v60 = vcombine.high %v2289_v54, %v2293_v61 }
 0x21b   :  { %5285 = vmatpush1.bf16.msra.mxu0 %v14928_v9  ;;  %5449 = vmatpush1.bf16.msra.mxu1 %v14930_v12  ;;  %v14992_v9 = vcombine.low %v2256_v57, %v2260_v58  ;;  %v15003_v12 = vcombine.high %v2265_v5, %v2269_v8  ;;  %v2308_v8 = vld [vmem:[#allocation10 + $0x4e0] sm:$0xff] }
 0x21c   :  { %5286 = vmatprep.subr.bf16.mxu0 %v14937_v13  ;;  %5450 = vmatprep.subr.bf16.mxu1 %v14939_v17  ;;  %v2272_v13 = vld [vmem:[#allocation10 + $0x3c0] sm:$0xff]  ;;  %v2277_v17 = vld [vmem:[#allocation10 + $0x3e8] sm:$0xff] }
 0x21d   :  { %v15009_v20 = vcombine.high %v2272_v13, %v2276_v14  ;;  %v15010_v28 = vcombine.low %v2273_v16, %v2277_v17 }
 0x21f   :  { %5287 = vmatpush1.bf16.msra.mxu0 %v14936_v18  ;;  %5451 = vmatpush1.bf16.msra.mxu1 %v14938_v21  ;;  %v15000_v18 = vcombine.low %v2264_v1, %v2268_v2  ;;  %v15011_v21 = vcombine.high %v2273_v16, %v2277_v17  ;;  %v2312_v16 = vld [vmem:[#allocation10 + $0x500] sm:$0xff] }
 0x220   :  { %5288 = vmatprep.subr.bf16.mxu0 %v14945_v22  ;;  %5452 = vmatprep.subr.bf16.mxu1 %v14947_v25  ;;  %v2280_v22 = vld [vmem:[#allocation10 + $0x400] sm:$0xff]  ;;  %v2285_v25 = vld [vmem:[#allocation10 + $0x428] sm:$0xff] }
 0x221   :  { %v15017_v29 = vcombine.high %v2280_v22, %v2284_v23  ;;  %v15018_v57 = vcombine.low %v2281_v24, %v2285_v25  ;;  %v2316_v17 = vld [vmem:[#allocation10 + $0x520] sm:$0xff] }
 0x223   :  { %5289 = vmatpush1.bf16.msra.mxu0 %v14944_v27  ;;  %5453 = vmatpush1.bf16.msra.mxu1 %v14946_v30  ;;  %v15008_v27 = vcombine.low %v2272_v13, %v2276_v14  ;;  %v15019_v30 = vcombine.high %v2281_v24, %v2285_v25  ;;  %v2320_v24 = vld [vmem:[#allocation10 + $0x540] sm:$0xff] }
 0x224   :  { %5290 = vmatprep.subr.bf16.mxu0 %v14953_v31  ;;  %5454 = vmatprep.subr.bf16.mxu1 %v14955_v34  ;;  %v496_v31 = vlaneseq  ;;  %v18307_v34 = vld [vmem:[#allocation8] sm:$0xff]  ;;  %v2324_v25 = vld [vmem:[#allocation10 + $0x560] sm:$0xff] }
 0x226   :  { %v18302_v32 = vshrl.u32 %v496_v31, 7  ;;  %v15057_v31 = vcombine.high %v2320_v24, %v2324_v25 }
 0x227   :  { %5291 = vmatpush1.bf16.msra.mxu0 %v14952_v35  ;;  %5455 = vmatpush1.bf16.msra.mxu1 %v14954_v37 }
 0x228   :  { %5292 = vmatprep.subr.bf16.mxu0 %v14961_v38  ;;  %5456 = vmatprep.subr.bf16.mxu1 %v14963_v41  ;;  %v18305_v33 = vsub.s32 0, %v18302_v32  ;;  %v18310_v35 = vsub.s32 1, %v18302_v32  ;;  %v18313_v7 = vsub.s32 3, %v18302_v32 }
 0x22a   :  { %v499_v36 = vrot.slane %v18307_v34, %v18305_v33  ;;  %v503_v37 = vrot.slane %v18307_v34, %v18310_v35  ;;  %v511_v38 = vrot.slane %v18307_v34, %v18313_v7 }
 0x22b   :  { %5293 = vmatpush1.bf16.msra.mxu0 %v14960_v42  ;;  %5457 = vmatpush1.bf16.msra.mxu1 %v14962_v45 }
 0x22c   :  { %5294 = vmatprep.subr.bf16.mxu0 %v14969_v46  ;;  %5458 = vmatprep.subr.bf16.mxu1 %v14971_v49 }
 0x22f   :  { %5295 = vmatpush1.bf16.msra.mxu0 %v14968_v50  ;;  %5459 = vmatpush1.bf16.msra.mxu1 %v14970_v52 }
 0x230   :  { %5296 = vmatprep.subr.bf16.mxu0 %v14977_v53  ;;  %5460 = vmatprep.subr.bf16.mxu1 %v14979_v55  ;;  %v2292_v53 = vld [vmem:[#allocation10 + $0x460] sm:$0xff] }
 0x231   :  { %v15024_v2 = vcombine.low %v2288_v51, %v2292_v53 }
 0x233   :  { %5297 = vmatpush1.bf16.msra.mxu0 %v14976_v56  ;;  %5461 = vmatpush1.bf16.msra.mxu1 %v14978_v26  ;;  %v15016_v56 = vcombine.low %v2280_v22, %v2284_v23  ;;  %v2296_v26 = vld [vmem:[#allocation10 + $0x480] sm:$0xff]  ;;  %v15049_v22 = vcombine.high %v2312_v16, %v2316_v17 }
 0x234   :  { %5298 = vmatprep.subr.bf16.mxu0 %v14985_v59  ;;  %5462 = vmatprep.subr.bf16.mxu1 %v14987_v63  ;;  %v15025_v59 = vcombine.high %v2288_v51, %v2292_v53  ;;  %v2297_v63 = vld [vmem:[#allocation10 + $0x488] sm:$0xff]  ;;  %v2344_v53 = vld [vmem:[#allocation10 + $0x600] sm:$0xff] }
 0x237   :  { %5299 = vmatpush1.bf16.msra.mxu0 %v14984_v0  ;;  %5463 = vmatpush1.bf16.msra.mxu1 %v14986_v3  ;;  %v2301_v0 = vld [vmem:[#allocation10 + $0x4a8] sm:$0xff]  ;;  %v15026_v3 = vcombine.low %v2289_v54, %v2293_v61  ;;  %v2348_v54 = vld [vmem:[#allocation10 + $0x620] sm:$0xff] }
 0x238   :  { %5300 = vmatprep.subr.bf16.mxu0 %v14993_v4  ;;  %5464 = vmatprep.subr.bf16.mxu1 %v14995_v6  ;;  %v15033_v4 = vcombine.high %v2296_v26, %v2300_v62  ;;  %v15035_v5 = vcombine.high %v2297_v63, %v2301_v0  ;;  %v2304_v6 = vld [vmem:[#allocation10 + $0x4c0] sm:$0xff]  ;;  %v2345_v61 = vld [vmem:[#allocation10 + $0x608] sm:$0xff] }
 0x239   :  { %v15041_v13 = vcombine.high %v2304_v6, %v2308_v8 }
 0x23b   :  { %5301 = vmatpush1.bf16.msra.mxu0 %v14992_v9  ;;  %5465 = vmatpush1.bf16.msra.mxu1 %v14994_v10  ;;  %v2305_v9 = vld [vmem:[#allocation10 + $0x4c8] sm:$0xff] }
 0x23c   :  { %5302 = vmatprep.subr.bf16.mxu0 %v15001_v11  ;;  %5466 = vmatprep.subr.bf16.mxu1 %v15003_v12  ;;  %v2309_v10 = vld [vmem:[#allocation10 + $0x4e8] sm:$0xff]  ;;  %v15032_v11 = vcombine.low %v2296_v26, %v2300_v62  ;;  %v15034_v12 = vcombine.low %v2297_v63, %v2301_v0  ;;  %v2352_v62 = vld [vmem:[#allocation10 + $0x640] sm:$0xff] }
 0x23d   :  { %v15043_v14 = vcombine.high %v2305_v9, %v2309_v10  ;;  %v2356_v63 = vld [vmem:[#allocation10 + $0x660] sm:$0xff]  ;;  %v2353_v0 = vld [vmem:[#allocation10 + $0x648] sm:$0xff] }
 0x23f   :  { %5303 = vmatpush1.bf16.msra.mxu0 %v15000_v18  ;;  %5467 = vmatpush1.bf16.msra.mxu1 %v15002_v19  ;;  %v2313_v18 = vld [vmem:[#allocation10 + $0x508] sm:$0xff] }
 0x240   :  { %5304 = vmatprep.subr.bf16.mxu0 %v15009_v20  ;;  %5468 = vmatprep.subr.bf16.mxu1 %v15011_v21  ;;  %v2317_v19 = vld [vmem:[#allocation10 + $0x528] sm:$0xff]  ;;  %v15040_v20 = vcombine.low %v2304_v6, %v2308_v8  ;;  %v15042_v21 = vcombine.low %v2305_v9, %v2309_v10  ;;  %v2360_v8 = vld [vmem:[#allocation10 + $0x680] sm:$0xff] }
 0x241   :  { %v15051_v23 = vcombine.high %v2313_v18, %v2317_v19  ;;  %v2364_v9 = vld [vmem:[#allocation10 + $0x6a0] sm:$0xff]  ;;  %v2361_v10 = vld [vmem:[#allocation10 + $0x688] sm:$0xff] }
 0x243   :  { %5305 = vmatpush1.bf16.msra.mxu0 %v15008_v27  ;;  %5469 = vmatpush1.bf16.msra.mxu1 %v15010_v28  ;;  %v2321_v27 = vld [vmem:[#allocation10 + $0x548] sm:$0xff] }
 0x244   :  { %5315 = vmatprep.subr.bf16.mxu0 %v15017_v29  ;;  %5479 = vmatprep.subr.bf16.mxu1 %v15019_v30  ;;  %v2325_v28 = vld [vmem:[#allocation10 + $0x568] sm:$0xff]  ;;  %v15048_v29 = vcombine.low %v2312_v16, %v2316_v17  ;;  %v15050_v30 = vcombine.low %v2313_v18, %v2317_v19  ;;  %v2368_v17 = vld [vmem:[#allocation10 + $0x6c0] sm:$0xff] }
 0x245   :  { %v2372_v18 = vld [vmem:[#allocation10 + $0x6e0] sm:$0xff]  ;;  %v2369_v19 = vld [vmem:[#allocation10 + $0x6c8] sm:$0xff] }
 0x259   :  { %v1891_v39 = vpop.f32.mrb[0].mxu0  ;;  %v18321_v41 = vpop.f32.mrb[0].mxu1 }
 0x25a   :  { %v16552_v40 = vadd.f32 %v1891_v39, %v499_v36  ;;  %v1893_v42 = vpop.f32.mrb[1].mxu0  ;;  %v1975_v44 = vpop.f32.mrb[1].mxu1  ;;  %v15059_v36 = vcombine.high %v2321_v27, %v2325_v28  ;;  %v2329_v39 = vld [vmem:[#allocation10 + $0x588] sm:$0xff] }
 0x25b   :  { %v16553_v43 = vadd.f32 %v1893_v42, %v503_v37  ;;  %v1895_v45 = vpop.f32.mrb[2].mxu0  ;;  %v16555_v47 = vadd.f32 %v1975_v44, %v511_v38  ;;  %v1977_v48 = vpop.f32.mrb[2].mxu1  ;;  %v2328_v37 = vld [vmem:[#allocation10 + $0x580] sm:$0xff]  ;;  %v15056_v42 = vcombine.low %v2320_v24, %v2324_v25 }
 0x25c   :  { %v2144_v46 = vmax.f32 %v16552_v40, 0.0  ;;  %v1896_v49 = vpop.f32.mrb[3].mxu0  ;;  %v1978_v15 = vpop.f32.mrb[3].mxu1  ;;  %v2332_v38 = vld [vmem:[#allocation10 + $0x5a0] sm:$0xff]  ;;  %v2333_v40 = vld [vmem:[#allocation10 + $0x5a8] sm:$0xff] }
 0x25d   :  { %v2145_v50 = vmax.f32 %v16553_v43, 0.0  ;;  %v2147_v52 = vmax.f32 %v16555_v47, 0.0  ;;  %v15058_v43 = vcombine.low %v2321_v27, %v2325_v28  ;;  %v15065_v44 = vcombine.high %v2328_v37, %v2332_v38  ;;  %v2340_v47 = vld [vmem:[#allocation10 + $0x5e0] sm:$0xff]  ;;  %v2337_v48 = vld [vmem:[#allocation10 + $0x5c8] sm:$0xff] }
 0x25e   :  { %v18325_v58 = vpack.c.bf16 %v2144_v46, %v2144_v46  ;;  %v15067_v45 = vcombine.high %v2329_v39, %v2333_v40  ;;  %v2336_v46 = vld [vmem:[#allocation10 + $0x5c0] sm:$0xff]  ;;  %v2341_v49 = vld [vmem:[#allocation10 + $0x5e8] sm:$0xff]  ;;  %v15066_v15 = vcombine.low %v2329_v39, %v2333_v40 }
 0x25f   :  { %v18323_v55 = vpack.c.bf16 %v2145_v50, %v2145_v50  ;;  %v18329_v1 = vpack.c.bf16 %v2147_v52, %v2147_v52  ;;  %v15064_v50 = vcombine.low %v2328_v37, %v2332_v38  ;;  %v15073_v51 = vcombine.high %v2336_v46, %v2340_v47  ;;  %v2376_v25 = vld [vmem:[#allocation10 + $0x700] sm:$0xff]  ;;  %v2377_v28 = vld [vmem:[#allocation10 + $0x708] sm:$0xff] }
 0x260   :  { %v15075_v52 = vcombine.high %v2337_v48, %v2341_v49  ;;  %v15074_v26 = vcombine.low %v2337_v48, %v2341_v49  ;;  %v2380_v27 = vld [vmem:[#allocation10 + $0x720] sm:$0xff]  ;;  %v2385_v40 = vld [vmem:[#allocation10 + $0x748] sm:$0xff] }
 0x261   :  { %5306 = vmatprep.mubr.bf16.mxu0 %v18323_v55  ;;  %5470 = vmatprep.mubr.bf16.mxu1 %v18323_v55  ;;  %v2384_v38 = vld [vmem:[#allocation10 + $0x740] sm:$0xff] }
 0x262   :  { %5307 = vmatmul.mubr.bf16.vlgmr.msra.gmra.mrb[8].mxu0 %v18325_v58  ;;  %5471 = vmatmul.mubr.bf16.vlgmr.msra.gmra.mrb[8].mxu1 %v18325_v58  ;;  %v2388_v39 = vld [vmem:[#allocation10 + $0x760] sm:$0xff] }
 0x263   :  { %5316 = vmatpush1.bf16.msra.mxu0 %v15016_v56  ;;  %5480 = vmatpush1.bf16.msra.mxu1 %v15018_v57  ;;  %v2349_v56 = vld [vmem:[#allocation10 + $0x628] sm:$0xff]  ;;  %v15072_v57 = vcombine.low %v2336_v46, %v2340_v47  ;;  %v15121_v46 = vcombine.high %v2384_v38, %v2388_v39  ;;  %v2392_v48 = vld [vmem:[#allocation10 + $0x780] sm:$0xff] }
 0x264   :  { %5347 = vmatprep.mubr.bf16.mxu0 %v18329_v1  ;;  %5511 = vmatprep.mubr.bf16.mxu1 %v18329_v1  ;;  %v2396_v49 = vld [vmem:[#allocation10 + $0x7a0] sm:$0xff] }
 0x265   :  { %5317 = vmatprep.subr.bf16.mxu0 %v15025_v59  ;;  %5481 = vmatprep.subr.bf16.mxu1 %v15027_v60  ;;  %v15081_v59 = vcombine.high %v2344_v53, %v2348_v54  ;;  %v15083_v60 = vcombine.high %v2345_v61, %v2349_v56 }
 0x267   :  { %5318 = vmatpush1.bf16.msra.mxu0 %v15024_v2  ;;  %5482 = vmatpush1.bf16.msra.mxu1 %v15026_v3  ;;  %v2357_v2 = vld [vmem:[#allocation10 + $0x668] sm:$0xff]  ;;  %v15080_v3 = vcombine.low %v2344_v53, %v2348_v54  ;;  %v15129_v54 = vcombine.high %v2392_v48, %v2396_v49 }
 0x268   :  { %5319 = vmatprep.subr.bf16.mxu0 %v15033_v4  ;;  %5483 = vmatprep.subr.bf16.mxu1 %v15035_v5  ;;  %v15082_v4 = vcombine.low %v2345_v61, %v2349_v56  ;;  %v15089_v5 = vcombine.high %v2352_v62, %v2356_v63  ;;  %v15091_v6 = vcombine.high %v2353_v0, %v2357_v2  ;;  %v2400_v56 = vld [vmem:[#allocation10 + $0x7c0] sm:$0xff] }
 0x26b   :  { %5320 = vmatpush1.bf16.msra.mxu0 %v15032_v11  ;;  %5484 = vmatpush1.bf16.msra.mxu1 %v15034_v12  ;;  %v2365_v11 = vld [vmem:[#allocation10 + $0x6a8] sm:$0xff]  ;;  %v15088_v12 = vcombine.low %v2352_v62, %v2356_v63 }
 0x26c   :  { %5321 = vmatprep.subr.bf16.mxu0 %v15041_v13  ;;  %5485 = vmatprep.subr.bf16.mxu1 %v15043_v14  ;;  %v15090_v13 = vcombine.low %v2353_v0, %v2357_v2  ;;  %v15097_v14 = vcombine.high %v2360_v8, %v2364_v9  ;;  %v15099_v16 = vcombine.high %v2361_v10, %v2365_v11 }
 0x26f   :  { %5322 = vmatpush1.bf16.msra.mxu0 %v15040_v20  ;;  %5486 = vmatpush1.bf16.msra.mxu1 %v15042_v21  ;;  %v2373_v20 = vld [vmem:[#allocation10 + $0x6e8] sm:$0xff]  ;;  %v15096_v21 = vcombine.low %v2360_v8, %v2364_v9 }
 0x270   :  { %5323 = vmatprep.subr.bf16.mxu0 %v15049_v22  ;;  %5487 = vmatprep.subr.bf16.mxu1 %v15051_v23  ;;  %v15098_v22 = vcombine.low %v2361_v10, %v2365_v11  ;;  %v15105_v23 = vcombine.high %v2368_v17, %v2372_v18  ;;  %v15107_v24 = vcombine.high %v2369_v19, %v2373_v20 }
 0x273   :  { %5324 = vmatpush1.bf16.msra.mxu0 %v15048_v29  ;;  %5488 = vmatpush1.bf16.msra.mxu1 %v15050_v30  ;;  %v2381_v29 = vld [vmem:[#allocation10 + $0x728] sm:$0xff]  ;;  %v15104_v30 = vcombine.low %v2368_v17, %v2372_v18 }
 0x274   :  { %5325 = vmatprep.subr.bf16.mxu0 %v15057_v31  ;;  %5489 = vmatprep.subr.bf16.mxu1 %v15059_v36  ;;  %v15106_v31 = vcombine.low %v2369_v19, %v2373_v20  ;;  %v15113_v36 = vcombine.high %v2376_v25, %v2380_v27  ;;  %v15115_v37 = vcombine.high %v2377_v28, %v2381_v29 }
 0x277   :  { %5326 = vmatpush1.bf16.msra.mxu0 %v15056_v42  ;;  %5490 = vmatpush1.bf16.msra.mxu1 %v15058_v43  ;;  %v2389_v42 = vld [vmem:[#allocation10 + $0x768] sm:$0xff]  ;;  %v15112_v43 = vcombine.low %v2376_v25, %v2380_v27 }
 0x278   :  { %5327 = vmatprep.subr.bf16.mxu0 %v15065_v44  ;;  %5491 = vmatprep.subr.bf16.mxu1 %v15067_v45  ;;  %v15114_v44 = vcombine.low %v2377_v28, %v2381_v29  ;;  %v18336_v45 = vsub.s32 2, %v18302_v32  ;;  %v15123_v47 = vcombine.high %v2385_v40, %v2389_v42  ;;  %v2429_v25 = vld [vmem:[#allocation10 + $0x8a8] sm:$0xff] }
 0x27a   :  { %v507_v53 = vrot.slane %v18307_v34, %v18336_v45 }
 0x27b   :  { %5328 = vmatpush1.bf16.msra.mxu0 %v15064_v50  ;;  %5492 = vmatpush1.bf16.msra.mxu1 %v15066_v15  ;;  %v2393_v50 = vld [vmem:[#allocation10 + $0x788] sm:$0xff] }
 0x27c   :  { %5329 = vmatprep.subr.bf16.mxu0 %v15073_v51  ;;  %5493 = vmatprep.subr.bf16.mxu1 %v15075_v52  ;;  %v2397_v15 = vld [vmem:[#allocation10 + $0x7a8] sm:$0xff]  ;;  %v15120_v51 = vcombine.low %v2384_v38, %v2388_v39  ;;  %v15122_v52 = vcombine.low %v2385_v40, %v2389_v42  ;;  %v16554_v63 = vadd.f32 %v18321_v41, %v507_v53  ;;  %v2452_v53 = vld [vmem:[#allocation10 + $0x960] sm:$0xff] }
 0x27d   :  { %v15131_v61 = vcombine.high %v2393_v50, %v2397_v15  ;;  %v15130_v62 = vcombine.low %v2393_v50, %v2397_v15  ;;  %v2417_v41 = vld [vmem:[#allocation10 + $0x848] sm:$0xff] }
 0x27e   :  { %v2146_v10 = vmax.f32 %v16554_v63, 0.0  ;;  %v2437_v38 = vld [vmem:[#allocation10 + $0x8e8] sm:$0xff] }
 0x27f   :  { %5330 = vmatpush1.bf16.msra.mxu0 %v15072_v57  ;;  %5494 = vmatpush1.bf16.msra.mxu1 %v15074_v26  ;;  %v2404_v57 = vld [vmem:[#allocation10 + $0x7e0] sm:$0xff]  ;;  %v2401_v26 = vld [vmem:[#allocation10 + $0x7c8] sm:$0xff] }
 0x280   :  { %5331 = vmatprep.subr.bf16.mxu0 %v15081_v59  ;;  %5495 = vmatprep.subr.bf16.mxu1 %v15083_v60  ;;  %v2405_v59 = vld [vmem:[#allocation10 + $0x7e8] sm:$0xff]  ;;  %v15128_v60 = vcombine.low %v2392_v48, %v2396_v49  ;;  %v15137_v0 = vcombine.high %v2400_v56, %v2404_v57  ;;  %v15136_v8 = vcombine.low %v2400_v56, %v2404_v57 }
 0x281   :  { %v15139_v2 = vcombine.high %v2401_v26, %v2405_v59  ;;  %v15138_v9 = vcombine.low %v2401_v26, %v2405_v59  ;;  %v18341_v19 = vpack.c.bf16 %v2146_v10, %v2146_v10  ;;  %v2445_v48 = vld [vmem:[#allocation10 + $0x928] sm:$0xff] }
 0x282   :  { %v2457_v63 = vld [vmem:[#allocation10 + $0x988] sm:$0xff] }
 0x283   :  { %5332 = vmatpush1.bf16.msra.mxu0 %v15080_v3  ;;  %5496 = vmatpush1.bf16.msra.mxu1 %v15082_v4  ;;  %v2408_v3 = vld [vmem:[#allocation10 + $0x800] sm:$0xff]  ;;  %v2469_v10 = vld [vmem:[#allocation10 + $0x9e8] sm:$0xff] }
 0x284   :  { %5333 = vmatprep.subr.bf16.mxu0 %v15089_v5  ;;  %5497 = vmatprep.subr.bf16.mxu1 %v15091_v6  ;;  %v2412_v4 = vld [vmem:[#allocation10 + $0x820] sm:$0xff]  ;;  %v2409_v5 = vld [vmem:[#allocation10 + $0x808] sm:$0xff] }
 0x285   :  { %v2413_v6 = vld [vmem:[#allocation10 + $0x828] sm:$0xff]  ;;  %v15145_v11 = vcombine.high %v2408_v3, %v2412_v4  ;;  %v15144_v17 = vcombine.low %v2408_v3, %v2412_v4 }
 0x286   :  { %v15146_v18 = vcombine.low %v2409_v5, %v2413_v6 }
 0x287   :  { %5334 = vmatpush1.bf16.msra.mxu0 %v15088_v12  ;;  %5498 = vmatpush1.bf16.msra.mxu1 %v15090_v13  ;;  %v15147_v12 = vcombine.high %v2409_v5, %v2413_v6  ;;  %v2416_v13 = vld [vmem:[#allocation10 + $0x840] sm:$0xff] }
 0x288   :  { %5335 = vmatprep.subr.bf16.mxu0 %v15097_v14  ;;  %5499 = vmatprep.subr.bf16.mxu1 %v15099_v16  ;;  %v2420_v14 = vld [vmem:[#allocation10 + $0x860] sm:$0xff]  ;;  %v2421_v16 = vld [vmem:[#allocation10 + $0x868] sm:$0xff] }
 0x289   :  { %v15153_v20 = vcombine.high %v2416_v13, %v2420_v14  ;;  %v15152_v27 = vcombine.low %v2416_v13, %v2420_v14  ;;  %v15154_v28 = vcombine.low %v2417_v41, %v2421_v16  ;;  %v2464_v6 = vld [vmem:[#allocation10 + $0x9c0] sm:$0xff] }
 0x28b   :  { %5336 = vmatpush1.bf16.msra.mxu0 %v15096_v21  ;;  %5500 = vmatpush1.bf16.msra.mxu1 %v15098_v22  ;;  %v15155_v21 = vcombine.high %v2417_v41, %v2421_v16  ;;  %v2424_v22 = vld [vmem:[#allocation10 + $0x880] sm:$0xff] }
 0x28c   :  { %5337 = vmatprep.subr.bf16.mxu0 %v15105_v23  ;;  %5501 = vmatprep.subr.bf16.mxu1 %v15107_v24  ;;  %v2428_v23 = vld [vmem:[#allocation10 + $0x8a0] sm:$0xff]  ;;  %v2425_v24 = vld [vmem:[#allocation10 + $0x888] sm:$0xff] }
 0x28d   :  { %v15161_v29 = vcombine.high %v2424_v22, %v2428_v23  ;;  %v15160_v39 = vcombine.low %v2424_v22, %v2428_v23  ;;  %v15162_v40 = vcombine.low %v2425_v24, %v2429_v25  ;;  %v2472_v41 = vld [vmem:[#allocation10 + $0xa00] sm:$0xff] }
 0x28e   :  { %v2476_v16 = vld [vmem:[#allocation10 + $0xa20] sm:$0xff] }
 0x28f   :  { %5338 = vmatpush1.bf16.msra.mxu0 %v15104_v30  ;;  %5502 = vmatpush1.bf16.msra.mxu1 %v15106_v31  ;;  %v15163_v30 = vcombine.high %v2425_v24, %v2429_v25  ;;  %v2432_v31 = vld [vmem:[#allocation10 + $0x8c0] sm:$0xff]  ;;  %v15209_v22 = vcombine.high %v2472_v41, %v2476_v16 }
 0x290   :  { %5339 = vmatprep.subr.bf16.mxu0 %v15113_v36  ;;  %5503 = vmatprep.subr.bf16.mxu1 %v15115_v37  ;;  %v2436_v36 = vld [vmem:[#allocation10 + $0x8e0] sm:$0xff]  ;;  %v2433_v37 = vld [vmem:[#allocation10 + $0x8c8] sm:$0xff] }
 0x291   :  { %v15169_v42 = vcombine.high %v2432_v31, %v2436_v36  ;;  %v15168_v49 = vcombine.low %v2432_v31, %v2436_v36  ;;  %v15170_v50 = vcombine.low %v2433_v37, %v2437_v38  ;;  %v2480_v24 = vld [vmem:[#allocation10 + $0xa40] sm:$0xff] }
 0x292   :  { %v2484_v25 = vld [vmem:[#allocation10 + $0xa60] sm:$0xff] }
 0x293   :  { %5340 = vmatpush1.bf16.msra.mxu0 %v15112_v43  ;;  %5504 = vmatpush1.bf16.msra.mxu1 %v15114_v44  ;;  %v15171_v43 = vcombine.high %v2433_v37, %v2437_v38  ;;  %v2440_v44 = vld [vmem:[#allocation10 + $0x900] sm:$0xff]  ;;  %v15217_v31 = vcombine.high %v2480_v24, %v2484_v25 }
 0x294   :  { %5341 = vmatprep.subr.bf16.mxu0 %v15121_v46  ;;  %5505 = vmatprep.subr.bf16.mxu1 %v15123_v47  ;;  %v2444_v46 = vld [vmem:[#allocation10 + $0x920] sm:$0xff]  ;;  %v2441_v47 = vld [vmem:[#allocation10 + $0x908] sm:$0xff] }
 0x295   :  { %v15177_v15 = vcombine.high %v2440_v44, %v2444_v46  ;;  %v15176_v56 = vcombine.low %v2440_v44, %v2444_v46  ;;  %v15178_v57 = vcombine.low %v2441_v47, %v2445_v48  ;;  %v2488_v37 = vld [vmem:[#allocation10 + $0xa80] sm:$0xff] }
 0x296   :  { %v2492_v38 = vld [vmem:[#allocation10 + $0xaa0] sm:$0xff] }
 0x297   :  { %5342 = vmatpush1.bf16.msra.mxu0 %v15120_v51  ;;  %5506 = vmatpush1.bf16.msra.mxu1 %v15122_v52  ;;  %v15179_v51 = vcombine.high %v2441_v47, %v2445_v48  ;;  %v2448_v52 = vld [vmem:[#allocation10 + $0x940] sm:$0xff]  ;;  %v15225_v44 = vcombine.high %v2488_v37, %v2492_v38 }
 0x298   :  { %5343 = vmatprep.subr.bf16.mxu0 %v15129_v54  ;;  %5507 = vmatprep.subr.bf16.mxu1 %v15131_v61  ;;  %v2449_v54 = vld [vmem:[#allocation10 + $0x948] sm:$0xff]  ;;  %v15185_v26 = vcombine.high %v2448_v52, %v2452_v53  ;;  %v2496_v47 = vld [vmem:[#allocation10 + $0xac0] sm:$0xff] }
 0x299   :  { %v2453_v61 = vld [vmem:[#allocation10 + $0x968] sm:$0xff]  ;;  %v2500_v48 = vld [vmem:[#allocation10 + $0xae0] sm:$0xff] }
 0x29a   :  { %v15187_v59 = vcombine.high %v2449_v54, %v2453_v61  ;;  %v15186_v3 = vcombine.low %v2449_v54, %v2453_v61  ;;  %v2504_v54 = vld [vmem:[#allocation10 + $0xb00] sm:$0xff] }
 0x29b   :  { %5344 = vmatpush1.bf16.msra.mxu0 %v15128_v60  ;;  %5508 = vmatpush1.bf16.msra.mxu1 %v15130_v62  ;;  %v2456_v60 = vld [vmem:[#allocation10 + $0x980] sm:$0xff] }
 0x29c   :  { %5345 = vmatprep.subr.bf16.mxu0 %v15137_v0  ;;  %5509 = vmatprep.subr.bf16.mxu1 %v15139_v2  ;;  %v2460_v62 = vld [vmem:[#allocation10 + $0x9a0] sm:$0xff]  ;;  %v2461_v0 = vld [vmem:[#allocation10 + $0x9a8] sm:$0xff]  ;;  %v15184_v2 = vcombine.low %v2448_v52, %v2452_v53  ;;  %v15233_v52 = vcombine.high %v2496_v47, %v2500_v48 }
 0x29d   :  { %v15193_v4 = vcombine.high %v2456_v60, %v2460_v62  ;;  %v15195_v5 = vcombine.high %v2457_v63, %v2461_v0  ;;  %v2508_v61 = vld [vmem:[#allocation10 + $0xb20] sm:$0xff] }
 0x29f   :  { %5346 = vmatpush1.bf16.msra.mxu0 %v15136_v8  ;;  %5510 = vmatpush1.bf16.msra.mxu1 %v15138_v9  ;;  %v2468_v8 = vld [vmem:[#allocation10 + $0x9e0] sm:$0xff]  ;;  %v2465_v9 = vld [vmem:[#allocation10 + $0x9c8] sm:$0xff] }
 0x2a0   :  { %5356 = vmatprep.subr.bf16.mxu0 %v15145_v11  ;;  %5520 = vmatprep.subr.bf16.mxu1 %v15147_v12  ;;  %v15192_v11 = vcombine.low %v2456_v60, %v2460_v62  ;;  %v15194_v12 = vcombine.low %v2457_v63, %v2461_v0  ;;  %v15201_v13 = vcombine.high %v2464_v6, %v2468_v8  ;;  %v2512_v63 = vld [vmem:[#allocation10 + $0xb40] sm:$0xff] }
 0x2a1   :  { %v15203_v14 = vcombine.high %v2465_v9, %v2469_v10  ;;  %v15241_v60 = vcombine.high %v2504_v54, %v2508_v61  ;;  %v2516_v0 = vld [vmem:[#allocation10 + $0xb60] sm:$0xff] }
 0x2a2   :  { %5348 = vmatmul.mubr.bf16.vlgmr.msra.gmra.mrb[8].mxu0 %v18341_v19  ;;  %5512 = vmatmul.mubr.bf16.vlgmr.msra.gmra.mrb[8].mxu1 %v18341_v19 }
 0x2a3   :  { %5357 = vmatpush1.bf16.msra.mxu0 %v15144_v17  ;;  %5521 = vmatpush1.bf16.msra.mxu1 %v15146_v18  ;;  %v2473_v17 = vld [vmem:[#allocation10 + $0xa08] sm:$0xff] }
 0x2a4   :  { %5358 = vmatprep.subr.bf16.mxu0 %v15153_v20  ;;  %5522 = vmatprep.subr.bf16.mxu1 %v15155_v21  ;;  %v2477_v18 = vld [vmem:[#allocation10 + $0xa28] sm:$0xff]  ;;  %v15200_v20 = vcombine.low %v2464_v6, %v2468_v8  ;;  %v15202_v21 = vcombine.low %v2465_v9, %v2469_v10  ;;  %v15249_v6 = vcombine.high %v2512_v63, %v2516_v0  ;;  %v2520_v9 = vld [vmem:[#allocation10 + $0xb80] sm:$0xff] }
 0x2a5   :  { %v15211_v23 = vcombine.high %v2473_v17, %v2477_v18  ;;  %v2524_v10 = vld [vmem:[#allocation10 + $0xba0] sm:$0xff] }
 0x2a7   :  { %5359 = vmatpush1.bf16.msra.mxu0 %v15152_v27  ;;  %5523 = vmatpush1.bf16.msra.mxu1 %v15154_v28  ;;  %v2481_v27 = vld [vmem:[#allocation10 + $0xa48] sm:$0xff] }
 0x2a8   :  { %5360 = vmatprep.subr.bf16.mxu0 %v15161_v29  ;;  %5524 = vmatprep.subr.bf16.mxu1 %v15163_v30  ;;  %v2485_v28 = vld [vmem:[#allocation10 + $0xa68] sm:$0xff]  ;;  %v15208_v29 = vcombine.low %v2472_v41, %v2476_v16  ;;  %v15210_v30 = vcombine.low %v2473_v17, %v2477_v18  ;;  %v18349_v16 = vsub.s32 5, %v18302_v32  ;;  %v15257_v17 = vcombine.high %v2520_v9, %v2524_v10 }
 0x2a9   :  { %v15219_v36 = vcombine.high %v2481_v27, %v2485_v28 }
 0x2ab   :  { %5361 = vmatpush1.bf16.msra.mxu0 %v15160_v39  ;;  %5525 = vmatpush1.bf16.msra.mxu1 %v15162_v40  ;;  %v2489_v39 = vld [vmem:[#allocation10 + $0xa88] sm:$0xff] }
 0x2ac   :  { %5362 = vmatprep.subr.bf16.mxu0 %v15169_v42  ;;  %5526 = vmatprep.subr.bf16.mxu1 %v15171_v43  ;;  %v2493_v40 = vld [vmem:[#allocation10 + $0xaa8] sm:$0xff]  ;;  %v15216_v42 = vcombine.low %v2480_v24, %v2484_v25  ;;  %v15218_v43 = vcombine.low %v2481_v27, %v2485_v28  ;;  %v15256_v27 = vcombine.low %v2520_v9, %v2524_v10  ;;  %v2556_v9 = vld [vmem:[#allocation10 + $0xca0] sm:$0xff] }
 0x2ad   :  { %v15227_v46 = vcombine.high %v2489_v39, %v2493_v40  ;;  %v2533_v24 = vld [vmem:[#allocation10 + $0xbe8] sm:$0xff] }
 0x2ae   :  { %v2553_v10 = vld [vmem:[#allocation10 + $0xc88] sm:$0xff] }
 0x2af   :  { %5363 = vmatpush1.bf16.msra.mxu0 %v15168_v49  ;;  %5527 = vmatpush1.bf16.msra.mxu1 %v15170_v50  ;;  %v2497_v49 = vld [vmem:[#allocation10 + $0xac8] sm:$0xff] }
 0x2b0   :  { %5364 = vmatprep.subr.bf16.mxu0 %v15177_v15  ;;  %5528 = vmatprep.subr.bf16.mxu1 %v15179_v51  ;;  %v2501_v50 = vld [vmem:[#allocation10 + $0xae8] sm:$0xff]  ;;  %v15224_v15 = vcombine.low %v2488_v37, %v2492_v38  ;;  %v15226_v51 = vcombine.low %v2489_v39, %v2493_v40  ;;  %v2536_v37 = vld [vmem:[#allocation10 + $0xc00] sm:$0xff] }
 0x2b1   :  { %v15235_v53 = vcombine.high %v2497_v49, %v2501_v50  ;;  %v2540_v39 = vld [vmem:[#allocation10 + $0xc20] sm:$0xff]  ;;  %v2537_v40 = vld [vmem:[#allocation10 + $0xc08] sm:$0xff] }
 0x2b3   :  { %5365 = vmatpush1.bf16.msra.mxu0 %v15176_v56  ;;  %5529 = vmatpush1.bf16.msra.mxu1 %v15178_v57  ;;  %v2505_v56 = vld [vmem:[#allocation10 + $0xb08] sm:$0xff] }
 0x2b4   :  { %5366 = vmatprep.subr.bf16.mxu0 %v15185_v26  ;;  %5530 = vmatprep.subr.bf16.mxu1 %v15187_v59  ;;  %v2509_v57 = vld [vmem:[#allocation10 + $0xb28] sm:$0xff]  ;;  %v15232_v26 = vcombine.low %v2496_v47, %v2500_v48  ;;  %v15234_v59 = vcombine.low %v2497_v49, %v2501_v50 }
 0x2b5   :  { %v15243_v62 = vcombine.high %v2505_v56, %v2509_v57 }
 0x2b7   :  { %5367 = vmatpush1.bf16.msra.mxu0 %v15184_v2  ;;  %5531 = vmatpush1.bf16.msra.mxu1 %v15186_v3  ;;  %v2513_v2 = vld [vmem:[#allocation10 + $0xb48] sm:$0xff] }
 0x2b8   :  { %5368 = vmatprep.subr.bf16.mxu0 %v15193_v4  ;;  %5532 = vmatprep.subr.bf16.mxu1 %v15195_v5  ;;  %v2517_v3 = vld [vmem:[#allocation10 + $0xb68] sm:$0xff]  ;;  %v15240_v4 = vcombine.low %v2504_v54, %v2508_v61  ;;  %v15242_v5 = vcombine.low %v2505_v56, %v2509_v57  ;;  %v15273_v54 = vcombine.high %v2536_v37, %v2540_v39 }
 0x2b9   :  { %v15251_v8 = vcombine.high %v2513_v2, %v2517_v3  ;;  %v15250_v41 = vcombine.low %v2513_v2, %v2517_v3  ;;  %v15272_v2 = vcombine.low %v2536_v37, %v2540_v39  ;;  %v2573_v37 = vld [vmem:[#allocation10 + $0xd28] sm:$0xff] }
 0x2bb   :  { %5369 = vmatpush1.bf16.msra.mxu0 %v15192_v11  ;;  %5533 = vmatpush1.bf16.msra.mxu1 %v15194_v12  ;;  %v2521_v11 = vld [vmem:[#allocation10 + $0xb88] sm:$0xff] }
 0x2bc   :  { %5370 = vmatprep.subr.bf16.mxu0 %v15201_v13  ;;  %5534 = vmatprep.subr.bf16.mxu1 %v15203_v14  ;;  %v2525_v12 = vld [vmem:[#allocation10 + $0xba8] sm:$0xff]  ;;  %v18346_v13 = vsub.s32 4, %v18302_v32  ;;  %v15248_v14 = vcombine.low %v2512_v63, %v2516_v0 }
 0x2bd   :  { %v15259_v18 = vcombine.high %v2521_v11, %v2525_v12  ;;  %v15258_v28 = vcombine.low %v2521_v11, %v2525_v12  ;;  %v2549_v63 = vld [vmem:[#allocation10 + $0xc68] sm:$0xff] }
 0x2be   :  { %v515_v25 = vrot.slane %v18307_v34, %v18346_v13  ;;  %v2557_v11 = vld [vmem:[#allocation10 + $0xca8] sm:$0xff] }
 0x2bf   :  { %5371 = vmatpush1.bf16.msra.mxu0 %v15200_v20  ;;  %5535 = vmatpush1.bf16.msra.mxu1 %v15202_v21  ;;  %v18352_v20 = vsub.s32 7, %v18302_v32  ;;  %v2528_v21 = vld [vmem:[#allocation10 + $0xbc0] sm:$0xff] }
 0x2c0   :  { %5372 = vmatprep.subr.bf16.mxu0 %v15209_v22  ;;  %5536 = vmatprep.subr.bf16.mxu1 %v15211_v23  ;;  %v2532_v22 = vld [vmem:[#allocation10 + $0xbe0] sm:$0xff]  ;;  %v2529_v23 = vld [vmem:[#allocation10 + $0xbc8] sm:$0xff] }
 0x2c1   :  { %v15264_v50 = vcombine.low %v2528_v21, %v2532_v22 }
 0x2c3   :  { %5373 = vmatpush1.bf16.msra.mxu0 %v15208_v29  ;;  %5537 = vmatpush1.bf16.msra.mxu1 %v15210_v30  ;;  %v519_v29 = vrot.slane %v18307_v34, %v18349_v16  ;;  %v527_v30 = vrot.slane %v18307_v34, %v18352_v20 }
 0x2c4   :  { %5374 = vmatprep.subr.bf16.mxu0 %v15217_v31  ;;  %5538 = vmatprep.subr.bf16.mxu1 %v15219_v36  ;;  %v15265_v31 = vcombine.high %v2528_v21, %v2532_v22  ;;  %v15267_v36 = vcombine.high %v2529_v23, %v2533_v24  ;;  %v2560_v21 = vld [vmem:[#allocation10 + $0xcc0] sm:$0xff] }
 0x2c5   :  { %v2564_v22 = vld [vmem:[#allocation10 + $0xce0] sm:$0xff] }
 0x2c7   :  { %5375 = vmatpush1.bf16.msra.mxu0 %v15216_v42  ;;  %5539 = vmatpush1.bf16.msra.mxu1 %v15218_v43  ;;  %v2541_v42 = vld [vmem:[#allocation10 + $0xc28] sm:$0xff] }
 0x2c8   :  { %5376 = vmatprep.subr.bf16.mxu0 %v15225_v44  ;;  %5540 = vmatprep.subr.bf16.mxu1 %v15227_v46  ;;  %v15275_v61 = vcombine.high %v2537_v40, %v2541_v42  ;;  %v15274_v3 = vcombine.low %v2537_v40, %v2541_v42 }
 0x2cb   :  { %5377 = vmatpush1.bf16.msra.mxu0 %v15224_v15  ;;  %5541 = vmatpush1.bf16.msra.mxu1 %v15226_v51  ;;  %v15266_v15 = vcombine.low %v2529_v23, %v2533_v24  ;;  %v2561_v23 = vld [vmem:[#allocation10 + $0xcc8] sm:$0xff] }
 0x2cc   :  { %5378 = vmatprep.subr.bf16.mxu0 %v15233_v52  ;;  %5542 = vmatprep.subr.bf16.mxu1 %v15235_v53  ;;  %v2565_v24 = vld [vmem:[#allocation10 + $0xce8] sm:$0xff] }
 0x2cd   :  { %v15298_v39 = vcombine.low %v2561_v23, %v2565_v24 }
 0x2cf   :  { %5379 = vmatpush1.bf16.msra.mxu0 %v15232_v26  ;;  %5543 = vmatpush1.bf16.msra.mxu1 %v15234_v59  ;;  %v2544_v26 = vld [vmem:[#allocation10 + $0xc40] sm:$0xff] }
 0x2d0   :  { %5380 = vmatprep.subr.bf16.mxu0 %v15241_v60  ;;  %5544 = vmatprep.subr.bf16.mxu1 %v15243_v62  ;;  %v2548_v60 = vld [vmem:[#allocation10 + $0xc60] sm:$0xff]  ;;  %v2545_v62 = vld [vmem:[#allocation10 + $0xc48] sm:$0xff] }
 0x2d3   :  { %5381 = vmatpush1.bf16.msra.mxu0 %v15240_v4  ;;  %5545 = vmatpush1.bf16.msra.mxu1 %v15242_v5  ;;  %v2552_v5 = vld [vmem:[#allocation10 + $0xc80] sm:$0xff] }
 0x2d4   :  { %5382 = vmatprep.subr.bf16.mxu0 %v15249_v6  ;;  %5546 = vmatprep.subr.bf16.mxu1 %v15251_v8  ;;  %v15281_v6 = vcombine.high %v2544_v26, %v2548_v60  ;;  %v15283_v8 = vcombine.high %v2545_v62, %v2549_v63 }
 0x2d7   :  { %5383 = vmatpush1.bf16.msra.mxu0 %v15248_v14  ;;  %5547 = vmatpush1.bf16.msra.mxu1 %v15250_v41  ;;  %v15280_v14 = vcombine.low %v2544_v26, %v2548_v60  ;;  %v15282_v41 = vcombine.low %v2545_v62, %v2549_v63  ;;  %v2596_v60 = vld [vmem:[#allocation10 + $0xde0] sm:$0xff]  ;;  %v2593_v62 = vld [vmem:[#allocation10 + $0xdc8] sm:$0xff] }
 0x2d8   :  { %5384 = vmatprep.subr.bf16.mxu0 %v15257_v17  ;;  %5548 = vmatprep.subr.bf16.mxu1 %v15259_v18  ;;  %v15289_v17 = vcombine.high %v2552_v5, %v2556_v9  ;;  %v15291_v18 = vcombine.high %v2553_v10, %v2557_v11  ;;  %v2597_v63 = vld [vmem:[#allocation10 + $0xde8] sm:$0xff] }
 0x2d9   :  { %v2055_v38 = vpop.f32.mrb[4].mxu0  ;;  %v18360_v44 = vpop.f32.mrb[4].mxu1 }
 0x2da   :  { %v16556_v43 = vadd.f32 %v2055_v38, %v515_v25  ;;  %v2057_v46 = vpop.f32.mrb[5].mxu0  ;;  %v2139_v48 = vpop.f32.mrb[5].mxu1  ;;  %v15288_v25 = vcombine.low %v2552_v5, %v2556_v9  ;;  %v15296_v38 = vcombine.low %v2560_v21, %v2564_v22  ;;  %v2604_v9 = vld [vmem:[#allocation10 + $0xe20] sm:$0xff] }
 0x2db   :  { %v16557_v47 = vadd.f32 %v2057_v46, %v519_v29  ;;  %5385 = vmatpush1.bf16.msra.mxu0 %v15256_v27  ;;  %5549 = vmatpush1.bf16.msra.mxu1 %v15258_v28  ;;  %v2059_v49 = vpop.f32.mrb[6].mxu0  ;;  %v16559_v34 = vadd.f32 %v2139_v48, %v527_v30  ;;  %v2141_v52 = vpop.f32.mrb[6].mxu1  ;;  %v15290_v27 = vcombine.low %v2553_v10, %v2557_v11  ;;  %v2568_v30 = vld [vmem:[#allocation10 + $0xd00] sm:$0xff]  ;;  %v2581_v48 = vld [vmem:[#allocation10 + $0xd68] sm:$0xff] }
 0x2dc   :  { %v2148_v51 = vmax.f32 %v16556_v43, 0.0  ;;  %v2060_v53 = vpop.f32.mrb[7].mxu0  ;;  %5386 = vmatprep.subr.bf16.mxu0 %v15265_v31  ;;  %5550 = vmatprep.subr.bf16.mxu1 %v15267_v36  ;;  %v2142_v57 = vpop.f32.mrb[7].mxu1  ;;  %v15297_v28 = vcombine.high %v2560_v21, %v2564_v22  ;;  %v15299_v29 = vcombine.high %v2561_v23, %v2565_v24  ;;  %v2572_v31 = vld [vmem:[#allocation10 + $0xd20] sm:$0xff]  ;;  %v2569_v36 = vld [vmem:[#allocation10 + $0xd08] sm:$0xff] }
 0x2dd   :  { %v2149_v56 = vmax.f32 %v16557_v47, 0.0  ;;  %v2151_v59 = vmax.f32 %v16559_v34, 0.0  ;;  %v15305_v40 = vcombine.high %v2568_v30, %v2572_v31  ;;  %v15307_v42 = vcombine.high %v2569_v36, %v2573_v37  ;;  %v2576_v43 = vld [vmem:[#allocation10 + $0xd40] sm:$0xff]  ;;  %v2577_v47 = vld [vmem:[#allocation10 + $0xd48] sm:$0xff] }
 0x2de   :  { %v18364_v4 = vpack.c.bf16 %v2148_v51, %v2148_v51  ;;  %v2580_v46 = vld [vmem:[#allocation10 + $0xd60] sm:$0xff]  ;;  %v15304_v49 = vcombine.low %v2568_v30, %v2572_v31  ;;  %v15315_v51 = vcombine.high %v2577_v47, %v2581_v48  ;;  %v2585_v53 = vld [vmem:[#allocation10 + $0xd88] sm:$0xff] }
 0x2df   :  { %v18362_v0 = vpack.c.bf16 %v2149_v56, %v2149_v56  ;;  %5387 = vmatpush1.bf16.msra.mxu0 %v15264_v50  ;;  %5551 = vmatpush1.bf16.msra.mxu1 %v15266_v15  ;;  %v18368_v12 = vpack.c.bf16 %v2151_v59, %v2151_v59  ;;  %v15306_v50 = vcombine.low %v2569_v36, %v2573_v37  ;;  %v2584_v34 = vld [vmem:[#allocation10 + $0xd80] sm:$0xff]  ;;  %v2601_v10 = vld [vmem:[#allocation10 + $0xe08] sm:$0xff] }
 0x2e0   :  { %5397 = vmatprep.subr.bf16.mxu0 %v15273_v54  ;;  %5561 = vmatprep.subr.bf16.mxu1 %v15275_v61  ;;  %v15313_v15 = vcombine.high %v2576_v43, %v2580_v46  ;;  %v2588_v52 = vld [vmem:[#allocation10 + $0xda0] sm:$0xff]  ;;  %v2589_v54 = vld [vmem:[#allocation10 + $0xda8] sm:$0xff]  ;;  %v15312_v61 = vcombine.low %v2576_v43, %v2580_v46  ;;  %v15314_v56 = vcombine.low %v2577_v47, %v2581_v48 }
 0x2e1   :  { %5388 = vmatprep.mubr.bf16.mxu0 %v18362_v0  ;;  %5552 = vmatprep.mubr.bf16.mxu1 %v18362_v0  ;;  %v15321_v57 = vcombine.high %v2584_v34, %v2588_v52  ;;  %v15323_v26 = vcombine.high %v2585_v53, %v2589_v54  ;;  %v2592_v59 = vld [vmem:[#allocation10 + $0xdc0] sm:$0xff]  ;;  %v2605_v11 = vld [vmem:[#allocation10 + $0xe28] sm:$0xff] }
 0x2e2   :  { %5389 = vmatmul.mubr.bf16.vlgmr.msra.gmra.mrb[8].mxu0 %v18364_v4  ;;  %5553 = vmatmul.mubr.bf16.vlgmr.msra.gmra.mrb[8].mxu1 %v18364_v4  ;;  %v15329_v5 = vcombine.high %v2592_v59, %v2596_v60  ;;  %v2608_v21 = vld [vmem:[#allocation10 + $0xe40] sm:$0xff]  ;;  %v2609_v23 = vld [vmem:[#allocation10 + $0xe48] sm:$0xff] }
 0x2e3   :  { %5398 = vmatpush1.bf16.msra.mxu0 %v15272_v2  ;;  %5562 = vmatpush1.bf16.msra.mxu1 %v15274_v3  ;;  %v15320_v2 = vcombine.low %v2584_v34, %v2588_v52  ;;  %v15322_v3 = vcombine.low %v2585_v53, %v2589_v54  ;;  %v2612_v22 = vld [vmem:[#allocation10 + $0xe60] sm:$0xff]  ;;  %v2613_v24 = vld [vmem:[#allocation10 + $0xe68] sm:$0xff] }
 0x2e4   :  { %5429 = vmatprep.mubr.bf16.mxu0 %v18368_v12  ;;  %5593 = vmatprep.mubr.bf16.mxu1 %v18368_v12  ;;  %v2616_v30 = vld [vmem:[#allocation10 + $0xe80] sm:$0xff]  ;;  %v2617_v36 = vld [vmem:[#allocation10 + $0xe88] sm:$0xff] }
 0x2e5   :  { %5399 = vmatprep.subr.bf16.mxu0 %v15281_v6  ;;  %5563 = vmatprep.subr.bf16.mxu1 %v15283_v8  ;;  %v15331_v6 = vcombine.high %v2593_v62, %v2597_v63  ;;  %v2600_v8 = vld [vmem:[#allocation10 + $0xe00] sm:$0xff]  ;;  %v2621_v37 = vld [vmem:[#allocation10 + $0xea8] sm:$0xff] }
 0x2e6   :  { %v2620_v31 = vld [vmem:[#allocation10 + $0xea0] sm:$0xff]  ;;  %v2625_v47 = vld [vmem:[#allocation10 + $0xec8] sm:$0xff] }
 0x2e7   :  { %5400 = vmatpush1.bf16.msra.mxu0 %v15280_v14  ;;  %5564 = vmatpush1.bf16.msra.mxu1 %v15282_v41  ;;  %v15328_v14 = vcombine.low %v2592_v59, %v2596_v60  ;;  %v15330_v41 = vcombine.low %v2593_v62, %v2597_v63  ;;  %v2624_v43 = vld [vmem:[#allocation10 + $0xec0] sm:$0xff]  ;;  %v2629_v48 = vld [vmem:[#allocation10 + $0xee8] sm:$0xff] }
 0x2e8   :  { %5401 = vmatprep.subr.bf16.mxu0 %v15289_v17  ;;  %5565 = vmatprep.subr.bf16.mxu1 %v15291_v18  ;;  %v15337_v17 = vcombine.high %v2600_v8, %v2604_v9  ;;  %v15339_v18 = vcombine.high %v2601_v10, %v2605_v11  ;;  %v2628_v46 = vld [vmem:[#allocation10 + $0xee0] sm:$0xff]  ;;  %v2633_v53 = vld [vmem:[#allocation10 + $0xf08] sm:$0xff] }
 0x2e9   :  { %v2632_v34 = vld [vmem:[#allocation10 + $0xf00] sm:$0xff]  ;;  %v2637_v54 = vld [vmem:[#allocation10 + $0xf28] sm:$0xff] }
 0x2ea   :  { %v2636_v52 = vld [vmem:[#allocation10 + $0xf20] sm:$0xff]  ;;  %v2641_v62 = vld [vmem:[#allocation10 + $0xf48] sm:$0xff] }
 0x2eb   :  { %5402 = vmatpush1.bf16.msra.mxu0 %v15288_v25  ;;  %5566 = vmatpush1.bf16.msra.mxu1 %v15290_v27  ;;  %v15336_v25 = vcombine.low %v2600_v8, %v2604_v9  ;;  %v15338_v27 = vcombine.low %v2601_v10, %v2605_v11  ;;  %v2640_v59 = vld [vmem:[#allocation10 + $0xf40] sm:$0xff]  ;;  %v2645_v63 = vld [vmem:[#allocation10 + $0xf68] sm:$0xff] }
 0x2ec   :  { %5403 = vmatprep.subr.bf16.mxu0 %v15297_v28  ;;  %5567 = vmatprep.subr.bf16.mxu1 %v15299_v29  ;;  %v15345_v28 = vcombine.high %v2608_v21, %v2612_v22  ;;  %v15347_v29 = vcombine.high %v2609_v23, %v2613_v24  ;;  %v2644_v60 = vld [vmem:[#allocation10 + $0xf60] sm:$0xff]  ;;  %v15379_v8 = vcombine.high %v2641_v62, %v2645_v63  ;;  %v2649_v11 = vld [vmem:[#allocation10 + $0xf88] sm:$0xff] }
 0x2ed   :  { %v2648_v9 = vld [vmem:[#allocation10 + $0xf80] sm:$0xff] }
 0x2ee   :  { %v2652_v10 = vld [vmem:[#allocation10 + $0xfa0] sm:$0xff] }
 0x2ef   :  { %5404 = vmatpush1.bf16.msra.mxu0 %v15296_v38  ;;  %5568 = vmatpush1.bf16.msra.mxu1 %v15298_v39  ;;  %v15344_v38 = vcombine.low %v2608_v21, %v2612_v22  ;;  %v15346_v39 = vcombine.low %v2609_v23, %v2613_v24  ;;  %v15385_v22 = vcombine.high %v2648_v9, %v2652_v10  ;;  %v2656_v23 = vld [vmem:[#allocation10 + $0xfc0] sm:$0xff] }
 0x2f0   :  { %5405 = vmatprep.subr.bf16.mxu0 %v15305_v40  ;;  %5569 = vmatprep.subr.bf16.mxu1 %v15307_v42  ;;  %v15353_v40 = vcombine.high %v2616_v30, %v2620_v31  ;;  %v15355_v42 = vcombine.high %v2617_v36, %v2621_v37  ;;  %v2660_v24 = vld [vmem:[#allocation10 + $0xfe0] sm:$0xff] }
 0x2f3   :  { %5406 = vmatpush1.bf16.msra.mxu0 %v15304_v49  ;;  %5570 = vmatpush1.bf16.msra.mxu1 %v15306_v50  ;;  %v15352_v49 = vcombine.low %v2616_v30, %v2620_v31  ;;  %v15354_v50 = vcombine.low %v2617_v36, %v2621_v37  ;;  %v15393_v31 = vcombine.high %v2656_v23, %v2660_v24  ;;  %v2154_v37 = vld [vmem:[#allocation10 + $0x10] sm:$0xff] }
 0x2f4   :  { %5407 = vmatprep.subr.bf16.mxu0 %v15313_v15  ;;  %5571 = vmatprep.subr.bf16.mxu1 %v15315_v51  ;;  %v15361_v15 = vcombine.high %v2624_v43, %v2628_v46  ;;  %v15363_v51 = vcombine.high %v2625_v47, %v2629_v48 }
 0x2f7   :  { %5408 = vmatpush1.bf16.msra.mxu0 %v15312_v61  ;;  %5572 = vmatpush1.bf16.msra.mxu1 %v15314_v56  ;;  %v15360_v61 = vcombine.low %v2624_v43, %v2628_v46  ;;  %v15362_v56 = vcombine.low %v2625_v47, %v2629_v48 }
 0x2f8   :  { %5409 = vmatprep.subr.bf16.mxu0 %v15321_v57  ;;  %5573 = vmatprep.subr.bf16.mxu1 %v15323_v26  ;;  %v15369_v57 = vcombine.high %v2632_v34, %v2636_v52  ;;  %v15371_v26 = vcombine.high %v2633_v53, %v2637_v54 }
 0x2fb   :  { %5410 = vmatpush1.bf16.msra.mxu0 %v15320_v2  ;;  %5574 = vmatpush1.bf16.msra.mxu1 %v15322_v3  ;;  %v15368_v2 = vcombine.low %v2632_v34, %v2636_v52  ;;  %v15370_v3 = vcombine.low %v2633_v53, %v2637_v54 }
 0x2fc   :  { %5411 = vmatprep.subr.bf16.mxu0 %v15329_v5  ;;  %5575 = vmatprep.subr.bf16.mxu1 %v15331_v6  ;;  %v18375_v5 = vsub.s32 6, %v18302_v32  ;;  %v15377_v6 = vcombine.high %v2640_v59, %v2644_v60 }
 0x2ff   :  { %5412 = vmatpush1.bf16.msra.mxu0 %v15328_v14  ;;  %5576 = vmatpush1.bf16.msra.mxu1 %v15330_v41  ;;  %v2653_v14 = vld [vmem:[#allocation10 + $0xfa8] sm:$0xff]  ;;  %v15376_v41 = vcombine.low %v2640_v59, %v2644_v60 }
 0x300   :  { %5413 = vmatprep.subr.bf16.mxu0 %v15337_v17  ;;  %5577 = vmatprep.subr.bf16.mxu1 %v15339_v18  ;;  %v15378_v17 = vcombine.low %v2641_v62, %v2645_v63  ;;  %v17563_v18 = vld [vmem:[#allocation8] sm:$0xff]  ;;  %v15387_v32 = vcombine.high %v2649_v11, %v2653_v14 }
 0x301   :  { %v523_v21 = vrot.slane %v17563_v18, %v18375_v5  ;;  %v2191_v18 = vld [vmem:[#allocation10 + $0x138] sm:$0xff] }
 0x303   :  { %5414 = vmatpush1.bf16.msra.mxu0 %v15336_v25  ;;  %5578 = vmatpush1.bf16.msra.mxu1 %v15338_v27  ;;  %v2657_v25 = vld [vmem:[#allocation10 + $0xfc8] sm:$0xff]  ;;  %v16558_v30 = vadd.f32 %v18360_v44, %v523_v21  ;;  %v2163_v44 = vld [vmem:[#allocation10 + $0x58] sm:$0xff] }
 0x304   :  { %5415 = vmatprep.subr.bf16.mxu0 %v15345_v28  ;;  %5579 = vmatprep.subr.bf16.mxu1 %v15347_v29  ;;  %v2661_v27 = vld [vmem:[#allocation10 + $0xfe8] sm:$0xff]  ;;  %v15384_v28 = vcombine.low %v2648_v9, %v2652_v10  ;;  %v15386_v29 = vcombine.low %v2649_v11, %v2653_v14 }
 0x305   :  { %v15395_v36 = vcombine.high %v2657_v25, %v2661_v27  ;;  %v15394_v43 = vcombine.low %v2657_v25, %v2661_v27  ;;  %v2150_v46 = vmax.f32 %v16558_v30, 0.0  ;;  %v2198_v25 = vld [vmem:[#allocation10 + $0x170] sm:$0xff]  ;;  %v2195_v27 = vld [vmem:[#allocation10 + $0x158] sm:$0xff] }
 0x307   :  { %5416 = vmatpush1.bf16.msra.mxu0 %v15344_v38  ;;  %5580 = vmatpush1.bf16.msra.mxu1 %v15346_v39  ;;  %v2158_v38 = vld [vmem:[#allocation10 + $0x30] sm:$0xff]  ;;  %v2155_v39 = vld [vmem:[#allocation10 + $0x18] sm:$0xff]  ;;  %v18379_v34 = vpack.c.bf16 %v2150_v46, %v2150_v46 }
 0x308   :  { %5417 = vmatprep.subr.bf16.mxu0 %v15353_v40  ;;  %5581 = vmatprep.subr.bf16.mxu1 %v15355_v42  ;;  %v2159_v40 = vld [vmem:[#allocation10 + $0x38] sm:$0xff]  ;;  %v15392_v42 = vcombine.low %v2656_v23, %v2660_v24  ;;  %v14893_v47 = vcombine.high %v2154_v37, %v2158_v38  ;;  %v2194_v24 = vld [vmem:[#allocation10 + $0x150] sm:$0xff] }
 0x309   :  { %v14895_v48 = vcombine.high %v2155_v39, %v2159_v40  ;;  %v14894_v52 = vcombine.low %v2155_v39, %v2159_v40  ;;  %v2203_v39 = vld [vmem:[#allocation10 + $0x198] sm:$0xff] }
 0x30a   :  { %v2207_v40 = vld [vmem:[#allocation10 + $0x1b8] sm:$0xff] }
 0x30b   :  { %5418 = vmatpush1.bf16.msra.mxu0 %v15352_v49  ;;  %5582 = vmatpush1.bf16.msra.mxu1 %v15354_v50  ;;  %v2162_v49 = vld [vmem:[#allocation10 + $0x50] sm:$0xff] }
 0x30c   :  { %5419 = vmatprep.subr.bf16.mxu0 %v15361_v15  ;;  %5583 = vmatprep.subr.bf16.mxu1 %v15363_v51  ;;  %v2166_v50 = vld [vmem:[#allocation10 + $0x70] sm:$0xff]  ;;  %v2167_v15 = vld [vmem:[#allocation10 + $0x78] sm:$0xff]  ;;  %v14892_v51 = vcombine.low %v2154_v37, %v2158_v38 }
 0x30d   :  { %v14901_v53 = vcombine.high %v2162_v49, %v2166_v50  ;;  %v14903_v54 = vcombine.high %v2163_v44, %v2167_v15  ;;  %v14900_v59 = vcombine.low %v2162_v49, %v2166_v50  ;;  %v14902_v60 = vcombine.low %v2163_v44, %v2167_v15  ;;  %v2202_v37 = vld [vmem:[#allocation10 + $0x190] sm:$0xff]  ;;  %v2211_v50 = vld [vmem:[#allocation10 + $0x1d8] sm:$0xff] }
 0x30e   :  { %v2206_v38 = vld [vmem:[#allocation10 + $0x1b0] sm:$0xff]  ;;  %v2215_v44 = vld [vmem:[#allocation10 + $0x1f8] sm:$0xff] }
 0x30f   :  { %5420 = vmatpush1.bf16.msra.mxu0 %v15360_v61  ;;  %5584 = vmatpush1.bf16.msra.mxu1 %v15362_v56  ;;  %v2170_v61 = vld [vmem:[#allocation10 + $0x90] sm:$0xff]  ;;  %v14941_v46 = vcombine.high %v2202_v37, %v2206_v38  ;;  %v14940_v15 = vcombine.low %v2202_v37, %v2206_v38  ;;  %v2251_v38 = vld [vmem:[#allocation10 + $0x318] sm:$0xff] }
 0x310   :  { %5421 = vmatprep.subr.bf16.mxu0 %v15369_v57  ;;  %5585 = vmatprep.subr.bf16.mxu1 %v15371_v26  ;;  %v2174_v56 = vld [vmem:[#allocation10 + $0xb0] sm:$0xff]  ;;  %v2171_v57 = vld [vmem:[#allocation10 + $0x98] sm:$0xff] }
 0x311   :  { %v2175_v26 = vld [vmem:[#allocation10 + $0xb8] sm:$0xff]  ;;  %v14909_v62 = vcombine.high %v2170_v61, %v2174_v56  ;;  %v14908_v9 = vcombine.low %v2170_v61, %v2174_v56  ;;  %v2214_v49 = vld [vmem:[#allocation10 + $0x1f0] sm:$0xff] }
 0x312   :  { %v14911_v63 = vcombine.high %v2171_v57, %v2175_v26  ;;  %v14910_v10 = vcombine.low %v2171_v57, %v2175_v26  ;;  %v2222_v61 = vld [vmem:[#allocation10 + $0x230] sm:$0xff]  ;;  %v2219_v56 = vld [vmem:[#allocation10 + $0x218] sm:$0xff] }
 0x313   :  { %5422 = vmatpush1.bf16.msra.mxu0 %v15368_v2  ;;  %5586 = vmatpush1.bf16.msra.mxu1 %v15370_v3  ;;  %v2178_v2 = vld [vmem:[#allocation10 + $0xd0] sm:$0xff]  ;;  %v2223_v57 = vld [vmem:[#allocation10 + $0x238] sm:$0xff] }
 0x314   :  { %5423 = vmatprep.subr.bf16.mxu0 %v15377_v6  ;;  %5587 = vmatprep.subr.bf16.mxu1 %v15379_v8  ;;  %v2182_v3 = vld [vmem:[#allocation10 + $0xf0] sm:$0xff]  ;;  %v2179_v6 = vld [vmem:[#allocation10 + $0xd8] sm:$0xff] }
 0x315   :  { %v2183_v8 = vld [vmem:[#allocation10 + $0xf8] sm:$0xff]  ;;  %v14917_v11 = vcombine.high %v2178_v2, %v2182_v3  ;;  %v14916_v21 = vcombine.low %v2178_v2, %v2182_v3  ;;  %v2230_v2 = vld [vmem:[#allocation10 + $0x270] sm:$0xff] }
 0x316   :  { %v14919_v14 = vcombine.high %v2179_v6, %v2183_v8  ;;  %v2227_v3 = vld [vmem:[#allocation10 + $0x258] sm:$0xff]  ;;  %v2254_v37 = vld [vmem:[#allocation10 + $0x330] sm:$0xff] }
 0x317   :  { %5424 = vmatpush1.bf16.msra.mxu0 %v15376_v41  ;;  %5588 = vmatpush1.bf16.msra.mxu1 %v15378_v17  ;;  %v2186_v41 = vld [vmem:[#allocation10 + $0x110] sm:$0xff] }
 0x318   :  { %5425 = vmatprep.subr.bf16.mxu0 %v15385_v22  ;;  %5589 = vmatprep.subr.bf16.mxu1 %v15387_v32  ;;  %v2190_v17 = vld [vmem:[#allocation10 + $0x130] sm:$0xff]  ;;  %v14918_v22 = vcombine.low %v2179_v6, %v2183_v8  ;;  %v2231_v6 = vld [vmem:[#allocation10 + $0x278] sm:$0xff] }
 0x319   :  { %v14925_v32 = vcombine.high %v2186_v41, %v2190_v17 }
 0x31b   :  { %5426 = vmatpush1.bf16.msra.mxu0 %v15384_v28  ;;  %5590 = vmatpush1.bf16.msra.mxu1 %v15386_v29  ;;  %v2199_v28 = vld [vmem:[#allocation10 + $0x178] sm:$0xff]  ;;  %v14924_v29 = vcombine.low %v2186_v41, %v2190_v17  ;;  %v2238_v41 = vld [vmem:[#allocation10 + $0x2b0] sm:$0xff] }
 0x31c   :  { %5427 = vmatprep.subr.bf16.mxu0 %v15393_v31  ;;  %5591 = vmatprep.subr.bf16.mxu1 %v15395_v36  ;;  %v14933_v31 = vcombine.high %v2194_v24, %v2198_v25  ;;  %v14935_v36 = vcombine.high %v2195_v27, %v2199_v28  ;;  %v2235_v17 = vld [vmem:[#allocation10 + $0x298] sm:$0xff] }
 0x31f   :  { %5428 = vmatpush1.bf16.msra.mxu0 %v15392_v42  ;;  %5592 = vmatpush1.bf16.msra.mxu1 %v15394_v43  ;;  %v14932_v42 = vcombine.low %v2194_v24, %v2198_v25  ;;  %v14934_v43 = vcombine.low %v2195_v27, %v2199_v28  ;;  %v2246_v24 = vld [vmem:[#allocation10 + $0x2f0] sm:$0xff]  ;;  %v2243_v25 = vld [vmem:[#allocation10 + $0x2d8] sm:$0xff] }
 0x320   :  { %5602 = vmatprep.subr.bf16.mxu0 %v14893_v47  ;;  %5766 = vmatprep.subr.bf16.mxu1 %v14895_v48  ;;  %v14943_v47 = vcombine.high %v2203_v39, %v2207_v40  ;;  %v2210_v48 = vld [vmem:[#allocation10 + $0x1d0] sm:$0xff]  ;;  %v2247_v27 = vld [vmem:[#allocation10 + $0x2f8] sm:$0xff] }
 0x321   :  { %v14948_v26 = vcombine.low %v2210_v48, %v2214_v49 }
 0x322   :  { %5430 = vmatmul.mubr.bf16.vlgmr.msra.gmra.mrb[8].mxu0 %v18379_v34  ;;  %5594 = vmatmul.mubr.bf16.vlgmr.msra.gmra.mrb[8].mxu1 %v18379_v34 }
 0x323   :  { %5603 = vmatpush1.bf16.msra.mxu0 %v14892_v51  ;;  %5634 = vmatprep.mubr.bf16.mxu0 %v18323_v55  ;;  %v14942_v51 = vcombine.low %v2203_v39, %v2207_v40  ;;  %v2255_v39 = vld [vmem:[#allocation10 + $0x338] sm:$0xff] }
 0x324   :  { %5767 = vmatpush1.bf16.msra.mxu1 %v14894_v52  ;;  %5798 = vmatprep.mubr.bf16.mxu1 %v18323_v55  ;;  %v2187_v55 = vld [vmem:[#allocation10 + $0x118] sm:$0xff]  ;;  %v14949_v52 = vcombine.high %v2210_v48, %v2214_v49  ;;  %v2262_v48 = vld [vmem:[#allocation10 + $0x370] sm:$0xff] }
 0x325   :  { %5604 = vmatprep.subr.bf16.mxu0 %v14901_v53  ;;  %5768 = vmatprep.subr.bf16.mxu1 %v14903_v54  ;;  %v14927_v23 = vcombine.high %v2187_v55, %v2191_v18  ;;  %v14926_v30 = vcombine.low %v2187_v55, %v2191_v18  ;;  %v14951_v53 = vcombine.high %v2211_v50, %v2215_v44  ;;  %v2218_v54 = vld [vmem:[#allocation10 + $0x210] sm:$0xff]  ;;  %v2239_v55 = vld [vmem:[#allocation10 + $0x2b8] sm:$0xff] }
 0x326   :  { %v14956_v8 = vcombine.low %v2218_v54, %v2222_v61  ;;  %v2259_v49 = vld [vmem:[#allocation10 + $0x358] sm:$0xff] }
 0x327   :  { %5605 = vmatpush1.bf16.msra.mxu0 %v14900_v59  ;;  %v14950_v59 = vcombine.low %v2211_v50, %v2215_v44  ;;  %v2263_v50 = vld [vmem:[#allocation10 + $0x378] sm:$0xff] }
 0x328   :  { %5769 = vmatpush1.bf16.msra.mxu1 %v14902_v60  ;;  %5606 = vmatprep.subr.bf16.mxu0 %v14909_v62  ;;  %v14957_v60 = vcombine.high %v2218_v54, %v2222_v61  ;;  %v14959_v62 = vcombine.high %v2219_v56, %v2223_v57  ;;  %v2270_v54 = vld [vmem:[#allocation10 + $0x3b0] sm:$0xff]  ;;  %v2267_v61 = vld [vmem:[#allocation10 + $0x398] sm:$0xff] }
 0x329   :  { %5770 = vmatprep.subr.bf16.mxu1 %v14911_v63  ;;  %v2226_v63 = vld [vmem:[#allocation10 + $0x250] sm:$0xff] }
 0x32a   :  { %v14964_v18 = vcombine.low %v2226_v63, %v2230_v2 }
 0x32b   :  { %5607 = vmatpush1.bf16.msra.mxu0 %v14908_v9  ;;  %v14958_v9 = vcombine.low %v2219_v56, %v2223_v57  ;;  %v2271_v56 = vld [vmem:[#allocation10 + $0x3b8] sm:$0xff] }
 0x32c   :  { %5771 = vmatpush1.bf16.msra.mxu1 %v14910_v10  ;;  %5608 = vmatprep.subr.bf16.mxu0 %v14917_v11  ;;  %v14965_v10 = vcombine.high %v2226_v63, %v2230_v2  ;;  %v14967_v11 = vcombine.high %v2227_v3, %v2231_v6  ;;  %v2278_v63 = vld [vmem:[#allocation10 + $0x3f0] sm:$0xff]  ;;  %v2275_v2 = vld [vmem:[#allocation10 + $0x3d8] sm:$0xff] }
 0x32d   :  { %5772 = vmatprep.subr.bf16.mxu1 %v14919_v14  ;;  %v2234_v14 = vld [vmem:[#allocation10 + $0x290] sm:$0xff] }
 0x32e   :  { %v14972_v28 = vcombine.low %v2234_v14, %v2238_v41 }
 0x32f   :  { %5609 = vmatpush1.bf16.msra.mxu0 %v14916_v21  ;;  %v14966_v21 = vcombine.low %v2227_v3, %v2231_v6  ;;  %v2279_v3 = vld [vmem:[#allocation10 + $0x3f8] sm:$0xff] }
 0x330   :  { %5773 = vmatpush1.bf16.msra.mxu1 %v14918_v22  ;;  %5610 = vmatprep.subr.bf16.mxu0 %v14925_v32  ;;  %v14973_v22 = vcombine.high %v2234_v14, %v2238_v41  ;;  %v14975_v32 = vcombine.high %v2235_v17, %v2239_v55  ;;  %v2286_v14 = vld [vmem:[#allocation10 + $0x430] sm:$0xff]  ;;  %v2283_v41 = vld [vmem:[#allocation10 + $0x418] sm:$0xff] }
 0x331   :  { %5774 = vmatprep.subr.bf16.mxu1 %v14927_v23  ;;  %v2242_v23 = vld [vmem:[#allocation10 + $0x2d0] sm:$0xff] }
 0x332   :  { %v14980_v40 = vcombine.low %v2242_v23, %v2246_v24 }
 0x333   :  { %5611 = vmatpush1.bf16.msra.mxu0 %v14924_v29  ;;  %v14974_v29 = vcombine.low %v2235_v17, %v2239_v55  ;;  %v2287_v17 = vld [vmem:[#allocation10 + $0x438] sm:$0xff] }
 0x334   :  { %5775 = vmatpush1.bf16.msra.mxu1 %v14926_v30  ;;  %5612 = vmatprep.subr.bf16.mxu0 %v14933_v31  ;;  %v14981_v30 = vcombine.high %v2242_v23, %v2246_v24  ;;  %v14983_v31 = vcombine.high %v2243_v25, %v2247_v27  ;;  %v2294_v23 = vld [vmem:[#allocation10 + $0x470] sm:$0xff] }
 0x335   :  { %5776 = vmatprep.subr.bf16.mxu1 %v14935_v36  ;;  %v2250_v36 = vld [vmem:[#allocation10 + $0x310] sm:$0xff] }
 0x336   :  { %v14988_v44 = vcombine.low %v2250_v36, %v2254_v37 }
 0x337   :  { %5613 = vmatpush1.bf16.msra.mxu0 %v14932_v42  ;;  %v14982_v42 = vcombine.low %v2243_v25, %v2247_v27  ;;  %v2291_v25 = vld [vmem:[#allocation10 + $0x458] sm:$0xff] }
 0x338   :  { %5777 = vmatpush1.bf16.msra.mxu1 %v14934_v43  ;;  %5614 = vmatprep.subr.bf16.mxu0 %v14941_v46  ;;  %v14989_v43 = vcombine.high %v2250_v36, %v2254_v37  ;;  %v14991_v46 = vcombine.high %v2251_v38, %v2255_v39  ;;  %v2295_v27 = vld [vmem:[#allocation10 + $0x478] sm:$0xff] }
 0x339   :  { %5778 = vmatprep.subr.bf16.mxu1 %v14943_v47  ;;  %v2258_v47 = vld [vmem:[#allocation10 + $0x350] sm:$0xff]  ;;  %v15031_v36 = vcombine.high %v2291_v25, %v2295_v27  ;;  %v2299_v37 = vld [vmem:[#allocation10 + $0x498] sm:$0xff] }
 0x33a   :  { %v14996_v57 = vcombine.low %v2258_v47, %v2262_v48 }
 0x33b   :  { %5615 = vmatpush1.bf16.msra.mxu0 %v14940_v15  ;;  %v14990_v15 = vcombine.low %v2251_v38, %v2255_v39  ;;  %v2303_v38 = vld [vmem:[#allocation10 + $0x4b8] sm:$0xff] }
 0x33c   :  { %5779 = vmatpush1.bf16.msra.mxu1 %v14942_v51  ;;  %5616 = vmatprep.subr.bf16.mxu0 %v14949_v52  ;;  %v14997_v51 = vcombine.high %v2258_v47, %v2262_v48  ;;  %v14999_v52 = vcombine.high %v2259_v49, %v2263_v50  ;;  %v2310_v47 = vld [vmem:[#allocation10 + $0x4f0] sm:$0xff]  ;;  %v2307_v48 = vld [vmem:[#allocation10 + $0x4d8] sm:$0xff] }
 0x33d   :  { %5780 = vmatprep.subr.bf16.mxu1 %v14951_v53  ;;  %v2266_v53 = vld [vmem:[#allocation10 + $0x390] sm:$0xff] }
 0x33e   :  { %v15004_v6 = vcombine.low %v2266_v53, %v2270_v54 }
 0x33f   :  { %5617 = vmatpush1.bf16.msra.mxu0 %v14948_v26  ;;  %v14998_v26 = vcombine.low %v2259_v49, %v2263_v50  ;;  %v2311_v49 = vld [vmem:[#allocation10 + $0x4f8] sm:$0xff] }
 0x340   :  { %5781 = vmatpush1.bf16.msra.mxu1 %v14950_v59  ;;  %5618 = vmatprep.subr.bf16.mxu0 %v14957_v60  ;;  %v15005_v59 = vcombine.high %v2266_v53, %v2270_v54  ;;  %v15007_v60 = vcombine.high %v2267_v61, %v2271_v56  ;;  %v2315_v53 = vld [vmem:[#allocation10 + $0x518] sm:$0xff] }
 0x341   :  { %5782 = vmatprep.subr.bf16.mxu1 %v14959_v62  ;;  %v2274_v62 = vld [vmem:[#allocation10 + $0x3d0] sm:$0xff]  ;;  %v2319_v54 = vld [vmem:[#allocation10 + $0x538] sm:$0xff] }
 0x342   :  { %v15012_v55 = vcombine.low %v2274_v62, %v2278_v63 }
 0x343   :  { %5619 = vmatpush1.bf16.msra.mxu0 %v14956_v8  ;;  %v15006_v8 = vcombine.low %v2267_v61, %v2271_v56  ;;  %v15046_v61 = vcombine.low %v2307_v48, %v2311_v49 }
 0x344   :  { %5783 = vmatpush1.bf16.msra.mxu1 %v14958_v9  ;;  %5620 = vmatprep.subr.bf16.mxu0 %v14965_v10  ;;  %v15013_v9 = vcombine.high %v2274_v62, %v2278_v63  ;;  %v15015_v10 = vcombine.high %v2275_v2, %v2279_v3  ;;  %v2327_v62 = vld [vmem:[#allocation10 + $0x578] sm:$0xff] }
 0x345   :  { %5784 = vmatprep.subr.bf16.mxu1 %v14967_v11  ;;  %v2282_v11 = vld [vmem:[#allocation10 + $0x410] sm:$0xff] }
 0x346   :  { %v15020_v24 = vcombine.low %v2282_v11, %v2286_v14 }
 0x347   :  { %5621 = vmatpush1.bf16.msra.mxu0 %v14964_v18  ;;  %v15014_v18 = vcombine.low %v2275_v2, %v2279_v3  ;;  %v15054_v2 = vcombine.low %v2315_v53, %v2319_v54 }
 0x348   :  { %5785 = vmatpush1.bf16.msra.mxu1 %v14966_v21  ;;  %5622 = vmatprep.subr.bf16.mxu0 %v14973_v22  ;;  %v15021_v21 = vcombine.high %v2282_v11, %v2286_v14  ;;  %v15023_v22 = vcombine.high %v2283_v41, %v2287_v17  ;;  %v2335_v11 = vld [vmem:[#allocation10 + $0x5b8] sm:$0xff] }
 0x349   :  { %5786 = vmatprep.subr.bf16.mxu1 %v14975_v32  ;;  %v2290_v32 = vld [vmem:[#allocation10 + $0x450] sm:$0xff] }
 0x34a   :  { %v15028_v39 = vcombine.low %v2290_v32, %v2294_v23 }
 0x34b   :  { %5623 = vmatpush1.bf16.msra.mxu0 %v14972_v28  ;;  %v15022_v28 = vcombine.low %v2283_v41, %v2287_v17 }
 0x34c   :  { %5787 = vmatpush1.bf16.msra.mxu1 %v14974_v29  ;;  %5624 = vmatprep.subr.bf16.mxu0 %v14981_v30  ;;  %v15029_v29 = vcombine.high %v2290_v32, %v2294_v23  ;;  %v2298_v30 = vld [vmem:[#allocation10 + $0x490] sm:$0xff]  ;;  %v2343_v32 = vld [vmem:[#allocation10 + $0x5f8] sm:$0xff] }
 0x34d   :  { %5788 = vmatprep.subr.bf16.mxu1 %v14983_v31  ;;  %v2302_v31 = vld [vmem:[#allocation10 + $0x4b0] sm:$0xff] }
 0x34e   :  { %v15036_v50 = vcombine.low %v2298_v30, %v2302_v31 }
 0x34f   :  { %5625 = vmatpush1.bf16.msra.mxu0 %v14980_v40  ;;  %v15030_v40 = vcombine.low %v2291_v25, %v2295_v27 }
 0x350   :  { %5789 = vmatpush1.bf16.msra.mxu1 %v14982_v42  ;;  %5626 = vmatprep.subr.bf16.mxu0 %v14989_v43  ;;  %v15037_v42 = vcombine.high %v2298_v30, %v2302_v31  ;;  %v15039_v43 = vcombine.high %v2299_v37, %v2303_v38  ;;  %v2347_v30 = vld [vmem:[#allocation10 + $0x618] sm:$0xff] }
 0x351   :  { %5790 = vmatprep.subr.bf16.mxu1 %v14991_v46  ;;  %v2306_v46 = vld [vmem:[#allocation10 + $0x4d0] sm:$0xff]  ;;  %v2351_v31 = vld [vmem:[#allocation10 + $0x638] sm:$0xff] }
 0x353   :  { %5627 = vmatpush1.bf16.msra.mxu0 %v14988_v44  ;;  %v15045_v44 = vcombine.high %v2306_v46, %v2310_v47 }
 0x354   :  { %5791 = vmatpush1.bf16.msra.mxu1 %v14990_v15  ;;  %5628 = vmatprep.subr.bf16.mxu0 %v14997_v51  ;;  %v15047_v15 = vcombine.high %v2307_v48, %v2311_v49  ;;  %v2314_v51 = vld [vmem:[#allocation10 + $0x510] sm:$0xff]  ;;  %v15086_v48 = vcombine.low %v2347_v30, %v2351_v31 }
 0x355   :  { %5792 = vmatprep.subr.bf16.mxu1 %v14999_v52  ;;  %v2318_v52 = vld [vmem:[#allocation10 + $0x530] sm:$0xff] }
 0x356   :  { %v15053_v56 = vcombine.high %v2314_v51, %v2318_v52  ;;  %v15052_v63 = vcombine.low %v2314_v51, %v2318_v52  ;;  %v2367_v51 = vld [vmem:[#allocation10 + $0x6b8] sm:$0xff] }
 0x357   :  { %5629 = vmatpush1.bf16.msra.mxu0 %v14996_v57  ;;  %v15055_v57 = vcombine.high %v2315_v53, %v2319_v54 }
 0x358   :  { %5793 = vmatpush1.bf16.msra.mxu1 %v14998_v26  ;;  %5630 = vmatprep.subr.bf16.mxu0 %v15005_v59  ;;  %v2322_v26 = vld [vmem:[#allocation10 + $0x550] sm:$0xff] }
 0x359   :  { %5794 = vmatprep.subr.bf16.mxu1 %v15007_v60  ;;  %v2326_v59 = vld [vmem:[#allocation10 + $0x570] sm:$0xff]  ;;  %v2323_v60 = vld [vmem:[#allocation10 + $0x558] sm:$0xff] }
 0x35a   :  { %v15061_v3 = vcombine.high %v2322_v26, %v2326_v59  ;;  %v15060_v14 = vcombine.low %v2322_v26, %v2326_v59  ;;  %v15062_v41 = vcombine.low %v2323_v60, %v2327_v62  ;;  %v2375_v26 = vld [vmem:[#allocation10 + $0x6f8] sm:$0xff] }
 0x35b   :  { %5631 = vmatpush1.bf16.msra.mxu0 %v15004_v6  ;;  %v15063_v6 = vcombine.high %v2323_v60, %v2327_v62 }
 0x35c   :  { %5795 = vmatpush1.bf16.msra.mxu1 %v15006_v8  ;;  %5632 = vmatprep.subr.bf16.mxu0 %v15013_v9  ;;  %v2330_v8 = vld [vmem:[#allocation10 + $0x590] sm:$0xff] }
 0x35d   :  { %5796 = vmatprep.subr.bf16.mxu1 %v15015_v10  ;;  %v2334_v9 = vld [vmem:[#allocation10 + $0x5b0] sm:$0xff]  ;;  %v2331_v10 = vld [vmem:[#allocation10 + $0x598] sm:$0xff] }
 0x35e   :  { %v15069_v17 = vcombine.high %v2330_v8, %v2334_v9  ;;  %v15068_v23 = vcombine.low %v2330_v8, %v2334_v9  ;;  %v2383_v8 = vld [vmem:[#allocation10 + $0x738] sm:$0xff] }
 0x35f   :  { %5633 = vmatpush1.bf16.msra.mxu0 %v15012_v55  ;;  %v15071_v55 = vcombine.high %v2331_v10, %v2335_v11 }
 0x360   :  { %5797 = vmatpush1.bf16.msra.mxu1 %v15014_v18  ;;  %5643 = vmatprep.subr.bf16.mxu0 %v15021_v21  ;;  %v2338_v18 = vld [vmem:[#allocation10 + $0x5d0] sm:$0xff] }
 0x361   :  { %5807 = vmatprep.subr.bf16.mxu1 %v15023_v22  ;;  %v2342_v21 = vld [vmem:[#allocation10 + $0x5f0] sm:$0xff]  ;;  %v2339_v22 = vld [vmem:[#allocation10 + $0x5d8] sm:$0xff] }
 0x362   :  { %5635 = vmatmul.mubr.bf16.vlgmr.msra.gmra.mrb[12].mxu0 %v18325_v58  ;;  %v15077_v25 = vcombine.high %v2338_v18, %v2342_v21  ;;  %v15079_v27 = vcombine.high %v2339_v22, %v2343_v32 }
 0x363   :  { %5799 = vmatmul.mubr.bf16.vlgmr.msra.gmra.mrb[12].mxu1 %v18325_v58  ;;  %5644 = vmatpush1.bf16.msra.mxu0 %v15020_v24  ;;  %v15038_v58 = vcombine.low %v2299_v37, %v2303_v38  ;;  %v15070_v24 = vcombine.low %v2331_v10, %v2335_v11  ;;  %v15078_v37 = vcombine.low %v2339_v22, %v2343_v32 }
 0x364   :  { %5675 = vmatprep.mubr.bf16.mxu0 %v18329_v1  ;;  %5808 = vmatpush1.bf16.msra.mxu1 %v15022_v28  ;;  %v2346_v28 = vld [vmem:[#allocation10 + $0x610] sm:$0xff] }
 0x365   :  { %5839 = vmatprep.mubr.bf16.mxu1 %v18329_v1  ;;  %5645 = vmatprep.subr.bf16.mxu0 %v15029_v29  ;;  %v15044_v1 = vcombine.low %v2306_v46, %v2310_v47  ;;  %v2350_v29 = vld [vmem:[#allocation10 + $0x630] sm:$0xff]  ;;  %v2359_v46 = vld [vmem:[#allocation10 + $0x678] sm:$0xff] }
 0x366   :  { %5809 = vmatprep.subr.bf16.mxu1 %v15031_v36  ;;  %v15076_v36 = vcombine.low %v2338_v18, %v2342_v21  ;;  %v15085_v38 = vcombine.high %v2346_v28, %v2350_v29  ;;  %v15084_v47 = vcombine.low %v2346_v28, %v2350_v29  ;;  %v2391_v18 = vld [vmem:[#allocation10 + $0x778] sm:$0xff] }
 0x367   :  { %5646 = vmatpush1.bf16.msra.mxu0 %v15028_v39  ;;  %v15087_v39 = vcombine.high %v2347_v30, %v2351_v31  ;;  %v2399_v28 = vld [vmem:[#allocation10 + $0x7b8] sm:$0xff] }
 0x368   :  { %5810 = vmatpush1.bf16.msra.mxu1 %v15030_v40  ;;  %5647 = vmatprep.subr.bf16.mxu0 %v15037_v42  ;;  %v2354_v40 = vld [vmem:[#allocation10 + $0x650] sm:$0xff] }
 0x369   :  { %5811 = vmatprep.subr.bf16.mxu1 %v15039_v43  ;;  %v2358_v42 = vld [vmem:[#allocation10 + $0x670] sm:$0xff]  ;;  %v2355_v43 = vld [vmem:[#allocation10 + $0x658] sm:$0xff] }
 0x36a   :  { %v15093_v49 = vcombine.high %v2354_v40, %v2358_v42  ;;  %v15092_v52 = vcombine.low %v2354_v40, %v2358_v42  ;;  %v15094_v53 = vcombine.low %v2355_v43, %v2359_v46  ;;  %v2407_v40 = vld [vmem:[#allocation10 + $0x7f8] sm:$0xff] }
 0x36b   :  { %5648 = vmatpush1.bf16.msra.mxu0 %v15036_v50  ;;  %v15095_v50 = vcombine.high %v2355_v43, %v2359_v46 }
 0x36c   :  { %5812 = vmatpush1.bf16.msra.mxu1 %v15038_v58  ;;  %5649 = vmatprep.subr.bf16.mxu0 %v15045_v44  ;;  %v2362_v58 = vld [vmem:[#allocation10 + $0x690] sm:$0xff] }
 0x36d   :  { %5813 = vmatprep.subr.bf16.mxu1 %v15047_v15  ;;  %v2366_v44 = vld [vmem:[#allocation10 + $0x6b0] sm:$0xff]  ;;  %v2363_v15 = vld [vmem:[#allocation10 + $0x698] sm:$0xff] }
 0x36e   :  { %v15101_v54 = vcombine.high %v2362_v58, %v2366_v44  ;;  %v15100_v59 = vcombine.low %v2362_v58, %v2366_v44  ;;  %v15102_v60 = vcombine.low %v2363_v15, %v2367_v51  ;;  %v2415_v58 = vld [vmem:[#allocation10 + $0x838] sm:$0xff] }
 0x36f   :  { %5650 = vmatpush1.bf16.msra.mxu0 %v15044_v1  ;;  %v15103_v1 = vcombine.high %v2363_v15, %v2367_v51 }
 0x370   :  { %5814 = vmatpush1.bf16.msra.mxu1 %v15046_v61  ;;  %5651 = vmatprep.subr.bf16.mxu0 %v15053_v56  ;;  %v2370_v61 = vld [vmem:[#allocation10 + $0x6d0] sm:$0xff] }
 0x371   :  { %5815 = vmatprep.subr.bf16.mxu1 %v15055_v57  ;;  %v2374_v56 = vld [vmem:[#allocation10 + $0x6f0] sm:$0xff]  ;;  %v2371_v57 = vld [vmem:[#allocation10 + $0x6d8] sm:$0xff] }
 0x372   :  { %v15109_v62 = vcombine.high %v2370_v61, %v2374_v56  ;;  %v15108_v9 = vcombine.low %v2370_v61, %v2374_v56  ;;  %v15110_v10 = vcombine.low %v2371_v57, %v2375_v26  ;;  %v2419_v61 = vld [vmem:[#allocation10 + $0x858] sm:$0xff] }
 0x373   :  { %5652 = vmatpush1.bf16.msra.mxu0 %v15052_v63  ;;  %v15111_v63 = vcombine.high %v2371_v57, %v2375_v26  ;;  %v2423_v56 = vld [vmem:[#allocation10 + $0x878] sm:$0xff] }
 0x374   :  { %5816 = vmatpush1.bf16.msra.mxu1 %v15054_v2  ;;  %5653 = vmatprep.subr.bf16.mxu0 %v15061_v3  ;;  %v2378_v2 = vld [vmem:[#allocation10 + $0x710] sm:$0xff] }
 0x375   :  { %5817 = vmatprep.subr.bf16.mxu1 %v15063_v6  ;;  %v2382_v3 = vld [vmem:[#allocation10 + $0x730] sm:$0xff]  ;;  %v2379_v6 = vld [vmem:[#allocation10 + $0x718] sm:$0xff] }
 0x376   :  { %v15117_v11 = vcombine.high %v2378_v2, %v2382_v3  ;;  %v15116_v21 = vcombine.low %v2378_v2, %v2382_v3  ;;  %v15118_v22 = vcombine.low %v2379_v6, %v2383_v8  ;;  %v2431_v2 = vld [vmem:[#allocation10 + $0x8b8] sm:$0xff] }
 0x377   :  { %5654 = vmatpush1.bf16.msra.mxu0 %v15060_v14  ;;  %v15119_v14 = vcombine.high %v2379_v6, %v2383_v8  ;;  %v15158_v6 = vcombine.low %v2419_v61, %v2423_v56 }
 0x378   :  { %5818 = vmatpush1.bf16.msra.mxu1 %v15062_v41  ;;  %5655 = vmatprep.subr.bf16.mxu0 %v15069_v17  ;;  %v2386_v41 = vld [vmem:[#allocation10 + $0x750] sm:$0xff] }
 0x379   :  { %5819 = vmatprep.subr.bf16.mxu1 %v15071_v55  ;;  %v2390_v17 = vld [vmem:[#allocation10 + $0x770] sm:$0xff]  ;;  %v2387_v55 = vld [vmem:[#allocation10 + $0x758] sm:$0xff] }
 0x37a   :  { %v15125_v32 = vcombine.high %v2386_v41, %v2390_v17  ;;  %v15124_v29 = vcombine.low %v2386_v41, %v2390_v17  ;;  %v15126_v30 = vcombine.low %v2387_v55, %v2391_v18  ;;  %v2439_v41 = vld [vmem:[#allocation10 + $0x8f8] sm:$0xff] }
 0x37b   :  { %5656 = vmatpush1.bf16.msra.mxu0 %v15068_v23  ;;  %v15127_v23 = vcombine.high %v2387_v55, %v2391_v18 }
 0x37c   :  { %5820 = vmatpush1.bf16.msra.mxu1 %v15070_v24  ;;  %5657 = vmatprep.subr.bf16.mxu0 %v15077_v25  ;;  %v2394_v24 = vld [vmem:[#allocation10 + $0x790] sm:$0xff] }
 0x37d   :  { %5821 = vmatprep.subr.bf16.mxu1 %v15079_v27  ;;  %v2398_v25 = vld [vmem:[#allocation10 + $0x7b0] sm:$0xff]  ;;  %v2395_v27 = vld [vmem:[#allocation10 + $0x798] sm:$0xff] }
 0x37e   :  { %v15133_v31 = vcombine.high %v2394_v24, %v2398_v25  ;;  %v15132_v42 = vcombine.low %v2394_v24, %v2398_v25  ;;  %v15134_v43 = vcombine.low %v2395_v27, %v2399_v28 }
 0x37f   :  { %5658 = vmatpush1.bf16.msra.mxu0 %v15076_v36  ;;  %v15135_v36 = vcombine.high %v2395_v27, %v2399_v28  ;;  %v2450_v28 = vld [vmem:[#allocation10 + $0x950] sm:$0xff] }
 0x380   :  { %5822 = vmatpush1.bf16.msra.mxu1 %v15078_v37  ;;  %5659 = vmatprep.subr.bf16.mxu0 %v15085_v38  ;;  %v2402_v37 = vld [vmem:[#allocation10 + $0x7d0] sm:$0xff] }
 0x381   :  { %5823 = vmatprep.subr.bf16.mxu1 %v15087_v39  ;;  %v2406_v38 = vld [vmem:[#allocation10 + $0x7f0] sm:$0xff]  ;;  %v2403_v39 = vld [vmem:[#allocation10 + $0x7d8] sm:$0xff] }
 0x382   :  { %v15141_v46 = vcombine.high %v2402_v37, %v2406_v38  ;;  %v15140_v44 = vcombine.low %v2402_v37, %v2406_v38  ;;  %v15142_v15 = vcombine.low %v2403_v39, %v2407_v40 }
 0x383   :  { %5660 = vmatpush1.bf16.msra.mxu0 %v15084_v47  ;;  %v15143_v47 = vcombine.high %v2403_v39, %v2407_v40  ;;  %v2458_v40 = vld [vmem:[#allocation10 + $0x990] sm:$0xff] }
 0x384   :  { %5824 = vmatpush1.bf16.msra.mxu1 %v15086_v48  ;;  %5661 = vmatprep.subr.bf16.mxu0 %v15093_v49  ;;  %v2410_v48 = vld [vmem:[#allocation10 + $0x810] sm:$0xff] }
 0x385   :  { %5825 = vmatprep.subr.bf16.mxu1 %v15095_v50  ;;  %v2414_v49 = vld [vmem:[#allocation10 + $0x830] sm:$0xff]  ;;  %v2411_v50 = vld [vmem:[#allocation10 + $0x818] sm:$0xff] }
 0x386   :  { %v15149_v51 = vcombine.high %v2410_v48, %v2414_v49  ;;  %v15150_v57 = vcombine.low %v2411_v50, %v2415_v58 }
 0x387   :  { %5662 = vmatpush1.bf16.msra.mxu0 %v15092_v52  ;;  %v15151_v52 = vcombine.high %v2411_v50, %v2415_v58  ;;  %v2466_v58 = vld [vmem:[#allocation10 + $0x9d0] sm:$0xff] }
 0x388   :  { %5826 = vmatpush1.bf16.msra.mxu1 %v15094_v53  ;;  %5663 = vmatprep.subr.bf16.mxu0 %v15101_v54  ;;  %v2418_v53 = vld [vmem:[#allocation10 + $0x850] sm:$0xff] }
 0x389   :  { %5827 = vmatprep.subr.bf16.mxu1 %v15103_v1  ;;  %v2422_v54 = vld [vmem:[#allocation10 + $0x870] sm:$0xff]  ;;  %v15148_v1 = vcombine.low %v2410_v48, %v2414_v49 }
 0x38a   :  { %v15157_v26 = vcombine.high %v2418_v53, %v2422_v54  ;;  %v15156_v3 = vcombine.low %v2418_v53, %v2422_v54 }
 0x38b   :  { %5664 = vmatpush1.bf16.msra.mxu0 %v15100_v59  ;;  %v2426_v59 = vld [vmem:[#allocation10 + $0x890] sm:$0xff] }
 0x38c   :  { %5828 = vmatpush1.bf16.msra.mxu1 %v15102_v60  ;;  %5665 = vmatprep.subr.bf16.mxu0 %v15109_v62  ;;  %v2430_v60 = vld [vmem:[#allocation10 + $0x8b0] sm:$0xff]  ;;  %v15159_v62 = vcombine.high %v2419_v61, %v2423_v56 }
 0x38d   :  { %5829 = vmatprep.subr.bf16.mxu1 %v15111_v63  ;;  %v2427_v63 = vld [vmem:[#allocation10 + $0x898] sm:$0xff]  ;;  %v15165_v8 = vcombine.high %v2426_v59, %v2430_v60  ;;  %v15164_v17 = vcombine.low %v2426_v59, %v2430_v60  ;;  %v2474_v61 = vld [vmem:[#allocation10 + $0xa10] sm:$0xff] }
 0x38e   :  { %v2478_v56 = vld [vmem:[#allocation10 + $0xa30] sm:$0xff] }
 0x38f   :  { %5666 = vmatpush1.bf16.msra.mxu0 %v15108_v9  ;;  %v15167_v9 = vcombine.high %v2427_v63, %v2431_v2 }
 0x390   :  { %5830 = vmatpush1.bf16.msra.mxu1 %v15110_v10  ;;  %5667 = vmatprep.subr.bf16.mxu0 %v15117_v11  ;;  %v2434_v10 = vld [vmem:[#allocation10 + $0x8d0] sm:$0xff] }
 0x391   :  { %5831 = vmatprep.subr.bf16.mxu1 %v15119_v14  ;;  %v2438_v11 = vld [vmem:[#allocation10 + $0x8f0] sm:$0xff]  ;;  %v2435_v14 = vld [vmem:[#allocation10 + $0x8d8] sm:$0xff] }
 0x392   :  { %v15173_v55 = vcombine.high %v2434_v10, %v2438_v11  ;;  %v15175_v18 = vcombine.high %v2435_v14, %v2439_v41  ;;  %v15174_v24 = vcombine.low %v2435_v14, %v2439_v41  ;;  %v2490_v41 = vld [vmem:[#allocation10 + $0xa90] sm:$0xff] }
 0x393   :  { %5668 = vmatpush1.bf16.msra.mxu0 %v15116_v21  ;;  %v2442_v21 = vld [vmem:[#allocation10 + $0x910] sm:$0xff] }
 0x394   :  { %5832 = vmatpush1.bf16.msra.mxu1 %v15118_v22  ;;  %5669 = vmatprep.subr.bf16.mxu0 %v15125_v32  ;;  %v2446_v22 = vld [vmem:[#allocation10 + $0x930] sm:$0xff]  ;;  %v2443_v32 = vld [vmem:[#allocation10 + $0x918] sm:$0xff] }
 0x395   :  { %5833 = vmatprep.subr.bf16.mxu1 %v15127_v23  ;;  %v2447_v23 = vld [vmem:[#allocation10 + $0x938] sm:$0xff]  ;;  %v15181_v25 = vcombine.high %v2442_v21, %v2446_v22 }
 0x396   :  { %v15183_v27 = vcombine.high %v2443_v32, %v2447_v23  ;;  %v15182_v37 = vcombine.low %v2443_v32, %v2447_v23  ;;  %v2498_v23 = vld [vmem:[#allocation10 + $0xad0] sm:$0xff] }
 0x397   :  { %5670 = vmatpush1.bf16.msra.mxu0 %v15124_v29  ;;  %v2454_v29 = vld [vmem:[#allocation10 + $0x970] sm:$0xff] }
 0x398   :  { %5834 = vmatpush1.bf16.msra.mxu1 %v15126_v30  ;;  %5671 = vmatprep.subr.bf16.mxu0 %v15133_v31  ;;  %v2451_v30 = vld [vmem:[#allocation10 + $0x958] sm:$0xff]  ;;  %v15189_v38 = vcombine.high %v2450_v28, %v2454_v29 }
 0x399   :  { %5835 = vmatprep.subr.bf16.mxu1 %v15135_v36  ;;  %v2455_v31 = vld [vmem:[#allocation10 + $0x978] sm:$0xff]  ;;  %v15180_v36 = vcombine.low %v2442_v21, %v2446_v22 }
 0x39a   :  { %v15191_v39 = vcombine.high %v2451_v30, %v2455_v31  ;;  %v15190_v48 = vcombine.low %v2451_v30, %v2455_v31  ;;  %v2506_v31 = vld [vmem:[#allocation10 + $0xb10] sm:$0xff] }
 0x39b   :  { %5672 = vmatpush1.bf16.msra.mxu0 %v15132_v42  ;;  %v2462_v42 = vld [vmem:[#allocation10 + $0x9b0] sm:$0xff] }
 0x39c   :  { %5836 = vmatpush1.bf16.msra.mxu1 %v15134_v43  ;;  %5673 = vmatprep.subr.bf16.mxu0 %v15141_v46  ;;  %v2459_v43 = vld [vmem:[#allocation10 + $0x998] sm:$0xff]  ;;  %v15197_v49 = vcombine.high %v2458_v40, %v2462_v42 }
 0x39d   :  { %5837 = vmatprep.subr.bf16.mxu1 %v15143_v47  ;;  %v2463_v46 = vld [vmem:[#allocation10 + $0x9b8] sm:$0xff]  ;;  %v15188_v47 = vcombine.low %v2450_v28, %v2454_v29 }
 0x39e   :  { %v15199_v50 = vcombine.high %v2459_v43, %v2463_v46  ;;  %v15198_v53 = vcombine.low %v2459_v43, %v2463_v46  ;;  %v2514_v46 = vld [vmem:[#allocation10 + $0xb50] sm:$0xff] }
 0x39f   :  { %5674 = vmatpush1.bf16.msra.mxu0 %v15140_v44  ;;  %v2470_v44 = vld [vmem:[#allocation10 + $0x9f0] sm:$0xff] }
 0x3a0   :  { %5838 = vmatpush1.bf16.msra.mxu1 %v15142_v15  ;;  %5684 = vmatprep.subr.bf16.mxu0 %v15149_v51  ;;  %v2467_v15 = vld [vmem:[#allocation10 + $0x9d8] sm:$0xff]  ;;  %v15205_v54 = vcombine.high %v2466_v58, %v2470_v44  ;;  %v15204_v59 = vcombine.low %v2466_v58, %v2470_v44 }
 0x3a1   :  { %5848 = vmatprep.subr.bf16.mxu1 %v15151_v52  ;;  %v2471_v51 = vld [vmem:[#allocation10 + $0x9f8] sm:$0xff]  ;;  %v15196_v52 = vcombine.low %v2458_v40, %v2462_v42 }
 0x3a2   :  { %5676 = vmatmul.mubr.bf16.vlgmr.msra.gmra.mrb[12].mxu0 %v18341_v19  ;;  %v15206_v60 = vcombine.low %v2467_v15, %v2471_v51 }
 0x3a3   :  { %5840 = vmatmul.mubr.bf16.vlgmr.msra.gmra.mrb[12].mxu1 %v18341_v19  ;;  %5685 = vmatpush1.bf16.msra.mxu0 %v15148_v1  ;;  %v15166_v19 = vcombine.low %v2427_v63, %v2431_v2  ;;  %v15207_v1 = vcombine.high %v2467_v15, %v2471_v51  ;;  %v2482_v2 = vld [vmem:[#allocation10 + $0xa50] sm:$0xff] }
 0x3a4   :  { %5716 = vmatprep.mubr.bf16.mxu0 %v18362_v0  ;;  %5849 = vmatpush1.bf16.msra.mxu1 %v15150_v57  ;;  %v2475_v57 = vld [vmem:[#allocation10 + $0xa18] sm:$0xff]  ;;  %v2522_v51 = vld [vmem:[#allocation10 + $0xb90] sm:$0xff] }
 0x3a5   :  { %5880 = vmatprep.mubr.bf16.mxu1 %v18362_v0  ;;  %5686 = vmatprep.subr.bf16.mxu0 %v15157_v26  ;;  %v15172_v0 = vcombine.low %v2434_v10, %v2438_v11  ;;  %v2479_v26 = vld [vmem:[#allocation10 + $0xa38] sm:$0xff] }
 0x3a6   :  { %5850 = vmatprep.subr.bf16.mxu1 %v15159_v62  ;;  %v15213_v62 = vcombine.high %v2474_v61, %v2478_v56  ;;  %v15215_v63 = vcombine.high %v2475_v57, %v2479_v26  ;;  %v15214_v10 = vcombine.low %v2475_v57, %v2479_v26  ;;  %v2530_v26 = vld [vmem:[#allocation10 + $0xbd0] sm:$0xff] }
 0x3a7   :  { %5687 = vmatpush1.bf16.msra.mxu0 %v15156_v3  ;;  %v2486_v3 = vld [vmem:[#allocation10 + $0xa70] sm:$0xff] }
 0x3a8   :  { %5851 = vmatpush1.bf16.msra.mxu1 %v15158_v6  ;;  %5688 = vmatprep.subr.bf16.mxu0 %v15165_v8  ;;  %v2483_v6 = vld [vmem:[#allocation10 + $0xa58] sm:$0xff]  ;;  %v15221_v11 = vcombine.high %v2482_v2, %v2486_v3 }
 0x3a9   :  { %5852 = vmatprep.subr.bf16.mxu1 %v15167_v9  ;;  %v2487_v8 = vld [vmem:[#allocation10 + $0xa78] sm:$0xff]  ;;  %v15212_v9 = vcombine.low %v2474_v61, %v2478_v56 }
 0x3aa   :  { %v15223_v14 = vcombine.high %v2483_v6, %v2487_v8  ;;  %v15222_v21 = vcombine.low %v2483_v6, %v2487_v8  ;;  %v2538_v8 = vld [vmem:[#allocation10 + $0xc10] sm:$0xff] }
 0x3ab   :  { %5689 = vmatpush1.bf16.msra.mxu0 %v15164_v17  ;;  %v2494_v17 = vld [vmem:[#allocation10 + $0xab0] sm:$0xff] }
 0x3ac   :  { %5853 = vmatpush1.bf16.msra.mxu1 %v15166_v19  ;;  %5690 = vmatprep.subr.bf16.mxu0 %v15173_v55  ;;  %v2491_v19 = vld [vmem:[#allocation10 + $0xa98] sm:$0xff]  ;;  %v15229_v22 = vcombine.high %v2490_v41, %v2494_v17 }
 0x3ad   :  { %5854 = vmatprep.subr.bf16.mxu1 %v15175_v18  ;;  %v2495_v55 = vld [vmem:[#allocation10 + $0xab8] sm:$0xff]  ;;  %v15220_v18 = vcombine.low %v2482_v2, %v2486_v3 }
 0x3ae   :  { %v15231_v32 = vcombine.high %v2491_v19, %v2495_v55  ;;  %v15230_v28 = vcombine.low %v2491_v19, %v2495_v55  ;;  %v2546_v55 = vld [vmem:[#allocation10 + $0xc50] sm:$0xff] }
 0x3af   :  { %5691 = vmatpush1.bf16.msra.mxu0 %v15172_v0  ;;  %v2502_v0 = vld [vmem:[#allocation10 + $0xaf0] sm:$0xff] }
 0x3b0   :  { %5855 = vmatpush1.bf16.msra.mxu1 %v15174_v24  ;;  %5692 = vmatprep.subr.bf16.mxu0 %v15181_v25  ;;  %v2499_v24 = vld [vmem:[#allocation10 + $0xad8] sm:$0xff]  ;;  %v15237_v29 = vcombine.high %v2498_v23, %v2502_v0 }
 0x3b1   :  { %5856 = vmatprep.subr.bf16.mxu1 %v15183_v27  ;;  %v2503_v25 = vld [vmem:[#allocation10 + $0xaf8] sm:$0xff]  ;;  %v15228_v27 = vcombine.low %v2490_v41, %v2494_v17 }
 0x3b2   :  { %v15239_v30 = vcombine.high %v2499_v24, %v2503_v25  ;;  %v15238_v40 = vcombine.low %v2499_v24, %v2503_v25  ;;  %v2554_v24 = vld [vmem:[#allocation10 + $0xc90] sm:$0xff] }
 0x3b3   :  { %5693 = vmatpush1.bf16.msra.mxu0 %v15180_v36  ;;  %v2510_v36 = vld [vmem:[#allocation10 + $0xb30] sm:$0xff] }
 0x3b4   :  { %5857 = vmatpush1.bf16.msra.mxu1 %v15182_v37  ;;  %5694 = vmatprep.subr.bf16.mxu0 %v15189_v38  ;;  %v2507_v37 = vld [vmem:[#allocation10 + $0xb18] sm:$0xff]  ;;  %v15245_v42 = vcombine.high %v2506_v31, %v2510_v36  ;;  %v2558_v25 = vld [vmem:[#allocation10 + $0xcb0] sm:$0xff] }
 0x3b5   :  { %5858 = vmatprep.subr.bf16.mxu1 %v15191_v39  ;;  %v2511_v38 = vld [vmem:[#allocation10 + $0xb38] sm:$0xff]  ;;  %v15236_v39 = vcombine.low %v2498_v23, %v2502_v0 }
 0x3b6   :  { %v15247_v43 = vcombine.high %v2507_v37, %v2511_v38  ;;  %v15246_v58 = vcombine.low %v2507_v37, %v2511_v38  ;;  %v2562_v38 = vld [vmem:[#allocation10 + $0xcd0] sm:$0xff] }
 0x3b7   :  { %5695 = vmatpush1.bf16.msra.mxu0 %v15188_v47  ;;  %v2518_v47 = vld [vmem:[#allocation10 + $0xb70] sm:$0xff] }
 0x3b8   :  { %5859 = vmatpush1.bf16.msra.mxu1 %v15190_v48  ;;  %5696 = vmatprep.subr.bf16.mxu0 %v15197_v49  ;;  %v2515_v48 = vld [vmem:[#allocation10 + $0xb58] sm:$0xff]  ;;  %v15253_v44 = vcombine.high %v2514_v46, %v2518_v47 }
 0x3b9   :  { %5860 = vmatprep.subr.bf16.mxu1 %v15199_v50  ;;  %v2519_v49 = vld [vmem:[#allocation10 + $0xb78] sm:$0xff]  ;;  %v15244_v50 = vcombine.low %v2506_v31, %v2510_v36  ;;  %v15293_v36 = vcombine.high %v2554_v24, %v2558_v25 }
 0x3ba   :  { %v15255_v15 = vcombine.high %v2515_v48, %v2519_v49  ;;  %v15254_v61 = vcombine.low %v2515_v48, %v2519_v49  ;;  %v2570_v48 = vld [vmem:[#allocation10 + $0xd10] sm:$0xff] }
 0x3bb   :  { %5697 = vmatpush1.bf16.msra.mxu0 %v15196_v52  ;;  %v2526_v52 = vld [vmem:[#allocation10 + $0xbb0] sm:$0xff] }
 0x3bc   :  { %5861 = vmatpush1.bf16.msra.mxu1 %v15198_v53  ;;  %5698 = vmatprep.subr.bf16.mxu0 %v15205_v54  ;;  %v2523_v53 = vld [vmem:[#allocation10 + $0xb98] sm:$0xff]  ;;  %v15261_v56 = vcombine.high %v2522_v51, %v2526_v52  ;;  %v2574_v49 = vld [vmem:[#allocation10 + $0xd30] sm:$0xff] }
 0x3bd   :  { %5862 = vmatprep.subr.bf16.mxu1 %v15207_v1  ;;  %v2527_v54 = vld [vmem:[#allocation10 + $0xbb8] sm:$0xff]  ;;  %v15252_v1 = vcombine.low %v2514_v46, %v2518_v47 }
 0x3be   :  { %v15263_v57 = vcombine.high %v2523_v53, %v2527_v54  ;;  %v15262_v2 = vcombine.low %v2523_v53, %v2527_v54  ;;  %v2582_v53 = vld [vmem:[#allocation10 + $0xd70] sm:$0xff]  ;;  %v2579_v54 = vld [vmem:[#allocation10 + $0xd58] sm:$0xff] }
 0x3bf   :  { %5699 = vmatpush1.bf16.msra.mxu0 %v15204_v59  ;;  %v2534_v59 = vld [vmem:[#allocation10 + $0xbf0] sm:$0xff] }
 0x3c0   :  { %5863 = vmatpush1.bf16.msra.mxu1 %v15206_v60  ;;  %5700 = vmatprep.subr.bf16.mxu0 %v15213_v62  ;;  %v2531_v60 = vld [vmem:[#allocation10 + $0xbd8] sm:$0xff]  ;;  %v15269_v3 = vcombine.high %v2530_v26, %v2534_v59 }
 0x3c1   :  { %5864 = vmatprep.subr.bf16.mxu1 %v15215_v63  ;;  %v2535_v62 = vld [vmem:[#allocation10 + $0xbf8] sm:$0xff]  ;;  %v15260_v63 = vcombine.low %v2522_v51, %v2526_v52  ;;  %v2578_v52 = vld [vmem:[#allocation10 + $0xd50] sm:$0xff] }
 0x3c2   :  { %v15271_v6 = vcombine.high %v2531_v60, %v2535_v62  ;;  %v15270_v41 = vcombine.low %v2531_v60, %v2535_v62  ;;  %v2590_v60 = vld [vmem:[#allocation10 + $0xdb0] sm:$0xff]  ;;  %v2587_v62 = vld [vmem:[#allocation10 + $0xd98] sm:$0xff] }
 0x3c3   :  { %5701 = vmatpush1.bf16.msra.mxu0 %v15212_v9  ;;  %v2542_v9 = vld [vmem:[#allocation10 + $0xc30] sm:$0xff] }
 0x3c4   :  { %5865 = vmatpush1.bf16.msra.mxu1 %v15214_v10  ;;  %5702 = vmatprep.subr.bf16.mxu0 %v15221_v11  ;;  %v2539_v10 = vld [vmem:[#allocation10 + $0xc18] sm:$0xff]  ;;  %v15277_v17 = vcombine.high %v2538_v8, %v2542_v9 }
 0x3c5   :  { %5866 = vmatprep.subr.bf16.mxu1 %v15223_v14  ;;  %v2543_v11 = vld [vmem:[#allocation10 + $0xc38] sm:$0xff]  ;;  %v15268_v14 = vcombine.low %v2530_v26, %v2534_v59  ;;  %v2586_v59 = vld [vmem:[#allocation10 + $0xd90] sm:$0xff] }
 0x3c6   :  { %v15279_v19 = vcombine.high %v2539_v10, %v2543_v11  ;;  %v15278_v23 = vcombine.low %v2539_v10, %v2543_v11  ;;  %v2594_v11 = vld [vmem:[#allocation10 + $0xdd0] sm:$0xff] }
 0x3c7   :  { %5703 = vmatpush1.bf16.msra.mxu0 %v15220_v18  ;;  %v2550_v18 = vld [vmem:[#allocation10 + $0xc70] sm:$0xff] }
 0x3c8   :  { %5867 = vmatpush1.bf16.msra.mxu1 %v15222_v21  ;;  %5704 = vmatprep.subr.bf16.mxu0 %v15229_v22  ;;  %v15276_v21 = vcombine.low %v2538_v8, %v2542_v9  ;;  %v2547_v22 = vld [vmem:[#allocation10 + $0xc58] sm:$0xff]  ;;  %v15285_v0 = vcombine.high %v2546_v55, %v2550_v18 }
 0x3c9   :  { %5868 = vmatprep.subr.bf16.mxu1 %v15231_v32  ;;  %v2551_v32 = vld [vmem:[#allocation10 + $0xc78] sm:$0xff] }
 0x3ca   :  { %v15286_v31 = vcombine.low %v2547_v22, %v2551_v32 }
 0x3cb   :  { %5705 = vmatpush1.bf16.msra.mxu0 %v15228_v27  ;;  %v15287_v27 = vcombine.high %v2547_v22, %v2551_v32  ;;  %v15324_v22 = vcombine.low %v2586_v59, %v2590_v60 }
 0x3cc   :  { %5869 = vmatpush1.bf16.msra.mxu1 %v15230_v28  ;;  %5706 = vmatprep.subr.bf16.mxu0 %v15237_v29  ;;  %v2555_v28 = vld [vmem:[#allocation10 + $0xc98] sm:$0xff] }
 0x3cd   :  { %5870 = vmatprep.subr.bf16.mxu1 %v15239_v30  ;;  %v2559_v29 = vld [vmem:[#allocation10 + $0xcb8] sm:$0xff]  ;;  %v15284_v30 = vcombine.low %v2546_v55, %v2550_v18 }
 0x3ce   :  { %v15295_v37 = vcombine.high %v2555_v28, %v2559_v29  ;;  %v2599_v55 = vld [vmem:[#allocation10 + $0xdf8] sm:$0xff] }
 0x3cf   :  { %5707 = vmatpush1.bf16.msra.mxu0 %v15236_v39  ;;  %v2566_v39 = vld [vmem:[#allocation10 + $0xcf0] sm:$0xff] }
 0x3d0   :  { %5871 = vmatpush1.bf16.msra.mxu1 %v15238_v40  ;;  %5708 = vmatprep.subr.bf16.mxu0 %v15245_v42  ;;  %v2563_v40 = vld [vmem:[#allocation10 + $0xcd8] sm:$0xff]  ;;  %v15301_v46 = vcombine.high %v2562_v38, %v2566_v39 }
 0x3d1   :  { %5872 = vmatprep.subr.bf16.mxu1 %v15247_v43  ;;  %v2567_v42 = vld [vmem:[#allocation10 + $0xcf8] sm:$0xff]  ;;  %v15292_v43 = vcombine.low %v2554_v24, %v2558_v25 }
 0x3d2   :  { %v15303_v47 = vcombine.high %v2563_v40, %v2567_v42 }
 0x3d3   :  { %5709 = vmatpush1.bf16.msra.mxu0 %v15244_v50  ;;  %v2571_v50 = vld [vmem:[#allocation10 + $0xd18] sm:$0xff] }
 0x3d4   :  { %5873 = vmatpush1.bf16.msra.mxu1 %v15246_v58  ;;  %5710 = vmatprep.subr.bf16.mxu0 %v15253_v44  ;;  %v2575_v58 = vld [vmem:[#allocation10 + $0xd38] sm:$0xff]  ;;  %v15302_v44 = vcombine.low %v2563_v40, %v2567_v42  ;;  %v2614_v40 = vld [vmem:[#allocation10 + $0xe70] sm:$0xff] }
 0x3d5   :  { %5874 = vmatprep.subr.bf16.mxu1 %v15255_v15  ;;  %v15309_v15 = vcombine.high %v2570_v48, %v2574_v49  ;;  %v15311_v51 = vcombine.high %v2571_v50, %v2575_v58  ;;  %v2611_v42 = vld [vmem:[#allocation10 + $0xe58] sm:$0xff] }
 0x3d7   :  { %5711 = vmatpush1.bf16.msra.mxu0 %v15252_v1  ;;  %v2583_v1 = vld [vmem:[#allocation10 + $0xd78] sm:$0xff] }
 0x3d8   :  { %5875 = vmatpush1.bf16.msra.mxu1 %v15254_v61  ;;  %5712 = vmatprep.subr.bf16.mxu0 %v15261_v56  ;;  %v15308_v61 = vcombine.low %v2570_v48, %v2574_v49  ;;  %v15310_v56 = vcombine.low %v2571_v50, %v2575_v58  ;;  %v15319_v26 = vcombine.high %v2579_v54, %v2583_v1  ;;  %v2618_v49 = vld [vmem:[#allocation10 + $0xe90] sm:$0xff]  ;;  %v2619_v58 = vld [vmem:[#allocation10 + $0xe98] sm:$0xff] }
 0x3d9   :  { %5876 = vmatprep.subr.bf16.mxu1 %v15263_v57  ;;  %v15317_v57 = vcombine.high %v2578_v52, %v2582_v53  ;;  %v2622_v50 = vld [vmem:[#allocation10 + $0xeb0] sm:$0xff] }
 0x3db   :  { %5713 = vmatpush1.bf16.msra.mxu0 %v15260_v63  ;;  %v2591_v63 = vld [vmem:[#allocation10 + $0xdb8] sm:$0xff] }
 0x3dc   :  { %5877 = vmatpush1.bf16.msra.mxu1 %v15262_v2  ;;  %5714 = vmatprep.subr.bf16.mxu0 %v15269_v3  ;;  %v15316_v2 = vcombine.low %v2578_v52, %v2582_v53  ;;  %v15318_v3 = vcombine.low %v2579_v54, %v2583_v1  ;;  %v15327_v10 = vcombine.high %v2587_v62, %v2591_v63  ;;  %v2626_v53 = vld [vmem:[#allocation10 + $0xed0] sm:$0xff]  ;;  %v2627_v1 = vld [vmem:[#allocation10 + $0xed8] sm:$0xff] }
 0x3dd   :  { %5878 = vmatprep.subr.bf16.mxu1 %v15271_v6  ;;  %v15325_v6 = vcombine.high %v2586_v59, %v2590_v60  ;;  %v2630_v54 = vld [vmem:[#allocation10 + $0xef0] sm:$0xff] }
 0x3de   :  { %v2634_v60 = vld [vmem:[#allocation10 + $0xf10] sm:$0xff] }
 0x3df   :  { %5715 = vmatpush1.bf16.msra.mxu0 %v15268_v14  ;;  %v2598_v14 = vld [vmem:[#allocation10 + $0xdf0] sm:$0xff] }
 0x3e0   :  { %5879 = vmatpush1.bf16.msra.mxu1 %v15270_v41  ;;  %5725 = vmatprep.subr.bf16.mxu0 %v15277_v17  ;;  %v15333_v24 = vcombine.high %v2594_v11, %v2598_v14 }
 0x3e1   :  { %5889 = vmatprep.subr.bf16.mxu1 %v15279_v19  ;;  %v2595_v19 = vld [vmem:[#allocation10 + $0xdd8] sm:$0xff] }
 0x3e2   :  { %5717 = vmatmul.mubr.bf16.vlgmr.msra.gmra.mrb[12].mxu0 %v18364_v4  ;;  %v15335_v25 = vcombine.high %v2595_v19, %v2599_v55 }
 0x3e3   :  { %5881 = vmatmul.mubr.bf16.vlgmr.msra.gmra.mrb[12].mxu1 %v18364_v4  ;;  %5726 = vmatpush1.bf16.msra.mxu0 %v15276_v21  ;;  %v15294_v4 = vcombine.low %v2555_v28, %v2559_v29  ;;  %v2606_v28 = vld [vmem:[#allocation10 + $0xe30] sm:$0xff]  ;;  %v2603_v29 = vld [vmem:[#allocation10 + $0xe18] sm:$0xff] }
 0x3e4   :  { %5757 = vmatprep.mubr.bf16.mxu0 %v18368_v12  ;;  %5890 = vmatpush1.bf16.msra.mxu1 %v15278_v23 }
 0x3e5   :  { %5921 = vmatprep.mubr.bf16.mxu1 %v18368_v12  ;;  %5727 = vmatprep.subr.bf16.mxu0 %v15285_v0  ;;  %v15300_v12 = vcombine.low %v2562_v38, %v2566_v39  ;;  %v15326_v0 = vcombine.low %v2587_v62, %v2591_v63  ;;  %v2610_v39 = vld [vmem:[#allocation10 + $0xe50] sm:$0xff]  ;;  %v2635_v63 = vld [vmem:[#allocation10 + $0xf18] sm:$0xff] }
 0x3e6   :  { %5891 = vmatprep.subr.bf16.mxu1 %v15287_v27  ;;  %v2602_v27 = vld [vmem:[#allocation10 + $0xe10] sm:$0xff] }
 0x3e7   :  { %5728 = vmatpush1.bf16.msra.mxu0 %v15284_v30  ;;  %v2607_v30 = vld [vmem:[#allocation10 + $0xe38] sm:$0xff]  ;;  %v2638_v62 = vld [vmem:[#allocation10 + $0xf30] sm:$0xff] }
 0x3e8   :  { %5892 = vmatpush1.bf16.msra.mxu1 %v15286_v31  ;;  %5729 = vmatprep.subr.bf16.mxu0 %v15293_v36  ;;  %v15332_v31 = vcombine.low %v2594_v11, %v2598_v14  ;;  %v15334_v36 = vcombine.low %v2595_v19, %v2599_v55  ;;  %v15343_v38 = vcombine.high %v2603_v29, %v2607_v30  ;;  %v2642_v14 = vld [vmem:[#allocation10 + $0xf50] sm:$0xff]  ;;  %v2643_v55 = vld [vmem:[#allocation10 + $0xf58] sm:$0xff] }
 0x3e9   :  { %5893 = vmatprep.subr.bf16.mxu1 %v15295_v37  ;;  %v15341_v37 = vcombine.high %v2602_v27, %v2606_v28  ;;  %v2646_v19 = vld [vmem:[#allocation10 + $0xf70] sm:$0xff] }
 0x3eb   :  { %5730 = vmatpush1.bf16.msra.mxu0 %v15292_v43  ;;  %v2615_v43 = vld [vmem:[#allocation10 + $0xe78] sm:$0xff] }
 0x3ec   :  { %5894 = vmatpush1.bf16.msra.mxu1 %v15294_v4  ;;  %5731 = vmatprep.subr.bf16.mxu0 %v15301_v46  ;;  %v15340_v4 = vcombine.low %v2602_v27, %v2606_v28  ;;  %v15342_v46 = vcombine.low %v2603_v29, %v2607_v30  ;;  %v15351_v48 = vcombine.high %v2611_v42, %v2615_v43  ;;  %v2655_v27 = vld [vmem:[#allocation10 + $0xfb8] sm:$0xff]  ;;  %v18405_v28 = vld [vmem:[#allocation11] sm:$0xff] }
 0x3ed   :  { %5895 = vmatprep.subr.bf16.mxu1 %v15303_v47  ;;  %v15349_v47 = vcombine.high %v2610_v39, %v2614_v40  ;;  %v15380_v29 = vcombine.low %v2642_v14, %v2646_v19 }
 0x3ef   :  { %5732 = vmatpush1.bf16.msra.mxu0 %v15300_v12  ;;  %v2623_v12 = vld [vmem:[#allocation10 + $0xeb8] sm:$0xff] }
 0x3f0   :  { %5896 = vmatpush1.bf16.msra.mxu1 %v15302_v44  ;;  %5733 = vmatprep.subr.bf16.mxu0 %v15309_v15  ;;  %v15348_v44 = vcombine.low %v2610_v39, %v2614_v40  ;;  %v15350_v15 = vcombine.low %v2611_v42, %v2615_v43  ;;  %v15359_v52 = vcombine.high %v2619_v58, %v2623_v12  ;;  %v2659_v40 = vld [vmem:[#allocation10 + $0xfd8] sm:$0xff] }
 0x3f1   :  { %5897 = vmatprep.subr.bf16.mxu1 %v15311_v51  ;;  %v15357_v51 = vcombine.high %v2618_v49, %v2622_v50  ;;  %v2681_v39 = vrot.slane %v18405_v28, %v18310_v35  ;;  %v2663_v42 = vld [vmem:[#allocation10 + $0xff8] sm:$0xff] }
 0x3f3   :  { %5734 = vmatpush1.bf16.msra.mxu0 %v15308_v61  ;;  %v2631_v61 = vld [vmem:[#allocation10 + $0xef8] sm:$0xff] }
 0x3f4   :  { %5898 = vmatpush1.bf16.msra.mxu1 %v15310_v56  ;;  %5735 = vmatprep.subr.bf16.mxu0 %v15317_v57  ;;  %v15356_v56 = vcombine.low %v2618_v49, %v2622_v50  ;;  %v15358_v57 = vcombine.low %v2619_v58, %v2623_v12  ;;  %v15367_v59 = vcombine.high %v2627_v1, %v2631_v61  ;;  %v5942_v49 = vld [vmem:[#allocation13 + $0x20] sm:$0xff]  ;;  %v5939_v58 = vld [vmem:[#allocation13 + $0x8] sm:$0xff] }
 0x3f5   :  { %v18397_v8 = vpop.f32.mrb[8].mxu0  ;;  %v18399_v9 = vpop.f32.mrb[8].mxu1  ;;  %5899 = vmatprep.subr.bf16.mxu1 %v15319_v26  ;;  %v15365_v26 = vcombine.high %v2626_v53, %v2630_v54  ;;  %v5943_v12 = vld [vmem:[#allocation13 + $0x28] sm:$0xff] }
 0x3f6   :  { %v18401_v41 = vpop.f32.mrb[9].mxu0  ;;  %v18403_v17 = vpop.f32.mrb[9].mxu1 }
 0x3f7   :  { %v5435_v18 = vpop.f32.mrb[10].mxu0  ;;  %v5599_v21 = vpop.f32.mrb[10].mxu1  ;;  %5736 = vmatpush1.bf16.msra.mxu0 %v15316_v2  ;;  %v2639_v2 = vld [vmem:[#allocation10 + $0xf38] sm:$0xff]  ;;  %v16561_v50 = vadd.f32 %v18401_v41, %v2681_v39  ;;  %v15402_v41 = vcombine.low %v5939_v58, %v5943_v12  ;;  %v5979_v39 = vld [vmem:[#allocation13 + $0x148] sm:$0xff] }
 0x3f8   :  { %5900 = vmatpush1.bf16.msra.mxu1 %v15318_v3  ;;  %v5436_v32 = vpop.f32.mrb[11].mxu0  ;;  %v5600_v23 = vpop.f32.mrb[11].mxu1  ;;  %5737 = vmatprep.subr.bf16.mxu0 %v15325_v6  ;;  %v15364_v3 = vcombine.low %v2626_v53, %v2630_v54  ;;  %v15366_v6 = vcombine.low %v2627_v1, %v2631_v61  ;;  %v15375_v11 = vcombine.high %v2635_v63, %v2639_v2  ;;  %v2647_v18 = vld [vmem:[#allocation10 + $0xf78] sm:$0xff]  ;;  %v5946_v54 = vld [vmem:[#allocation13 + $0x40] sm:$0xff] }
 0x3f9   :  { %5901 = vmatprep.subr.bf16.mxu1 %v15327_v10  ;;  %v15373_v10 = vcombine.high %v2634_v60, %v2638_v62  ;;  %v15372_v21 = vcombine.low %v2634_v60, %v2638_v62  ;;  %v15381_v32 = vcombine.high %v2642_v14, %v2646_v19  ;;  %v15383_v23 = vcombine.high %v2643_v55, %v2647_v18  ;;  %v5950_v1 = vld [vmem:[#allocation13 + $0x60] sm:$0xff] }
 0x3fa   :  { %v15382_v30 = vcombine.low %v2643_v55, %v2647_v18  ;;  %v5931_v53 = vmax.f32 %v16561_v50, 0.0  ;;  %v5958_v60 = vld [vmem:[#allocation13 + $0xa0] sm:$0xff]  ;;  %v5963_v18 = vld [vmem:[#allocation13 + $0xc8] sm:$0xff] }
 0x3fb   :  { %5738 = vmatpush1.bf16.msra.mxu0 %v15324_v22  ;;  %v15374_v22 = vcombine.low %v2635_v63, %v2639_v2  ;;  %v5955_v2 = vld [vmem:[#allocation13 + $0x88] sm:$0xff]  ;;  %v5962_v19 = vld [vmem:[#allocation13 + $0xc0] sm:$0xff] }
 0x3fc   :  { %5902 = vmatpush1.bf16.msra.mxu1 %v15326_v0  ;;  %5739 = vmatprep.subr.bf16.mxu0 %v15333_v24  ;;  %v2650_v0 = vld [vmem:[#allocation10 + $0xf90] sm:$0xff]  ;;  %v18410_v62 = vpack.c.bf16 %v5931_v53, %v5931_v53  ;;  %v5966_v55 = vld [vmem:[#allocation13 + $0xe0] sm:$0xff] }
 0x3fd   :  { %5903 = vmatprep.subr.bf16.mxu1 %v15335_v25  ;;  %v2654_v24 = vld [vmem:[#allocation10 + $0xfb0] sm:$0xff]  ;;  %v2651_v25 = vld [vmem:[#allocation10 + $0xf98] sm:$0xff] }
 0x3fe   :  { %v15388_v43 = vcombine.low %v2650_v0, %v2654_v24  ;;  %v5991_v50 = vld [vmem:[#allocation13 + $0x1a8] sm:$0xff] }
 0x3ff   :  { %5740 = vmatpush1.bf16.msra.mxu0 %v15332_v31  ;;  %v15389_v31 = vcombine.high %v2650_v0, %v2654_v24  ;;  %v5970_v0 = vld [vmem:[#allocation13 + $0x100] sm:$0xff]  ;;  %v5995_v53 = vld [vmem:[#allocation13 + $0x1c8] sm:$0xff] }
 0x400   :  { %5904 = vmatpush1.bf16.msra.mxu1 %v15334_v36  ;;  %5741 = vmatprep.subr.bf16.mxu0 %v15341_v37  ;;  %v15391_v36 = vcombine.high %v2651_v25, %v2655_v27  ;;  %v2658_v37 = vld [vmem:[#allocation10 + $0xfd0] sm:$0xff]  ;;  %v5974_v24 = vld [vmem:[#allocation13 + $0x120] sm:$0xff] }
 0x401   :  { %5905 = vmatprep.subr.bf16.mxu1 %v15343_v38  ;;  %v2662_v38 = vld [vmem:[#allocation10 + $0xff0] sm:$0xff] }
 0x403   :  { %5742 = vmatpush1.bf16.msra.mxu0 %v15340_v4  ;;  %v15390_v4 = vcombine.low %v2651_v25, %v2655_v27  ;;  %v5971_v25 = vld [vmem:[#allocation13 + $0x108] sm:$0xff] }
 0x404   :  { %5906 = vmatpush1.bf16.msra.mxu1 %v15342_v46  ;;  %5743 = vmatprep.subr.bf16.mxu0 %v15349_v47  ;;  %v15397_v46 = vcombine.high %v2658_v37, %v2662_v38  ;;  %v15399_v47 = vcombine.high %v2659_v40, %v2663_v42  ;;  %v5975_v27 = vld [vmem:[#allocation13 + $0x128] sm:$0xff] }
 0x405   :  { %5907 = vmatprep.subr.bf16.mxu1 %v15351_v48  ;;  %v5938_v48 = vld [vmem:[#allocation13] sm:$0xff] }
 0x406   :  { %v15400_v61 = vcombine.low %v5938_v48, %v5942_v49 }
 0x407   :  { %5744 = vmatpush1.bf16.msra.mxu0 %v15348_v44  ;;  %v15396_v44 = vcombine.low %v2658_v37, %v2662_v38  ;;  %v5978_v37 = vld [vmem:[#allocation13 + $0x140] sm:$0xff] }
 0x408   :  { %5908 = vmatpush1.bf16.msra.mxu1 %v15350_v15  ;;  %5745 = vmatprep.subr.bf16.mxu0 %v15357_v51  ;;  %v15398_v15 = vcombine.low %v2659_v40, %v2663_v42  ;;  %v15401_v51 = vcombine.high %v5938_v48, %v5942_v49  ;;  %v5982_v38 = vld [vmem:[#allocation13 + $0x160] sm:$0xff]  ;;  %v5983_v40 = vld [vmem:[#allocation13 + $0x168] sm:$0xff]  ;;  %v15432_v42 = vcombine.low %v5970_v0, %v5974_v24 }
 0x409   :  { %5909 = vmatprep.subr.bf16.mxu1 %v15359_v52  ;;  %v15403_v52 = vcombine.high %v5939_v58, %v5943_v12  ;;  %v5990_v48 = vld [vmem:[#allocation13 + $0x1a0] sm:$0xff]  ;;  %v5987_v49 = vld [vmem:[#allocation13 + $0x188] sm:$0xff]  ;;  %v15440_v58 = vcombine.low %v5978_v37, %v5982_v38  ;;  %v15442_v12 = vcombine.low %v5979_v39, %v5983_v40 }
 0x40b   :  { %5746 = vmatpush1.bf16.msra.mxu0 %v15356_v56  ;;  %v5947_v56 = vld [vmem:[#allocation13 + $0x48] sm:$0xff] }
 0x40c   :  { %5910 = vmatpush1.bf16.msra.mxu1 %v15358_v57  ;;  %5747 = vmatprep.subr.bf16.mxu0 %v15365_v26  ;;  %v5951_v57 = vld [vmem:[#allocation13 + $0x68] sm:$0xff]  ;;  %v15409_v26 = vcombine.high %v5946_v54, %v5950_v1 }
 0x40d   :  { %5911 = vmatprep.subr.bf16.mxu1 %v15367_v59  ;;  %v5954_v59 = vld [vmem:[#allocation13 + $0x80] sm:$0xff]  ;;  %v15411_v63 = vcombine.high %v5947_v56, %v5951_v57 }
 0x40f   :  { %5748 = vmatpush1.bf16.msra.mxu0 %v15364_v3  ;;  %v5959_v3 = vld [vmem:[#allocation13 + $0xa8] sm:$0xff] }
 0x410   :  { %5912 = vmatpush1.bf16.msra.mxu1 %v15366_v6  ;;  %5749 = vmatprep.subr.bf16.mxu0 %v15373_v10  ;;  %v15408_v6 = vcombine.low %v5946_v54, %v5950_v1  ;;  %v15410_v10 = vcombine.low %v5947_v56, %v5951_v57  ;;  %v15419_v14 = vcombine.high %v5955_v2, %v5959_v3  ;;  %v5999_v54 = vld [vmem:[#allocation13 + $0x1e8] sm:$0xff] }
 0x411   :  { %5913 = vmatprep.subr.bf16.mxu1 %v15375_v11  ;;  %v15417_v11 = vcombine.high %v5954_v59, %v5958_v60  ;;  %v15459_v57 = vcombine.high %v5995_v53, %v5999_v54 }
 0x413   :  { %5750 = vmatpush1.bf16.msra.mxu0 %v15372_v21  ;;  %v5967_v21 = vld [vmem:[#allocation13 + $0xe8] sm:$0xff] }
 0x414   :  { %5914 = vmatpush1.bf16.msra.mxu1 %v15374_v22  ;;  %5751 = vmatprep.subr.bf16.mxu0 %v15381_v32  ;;  %v15416_v22 = vcombine.low %v5954_v59, %v5958_v60  ;;  %v15425_v32 = vcombine.high %v5962_v19, %v5966_v55  ;;  %v6003_v59 = vld [vmem:[#allocation13 + $0x208] sm:$0xff] }
 0x415   :  { %5915 = vmatprep.subr.bf16.mxu1 %v15383_v23  ;;  %v15427_v23 = vcombine.high %v5963_v18, %v5967_v21  ;;  %v6007_v60 = vld [vmem:[#allocation13 + $0x228] sm:$0xff] }
 0x417   :  { %5752 = vmatpush1.bf16.msra.mxu0 %v15380_v29  ;;  %v15424_v29 = vcombine.low %v5962_v19, %v5966_v55  ;;  %v6015_v19 = vld [vmem:[#allocation13 + $0x268] sm:$0xff] }
 0x418   :  { %5916 = vmatpush1.bf16.msra.mxu1 %v15382_v30  ;;  %5753 = vmatprep.subr.bf16.mxu0 %v15389_v31  ;;  %v15426_v30 = vcombine.low %v5963_v18, %v5967_v21  ;;  %v15433_v31 = vcombine.high %v5970_v0, %v5974_v24  ;;  %v15466_v18 = vcombine.low %v6003_v59, %v6007_v60  ;;  %v6023_v0 = vld [vmem:[#allocation13 + $0x2a8] sm:$0xff] }
 0x419   :  { %5917 = vmatprep.subr.bf16.mxu1 %v15391_v36  ;;  %v15435_v36 = vcombine.high %v5971_v25, %v5975_v27 }
 0x41b   :  { %5754 = vmatpush1.bf16.msra.mxu0 %v15388_v43  ;;  %v15434_v43 = vcombine.low %v5971_v25, %v5975_v27 }
 0x41c   :  { %5918 = vmatpush1.bf16.msra.mxu1 %v15390_v4  ;;  %5755 = vmatprep.subr.bf16.mxu0 %v15397_v46  ;;  %v15441_v4 = vcombine.high %v5978_v37, %v5982_v38  ;;  %v15443_v46 = vcombine.high %v5979_v39, %v5983_v40  ;;  %v6031_v37 = vld [vmem:[#allocation13 + $0x2e8] sm:$0xff] }
 0x41d   :  { %5919 = vmatprep.subr.bf16.mxu1 %v15399_v47  ;;  %v5986_v47 = vld [vmem:[#allocation13 + $0x180] sm:$0xff] }
 0x41e   :  { %v15448_v1 = vcombine.low %v5986_v47, %v5990_v48 }
 0x41f   :  { %5756 = vmatpush1.bf16.msra.mxu0 %v15396_v44  ;;  %v15449_v44 = vcombine.high %v5986_v47, %v5990_v48  ;;  %v6039_v47 = vld [vmem:[#allocation13 + $0x328] sm:$0xff] }
 0x420   :  { %5920 = vmatpush1.bf16.msra.mxu1 %v15398_v15  ;;  %9060 = vmatprep.subr.bf16.mxu0 %v15401_v51  ;;  %v15451_v15 = vcombine.high %v5987_v49, %v5991_v50  ;;  %v5994_v51 = vld [vmem:[#allocation13 + $0x1c0] sm:$0xff] }
 0x421   :  { %9224 = vmatprep.subr.bf16.mxu1 %v15403_v52  ;;  %v5998_v52 = vld [vmem:[#allocation13 + $0x1e0] sm:$0xff] }
 0x422   :  { %5758 = vmatmul.mubr.bf16.vlgmr.msra.gmra.mrb[12].mxu0 %v18379_v34  ;;  %v15457_v56 = vcombine.high %v5994_v51, %v5998_v52 }
 0x423   :  { %5922 = vmatmul.mubr.bf16.vlgmr.msra.gmra.mrb[12].mxu1 %v18379_v34  ;;  %9061 = vmatpush1.bf16.msra.mxu0 %v15400_v61  ;;  %v15418_v34 = vcombine.low %v5955_v2, %v5959_v3  ;;  %v15450_v61 = vcombine.low %v5987_v49, %v5991_v50  ;;  %v15458_v2 = vcombine.low %v5995_v53, %v5999_v54 }
 0x424   :  { %9092 = vmatprep.mubr.bf16.mxu0 %v18410_v62  ;;  %9225 = vmatpush1.bf16.msra.mxu1 %v15402_v41  ;;  %v6002_v41 = vld [vmem:[#allocation13 + $0x200] sm:$0xff] }
 0x425   :  { %9256 = vmatprep.mubr.bf16.mxu1 %v18410_v62  ;;  %9062 = vmatprep.subr.bf16.mxu0 %v15409_v26  ;;  %v6006_v26 = vld [vmem:[#allocation13 + $0x220] sm:$0xff] }
 0x426   :  { %9226 = vmatprep.subr.bf16.mxu1 %v15411_v63  ;;  %v15456_v63 = vcombine.low %v5994_v51, %v5998_v52  ;;  %v15465_v3 = vcombine.high %v6002_v41, %v6006_v26  ;;  %v15464_v55 = vcombine.low %v6002_v41, %v6006_v26  ;;  %v6047_v51 = vld [vmem:[#allocation13 + $0x368] sm:$0xff] }
 0x427   :  { %9063 = vmatpush1.bf16.msra.mxu0 %v15408_v6  ;;  %v15467_v6 = vcombine.high %v6003_v59, %v6007_v60  ;;  %v6055_v41 = vld [vmem:[#allocation13 + $0x3a8] sm:$0xff]  ;;  %v2677_v59 = vrot.slane %v18405_v28, %v18305_v33 }
 0x428   :  { %9227 = vmatpush1.bf16.msra.mxu1 %v15410_v10  ;;  %9064 = vmatprep.subr.bf16.mxu0 %v15417_v11  ;;  %v6010_v10 = vld [vmem:[#allocation13 + $0x240] sm:$0xff] }
 0x429   :  { %9228 = vmatprep.subr.bf16.mxu1 %v15419_v14  ;;  %v6014_v11 = vld [vmem:[#allocation13 + $0x260] sm:$0xff]  ;;  %v6011_v14 = vld [vmem:[#allocation13 + $0x248] sm:$0xff] }
 0x42a   :  { %v15473_v21 = vcombine.high %v6010_v10, %v6014_v11  ;;  %v15472_v24 = vcombine.low %v6010_v10, %v6014_v11  ;;  %v15474_v25 = vcombine.low %v6011_v14, %v6015_v19  ;;  %v2689_v10 = vrot.slane %v18405_v28, %v18313_v7  ;;  %v6059_v11 = vld [vmem:[#allocation13 + $0x3c8] sm:$0xff] }
 0x42b   :  { %9065 = vmatpush1.bf16.msra.mxu0 %v15416_v22  ;;  %v15475_v22 = vcombine.high %v6011_v14, %v6015_v19  ;;  %v6063_v14 = vld [vmem:[#allocation13 + $0x3e8] sm:$0xff] }
 0x42c   :  { %9229 = vmatpush1.bf16.msra.mxu1 %v15418_v34  ;;  %9066 = vmatprep.subr.bf16.mxu0 %v15425_v32  ;;  %v6018_v34 = vld [vmem:[#allocation13 + $0x280] sm:$0xff] }
 0x42d   :  { %9230 = vmatprep.subr.bf16.mxu1 %v15427_v23  ;;  %v6022_v32 = vld [vmem:[#allocation13 + $0x2a0] sm:$0xff]  ;;  %v6019_v23 = vld [vmem:[#allocation13 + $0x288] sm:$0xff] }
 0x42e   :  { %v15481_v27 = vcombine.high %v6018_v34, %v6022_v32  ;;  %v15480_v38 = vcombine.low %v6018_v34, %v6022_v32  ;;  %v15482_v39 = vcombine.low %v6019_v23, %v6023_v0  ;;  %v6066_v34 = vld [vmem:[#allocation13 + $0x400] sm:$0xff] }
 0x42f   :  { %9067 = vmatpush1.bf16.msra.mxu0 %v15424_v29  ;;  %v15483_v29 = vcombine.high %v6019_v23, %v6023_v0  ;;  %v6070_v32 = vld [vmem:[#allocation13 + $0x420] sm:$0xff]  ;;  %v16563_v23 = vadd.f32 %v18403_v17, %v2689_v10  ;;  %v6067_v0 = vld [vmem:[#allocation13 + $0x408] sm:$0xff] }
 0x430   :  { %9231 = vmatpush1.bf16.msra.mxu1 %v15426_v30  ;;  %9068 = vmatprep.subr.bf16.mxu0 %v15433_v31  ;;  %v6026_v30 = vld [vmem:[#allocation13 + $0x2c0] sm:$0xff] }
 0x431   :  { %9232 = vmatprep.subr.bf16.mxu1 %v15435_v36  ;;  %v6030_v31 = vld [vmem:[#allocation13 + $0x2e0] sm:$0xff]  ;;  %v6027_v36 = vld [vmem:[#allocation13 + $0x2c8] sm:$0xff] }
 0x432   :  { %v15489_v40 = vcombine.high %v6026_v30, %v6030_v31  ;;  %v15488_v48 = vcombine.low %v6026_v30, %v6030_v31  ;;  %v15490_v49 = vcombine.low %v6027_v36, %v6031_v37  ;;  %v15529_v30 = vcombine.high %v6066_v34, %v6070_v32  ;;  %v6106_v10 = vld [vmem:[#allocation13 + $0x540] sm:$0xff] }
 0x433   :  { %9069 = vmatpush1.bf16.msra.mxu0 %v15432_v42  ;;  %v15491_v42 = vcombine.high %v6027_v36, %v6031_v37  ;;  %v5933_v31 = vmax.f32 %v16563_v23, 0.0  ;;  %v6074_v36 = vld [vmem:[#allocation13 + $0x440] sm:$0xff]  ;;  %v6115_v23 = vld [vmem:[#allocation13 + $0x588] sm:$0xff] }
 0x434   :  { %9233 = vmatpush1.bf16.msra.mxu1 %v15434_v43  ;;  %9070 = vmatprep.subr.bf16.mxu0 %v15441_v4  ;;  %v6034_v43 = vld [vmem:[#allocation13 + $0x300] sm:$0xff] }
 0x435   :  { %9234 = vmatprep.subr.bf16.mxu1 %v15443_v46  ;;  %v6038_v4 = vld [vmem:[#allocation13 + $0x320] sm:$0xff]  ;;  %v6035_v46 = vld [vmem:[#allocation13 + $0x308] sm:$0xff] }
 0x436   :  { %v15497_v50 = vcombine.high %v6034_v43, %v6038_v4  ;;  %v15496_v52 = vcombine.low %v6034_v43, %v6038_v4  ;;  %v15498_v53 = vcombine.low %v6035_v46, %v6039_v47  ;;  %v6078_v37 = vld [vmem:[#allocation13 + $0x460] sm:$0xff] }
 0x437   :  { %9071 = vmatpush1.bf16.msra.mxu0 %v15440_v58  ;;  %v15499_v58 = vcombine.high %v6035_v46, %v6039_v47  ;;  %v15537_v43 = vcombine.high %v6074_v36, %v6078_v37  ;;  %v6082_v4 = vld [vmem:[#allocation13 + $0x480] sm:$0xff]  ;;  %v18424_v47 = vpack.c.bf16 %v5933_v31, %v5933_v31  ;;  %v6123_v31 = vld [vmem:[#allocation13 + $0x5c8] sm:$0xff] }
 0x438   :  { %9235 = vmatpush1.bf16.msra.mxu1 %v15442_v12  ;;  %9072 = vmatprep.subr.bf16.mxu0 %v15449_v44  ;;  %v6042_v12 = vld [vmem:[#allocation13 + $0x340] sm:$0xff] }
 0x439   :  { %9236 = vmatprep.subr.bf16.mxu1 %v15451_v15  ;;  %v6046_v44 = vld [vmem:[#allocation13 + $0x360] sm:$0xff]  ;;  %v6043_v15 = vld [vmem:[#allocation13 + $0x348] sm:$0xff] }
 0x43a   :  { %v15505_v54 = vcombine.high %v6042_v12, %v6046_v44  ;;  %v15504_v26 = vcombine.low %v6042_v12, %v6046_v44  ;;  %v15506_v60 = vcombine.low %v6043_v15, %v6047_v51  ;;  %v6086_v46 = vld [vmem:[#allocation13 + $0x4a0] sm:$0xff] }
 0x43b   :  { %9073 = vmatpush1.bf16.msra.mxu0 %v15448_v1  ;;  %v15507_v1 = vcombine.high %v6043_v15, %v6047_v51  ;;  %v15545_v44 = vcombine.high %v6082_v4, %v6086_v46  ;;  %v6090_v51 = vld [vmem:[#allocation13 + $0x4c0] sm:$0xff] }
 0x43c   :  { %9237 = vmatpush1.bf16.msra.mxu1 %v15450_v61  ;;  %9074 = vmatprep.subr.bf16.mxu0 %v15457_v56  ;;  %v6050_v61 = vld [vmem:[#allocation13 + $0x380] sm:$0xff] }
 0x43d   :  { %9238 = vmatprep.subr.bf16.mxu1 %v15459_v57  ;;  %v6054_v56 = vld [vmem:[#allocation13 + $0x3a0] sm:$0xff]  ;;  %v6051_v57 = vld [vmem:[#allocation13 + $0x388] sm:$0xff] }
 0x43e   :  { %v15512_v19 = vcombine.low %v6050_v61, %v6054_v56 }
 0x43f   :  { %9075 = vmatpush1.bf16.msra.mxu0 %v15456_v63  ;;  %v15513_v63 = vcombine.high %v6050_v61, %v6054_v56 }
 0x440   :  { %9239 = vmatpush1.bf16.msra.mxu1 %v15458_v2  ;;  %9076 = vmatprep.subr.bf16.mxu0 %v15465_v3  ;;  %v15515_v2 = vcombine.high %v6051_v57, %v6055_v41  ;;  %v6058_v3 = vld [vmem:[#allocation13 + $0x3c0] sm:$0xff] }
 0x441   :  { %9240 = vmatprep.subr.bf16.mxu1 %v15467_v6  ;;  %v6062_v6 = vld [vmem:[#allocation13 + $0x3e0] sm:$0xff] }
 0x443   :  { %9077 = vmatpush1.bf16.msra.mxu0 %v15464_v55  ;;  %v16560_v55 = vadd.f32 %v18397_v8, %v2677_v59  ;;  %v6099_v59 = vld [vmem:[#allocation13 + $0x508] sm:$0xff] }
 0x444   :  { %9241 = vmatpush1.bf16.msra.mxu1 %v15466_v18  ;;  %9078 = vmatprep.subr.bf16.mxu0 %v15473_v21  ;;  %v15514_v18 = vcombine.low %v6051_v57, %v6055_v41  ;;  %v15521_v21 = vcombine.high %v6058_v3, %v6062_v6  ;;  %v6098_v41 = vld [vmem:[#allocation13 + $0x500] sm:$0xff] }
 0x445   :  { %9242 = vmatprep.subr.bf16.mxu1 %v15475_v22  ;;  %v15523_v22 = vcombine.high %v6059_v11, %v6063_v14 }
 0x447   :  { %9079 = vmatpush1.bf16.msra.mxu0 %v15472_v24  ;;  %v6071_v24 = vld [vmem:[#allocation13 + $0x428] sm:$0xff] }
 0x448   :  { %9243 = vmatpush1.bf16.msra.mxu1 %v15474_v25  ;;  %9080 = vmatprep.subr.bf16.mxu0 %v15481_v27  ;;  %v15520_v25 = vcombine.low %v6058_v3, %v6062_v6  ;;  %v5930_v27 = vmax.f32 %v16560_v55, 0.0  ;;  %v15531_v8 = vcombine.high %v6067_v0, %v6071_v24  ;;  %v15530_v17 = vcombine.low %v6067_v0, %v6071_v24  ;;  %v6119_v0 = vld [vmem:[#allocation13 + $0x5a8] sm:$0xff] }
 0x449   :  { %9244 = vmatprep.subr.bf16.mxu1 %v15483_v29  ;;  %v15522_v29 = vcombine.low %v6059_v11, %v6063_v14  ;;  %v6110_v11 = vld [vmem:[#allocation13 + $0x560] sm:$0xff]  ;;  %v6107_v14 = vld [vmem:[#allocation13 + $0x548] sm:$0xff] }
 0x44a   :  { %v15568_v24 = vcombine.low %v6106_v10, %v6110_v11 }
 0x44b   :  { %9081 = vmatpush1.bf16.msra.mxu0 %v15480_v38  ;;  %v15528_v38 = vcombine.low %v6066_v34, %v6070_v32  ;;  %v6114_v34 = vld [vmem:[#allocation13 + $0x580] sm:$0xff] }
 0x44c   :  { %9245 = vmatpush1.bf16.msra.mxu1 %v15482_v39  ;;  %9082 = vmatprep.subr.bf16.mxu0 %v15489_v40  ;;  %v6075_v39 = vld [vmem:[#allocation13 + $0x448] sm:$0xff]  ;;  %v6118_v32 = vld [vmem:[#allocation13 + $0x5a0] sm:$0xff] }
 0x44d   :  { %9246 = vmatprep.subr.bf16.mxu1 %v15491_v42  ;;  %v6079_v40 = vld [vmem:[#allocation13 + $0x468] sm:$0xff]  ;;  %v18422_v42 = vpack.c.bf16 %v5930_v27, %v5930_v27  ;;  %v15577_v27 = vcombine.high %v6114_v34, %v6118_v32 }
 0x44e   :  { %v15538_v12 = vcombine.low %v6075_v39, %v6079_v40 }
 0x44f   :  { %9083 = vmatpush1.bf16.msra.mxu0 %v15488_v48  ;;  %v15539_v48 = vcombine.high %v6075_v39, %v6079_v40 }
 0x450   :  { %9247 = vmatpush1.bf16.msra.mxu1 %v15490_v49  ;;  %9084 = vmatprep.subr.bf16.mxu0 %v15497_v50  ;;  %v6083_v49 = vld [vmem:[#allocation13 + $0x488] sm:$0xff] }
 0x451   :  { %9248 = vmatprep.subr.bf16.mxu1 %v15499_v58  ;;  %v6087_v50 = vld [vmem:[#allocation13 + $0x4a8] sm:$0xff]  ;;  %v15536_v58 = vcombine.low %v6074_v36, %v6078_v37  ;;  %v15576_v37 = vcombine.low %v6114_v34, %v6118_v32 }
 0x452   :  { %v15547_v15 = vcombine.high %v6083_v49, %v6087_v50  ;;  %v15546_v61 = vcombine.low %v6083_v49, %v6087_v50  ;;  %v6127_v36 = vld [vmem:[#allocation13 + $0x5e8] sm:$0xff] }
 0x453   :  { %9085 = vmatpush1.bf16.msra.mxu0 %v15496_v52  ;;  %v6094_v52 = vld [vmem:[#allocation13 + $0x4e0] sm:$0xff]  ;;  %v15587_v40 = vcombine.high %v6123_v31, %v6127_v36  ;;  %v15586_v49 = vcombine.low %v6123_v31, %v6127_v36  ;;  %v6167_v34 = vld [vmem:[#allocation13 + $0x728] sm:$0xff] }
 0x454   :  { %9249 = vmatpush1.bf16.msra.mxu1 %v15498_v53  ;;  %9086 = vmatprep.subr.bf16.mxu0 %v15505_v54  ;;  %v6091_v53 = vld [vmem:[#allocation13 + $0x4c8] sm:$0xff]  ;;  %v15553_v56 = vcombine.high %v6090_v51, %v6094_v52 }
 0x455   :  { %9250 = vmatprep.subr.bf16.mxu1 %v15507_v1  ;;  %v6095_v54 = vld [vmem:[#allocation13 + $0x4e8] sm:$0xff]  ;;  %v15544_v1 = vcombine.low %v6082_v4, %v6086_v46 }
 0x456   :  { %v15555_v57 = vcombine.high %v6091_v53, %v6095_v54  ;;  %v6131_v4 = vld [vmem:[#allocation13 + $0x608] sm:$0xff] }
 0x457   :  { %9087 = vmatpush1.bf16.msra.mxu0 %v15504_v26  ;;  %v6102_v26 = vld [vmem:[#allocation13 + $0x520] sm:$0xff]  ;;  %v6135_v46 = vld [vmem:[#allocation13 + $0x628] sm:$0xff] }
 0x458   :  { %9251 = vmatpush1.bf16.msra.mxu1 %v15506_v60  ;;  %9088 = vmatprep.subr.bf16.mxu0 %v15513_v63  ;;  %v6103_v60 = vld [vmem:[#allocation13 + $0x528] sm:$0xff]  ;;  %v15552_v63 = vcombine.low %v6090_v51, %v6094_v52  ;;  %v15561_v3 = vcombine.high %v6098_v41, %v6102_v26  ;;  %v15560_v55 = vcombine.low %v6098_v41, %v6102_v26 }
 0x459   :  { %9252 = vmatprep.subr.bf16.mxu1 %v15515_v2  ;;  %v15554_v2 = vcombine.low %v6091_v53, %v6095_v54  ;;  %v15563_v6 = vcombine.high %v6099_v59, %v6103_v60  ;;  %v6143_v51 = vld [vmem:[#allocation13 + $0x668] sm:$0xff]  ;;  %v15594_v53 = vcombine.low %v6131_v4, %v6135_v46 }
 0x45a   :  { %v6151_v41 = vld [vmem:[#allocation13 + $0x6a8] sm:$0xff] }
 0x45b   :  { %9089 = vmatpush1.bf16.msra.mxu0 %v15512_v19  ;;  %v6111_v19 = vld [vmem:[#allocation13 + $0x568] sm:$0xff] }
 0x45c   :  { %9253 = vmatpush1.bf16.msra.mxu1 %v15514_v18  ;;  %9090 = vmatprep.subr.bf16.mxu0 %v15521_v21  ;;  %v15562_v18 = vcombine.low %v6099_v59, %v6103_v60  ;;  %v15569_v21 = vcombine.high %v6106_v10, %v6110_v11  ;;  %v6159_v10 = vld [vmem:[#allocation13 + $0x6e8] sm:$0xff] }
 0x45d   :  { %9254 = vmatprep.subr.bf16.mxu1 %v15523_v22  ;;  %v15571_v22 = vcombine.high %v6107_v14, %v6111_v19 }
 0x45f   :  { %9091 = vmatpush1.bf16.msra.mxu0 %v15520_v25  ;;  %v15570_v25 = vcombine.low %v6107_v14, %v6111_v19 }
 0x460   :  { %9255 = vmatpush1.bf16.msra.mxu1 %v15522_v29  ;;  %9101 = vmatprep.subr.bf16.mxu0 %v15529_v30  ;;  %v15579_v29 = vcombine.high %v6115_v23, %v6119_v0  ;;  %v6122_v30 = vld [vmem:[#allocation13 + $0x5c0] sm:$0xff] }
 0x461   :  { %9265 = vmatprep.subr.bf16.mxu1 %v15531_v8  ;;  %v6126_v8 = vld [vmem:[#allocation13 + $0x5e0] sm:$0xff] }
 0x462   :  { %9093 = vmatmul.mubr.bf16.vlgmr.msra.gmra.mrb[16].mxu0 %v18422_v42  ;;  %v15585_v39 = vcombine.high %v6122_v30, %v6126_v8 }
 0x463   :  { %9257 = vmatmul.mubr.bf16.vlgmr.msra.gmra.mrb[16].mxu1 %v18422_v42  ;;  %9102 = vmatpush1.bf16.msra.mxu0 %v15528_v38  ;;  %v15578_v38 = vcombine.low %v6115_v23, %v6119_v0 }
 0x464   :  { %9133 = vmatprep.mubr.bf16.mxu0 %v18424_v47  ;;  %9266 = vmatpush1.bf16.msra.mxu1 %v15530_v17  ;;  %v6130_v17 = vld [vmem:[#allocation13 + $0x600] sm:$0xff] }
 0x465   :  { %9297 = vmatprep.mubr.bf16.mxu1 %v18424_v47  ;;  %9103 = vmatprep.subr.bf16.mxu0 %v15537_v43  ;;  %v6134_v43 = vld [vmem:[#allocation13 + $0x620] sm:$0xff] }
 0x466   :  { %9267 = vmatprep.subr.bf16.mxu1 %v15539_v48  ;;  %v15584_v48 = vcombine.low %v6122_v30, %v6126_v8  ;;  %v15593_v50 = vcombine.high %v6130_v17, %v6134_v43  ;;  %v15592_v52 = vcombine.low %v6130_v17, %v6134_v43  ;;  %v6175_v30 = vld [vmem:[#allocation13 + $0x768] sm:$0xff] }
 0x467   :  { %9104 = vmatpush1.bf16.msra.mxu0 %v15536_v58  ;;  %v15595_v58 = vcombine.high %v6131_v4, %v6135_v46  ;;  %v6183_v17 = vld [vmem:[#allocation13 + $0x7a8] sm:$0xff]  ;;  %v2685_v4 = vrot.slane %v18405_v28, %v18336_v45 }
 0x468   :  { %9268 = vmatpush1.bf16.msra.mxu1 %v15538_v12  ;;  %9105 = vmatprep.subr.bf16.mxu0 %v15545_v44  ;;  %v6138_v12 = vld [vmem:[#allocation13 + $0x640] sm:$0xff] }
 0x469   :  { %9269 = vmatprep.subr.bf16.mxu1 %v15547_v15  ;;  %v6142_v44 = vld [vmem:[#allocation13 + $0x660] sm:$0xff]  ;;  %v6139_v15 = vld [vmem:[#allocation13 + $0x648] sm:$0xff] }
 0x46a   :  { %v15601_v54 = vcombine.high %v6138_v12, %v6142_v44  ;;  %v15600_v26 = vcombine.low %v6138_v12, %v6142_v44  ;;  %v15602_v59 = vcombine.low %v6139_v15, %v6143_v51  ;;  %v6187_v12 = vld [vmem:[#allocation13 + $0x7c8] sm:$0xff] }
 0x46b   :  { %9106 = vmatpush1.bf16.msra.mxu0 %v15544_v1  ;;  %v15603_v1 = vcombine.high %v6139_v15, %v6143_v51  ;;  %v6191_v44 = vld [vmem:[#allocation13 + $0x7e8] sm:$0xff]  ;;  %v16562_v51 = vadd.f32 %v18399_v9, %v2685_v4  ;;  %v6202_v9 = vld [vmem:[#allocation13 + $0x840] sm:$0xff] }
 0x46c   :  { %9270 = vmatpush1.bf16.msra.mxu1 %v15546_v61  ;;  %9107 = vmatprep.subr.bf16.mxu0 %v15553_v56  ;;  %v6146_v61 = vld [vmem:[#allocation13 + $0x680] sm:$0xff]  ;;  %v15651_v28 = vcombine.high %v6187_v12, %v6191_v44 }
 0x46d   :  { %9271 = vmatprep.subr.bf16.mxu1 %v15555_v57  ;;  %v6150_v56 = vld [vmem:[#allocation13 + $0x6a0] sm:$0xff]  ;;  %v6147_v57 = vld [vmem:[#allocation13 + $0x688] sm:$0xff] }
 0x46e   :  { %v15609_v60 = vcombine.high %v6146_v61, %v6150_v56  ;;  %v15608_v11 = vcombine.low %v6146_v61, %v6150_v56  ;;  %v15610_v14 = vcombine.low %v6147_v57, %v6151_v41  ;;  %v6195_v61 = vld [vmem:[#allocation13 + $0x808] sm:$0xff] }
 0x46f   :  { %9108 = vmatpush1.bf16.msra.mxu0 %v15552_v63  ;;  %v15611_v63 = vcombine.high %v6147_v57, %v6151_v41  ;;  %v6199_v56 = vld [vmem:[#allocation13 + $0x828] sm:$0xff]  ;;  %v5932_v41 = vmax.f32 %v16562_v51, 0.0 }
 0x470   :  { %9272 = vmatpush1.bf16.msra.mxu1 %v15554_v2  ;;  %9109 = vmatprep.subr.bf16.mxu0 %v15561_v3  ;;  %v6154_v2 = vld [vmem:[#allocation13 + $0x6c0] sm:$0xff] }
 0x471   :  { %9273 = vmatprep.subr.bf16.mxu1 %v15563_v6  ;;  %v6158_v3 = vld [vmem:[#allocation13 + $0x6e0] sm:$0xff]  ;;  %v6155_v6 = vld [vmem:[#allocation13 + $0x6c8] sm:$0xff] }
 0x472   :  { %v15617_v19 = vcombine.high %v6154_v2, %v6158_v3  ;;  %v15616_v32 = vcombine.low %v6154_v2, %v6158_v3  ;;  %v15618_v23 = vcombine.low %v6155_v6, %v6159_v10  ;;  %v6203_v2 = vld [vmem:[#allocation13 + $0x848] sm:$0xff] }
 0x473   :  { %9110 = vmatpush1.bf16.msra.mxu0 %v15560_v55  ;;  %v15619_v55 = vcombine.high %v6155_v6, %v6159_v10  ;;  %v6207_v3 = vld [vmem:[#allocation13 + $0x868] sm:$0xff]  ;;  %v18433_v10 = vpack.c.bf16 %v5932_v41, %v5932_v41  ;;  %v6250_v41 = vld [vmem:[#allocation13 + $0x9c0] sm:$0xff] }
 0x474   :  { %9274 = vmatpush1.bf16.msra.mxu1 %v15562_v18  ;;  %9111 = vmatprep.subr.bf16.mxu0 %v15569_v21  ;;  %v6162_v18 = vld [vmem:[#allocation13 + $0x700] sm:$0xff] }
 0x475   :  { %9275 = vmatprep.subr.bf16.mxu1 %v15571_v22  ;;  %v6166_v21 = vld [vmem:[#allocation13 + $0x720] sm:$0xff]  ;;  %v6163_v22 = vld [vmem:[#allocation13 + $0x708] sm:$0xff] }
 0x476   :  { %v15625_v0 = vcombine.high %v6162_v18, %v6166_v21  ;;  %v15624_v8 = vcombine.low %v6162_v18, %v6166_v21  ;;  %v15626_v31 = vcombine.low %v6163_v22, %v6167_v34  ;;  %v6214_v18 = vld [vmem:[#allocation13 + $0x8a0] sm:$0xff]  ;;  %v6211_v21 = vld [vmem:[#allocation13 + $0x888] sm:$0xff] }
 0x477   :  { %9112 = vmatpush1.bf16.msra.mxu0 %v15568_v24  ;;  %v15627_v24 = vcombine.high %v6163_v22, %v6167_v34  ;;  %v6215_v22 = vld [vmem:[#allocation13 + $0x8a8] sm:$0xff] }
 0x478   :  { %9276 = vmatpush1.bf16.msra.mxu1 %v15570_v25  ;;  %9113 = vmatprep.subr.bf16.mxu0 %v15577_v27  ;;  %v6170_v25 = vld [vmem:[#allocation13 + $0x740] sm:$0xff] }
 0x479   :  { %9277 = vmatprep.subr.bf16.mxu1 %v15579_v29  ;;  %v6174_v27 = vld [vmem:[#allocation13 + $0x760] sm:$0xff]  ;;  %v6171_v29 = vld [vmem:[#allocation13 + $0x748] sm:$0xff] }
 0x47a   :  { %v15633_v36 = vcombine.high %v6170_v25, %v6174_v27  ;;  %v15632_v43 = vcombine.low %v6170_v25, %v6174_v27  ;;  %v15634_v46 = vcombine.low %v6171_v29, %v6175_v30  ;;  %v6222_v25 = vld [vmem:[#allocation13 + $0x8e0] sm:$0xff]  ;;  %v6219_v27 = vld [vmem:[#allocation13 + $0x8c8] sm:$0xff] }
 0x47b   :  { %9114 = vmatpush1.bf16.msra.mxu0 %v15576_v37  ;;  %v15635_v37 = vcombine.high %v6171_v29, %v6175_v30  ;;  %v6223_v29 = vld [vmem:[#allocation13 + $0x8e8] sm:$0xff] }
 0x47c   :  { %9278 = vmatpush1.bf16.msra.mxu1 %v15578_v38  ;;  %9115 = vmatprep.subr.bf16.mxu0 %v15585_v39  ;;  %v6178_v38 = vld [vmem:[#allocation13 + $0x780] sm:$0xff] }
 0x47d   :  { %9279 = vmatprep.subr.bf16.mxu1 %v15587_v40  ;;  %v6182_v39 = vld [vmem:[#allocation13 + $0x7a0] sm:$0xff]  ;;  %v6179_v40 = vld [vmem:[#allocation13 + $0x788] sm:$0xff] }
 0x47e   :  { %v15640_v15 = vcombine.low %v6178_v38, %v6182_v39 }
 0x47f   :  { %9116 = vmatpush1.bf16.msra.mxu0 %v15584_v48  ;;  %v15641_v48 = vcombine.high %v6178_v38, %v6182_v39  ;;  %v6230_v38 = vld [vmem:[#allocation13 + $0x920] sm:$0xff]  ;;  %v6227_v39 = vld [vmem:[#allocation13 + $0x908] sm:$0xff] }
 0x480   :  { %9280 = vmatpush1.bf16.msra.mxu1 %v15586_v49  ;;  %9117 = vmatprep.subr.bf16.mxu0 %v15593_v50  ;;  %v15643_v49 = vcombine.high %v6179_v40, %v6183_v17  ;;  %v6186_v50 = vld [vmem:[#allocation13 + $0x7c0] sm:$0xff] }
 0x481   :  { %9281 = vmatprep.subr.bf16.mxu1 %v15595_v58  ;;  %v6190_v58 = vld [vmem:[#allocation13 + $0x7e0] sm:$0xff] }
 0x482   :  { %v15648_v57 = vcombine.low %v6186_v50, %v6190_v58 }
 0x483   :  { %9118 = vmatpush1.bf16.msra.mxu0 %v15592_v52  ;;  %v15642_v52 = vcombine.low %v6179_v40, %v6183_v17  ;;  %v6231_v40 = vld [vmem:[#allocation13 + $0x928] sm:$0xff] }
 0x484   :  { %9282 = vmatpush1.bf16.msra.mxu1 %v15594_v53  ;;  %9119 = vmatprep.subr.bf16.mxu0 %v15601_v54  ;;  %v15649_v53 = vcombine.high %v6186_v50, %v6190_v58  ;;  %v6194_v54 = vld [vmem:[#allocation13 + $0x800] sm:$0xff]  ;;  %v6235_v50 = vld [vmem:[#allocation13 + $0x948] sm:$0xff] }
 0x485   :  { %9283 = vmatprep.subr.bf16.mxu1 %v15603_v1  ;;  %v6198_v1 = vld [vmem:[#allocation13 + $0x820] sm:$0xff]  ;;  %v6239_v58 = vld [vmem:[#allocation13 + $0x968] sm:$0xff] }
 0x486   :  { %v15656_v6 = vcombine.low %v6194_v54, %v6198_v1  ;;  %v15699_v51 = vcombine.high %v6235_v50, %v6239_v58 }
 0x487   :  { %9120 = vmatpush1.bf16.msra.mxu0 %v15600_v26  ;;  %v15650_v26 = vcombine.low %v6187_v12, %v6191_v44  ;;  %v15690_v44 = vcombine.low %v6227_v39, %v6231_v40 }
 0x488   :  { %9284 = vmatpush1.bf16.msra.mxu1 %v15602_v59  ;;  %9121 = vmatprep.subr.bf16.mxu0 %v15609_v60  ;;  %v15657_v59 = vcombine.high %v6194_v54, %v6198_v1  ;;  %v15659_v60 = vcombine.high %v6195_v61, %v6199_v56  ;;  %v6247_v54 = vld [vmem:[#allocation13 + $0x9a8] sm:$0xff] }
 0x489   :  { %9285 = vmatprep.subr.bf16.mxu1 %v15611_v63  ;;  %v6206_v63 = vld [vmem:[#allocation13 + $0x860] sm:$0xff] }
 0x48a   :  { %v15664_v34 = vcombine.low %v6202_v9, %v6206_v63 }
 0x48b   :  { %9122 = vmatpush1.bf16.msra.mxu0 %v15608_v11  ;;  %v15658_v11 = vcombine.low %v6195_v61, %v6199_v56  ;;  %v15698_v61 = vcombine.low %v6235_v50, %v6239_v58 }
 0x48c   :  { %9286 = vmatpush1.bf16.msra.mxu1 %v15610_v14  ;;  %9123 = vmatprep.subr.bf16.mxu0 %v15617_v19  ;;  %v15665_v14 = vcombine.high %v6202_v9, %v6206_v63  ;;  %v15667_v19 = vcombine.high %v6203_v2, %v6207_v3 }
 0x48d   :  { %9287 = vmatprep.subr.bf16.mxu1 %v15619_v55  ;;  %v6210_v55 = vld [vmem:[#allocation13 + $0x880] sm:$0xff] }
 0x48e   :  { %v15672_v30 = vcombine.low %v6210_v55, %v6214_v18 }
 0x48f   :  { %9124 = vmatpush1.bf16.msra.mxu0 %v15616_v32  ;;  %v15666_v32 = vcombine.low %v6203_v2, %v6207_v3 }
 0x490   :  { %9288 = vmatpush1.bf16.msra.mxu1 %v15618_v23  ;;  %9125 = vmatprep.subr.bf16.mxu0 %v15625_v0  ;;  %v15673_v23 = vcombine.high %v6210_v55, %v6214_v18  ;;  %v15675_v0 = vcombine.high %v6211_v21, %v6215_v22 }
 0x491   :  { %9289 = vmatprep.subr.bf16.mxu1 %v15627_v24  ;;  %v6218_v24 = vld [vmem:[#allocation13 + $0x8c0] sm:$0xff] }
 0x492   :  { %v15680_v17 = vcombine.low %v6218_v24, %v6222_v25 }
 0x493   :  { %9126 = vmatpush1.bf16.msra.mxu0 %v15624_v8  ;;  %v15674_v8 = vcombine.low %v6211_v21, %v6215_v22 }
 0x494   :  { %9290 = vmatpush1.bf16.msra.mxu1 %v15626_v31  ;;  %9127 = vmatprep.subr.bf16.mxu0 %v15633_v36  ;;  %v15681_v31 = vcombine.high %v6218_v24, %v6222_v25  ;;  %v15683_v36 = vcombine.high %v6219_v27, %v6223_v29 }
 0x495   :  { %9291 = vmatprep.subr.bf16.mxu1 %v15635_v37  ;;  %v6226_v37 = vld [vmem:[#allocation13 + $0x900] sm:$0xff] }
 0x496   :  { %v15689_v4 = vcombine.high %v6226_v37, %v6230_v38  ;;  %v15688_v12 = vcombine.low %v6226_v37, %v6230_v38 }
 0x497   :  { %9128 = vmatpush1.bf16.msra.mxu0 %v15632_v43  ;;  %v15682_v43 = vcombine.low %v6219_v27, %v6223_v29 }
 0x498   :  { %9292 = vmatpush1.bf16.msra.mxu1 %v15634_v46  ;;  %9129 = vmatprep.subr.bf16.mxu0 %v15641_v48  ;;  %v15691_v46 = vcombine.high %v6227_v39, %v6231_v40  ;;  %v6234_v48 = vld [vmem:[#allocation13 + $0x940] sm:$0xff] }
 0x499   :  { %9293 = vmatprep.subr.bf16.mxu1 %v15643_v49  ;;  %v6238_v49 = vld [vmem:[#allocation13 + $0x960] sm:$0xff] }
 0x49a   :  { %v15696_v1 = vcombine.low %v6234_v48, %v6238_v49 }
 0x49b   :  { %9130 = vmatpush1.bf16.msra.mxu0 %v15640_v15  ;;  %v15697_v15 = vcombine.high %v6234_v48, %v6238_v49 }
 0x49c   :  { %9294 = vmatpush1.bf16.msra.mxu1 %v15642_v52  ;;  %9131 = vmatprep.subr.bf16.mxu0 %v15649_v53  ;;  %v6242_v52 = vld [vmem:[#allocation13 + $0x980] sm:$0xff] }
 0x49d   :  { %9295 = vmatprep.subr.bf16.mxu1 %v15651_v28  ;;  %v6246_v53 = vld [vmem:[#allocation13 + $0x9a0] sm:$0xff]  ;;  %v6243_v28 = vld [vmem:[#allocation13 + $0x988] sm:$0xff] }
 0x49e   :  { %v15705_v56 = vcombine.high %v6242_v52, %v6246_v53  ;;  %v15704_v9 = vcombine.low %v6242_v52, %v6246_v53  ;;  %v15706_v63 = vcombine.low %v6243_v28, %v6247_v54 }
 0x49f   :  { %9132 = vmatpush1.bf16.msra.mxu0 %v15648_v57  ;;  %v15707_v57 = vcombine.high %v6243_v28, %v6247_v54 }
 0x4a0   :  { %9296 = vmatpush1.bf16.msra.mxu1 %v15650_v26  ;;  %9142 = vmatprep.subr.bf16.mxu0 %v15657_v59  ;;  %v6254_v26 = vld [vmem:[#allocation13 + $0x9e0] sm:$0xff]  ;;  %v6251_v59 = vld [vmem:[#allocation13 + $0x9c8] sm:$0xff] }
 0x4a1   :  { %9306 = vmatprep.subr.bf16.mxu1 %v15659_v60  ;;  %v6255_v60 = vld [vmem:[#allocation13 + $0x9e8] sm:$0xff]  ;;  %v15713_v2 = vcombine.high %v6250_v41, %v6254_v26  ;;  %v15712_v55 = vcombine.low %v6250_v41, %v6254_v26 }
 0x4a2   :  { %9134 = vmatmul.mubr.bf16.vlgmr.msra.gmra.mrb[16].mxu0 %v18433_v10  ;;  %v15715_v3 = vcombine.high %v6251_v59, %v6255_v60  ;;  %v15714_v18 = vcombine.low %v6251_v59, %v6255_v60 }
 0x4a3   :  { %9298 = vmatmul.mubr.bf16.vlgmr.msra.gmra.mrb[16].mxu1 %v18433_v10  ;;  %9143 = vmatpush1.bf16.msra.mxu0 %v15656_v6  ;;  %v6258_v6 = vld [vmem:[#allocation13 + $0xa00] sm:$0xff] }
 0x4a4   :  { %9307 = vmatpush1.bf16.msra.mxu1 %v15658_v11  ;;  %9144 = vmatprep.subr.bf16.mxu0 %v15665_v14  ;;  %v6262_v11 = vld [vmem:[#allocation13 + $0xa20] sm:$0xff]  ;;  %v6259_v14 = vld [vmem:[#allocation13 + $0xa08] sm:$0xff] }
 0x4a5   :  { %9308 = vmatprep.subr.bf16.mxu1 %v15667_v19  ;;  %v6263_v19 = vld [vmem:[#allocation13 + $0xa28] sm:$0xff]  ;;  %v15721_v21 = vcombine.high %v6258_v6, %v6262_v11  ;;  %v15720_v24 = vcombine.low %v6258_v6, %v6262_v11 }
 0x4a6   :  { %v15723_v22 = vcombine.high %v6259_v14, %v6263_v19  ;;  %v15722_v25 = vcombine.low %v6259_v14, %v6263_v19 }
 0x4a7   :  { %9145 = vmatpush1.bf16.msra.mxu0 %v15664_v34  ;;  %v6266_v34 = vld [vmem:[#allocation13 + $0xa40] sm:$0xff] }
 0x4a8   :  { %9309 = vmatpush1.bf16.msra.mxu1 %v15666_v32  ;;  %9146 = vmatprep.subr.bf16.mxu0 %v15673_v23  ;;  %v6270_v32 = vld [vmem:[#allocation13 + $0xa60] sm:$0xff]  ;;  %v6267_v23 = vld [vmem:[#allocation13 + $0xa48] sm:$0xff] }
 0x4a9   :  { %9310 = vmatprep.subr.bf16.mxu1 %v15675_v0  ;;  %v6271_v0 = vld [vmem:[#allocation13 + $0xa68] sm:$0xff]  ;;  %v15729_v27 = vcombine.high %v6266_v34, %v6270_v32  ;;  %v15728_v37 = vcombine.low %v6266_v34, %v6270_v32 }
 0x4aa   :  { %v15731_v29 = vcombine.high %v6267_v23, %v6271_v0  ;;  %v15730_v38 = vcombine.low %v6267_v23, %v6271_v0 }
 0x4ab   :  { %9147 = vmatpush1.bf16.msra.mxu0 %v15672_v30  ;;  %v6274_v30 = vld [vmem:[#allocation13 + $0xa80] sm:$0xff] }
 0x4ac   :  { %9311 = vmatpush1.bf16.msra.mxu1 %v15674_v8  ;;  %9148 = vmatprep.subr.bf16.mxu0 %v15681_v31  ;;  %v6278_v8 = vld [vmem:[#allocation13 + $0xaa0] sm:$0xff]  ;;  %v6275_v31 = vld [vmem:[#allocation13 + $0xa88] sm:$0xff] }
 0x4ad   :  { %9312 = vmatprep.subr.bf16.mxu1 %v15683_v36  ;;  %v6279_v36 = vld [vmem:[#allocation13 + $0xaa8] sm:$0xff]  ;;  %v15737_v39 = vcombine.high %v6274_v30, %v6278_v8  ;;  %v15736_v48 = vcombine.low %v6274_v30, %v6278_v8 }
 0x4ae   :  { %v15739_v40 = vcombine.high %v6275_v31, %v6279_v36  ;;  %v15738_v49 = vcombine.low %v6275_v31, %v6279_v36 }
 0x4af   :  { %9149 = vmatpush1.bf16.msra.mxu0 %v15680_v17  ;;  %v6282_v17 = vld [vmem:[#allocation13 + $0xac0] sm:$0xff] }
 0x4b0   :  { %9313 = vmatpush1.bf16.msra.mxu1 %v15682_v43  ;;  %9150 = vmatprep.subr.bf16.mxu0 %v15689_v4  ;;  %v6286_v43 = vld [vmem:[#allocation13 + $0xae0] sm:$0xff]  ;;  %v6283_v4 = vld [vmem:[#allocation13 + $0xac8] sm:$0xff] }
 0x4b1   :  { %9314 = vmatprep.subr.bf16.mxu1 %v15691_v46  ;;  %v6287_v46 = vld [vmem:[#allocation13 + $0xae8] sm:$0xff]  ;;  %v15745_v50 = vcombine.high %v6282_v17, %v6286_v43  ;;  %v15744_v52 = vcombine.low %v6282_v17, %v6286_v43 }
 0x4b2   :  { %v15747_v58 = vcombine.high %v6283_v4, %v6287_v46  ;;  %v15746_v53 = vcombine.low %v6283_v4, %v6287_v46 }
 0x4b3   :  { %9151 = vmatpush1.bf16.msra.mxu0 %v15688_v12  ;;  %v6290_v12 = vld [vmem:[#allocation13 + $0xb00] sm:$0xff] }
 0x4b4   :  { %9315 = vmatpush1.bf16.msra.mxu1 %v15690_v44  ;;  %9152 = vmatprep.subr.bf16.mxu0 %v15697_v15  ;;  %v6294_v44 = vld [vmem:[#allocation13 + $0xb20] sm:$0xff]  ;;  %v6291_v15 = vld [vmem:[#allocation13 + $0xb08] sm:$0xff] }
 0x4b5   :  { %9316 = vmatprep.subr.bf16.mxu1 %v15699_v51  ;;  %v6295_v51 = vld [vmem:[#allocation13 + $0xb28] sm:$0xff]  ;;  %v15753_v28 = vcombine.high %v6290_v12, %v6294_v44  ;;  %v15752_v41 = vcombine.low %v6290_v12, %v6294_v44 }
 0x4b6   :  { %v15755_v54 = vcombine.high %v6291_v15, %v6295_v51  ;;  %v15754_v26 = vcombine.low %v6291_v15, %v6295_v51 }
 0x4b7   :  { %9153 = vmatpush1.bf16.msra.mxu0 %v15696_v1  ;;  %v6298_v1 = vld [vmem:[#allocation13 + $0xb40] sm:$0xff] }
 0x4b8   :  { %9317 = vmatpush1.bf16.msra.mxu1 %v15698_v61  ;;  %9154 = vmatprep.subr.bf16.mxu0 %v15705_v56  ;;  %v6302_v61 = vld [vmem:[#allocation13 + $0xb60] sm:$0xff]  ;;  %v6299_v56 = vld [vmem:[#allocation13 + $0xb48] sm:$0xff] }
 0x4b9   :  { %9318 = vmatprep.subr.bf16.mxu1 %v15707_v57  ;;  %v6303_v57 = vld [vmem:[#allocation13 + $0xb68] sm:$0xff]  ;;  %v15761_v59 = vcombine.high %v6298_v1, %v6302_v61  ;;  %v15760_v6 = vcombine.low %v6298_v1, %v6302_v61 }
 0x4ba   :  { %v15763_v60 = vcombine.high %v6299_v56, %v6303_v57  ;;  %v15762_v11 = vcombine.low %v6299_v56, %v6303_v57  ;;  %v6331_v1 = vld [vmem:[#allocation13 + $0xc48] sm:$0xff] }
 0x4bb   :  { %9155 = vmatpush1.bf16.msra.mxu0 %v15704_v9  ;;  %v6306_v9 = vld [vmem:[#allocation13 + $0xb80] sm:$0xff]  ;;  %v6335_v61 = vld [vmem:[#allocation13 + $0xc68] sm:$0xff] }
 0x4bc   :  { %9319 = vmatpush1.bf16.msra.mxu1 %v15706_v63  ;;  %9156 = vmatprep.subr.bf16.mxu0 %v15713_v2  ;;  %v6310_v63 = vld [vmem:[#allocation13 + $0xba0] sm:$0xff]  ;;  %v6307_v2 = vld [vmem:[#allocation13 + $0xb88] sm:$0xff] }
 0x4bd   :  { %9320 = vmatprep.subr.bf16.mxu1 %v15715_v3  ;;  %v6311_v3 = vld [vmem:[#allocation13 + $0xba8] sm:$0xff]  ;;  %v15769_v14 = vcombine.high %v6306_v9, %v6310_v63  ;;  %v15768_v34 = vcombine.low %v6306_v9, %v6310_v63  ;;  %v15795_v9 = vcombine.high %v6331_v1, %v6335_v61  ;;  %v6342_v63 = vld [vmem:[#allocation13 + $0xca0] sm:$0xff] }
 0x4be   :  { %v15771_v19 = vcombine.high %v6307_v2, %v6311_v3  ;;  %v15770_v32 = vcombine.low %v6307_v2, %v6311_v3  ;;  %v6339_v2 = vld [vmem:[#allocation13 + $0xc88] sm:$0xff] }
 0x4bf   :  { %9157 = vmatpush1.bf16.msra.mxu0 %v15712_v55  ;;  %v6314_v55 = vld [vmem:[#allocation13 + $0xbc0] sm:$0xff]  ;;  %v6343_v3 = vld [vmem:[#allocation13 + $0xca8] sm:$0xff] }
 0x4c0   :  { %9321 = vmatpush1.bf16.msra.mxu1 %v15714_v18  ;;  %9158 = vmatprep.subr.bf16.mxu0 %v15721_v21  ;;  %v6318_v18 = vld [vmem:[#allocation13 + $0xbe0] sm:$0xff]  ;;  %v6315_v21 = vld [vmem:[#allocation13 + $0xbc8] sm:$0xff] }
 0x4c1   :  { %9322 = vmatprep.subr.bf16.mxu1 %v15723_v22  ;;  %v6319_v22 = vld [vmem:[#allocation13 + $0xbe8] sm:$0xff]  ;;  %v15777_v23 = vcombine.high %v6314_v55, %v6318_v18  ;;  %v15776_v30 = vcombine.low %v6314_v55, %v6318_v18  ;;  %v15803_v55 = vcombine.high %v6339_v2, %v6343_v3  ;;  %v6346_v18 = vld [vmem:[#allocation13 + $0xcc0] sm:$0xff] }
 0x4c2   :  { %v15779_v0 = vcombine.high %v6315_v21, %v6319_v22  ;;  %v15778_v8 = vcombine.low %v6315_v21, %v6319_v22  ;;  %v6350_v21 = vld [vmem:[#allocation13 + $0xce0] sm:$0xff]  ;;  %v6347_v22 = vld [vmem:[#allocation13 + $0xcc8] sm:$0xff] }
 0x4c3   :  { %9159 = vmatpush1.bf16.msra.mxu0 %v15720_v24  ;;  %v6322_v24 = vld [vmem:[#allocation13 + $0xc00] sm:$0xff] }
 0x4c4   :  { %9323 = vmatpush1.bf16.msra.mxu1 %v15722_v25  ;;  %9160 = vmatprep.subr.bf16.mxu0 %v15729_v27  ;;  %v6326_v25 = vld [vmem:[#allocation13 + $0xc20] sm:$0xff]  ;;  %v6323_v27 = vld [vmem:[#allocation13 + $0xc08] sm:$0xff] }
 0x4c5   :  { %9324 = vmatprep.subr.bf16.mxu1 %v15731_v29  ;;  %v6327_v29 = vld [vmem:[#allocation13 + $0xc28] sm:$0xff]  ;;  %v15785_v31 = vcombine.high %v6322_v24, %v6326_v25  ;;  %v15784_v57 = vcombine.low %v6322_v24, %v6326_v25  ;;  %v6354_v25 = vld [vmem:[#allocation13 + $0xd00] sm:$0xff] }
 0x4c6   :  { %v15787_v36 = vcombine.high %v6323_v27, %v6327_v29 }
 0x4c7   :  { %9161 = vmatpush1.bf16.msra.mxu0 %v15728_v37  ;;  %v18437_v37 = vld [vmem:[#allocation11] sm:$0xff] }
 0x4c8   :  { %9325 = vmatpush1.bf16.msra.mxu1 %v15730_v38  ;;  %9162 = vmatprep.subr.bf16.mxu0 %v15737_v39  ;;  %v2693_v38 = vrot.slane %v18437_v37, %v18346_v13  ;;  %v2697_v39 = vrot.slane %v18437_v37, %v18349_v16 }
 0x4c9   :  { %9326 = vmatprep.subr.bf16.mxu1 %v15739_v40  ;;  %v2705_v40 = vrot.slane %v18437_v37, %v18352_v20 }
 0x4cb   :  { %9163 = vmatpush1.bf16.msra.mxu0 %v15736_v48 }
 0x4cc   :  { %9327 = vmatpush1.bf16.msra.mxu1 %v15738_v49  ;;  %9164 = vmatprep.subr.bf16.mxu0 %v15745_v50 }
 0x4cd   :  { %9328 = vmatprep.subr.bf16.mxu1 %v15747_v58 }
 0x4cf   :  { %9165 = vmatpush1.bf16.msra.mxu0 %v15744_v52 }
 0x4d0   :  { %9329 = vmatpush1.bf16.msra.mxu1 %v15746_v53  ;;  %9166 = vmatprep.subr.bf16.mxu0 %v15753_v28  ;;  %v6330_v53 = vld [vmem:[#allocation13 + $0xc40] sm:$0xff] }
 0x4d1   :  { %9330 = vmatprep.subr.bf16.mxu1 %v15755_v54  ;;  %v6334_v54 = vld [vmem:[#allocation13 + $0xc60] sm:$0xff] }
 0x4d3   :  { %9167 = vmatpush1.bf16.msra.mxu0 %v15752_v41  ;;  %v15786_v41 = vcombine.low %v6323_v27, %v6327_v29  ;;  %v6358_v27 = vld [vmem:[#allocation13 + $0xd20] sm:$0xff]  ;;  %v6355_v29 = vld [vmem:[#allocation13 + $0xd08] sm:$0xff] }
 0x4d4   :  { %9331 = vmatpush1.bf16.msra.mxu1 %v15754_v26  ;;  %9168 = vmatprep.subr.bf16.mxu0 %v15761_v59  ;;  %v6338_v59 = vld [vmem:[#allocation13 + $0xc80] sm:$0xff] }
 0x4d5   :  { %9332 = vmatprep.subr.bf16.mxu1 %v15763_v60  ;;  %v15793_v60 = vcombine.high %v6330_v53, %v6334_v54 }
 0x4d7   :  { %9169 = vmatpush1.bf16.msra.mxu0 %v15760_v6 }
 0x4d8   :  { %9333 = vmatpush1.bf16.msra.mxu1 %v15762_v11  ;;  %9170 = vmatprep.subr.bf16.mxu0 %v15769_v14  ;;  %v15792_v11 = vcombine.low %v6330_v53, %v6334_v54  ;;  %v15794_v14 = vcombine.low %v6331_v1, %v6335_v61  ;;  %v6378_v54 = vld [vmem:[#allocation13 + $0xdc0] sm:$0xff]  ;;  %v6379_v61 = vld [vmem:[#allocation13 + $0xdc8] sm:$0xff] }
 0x4d9   :  { %9334 = vmatprep.subr.bf16.mxu1 %v15771_v19  ;;  %v15801_v19 = vcombine.high %v6338_v59, %v6342_v63  ;;  %v6382_v1 = vld [vmem:[#allocation13 + $0xde0] sm:$0xff] }
 0x4db   :  { %9171 = vmatpush1.bf16.msra.mxu0 %v15768_v34  ;;  %v6351_v34 = vld [vmem:[#allocation13 + $0xce8] sm:$0xff] }
 0x4dc   :  { %9335 = vmatpush1.bf16.msra.mxu1 %v15770_v32  ;;  %9172 = vmatprep.subr.bf16.mxu0 %v15777_v23  ;;  %v15800_v32 = vcombine.low %v6338_v59, %v6342_v63  ;;  %v15802_v23 = vcombine.low %v6339_v2, %v6343_v3  ;;  %v15811_v24 = vcombine.high %v6347_v22, %v6351_v34  ;;  %v6386_v63 = vld [vmem:[#allocation13 + $0xe00] sm:$0xff]  ;;  %v6387_v3 = vld [vmem:[#allocation13 + $0xe08] sm:$0xff] }
 0x4dd   :  { %9336 = vmatprep.subr.bf16.mxu1 %v15779_v0  ;;  %v15809_v0 = vcombine.high %v6346_v18, %v6350_v21  ;;  %v6390_v2 = vld [vmem:[#allocation13 + $0xe20] sm:$0xff] }
 0x4df   :  { %9173 = vmatpush1.bf16.msra.mxu0 %v15776_v30  ;;  %v6359_v30 = vld [vmem:[#allocation13 + $0xd28] sm:$0xff] }
 0x4e0   :  { %9337 = vmatpush1.bf16.msra.mxu1 %v15778_v8  ;;  %9183 = vmatprep.subr.bf16.mxu0 %v15785_v31  ;;  %v15808_v8 = vcombine.low %v6346_v18, %v6350_v21  ;;  %v15810_v31 = vcombine.low %v6347_v22, %v6351_v34  ;;  %v6394_v21 = vld [vmem:[#allocation13 + $0xe40] sm:$0xff]  ;;  %v6395_v34 = vld [vmem:[#allocation13 + $0xe48] sm:$0xff] }
 0x4e1   :  { %9347 = vmatprep.subr.bf16.mxu1 %v15787_v36  ;;  %v15817_v36 = vcombine.high %v6354_v25, %v6358_v27  ;;  %v6398_v22 = vld [vmem:[#allocation13 + $0xe60] sm:$0xff] }
 0x4f5   :  { %v5759_v17 = vpop.f32.mrb[12].mxu0 }
 0x4f6   :  { %v16564_v43 = vadd.f32 %v5759_v17, %v2693_v38  ;;  %v18445_v4 = vpop.f32.mrb[12].mxu1  ;;  %v5761_v46 = vpop.f32.mrb[13].mxu0  ;;  %v15819_v38 = vcombine.high %v6355_v29, %v6359_v30  ;;  %v6363_v17 = vld [vmem:[#allocation13 + $0xd48] sm:$0xff] }
 0x4f7   :  { %v16565_v48 = vadd.f32 %v5761_v46, %v2697_v39  ;;  %v5925_v49 = vpop.f32.mrb[13].mxu1  ;;  %v5763_v50 = vpop.f32.mrb[14].mxu0  ;;  %v6362_v39 = vld [vmem:[#allocation13 + $0xd40] sm:$0xff]  ;;  %v15816_v46 = vcombine.low %v6354_v25, %v6358_v27 }
 0x4f8   :  { %v5934_v58 = vmax.f32 %v16564_v43, 0.0  ;;  %v16567_v12 = vadd.f32 %v5925_v49, %v2705_v40  ;;  %v5927_v44 = vpop.f32.mrb[14].mxu1  ;;  %v5764_v15 = vpop.f32.mrb[15].mxu0  ;;  %v6366_v40 = vld [vmem:[#allocation13 + $0xd60] sm:$0xff]  ;;  %v6367_v43 = vld [vmem:[#allocation13 + $0xd68] sm:$0xff] }
 0x4f9   :  { %v5935_v51 = vmax.f32 %v16565_v48, 0.0  ;;  %v5928_v52 = vpop.f32.mrb[15].mxu1  ;;  %v15818_v48 = vcombine.low %v6355_v29, %v6359_v30  ;;  %v15825_v49 = vcombine.high %v6362_v39, %v6366_v40  ;;  %v15827_v50 = vcombine.high %v6363_v17, %v6367_v43  ;;  %v6371_v44 = vld [vmem:[#allocation13 + $0xd88] sm:$0xff]  ;;  %v6402_v27 = vld [vmem:[#allocation13 + $0xe80] sm:$0xff] }
 0x4fa   :  { %v5937_v28 = vmax.f32 %v16567_v12, 0.0  ;;  %v18449_v26 = vpack.c.bf16 %v5934_v58, %v5934_v58  ;;  %v6370_v58 = vld [vmem:[#allocation13 + $0xd80] sm:$0xff]  ;;  %v6375_v15 = vld [vmem:[#allocation13 + $0xda8] sm:$0xff]  ;;  %v15826_v52 = vcombine.low %v6363_v17, %v6367_v43 }
 0x4fb   :  { %v18447_v56 = vpack.c.bf16 %v5935_v51, %v5935_v51  ;;  %v6374_v12 = vld [vmem:[#allocation13 + $0xda0] sm:$0xff]  ;;  %v15824_v51 = vcombine.low %v6362_v39, %v6366_v40  ;;  %v15834_v59 = vcombine.low %v6371_v44, %v6375_v15  ;;  %v6403_v30 = vld [vmem:[#allocation13 + $0xe88] sm:$0xff] }
 0x4fc   :  { %v18453_v6 = vpack.c.bf16 %v5937_v28, %v5937_v28  ;;  %v15833_v53 = vcombine.high %v6370_v58, %v6374_v12  ;;  %v15835_v28 = vcombine.high %v6371_v44, %v6375_v15  ;;  %v6406_v29 = vld [vmem:[#allocation13 + $0xea0] sm:$0xff]  ;;  %v6411_v43 = vld [vmem:[#allocation13 + $0xec8] sm:$0xff] }
 0x4fd   :  { %9174 = vmatprep.mubr.bf16.mxu0 %v18447_v56  ;;  %9338 = vmatprep.mubr.bf16.mxu1 %v18447_v56  ;;  %v6410_v40 = vld [vmem:[#allocation13 + $0xec0] sm:$0xff]  ;;  %v6419_v15 = vld [vmem:[#allocation13 + $0xf08] sm:$0xff] }
 0x4fe   :  { %9175 = vmatmul.mubr.bf16.vlgmr.msra.gmra.mrb[16].mxu0 %v18449_v26  ;;  %9339 = vmatmul.mubr.bf16.vlgmr.msra.gmra.mrb[16].mxu1 %v18449_v26  ;;  %v6414_v17 = vld [vmem:[#allocation13 + $0xee0] sm:$0xff] }
 0x4ff   :  { %9184 = vmatpush1.bf16.msra.mxu0 %v15784_v57  ;;  %9348 = vmatpush1.bf16.msra.mxu1 %v15786_v41  ;;  %v6383_v57 = vld [vmem:[#allocation13 + $0xde8] sm:$0xff]  ;;  %v15832_v41 = vcombine.low %v6370_v58, %v6374_v12  ;;  %v6418_v12 = vld [vmem:[#allocation13 + $0xf00] sm:$0xff] }
 0x500   :  { %9215 = vmatprep.mubr.bf16.mxu0 %v18453_v6  ;;  %9379 = vmatprep.mubr.bf16.mxu1 %v18453_v6  ;;  %v6422_v44 = vld [vmem:[#allocation13 + $0xf20] sm:$0xff] }
 0x501   :  { %9185 = vmatprep.subr.bf16.mxu0 %v15793_v60  ;;  %9349 = vmatprep.subr.bf16.mxu1 %v15795_v9  ;;  %v15841_v60 = vcombine.high %v6378_v54, %v6382_v1  ;;  %v15843_v9 = vcombine.high %v6379_v61, %v6383_v57 }
 0x503   :  { %9186 = vmatpush1.bf16.msra.mxu0 %v15792_v11  ;;  %9350 = vmatpush1.bf16.msra.mxu1 %v15794_v14  ;;  %v6391_v11 = vld [vmem:[#allocation13 + $0xe28] sm:$0xff]  ;;  %v15840_v14 = vcombine.low %v6378_v54, %v6382_v1  ;;  %v6426_v1 = vld [vmem:[#allocation13 + $0xf40] sm:$0xff] }
 0x504   :  { %9187 = vmatprep.subr.bf16.mxu0 %v15801_v19  ;;  %9351 = vmatprep.subr.bf16.mxu1 %v15803_v55  ;;  %v15842_v19 = vcombine.low %v6379_v61, %v6383_v57  ;;  %v15849_v55 = vcombine.high %v6386_v63, %v6390_v2  ;;  %v15851_v18 = vcombine.high %v6387_v3, %v6391_v11  ;;  %v6430_v61 = vld [vmem:[#allocation13 + $0xf60] sm:$0xff]  ;;  %v6427_v57 = vld [vmem:[#allocation13 + $0xf48] sm:$0xff] }
 0x507   :  { %9188 = vmatpush1.bf16.msra.mxu0 %v15800_v32  ;;  %9352 = vmatpush1.bf16.msra.mxu1 %v15802_v23  ;;  %v6399_v32 = vld [vmem:[#allocation13 + $0xe68] sm:$0xff]  ;;  %v15848_v23 = vcombine.low %v6386_v63, %v6390_v2  ;;  %v6434_v2 = vld [vmem:[#allocation13 + $0xf80] sm:$0xff] }
 0x508   :  { %9189 = vmatprep.subr.bf16.mxu0 %v15809_v0  ;;  %9353 = vmatprep.subr.bf16.mxu1 %v15811_v24  ;;  %v15850_v0 = vcombine.low %v6387_v3, %v6391_v11  ;;  %v15857_v24 = vcombine.high %v6394_v21, %v6398_v22  ;;  %v15859_v25 = vcombine.high %v6395_v34, %v6399_v32  ;;  %v6438_v3 = vld [vmem:[#allocation13 + $0xfa0] sm:$0xff]  ;;  %v6435_v11 = vld [vmem:[#allocation13 + $0xf88] sm:$0xff] }
 0x50b   :  { %9190 = vmatpush1.bf16.msra.mxu0 %v15808_v8  ;;  %9354 = vmatpush1.bf16.msra.mxu1 %v15810_v31  ;;  %v6407_v8 = vld [vmem:[#allocation13 + $0xea8] sm:$0xff]  ;;  %v15856_v31 = vcombine.low %v6394_v21, %v6398_v22  ;;  %v15897_v21 = vcombine.high %v6434_v2, %v6438_v3 }
 0x50c   :  { %9191 = vmatprep.subr.bf16.mxu0 %v15817_v36  ;;  %9355 = vmatprep.subr.bf16.mxu1 %v15819_v38  ;;  %v15858_v36 = vcombine.low %v6395_v34, %v6399_v32  ;;  %v15865_v38 = vcombine.high %v6402_v27, %v6406_v29  ;;  %v15867_v39 = vcombine.high %v6403_v30, %v6407_v8  ;;  %v6442_v34 = vld [vmem:[#allocation13 + $0xfc0] sm:$0xff] }
 0x50d   :  { %v6446_v32 = vld [vmem:[#allocation13 + $0xfe0] sm:$0xff] }
 0x50f   :  { %9192 = vmatpush1.bf16.msra.mxu0 %v15816_v46  ;;  %9356 = vmatpush1.bf16.msra.mxu1 %v15818_v48  ;;  %v6415_v46 = vld [vmem:[#allocation13 + $0xee8] sm:$0xff]  ;;  %v15864_v48 = vcombine.low %v6402_v27, %v6406_v29  ;;  %v15905_v29 = vcombine.high %v6442_v34, %v6446_v32 }
 0x510   :  { %9193 = vmatprep.subr.bf16.mxu0 %v15825_v49  ;;  %9357 = vmatprep.subr.bf16.mxu1 %v15827_v50  ;;  %v15866_v49 = vcombine.low %v6403_v30, %v6407_v8  ;;  %v15873_v50 = vcombine.high %v6410_v40, %v6414_v17  ;;  %v15875_v58 = vcombine.high %v6411_v43, %v6415_v46  ;;  %v5940_v8 = vld [vmem:[#allocation13 + $0x10] sm:$0xff] }
 0x513   :  { %9194 = vmatpush1.bf16.msra.mxu0 %v15824_v51  ;;  %9358 = vmatpush1.bf16.msra.mxu1 %v15826_v52  ;;  %v6423_v51 = vld [vmem:[#allocation13 + $0xf28] sm:$0xff]  ;;  %v15872_v52 = vcombine.low %v6410_v40, %v6414_v17 }
 0x514   :  { %9195 = vmatprep.subr.bf16.mxu0 %v15833_v53  ;;  %9359 = vmatprep.subr.bf16.mxu1 %v15835_v28  ;;  %v15874_v53 = vcombine.low %v6411_v43, %v6415_v46  ;;  %v15881_v28 = vcombine.high %v6418_v12, %v6422_v44  ;;  %v15883_v54 = vcombine.high %v6419_v15, %v6423_v51  ;;  %v5948_v46 = vld [vmem:[#allocation13 + $0x50] sm:$0xff] }
 0x517   :  { %9196 = vmatpush1.bf16.msra.mxu0 %v15832_v41  ;;  %9360 = vmatpush1.bf16.msra.mxu1 %v15834_v59  ;;  %v6431_v41 = vld [vmem:[#allocation13 + $0xf68] sm:$0xff]  ;;  %v15880_v59 = vcombine.low %v6418_v12, %v6422_v44 }
 0x518   :  { %9197 = vmatprep.subr.bf16.mxu0 %v15841_v60  ;;  %9361 = vmatprep.subr.bf16.mxu1 %v15843_v9  ;;  %v15882_v60 = vcombine.low %v6419_v15, %v6423_v51  ;;  %v15889_v9 = vcombine.high %v6426_v1, %v6430_v61  ;;  %v15891_v63 = vcombine.high %v6427_v57, %v6431_v41  ;;  %v5956_v51 = vld [vmem:[#allocation13 + $0x90] sm:$0xff] }
 0x51b   :  { %9198 = vmatpush1.bf16.msra.mxu0 %v15840_v14  ;;  %9362 = vmatpush1.bf16.msra.mxu1 %v15842_v19  ;;  %v6439_v14 = vld [vmem:[#allocation13 + $0xfa8] sm:$0xff]  ;;  %v15888_v19 = vcombine.low %v6426_v1, %v6430_v61 }
 0x51c   :  { %9199 = vmatprep.subr.bf16.mxu0 %v15849_v55  ;;  %9363 = vmatprep.subr.bf16.mxu1 %v15851_v18  ;;  %v15890_v55 = vcombine.low %v6427_v57, %v6431_v41  ;;  %v2701_v18 = vrot.slane %v18437_v37, %v18375_v5  ;;  %v15899_v22 = vcombine.high %v6435_v11, %v6439_v14  ;;  %v5944_v37 = vld [vmem:[#allocation13 + $0x30] sm:$0xff] }
 0x51d   :  { %v15405_v17 = vcombine.high %v5940_v8, %v5944_v37  ;;  %v5964_v41 = vld [vmem:[#allocation13 + $0xd0] sm:$0xff] }
 0x51e   :  { %v16566_v27 = vadd.f32 %v18445_v4, %v2701_v18  ;;  %v5949_v4 = vld [vmem:[#allocation13 + $0x58] sm:$0xff] }
 0x51f   :  { %9200 = vmatpush1.bf16.msra.mxu0 %v15848_v23  ;;  %9364 = vmatpush1.bf16.msra.mxu1 %v15850_v0  ;;  %v6443_v23 = vld [vmem:[#allocation13 + $0xfc8] sm:$0xff] }
 0x520   :  { %9201 = vmatprep.subr.bf16.mxu0 %v15857_v24  ;;  %9365 = vmatprep.subr.bf16.mxu1 %v15859_v25  ;;  %v6447_v0 = vld [vmem:[#allocation13 + $0xfe8] sm:$0xff]  ;;  %v15896_v24 = vcombine.low %v6434_v2, %v6438_v3  ;;  %v15898_v25 = vcombine.low %v6435_v11, %v6439_v14  ;;  %v5936_v40 = vmax.f32 %v16566_v27, 0.0  ;;  %v5972_v14 = vld [vmem:[#allocation13 + $0x110] sm:$0xff] }
 0x521   :  { %v15907_v30 = vcombine.high %v6443_v23, %v6447_v0 }
 0x523   :  { %9202 = vmatpush1.bf16.msra.mxu0 %v15856_v31  ;;  %9366 = vmatpush1.bf16.msra.mxu1 %v15858_v36  ;;  %v5941_v31 = vld [vmem:[#allocation13 + $0x18] sm:$0xff] }
 0x524   :  { %9203 = vmatprep.subr.bf16.mxu0 %v15865_v38  ;;  %9367 = vmatprep.subr.bf16.mxu1 %v15867_v39  ;;  %v5945_v36 = vld [vmem:[#allocation13 + $0x38] sm:$0xff]  ;;  %v15904_v38 = vcombine.low %v6442_v34, %v6446_v32  ;;  %v15906_v39 = vcombine.low %v6443_v23, %v6447_v0  ;;  %v5980_v32 = vld [vmem:[#allocation13 + $0x150] sm:$0xff] }
 0x525   :  { %v15407_v43 = vcombine.high %v5941_v31, %v5945_v36  ;;  %v15406_v12 = vcombine.low %v5941_v31, %v5945_v36  ;;  %v5984_v23 = vld [vmem:[#allocation13 + $0x170] sm:$0xff]  ;;  %v5981_v0 = vld [vmem:[#allocation13 + $0x158] sm:$0xff] }
 0x526   :  { %v5989_v31 = vld [vmem:[#allocation13 + $0x198] sm:$0xff] }
 0x527   :  { %9204 = vmatpush1.bf16.msra.mxu0 %v15864_v48  ;;  %9368 = vmatpush1.bf16.msra.mxu1 %v15866_v49  ;;  %v5952_v48 = vld [vmem:[#allocation13 + $0x70] sm:$0xff]  ;;  %v5953_v49 = vld [vmem:[#allocation13 + $0x78] sm:$0xff] }
 0x528   :  { %9205 = vmatprep.subr.bf16.mxu0 %v15873_v50  ;;  %9369 = vmatprep.subr.bf16.mxu1 %v15875_v58  ;;  %v15404_v50 = vcombine.low %v5940_v8, %v5944_v37  ;;  %v18462_v58 = vpack.c.bf16 %v5936_v40, %v5936_v40  ;;  %v15413_v44 = vcombine.high %v5948_v46, %v5952_v48  ;;  %v5988_v8 = vld [vmem:[#allocation13 + $0x190] sm:$0xff]  ;;  %v5993_v36 = vld [vmem:[#allocation13 + $0x1b8] sm:$0xff] }
 0x529   :  { %v15415_v15 = vcombine.high %v5949_v4, %v5953_v49  ;;  %v15414_v1 = vcombine.low %v5949_v4, %v5953_v49  ;;  %v5992_v37 = vld [vmem:[#allocation13 + $0x1b0] sm:$0xff]  ;;  %v6001_v4 = vld [vmem:[#allocation13 + $0x1f8] sm:$0xff] }
 0x52a   :  { %v15453_v40 = vcombine.high %v5988_v8, %v5992_v37  ;;  %v15452_v49 = vcombine.low %v5988_v8, %v5992_v37  ;;  %v6040_v8 = vld [vmem:[#allocation13 + $0x330] sm:$0xff]  ;;  %v6037_v37 = vld [vmem:[#allocation13 + $0x318] sm:$0xff] }
 0x52b   :  { %9206 = vmatpush1.bf16.msra.mxu0 %v15872_v52  ;;  %9370 = vmatpush1.bf16.msra.mxu1 %v15874_v53  ;;  %v5960_v52 = vld [vmem:[#allocation13 + $0xb0] sm:$0xff]  ;;  %v5957_v53 = vld [vmem:[#allocation13 + $0x98] sm:$0xff] }
 0x52c   :  { %9207 = vmatprep.subr.bf16.mxu0 %v15881_v28  ;;  %9371 = vmatprep.subr.bf16.mxu1 %v15883_v54  ;;  %v5961_v28 = vld [vmem:[#allocation13 + $0xb8] sm:$0xff]  ;;  %v15412_v54 = vcombine.low %v5948_v46, %v5952_v48  ;;  %v15421_v61 = vcombine.high %v5956_v51, %v5960_v52  ;;  %v6000_v46 = vld [vmem:[#allocation13 + $0x1f0] sm:$0xff] }
 0x52d   :  { %v15423_v57 = vcombine.high %v5957_v53, %v5961_v28  ;;  %v15422_v2 = vcombine.low %v5957_v53, %v5961_v28  ;;  %v5997_v48 = vld [vmem:[#allocation13 + $0x1d8] sm:$0xff] }
 0x52e   :  { %v6009_v53 = vld [vmem:[#allocation13 + $0x238] sm:$0xff] }
 0x52f   :  { %9208 = vmatpush1.bf16.msra.mxu0 %v15880_v59  ;;  %9372 = vmatpush1.bf16.msra.mxu1 %v15882_v60  ;;  %v5968_v59 = vld [vmem:[#allocation13 + $0xf0] sm:$0xff]  ;;  %v5965_v60 = vld [vmem:[#allocation13 + $0xd8] sm:$0xff] }
 0x530   :  { %9209 = vmatprep.subr.bf16.mxu0 %v15889_v9  ;;  %9373 = vmatprep.subr.bf16.mxu1 %v15891_v63  ;;  %v5969_v9 = vld [vmem:[#allocation13 + $0xf8] sm:$0xff]  ;;  %v15420_v63 = vcombine.low %v5956_v51, %v5960_v52  ;;  %v15429_v3 = vcombine.high %v5964_v41, %v5968_v59  ;;  %v15428_v18 = vcombine.low %v5964_v41, %v5968_v59  ;;  %v6008_v51 = vld [vmem:[#allocation13 + $0x230] sm:$0xff] }
 0x531   :  { %v15431_v11 = vcombine.high %v5965_v60, %v5969_v9  ;;  %v6005_v52 = vld [vmem:[#allocation13 + $0x218] sm:$0xff]  ;;  %v6016_v41 = vld [vmem:[#allocation13 + $0x270] sm:$0xff] }
 0x532   :  { %v6013_v59 = vld [vmem:[#allocation13 + $0x258] sm:$0xff] }
 0x533   :  { %9210 = vmatpush1.bf16.msra.mxu0 %v15888_v19  ;;  %9374 = vmatpush1.bf16.msra.mxu1 %v15890_v55  ;;  %v5976_v19 = vld [vmem:[#allocation13 + $0x130] sm:$0xff]  ;;  %v5977_v55 = vld [vmem:[#allocation13 + $0x138] sm:$0xff] }
 0x534   :  { %9211 = vmatprep.subr.bf16.mxu0 %v15897_v21  ;;  %9375 = vmatprep.subr.bf16.mxu1 %v15899_v22  ;;  %v15430_v21 = vcombine.low %v5965_v60, %v5969_v9  ;;  %v15437_v22 = vcombine.high %v5972_v14, %v5976_v19  ;;  %v6017_v60 = vld [vmem:[#allocation13 + $0x278] sm:$0xff] }
 0x537   :  { %9212 = vmatpush1.bf16.msra.mxu0 %v15896_v24  ;;  %9376 = vmatpush1.bf16.msra.mxu1 %v15898_v25  ;;  %v5985_v24 = vld [vmem:[#allocation13 + $0x178] sm:$0xff]  ;;  %v15436_v25 = vcombine.low %v5972_v14, %v5976_v19  ;;  %v6024_v14 = vld [vmem:[#allocation13 + $0x2b0] sm:$0xff] }
 0x538   :  { %9213 = vmatprep.subr.bf16.mxu0 %v15905_v29  ;;  %9377 = vmatprep.subr.bf16.mxu1 %v15907_v30  ;;  %v15445_v29 = vcombine.high %v5980_v32, %v5984_v23  ;;  %v15447_v30 = vcombine.high %v5981_v0, %v5985_v24  ;;  %v6021_v19 = vld [vmem:[#allocation13 + $0x298] sm:$0xff] }
 0x53b   :  { %9214 = vmatpush1.bf16.msra.mxu0 %v15904_v38  ;;  %9378 = vmatpush1.bf16.msra.mxu1 %v15906_v39  ;;  %v15444_v38 = vcombine.low %v5980_v32, %v5984_v23  ;;  %v15446_v39 = vcombine.low %v5981_v0, %v5985_v24  ;;  %v6032_v32 = vld [vmem:[#allocation13 + $0x2f0] sm:$0xff]  ;;  %v6029_v23 = vld [vmem:[#allocation13 + $0x2d8] sm:$0xff] }
 0x53c   :  { %9388 = vmatprep.subr.bf16.mxu0 %v15405_v17  ;;  %9552 = vmatprep.subr.bf16.mxu1 %v15407_v43  ;;  %v15455_v17 = vcombine.high %v5989_v31, %v5993_v36  ;;  %v5996_v43 = vld [vmem:[#allocation13 + $0x1d0] sm:$0xff]  ;;  %v6033_v0 = vld [vmem:[#allocation13 + $0x2f8] sm:$0xff] }
 0x53d   :  { %v15460_v28 = vcombine.low %v5996_v43, %v6000_v46 }
 0x53e   :  { %9216 = vmatmul.mubr.bf16.vlgmr.msra.gmra.mrb[16].mxu0 %v18462_v58  ;;  %9380 = vmatmul.mubr.bf16.vlgmr.msra.gmra.mrb[16].mxu1 %v18462_v58 }
 0x53f   :  { %9389 = vmatpush1.bf16.msra.mxu0 %v15404_v50  ;;  %9420 = vmatprep.mubr.bf16.mxu0 %v18410_v62  ;;  %v15454_v50 = vcombine.low %v5989_v31, %v5993_v36  ;;  %v6041_v31 = vld [vmem:[#allocation13 + $0x338] sm:$0xff] }
 0x540   :  { %9553 = vmatpush1.bf16.msra.mxu1 %v15406_v12  ;;  %9584 = vmatprep.mubr.bf16.mxu1 %v18410_v62  ;;  %v5973_v62 = vld [vmem:[#allocation13 + $0x118] sm:$0xff]  ;;  %v15461_v12 = vcombine.high %v5996_v43, %v6000_v46  ;;  %v6048_v43 = vld [vmem:[#allocation13 + $0x370] sm:$0xff] }
 0x541   :  { %9390 = vmatprep.subr.bf16.mxu0 %v15413_v44  ;;  %9554 = vmatprep.subr.bf16.mxu1 %v15415_v15  ;;  %v15439_v34 = vcombine.high %v5973_v62, %v5977_v55  ;;  %v15438_v27 = vcombine.low %v5973_v62, %v5977_v55  ;;  %v15463_v44 = vcombine.high %v5997_v48, %v6001_v4  ;;  %v6004_v15 = vld [vmem:[#allocation13 + $0x210] sm:$0xff]  ;;  %v6025_v62 = vld [vmem:[#allocation13 + $0x2b8] sm:$0xff] }
 0x542   :  { %v15468_v9 = vcombine.low %v6004_v15, %v6008_v51  ;;  %v6045_v46 = vld [vmem:[#allocation13 + $0x358] sm:$0xff] }
 0x543   :  { %9391 = vmatpush1.bf16.msra.mxu0 %v15412_v54  ;;  %v15462_v54 = vcombine.low %v5997_v48, %v6001_v4  ;;  %v6049_v48 = vld [vmem:[#allocation13 + $0x378] sm:$0xff] }
 0x544   :  { %9555 = vmatpush1.bf16.msra.mxu1 %v15414_v1  ;;  %9392 = vmatprep.subr.bf16.mxu0 %v15421_v61  ;;  %v15469_v1 = vcombine.high %v6004_v15, %v6008_v51  ;;  %v15471_v61 = vcombine.high %v6005_v52, %v6009_v53  ;;  %v6056_v15 = vld [vmem:[#allocation13 + $0x3b0] sm:$0xff]  ;;  %v6053_v51 = vld [vmem:[#allocation13 + $0x398] sm:$0xff] }
 0x545   :  { %9556 = vmatprep.subr.bf16.mxu1 %v15423_v57  ;;  %v6012_v57 = vld [vmem:[#allocation13 + $0x250] sm:$0xff] }
 0x546   :  { %v15476_v55 = vcombine.low %v6012_v57, %v6016_v41 }
 0x547   :  { %9393 = vmatpush1.bf16.msra.mxu0 %v15420_v63  ;;  %v15470_v63 = vcombine.low %v6005_v52, %v6009_v53  ;;  %v6057_v52 = vld [vmem:[#allocation13 + $0x3b8] sm:$0xff] }
 0x548   :  { %9557 = vmatpush1.bf16.msra.mxu1 %v15422_v2  ;;  %9394 = vmatprep.subr.bf16.mxu0 %v15429_v3  ;;  %v15477_v2 = vcombine.high %v6012_v57, %v6016_v41  ;;  %v15479_v3 = vcombine.high %v6013_v59, %v6017_v60  ;;  %v6064_v57 = vld [vmem:[#allocation13 + $0x3f0] sm:$0xff]  ;;  %v6061_v41 = vld [vmem:[#allocation13 + $0x3d8] sm:$0xff] }
 0x549   :  { %9558 = vmatprep.subr.bf16.mxu1 %v15431_v11  ;;  %v6020_v11 = vld [vmem:[#allocation13 + $0x290] sm:$0xff] }
 0x54a   :  { %v15484_v24 = vcombine.low %v6020_v11, %v6024_v14 }
 0x54b   :  { %9395 = vmatpush1.bf16.msra.mxu0 %v15428_v18  ;;  %v15478_v18 = vcombine.low %v6013_v59, %v6017_v60  ;;  %v6065_v59 = vld [vmem:[#allocation13 + $0x3f8] sm:$0xff] }
 0x54c   :  { %9559 = vmatpush1.bf16.msra.mxu1 %v15430_v21  ;;  %9396 = vmatprep.subr.bf16.mxu0 %v15437_v22  ;;  %v15485_v21 = vcombine.high %v6020_v11, %v6024_v14  ;;  %v15487_v22 = vcombine.high %v6021_v19, %v6025_v62  ;;  %v6072_v11 = vld [vmem:[#allocation13 + $0x430] sm:$0xff]  ;;  %v6069_v14 = vld [vmem:[#allocation13 + $0x418] sm:$0xff] }
 0x54d   :  { %9560 = vmatprep.subr.bf16.mxu1 %v15439_v34  ;;  %v6028_v34 = vld [vmem:[#allocation13 + $0x2d0] sm:$0xff] }
 0x54e   :  { %v15492_v36 = vcombine.low %v6028_v34, %v6032_v32 }
 0x54f   :  { %9397 = vmatpush1.bf16.msra.mxu0 %v15436_v25  ;;  %v15486_v25 = vcombine.low %v6021_v19, %v6025_v62  ;;  %v6073_v19 = vld [vmem:[#allocation13 + $0x438] sm:$0xff] }
 0x550   :  { %9561 = vmatpush1.bf16.msra.mxu1 %v15438_v27  ;;  %9398 = vmatprep.subr.bf16.mxu0 %v15445_v29  ;;  %v15493_v27 = vcombine.high %v6028_v34, %v6032_v32  ;;  %v15495_v29 = vcombine.high %v6029_v23, %v6033_v0  ;;  %v6080_v34 = vld [vmem:[#allocation13 + $0x470] sm:$0xff] }
 0x551   :  { %9562 = vmatprep.subr.bf16.mxu1 %v15447_v30  ;;  %v6036_v30 = vld [vmem:[#allocation13 + $0x310] sm:$0xff] }
 0x552   :  { %v15500_v4 = vcombine.low %v6036_v30, %v6040_v8 }
 0x553   :  { %9399 = vmatpush1.bf16.msra.mxu0 %v15444_v38  ;;  %v15494_v38 = vcombine.low %v6029_v23, %v6033_v0  ;;  %v6077_v23 = vld [vmem:[#allocation13 + $0x458] sm:$0xff] }
 0x554   :  { %9563 = vmatpush1.bf16.msra.mxu1 %v15446_v39  ;;  %9400 = vmatprep.subr.bf16.mxu0 %v15453_v40  ;;  %v15501_v39 = vcombine.high %v6036_v30, %v6040_v8  ;;  %v15503_v40 = vcombine.high %v6037_v37, %v6041_v31  ;;  %v6081_v0 = vld [vmem:[#allocation13 + $0x478] sm:$0xff] }
 0x555   :  { %9564 = vmatprep.subr.bf16.mxu1 %v15455_v17  ;;  %v6044_v17 = vld [vmem:[#allocation13 + $0x350] sm:$0xff]  ;;  %v15543_v30 = vcombine.high %v6077_v23, %v6081_v0  ;;  %v6085_v8 = vld [vmem:[#allocation13 + $0x498] sm:$0xff] }
 0x556   :  { %v15508_v53 = vcombine.low %v6044_v17, %v6048_v43 }
 0x557   :  { %9401 = vmatpush1.bf16.msra.mxu0 %v15452_v49  ;;  %v15502_v49 = vcombine.low %v6037_v37, %v6041_v31  ;;  %v6089_v37 = vld [vmem:[#allocation13 + $0x4b8] sm:$0xff] }
 0x558   :  { %9565 = vmatpush1.bf16.msra.mxu1 %v15454_v50  ;;  %9402 = vmatprep.subr.bf16.mxu0 %v15461_v12  ;;  %v15509_v50 = vcombine.high %v6044_v17, %v6048_v43  ;;  %v15511_v12 = vcombine.high %v6045_v46, %v6049_v48  ;;  %v6096_v17 = vld [vmem:[#allocation13 + $0x4f0] sm:$0xff]  ;;  %v6093_v43 = vld [vmem:[#allocation13 + $0x4d8] sm:$0xff] }
 0x559   :  { %9566 = vmatprep.subr.bf16.mxu1 %v15463_v44  ;;  %v6052_v44 = vld [vmem:[#allocation13 + $0x390] sm:$0xff] }
 0x55a   :  { %v15516_v60 = vcombine.low %v6052_v44, %v6056_v15 }
 0x55b   :  { %9403 = vmatpush1.bf16.msra.mxu0 %v15460_v28  ;;  %v15510_v28 = vcombine.low %v6045_v46, %v6049_v48  ;;  %v6097_v46 = vld [vmem:[#allocation13 + $0x4f8] sm:$0xff] }
 0x55c   :  { %9567 = vmatpush1.bf16.msra.mxu1 %v15462_v54  ;;  %9404 = vmatprep.subr.bf16.mxu0 %v15469_v1  ;;  %v15517_v54 = vcombine.high %v6052_v44, %v6056_v15  ;;  %v15519_v1 = vcombine.high %v6053_v51, %v6057_v52  ;;  %v6101_v44 = vld [vmem:[#allocation13 + $0x518] sm:$0xff] }
 0x55d   :  { %9568 = vmatprep.subr.bf16.mxu1 %v15471_v61  ;;  %v6060_v61 = vld [vmem:[#allocation13 + $0x3d0] sm:$0xff]  ;;  %v6105_v15 = vld [vmem:[#allocation13 + $0x538] sm:$0xff] }
 0x55e   :  { %v15524_v62 = vcombine.low %v6060_v61, %v6064_v57 }
 0x55f   :  { %9405 = vmatpush1.bf16.msra.mxu0 %v15468_v9  ;;  %v15518_v9 = vcombine.low %v6053_v51, %v6057_v52  ;;  %v15558_v51 = vcombine.low %v6093_v43, %v6097_v46 }
 0x560   :  { %9569 = vmatpush1.bf16.msra.mxu1 %v15470_v63  ;;  %9406 = vmatprep.subr.bf16.mxu0 %v15477_v2  ;;  %v15525_v63 = vcombine.high %v6060_v61, %v6064_v57  ;;  %v15527_v2 = vcombine.high %v6061_v41, %v6065_v59  ;;  %v6113_v61 = vld [vmem:[#allocation13 + $0x578] sm:$0xff] }
 0x561   :  { %9570 = vmatprep.subr.bf16.mxu1 %v15479_v3  ;;  %v6068_v3 = vld [vmem:[#allocation13 + $0x410] sm:$0xff] }
 0x562   :  { %v15532_v32 = vcombine.low %v6068_v3, %v6072_v11 }
 0x563   :  { %9407 = vmatpush1.bf16.msra.mxu0 %v15476_v55  ;;  %v15526_v55 = vcombine.low %v6061_v41, %v6065_v59  ;;  %v15566_v41 = vcombine.low %v6101_v44, %v6105_v15 }
 0x564   :  { %9571 = vmatpush1.bf16.msra.mxu1 %v15478_v18  ;;  %9408 = vmatprep.subr.bf16.mxu0 %v15485_v21  ;;  %v15533_v18 = vcombine.high %v6068_v3, %v6072_v11  ;;  %v15535_v21 = vcombine.high %v6069_v14, %v6073_v19  ;;  %v6121_v3 = vld [vmem:[#allocation13 + $0x5b8] sm:$0xff] }
 0x565   :  { %9572 = vmatprep.subr.bf16.mxu1 %v15487_v22  ;;  %v6076_v22 = vld [vmem:[#allocation13 + $0x450] sm:$0xff] }
 0x566   :  { %v15540_v31 = vcombine.low %v6076_v22, %v6080_v34 }
 0x567   :  { %9409 = vmatpush1.bf16.msra.mxu0 %v15484_v24  ;;  %v15534_v24 = vcombine.low %v6069_v14, %v6073_v19 }
 0x568   :  { %9573 = vmatpush1.bf16.msra.mxu1 %v15486_v25  ;;  %9410 = vmatprep.subr.bf16.mxu0 %v15493_v27  ;;  %v15541_v25 = vcombine.high %v6076_v22, %v6080_v34  ;;  %v6084_v27 = vld [vmem:[#allocation13 + $0x490] sm:$0xff]  ;;  %v6129_v22 = vld [vmem:[#allocation13 + $0x5f8] sm:$0xff] }
 0x569   :  { %9574 = vmatprep.subr.bf16.mxu1 %v15495_v29  ;;  %v6088_v29 = vld [vmem:[#allocation13 + $0x4b0] sm:$0xff] }
 0x56a   :  { %v15548_v48 = vcombine.low %v6084_v27, %v6088_v29 }
 0x56b   :  { %9411 = vmatpush1.bf16.msra.mxu0 %v15492_v36  ;;  %v15542_v36 = vcombine.low %v6077_v23, %v6081_v0 }
 0x56c   :  { %9575 = vmatpush1.bf16.msra.mxu1 %v15494_v38  ;;  %9412 = vmatprep.subr.bf16.mxu0 %v15501_v39  ;;  %v15549_v38 = vcombine.high %v6084_v27, %v6088_v29  ;;  %v15551_v39 = vcombine.high %v6085_v8, %v6089_v37  ;;  %v6133_v27 = vld [vmem:[#allocation13 + $0x618] sm:$0xff] }
 0x56d   :  { %9576 = vmatprep.subr.bf16.mxu1 %v15503_v40  ;;  %v6092_v40 = vld [vmem:[#allocation13 + $0x4d0] sm:$0xff]  ;;  %v6137_v29 = vld [vmem:[#allocation13 + $0x638] sm:$0xff] }
 0x56f   :  { %9413 = vmatpush1.bf16.msra.mxu0 %v15500_v4  ;;  %v15557_v4 = vcombine.high %v6092_v40, %v6096_v17 }
 0x570   :  { %9577 = vmatpush1.bf16.msra.mxu1 %v15502_v49  ;;  %9414 = vmatprep.subr.bf16.mxu0 %v15509_v50  ;;  %v15559_v49 = vcombine.high %v6093_v43, %v6097_v46  ;;  %v6100_v50 = vld [vmem:[#allocation13 + $0x510] sm:$0xff]  ;;  %v15598_v43 = vcombine.low %v6133_v27, %v6137_v29 }
 0x571   :  { %9578 = vmatprep.subr.bf16.mxu1 %v15511_v12  ;;  %v6104_v12 = vld [vmem:[#allocation13 + $0x530] sm:$0xff] }
 0x572   :  { %v15565_v52 = vcombine.high %v6100_v50, %v6104_v12  ;;  %v15564_v57 = vcombine.low %v6100_v50, %v6104_v12  ;;  %v6153_v50 = vld [vmem:[#allocation13 + $0x6b8] sm:$0xff] }
 0x573   :  { %9415 = vmatpush1.bf16.msra.mxu0 %v15508_v53  ;;  %v15567_v53 = vcombine.high %v6101_v44, %v6105_v15 }
 0x574   :  { %9579 = vmatpush1.bf16.msra.mxu1 %v15510_v28  ;;  %9416 = vmatprep.subr.bf16.mxu0 %v15517_v54  ;;  %v6108_v28 = vld [vmem:[#allocation13 + $0x550] sm:$0xff] }
 0x575   :  { %9580 = vmatprep.subr.bf16.mxu1 %v15519_v1  ;;  %v6112_v54 = vld [vmem:[#allocation13 + $0x570] sm:$0xff]  ;;  %v6109_v1 = vld [vmem:[#allocation13 + $0x558] sm:$0xff] }
 0x576   :  { %v15573_v59 = vcombine.high %v6108_v28, %v6112_v54  ;;  %v15572_v11 = vcombine.low %v6108_v28, %v6112_v54  ;;  %v15574_v14 = vcombine.low %v6109_v1, %v6113_v61  ;;  %v6161_v28 = vld [vmem:[#allocation13 + $0x6f8] sm:$0xff] }
 0x577   :  { %9417 = vmatpush1.bf16.msra.mxu0 %v15516_v60  ;;  %v15575_v60 = vcombine.high %v6109_v1, %v6113_v61 }
 0x578   :  { %9581 = vmatpush1.bf16.msra.mxu1 %v15518_v9  ;;  %9418 = vmatprep.subr.bf16.mxu0 %v15525_v63  ;;  %v6116_v9 = vld [vmem:[#allocation13 + $0x590] sm:$0xff] }
 0x579   :  { %9582 = vmatprep.subr.bf16.mxu1 %v15527_v2  ;;  %v6120_v63 = vld [vmem:[#allocation13 + $0x5b0] sm:$0xff]  ;;  %v6117_v2 = vld [vmem:[#allocation13 + $0x598] sm:$0xff] }
 0x57a   :  { %v15581_v19 = vcombine.high %v6116_v9, %v6120_v63  ;;  %v15580_v34 = vcombine.low %v6116_v9, %v6120_v63  ;;  %v6169_v9 = vld [vmem:[#allocation13 + $0x738] sm:$0xff] }
 0x57b   :  { %9419 = vmatpush1.bf16.msra.mxu0 %v15524_v62  ;;  %v15583_v62 = vcombine.high %v6117_v2, %v6121_v3 }
 0x57c   :  { %9583 = vmatpush1.bf16.msra.mxu1 %v15526_v55  ;;  %9429 = vmatprep.subr.bf16.mxu0 %v15533_v18  ;;  %v6124_v55 = vld [vmem:[#allocation13 + $0x5d0] sm:$0xff] }
 0x57d   :  { %9593 = vmatprep.subr.bf16.mxu1 %v15535_v21  ;;  %v6128_v18 = vld [vmem:[#allocation13 + $0x5f0] sm:$0xff]  ;;  %v6125_v21 = vld [vmem:[#allocation13 + $0x5d8] sm:$0xff] }
 0x57e   :  { %9421 = vmatmul.mubr.bf16.vlgmr.msra.gmra.mrb[20].mxu0 %v18422_v42  ;;  %v15589_v23 = vcombine.high %v6124_v55, %v6128_v18  ;;  %v15591_v0 = vcombine.high %v6125_v21, %v6129_v22 }
 0x57f   :  { %9585 = vmatmul.mubr.bf16.vlgmr.msra.gmra.mrb[20].mxu1 %v18422_v42  ;;  %9430 = vmatpush1.bf16.msra.mxu0 %v15532_v32  ;;  %v15550_v42 = vcombine.low %v6085_v8, %v6089_v37  ;;  %v15582_v32 = vcombine.low %v6117_v2, %v6121_v3  ;;  %v15590_v8 = vcombine.low %v6125_v21, %v6129_v22 }
 0x580   :  { %9461 = vmatprep.mubr.bf16.mxu0 %v18424_v47  ;;  %9594 = vmatpush1.bf16.msra.mxu1 %v15534_v24  ;;  %v6132_v24 = vld [vmem:[#allocation13 + $0x610] sm:$0xff] }
 0x581   :  { %9625 = vmatprep.mubr.bf16.mxu1 %v18424_v47  ;;  %9431 = vmatprep.subr.bf16.mxu0 %v15541_v25  ;;  %v15556_v47 = vcombine.low %v6092_v40, %v6096_v17  ;;  %v6136_v25 = vld [vmem:[#allocation13 + $0x630] sm:$0xff]  ;;  %v6145_v40 = vld [vmem:[#allocation13 + $0x678] sm:$0xff] }
 0x582   :  { %9595 = vmatprep.subr.bf16.mxu1 %v15543_v30  ;;  %v15588_v30 = vcombine.low %v6124_v55, %v6128_v18  ;;  %v15597_v37 = vcombine.high %v6132_v24, %v6136_v25  ;;  %v15596_v17 = vcombine.low %v6132_v24, %v6136_v25  ;;  %v6177_v55 = vld [vmem:[#allocation13 + $0x778] sm:$0xff] }
 0x583   :  { %9432 = vmatpush1.bf16.msra.mxu0 %v15540_v31  ;;  %v15599_v31 = vcombine.high %v6133_v27, %v6137_v29  ;;  %v6185_v24 = vld [vmem:[#allocation13 + $0x7b8] sm:$0xff] }
 0x584   :  { %9596 = vmatpush1.bf16.msra.mxu1 %v15542_v36  ;;  %9433 = vmatprep.subr.bf16.mxu0 %v15549_v38  ;;  %v6140_v36 = vld [vmem:[#allocation13 + $0x650] sm:$0xff] }
 0x585   :  { %9597 = vmatprep.subr.bf16.mxu1 %v15551_v39  ;;  %v6144_v38 = vld [vmem:[#allocation13 + $0x670] sm:$0xff]  ;;  %v6141_v39 = vld [vmem:[#allocation13 + $0x658] sm:$0xff] }
 0x586   :  { %v15605_v46 = vcombine.high %v6140_v36, %v6144_v38  ;;  %v15604_v12 = vcombine.low %v6140_v36, %v6144_v38  ;;  %v15606_v44 = vcombine.low %v6141_v39, %v6145_v40  ;;  %v6193_v36 = vld [vmem:[#allocation13 + $0x7f8] sm:$0xff] }
 0x587   :  { %9434 = vmatpush1.bf16.msra.mxu0 %v15548_v48  ;;  %v15607_v48 = vcombine.high %v6141_v39, %v6145_v40 }
 0x588   :  { %9598 = vmatpush1.bf16.msra.mxu1 %v15550_v42  ;;  %9435 = vmatprep.subr.bf16.mxu0 %v15557_v4  ;;  %v6148_v42 = vld [vmem:[#allocation13 + $0x690] sm:$0xff] }
 0x589   :  { %9599 = vmatprep.subr.bf16.mxu1 %v15559_v49  ;;  %v6152_v4 = vld [vmem:[#allocation13 + $0x6b0] sm:$0xff]  ;;  %v6149_v49 = vld [vmem:[#allocation13 + $0x698] sm:$0xff] }
 0x58a   :  { %v15613_v15 = vcombine.high %v6148_v42, %v6152_v4  ;;  %v15612_v54 = vcombine.low %v6148_v42, %v6152_v4  ;;  %v15614_v1 = vcombine.low %v6149_v49, %v6153_v50  ;;  %v6201_v42 = vld [vmem:[#allocation13 + $0x838] sm:$0xff] }
 0x58b   :  { %9436 = vmatpush1.bf16.msra.mxu0 %v15556_v47  ;;  %v15615_v47 = vcombine.high %v6149_v49, %v6153_v50 }
 0x58c   :  { %9600 = vmatpush1.bf16.msra.mxu1 %v15558_v51  ;;  %9437 = vmatprep.subr.bf16.mxu0 %v15565_v52  ;;  %v6156_v51 = vld [vmem:[#allocation13 + $0x6d0] sm:$0xff] }
 0x58d   :  { %9601 = vmatprep.subr.bf16.mxu1 %v15567_v53  ;;  %v6160_v52 = vld [vmem:[#allocation13 + $0x6f0] sm:$0xff]  ;;  %v6157_v53 = vld [vmem:[#allocation13 + $0x6d8] sm:$0xff] }
 0x58e   :  { %v15621_v61 = vcombine.high %v6156_v51, %v6160_v52  ;;  %v15620_v63 = vcombine.low %v6156_v51, %v6160_v52  ;;  %v15622_v2 = vcombine.low %v6157_v53, %v6161_v28  ;;  %v6205_v51 = vld [vmem:[#allocation13 + $0x858] sm:$0xff] }
 0x58f   :  { %9438 = vmatpush1.bf16.msra.mxu0 %v15564_v57  ;;  %v15623_v57 = vcombine.high %v6157_v53, %v6161_v28  ;;  %v6209_v52 = vld [vmem:[#allocation13 + $0x878] sm:$0xff] }
 0x590   :  { %9602 = vmatpush1.bf16.msra.mxu1 %v15566_v41  ;;  %9439 = vmatprep.subr.bf16.mxu0 %v15573_v59  ;;  %v6164_v41 = vld [vmem:[#allocation13 + $0x710] sm:$0xff] }
 0x591   :  { %9603 = vmatprep.subr.bf16.mxu1 %v15575_v60  ;;  %v6168_v59 = vld [vmem:[#allocation13 + $0x730] sm:$0xff]  ;;  %v6165_v60 = vld [vmem:[#allocation13 + $0x718] sm:$0xff] }
 0x592   :  { %v15629_v3 = vcombine.high %v6164_v41, %v6168_v59  ;;  %v15628_v18 = vcombine.low %v6164_v41, %v6168_v59  ;;  %v15630_v21 = vcombine.low %v6165_v60, %v6169_v9  ;;  %v6217_v41 = vld [vmem:[#allocation13 + $0x8b8] sm:$0xff] }
 0x593   :  { %9440 = vmatpush1.bf16.msra.mxu0 %v15572_v11  ;;  %v15631_v11 = vcombine.high %v6165_v60, %v6169_v9  ;;  %v15670_v60 = vcombine.low %v6205_v51, %v6209_v52 }
 0x594   :  { %9604 = vmatpush1.bf16.msra.mxu1 %v15574_v14  ;;  %9441 = vmatprep.subr.bf16.mxu0 %v15581_v19  ;;  %v6172_v14 = vld [vmem:[#allocation13 + $0x750] sm:$0xff] }
 0x595   :  { %9605 = vmatprep.subr.bf16.mxu1 %v15583_v62  ;;  %v6176_v19 = vld [vmem:[#allocation13 + $0x770] sm:$0xff]  ;;  %v6173_v62 = vld [vmem:[#allocation13 + $0x758] sm:$0xff] }
 0x596   :  { %v15637_v22 = vcombine.high %v6172_v14, %v6176_v19  ;;  %v15636_v25 = vcombine.low %v6172_v14, %v6176_v19  ;;  %v15638_v27 = vcombine.low %v6173_v62, %v6177_v55  ;;  %v6225_v14 = vld [vmem:[#allocation13 + $0x8f8] sm:$0xff] }
 0x597   :  { %9442 = vmatpush1.bf16.msra.mxu0 %v15580_v34  ;;  %v15639_v34 = vcombine.high %v6173_v62, %v6177_v55 }
 0x598   :  { %9606 = vmatpush1.bf16.msra.mxu1 %v15582_v32  ;;  %9443 = vmatprep.subr.bf16.mxu0 %v15589_v23  ;;  %v6180_v32 = vld [vmem:[#allocation13 + $0x790] sm:$0xff] }
 0x599   :  { %9607 = vmatprep.subr.bf16.mxu1 %v15591_v0  ;;  %v6184_v23 = vld [vmem:[#allocation13 + $0x7b0] sm:$0xff]  ;;  %v6181_v0 = vld [vmem:[#allocation13 + $0x798] sm:$0xff] }
 0x59a   :  { %v15645_v29 = vcombine.high %v6180_v32, %v6184_v23  ;;  %v15644_v38 = vcombine.low %v6180_v32, %v6184_v23  ;;  %v15646_v39 = vcombine.low %v6181_v0, %v6185_v24 }
 0x59b   :  { %9444 = vmatpush1.bf16.msra.mxu0 %v15588_v30  ;;  %v15647_v30 = vcombine.high %v6181_v0, %v6185_v24  ;;  %v6236_v24 = vld [vmem:[#allocation13 + $0x950] sm:$0xff] }
 0x59c   :  { %9608 = vmatpush1.bf16.msra.mxu1 %v15590_v8  ;;  %9445 = vmatprep.subr.bf16.mxu0 %v15597_v37  ;;  %v6188_v8 = vld [vmem:[#allocation13 + $0x7d0] sm:$0xff] }
 0x59d   :  { %9609 = vmatprep.subr.bf16.mxu1 %v15599_v31  ;;  %v6192_v37 = vld [vmem:[#allocation13 + $0x7f0] sm:$0xff]  ;;  %v6189_v31 = vld [vmem:[#allocation13 + $0x7d8] sm:$0xff] }
 0x59e   :  { %v15653_v40 = vcombine.high %v6188_v8, %v6192_v37  ;;  %v15652_v4 = vcombine.low %v6188_v8, %v6192_v37  ;;  %v15654_v49 = vcombine.low %v6189_v31, %v6193_v36 }
 0x59f   :  { %9446 = vmatpush1.bf16.msra.mxu0 %v15596_v17  ;;  %v15655_v17 = vcombine.high %v6189_v31, %v6193_v36  ;;  %v6244_v36 = vld [vmem:[#allocation13 + $0x990] sm:$0xff] }
 0x5a0   :  { %9610 = vmatpush1.bf16.msra.mxu1 %v15598_v43  ;;  %9447 = vmatprep.subr.bf16.mxu0 %v15605_v46  ;;  %v6196_v43 = vld [vmem:[#allocation13 + $0x810] sm:$0xff] }
 0x5a1   :  { %9611 = vmatprep.subr.bf16.mxu1 %v15607_v48  ;;  %v6200_v46 = vld [vmem:[#allocation13 + $0x830] sm:$0xff]  ;;  %v6197_v48 = vld [vmem:[#allocation13 + $0x818] sm:$0xff] }
 0x5a2   :  { %v15661_v50 = vcombine.high %v6196_v43, %v6200_v46  ;;  %v15662_v53 = vcombine.low %v6197_v48, %v6201_v42 }
 0x5a3   :  { %9448 = vmatpush1.bf16.msra.mxu0 %v15604_v12  ;;  %v15663_v12 = vcombine.high %v6197_v48, %v6201_v42  ;;  %v6252_v42 = vld [vmem:[#allocation13 + $0x9d0] sm:$0xff] }
 0x5a4   :  { %9612 = vmatpush1.bf16.msra.mxu1 %v15606_v44  ;;  %9449 = vmatprep.subr.bf16.mxu0 %v15613_v15  ;;  %v6204_v44 = vld [vmem:[#allocation13 + $0x850] sm:$0xff] }
 0x5a5   :  { %9613 = vmatprep.subr.bf16.mxu1 %v15615_v47  ;;  %v6208_v15 = vld [vmem:[#allocation13 + $0x870] sm:$0xff]  ;;  %v15660_v47 = vcombine.low %v6196_v43, %v6200_v46 }
 0x5a6   :  { %v15669_v28 = vcombine.high %v6204_v44, %v6208_v15  ;;  %v15668_v59 = vcombine.low %v6204_v44, %v6208_v15 }
 0x5a7   :  { %9450 = vmatpush1.bf16.msra.mxu0 %v15612_v54  ;;  %v6212_v54 = vld [vmem:[#allocation13 + $0x890] sm:$0xff] }
 0x5a8   :  { %9614 = vmatpush1.bf16.msra.mxu1 %v15614_v1  ;;  %9451 = vmatprep.subr.bf16.mxu0 %v15621_v61  ;;  %v6216_v1 = vld [vmem:[#allocation13 + $0x8b0] sm:$0xff]  ;;  %v15671_v61 = vcombine.high %v6205_v51, %v6209_v52 }
 0x5a9   :  { %9615 = vmatprep.subr.bf16.mxu1 %v15623_v57  ;;  %v6213_v57 = vld [vmem:[#allocation13 + $0x898] sm:$0xff]  ;;  %v15677_v9 = vcombine.high %v6212_v54, %v6216_v1  ;;  %v15676_v19 = vcombine.low %v6212_v54, %v6216_v1  ;;  %v6260_v51 = vld [vmem:[#allocation13 + $0xa10] sm:$0xff] }
 0x5aa   :  { %v6264_v52 = vld [vmem:[#allocation13 + $0xa30] sm:$0xff] }
 0x5ab   :  { %9452 = vmatpush1.bf16.msra.mxu0 %v15620_v63  ;;  %v15679_v63 = vcombine.high %v6213_v57, %v6217_v41 }
 0x5ac   :  { %9616 = vmatpush1.bf16.msra.mxu1 %v15622_v2  ;;  %9453 = vmatprep.subr.bf16.mxu0 %v15629_v3  ;;  %v6220_v2 = vld [vmem:[#allocation13 + $0x8d0] sm:$0xff] }
 0x5ad   :  { %9617 = vmatprep.subr.bf16.mxu1 %v15631_v11  ;;  %v6224_v3 = vld [vmem:[#allocation13 + $0x8f0] sm:$0xff]  ;;  %v6221_v11 = vld [vmem:[#allocation13 + $0x8d8] sm:$0xff] }
 0x5ae   :  { %v15685_v62 = vcombine.high %v6220_v2, %v6224_v3  ;;  %v15687_v55 = vcombine.high %v6221_v11, %v6225_v14  ;;  %v15686_v32 = vcombine.low %v6221_v11, %v6225_v14  ;;  %v6276_v14 = vld [vmem:[#allocation13 + $0xa90] sm:$0xff] }
 0x5af   :  { %9454 = vmatpush1.bf16.msra.mxu0 %v15628_v18  ;;  %v6228_v18 = vld [vmem:[#allocation13 + $0x910] sm:$0xff] }
 0x5b0   :  { %9618 = vmatpush1.bf16.msra.mxu1 %v15630_v21  ;;  %9455 = vmatprep.subr.bf16.mxu0 %v15637_v22  ;;  %v6232_v21 = vld [vmem:[#allocation13 + $0x930] sm:$0xff]  ;;  %v6229_v22 = vld [vmem:[#allocation13 + $0x918] sm:$0xff] }
 0x5b1   :  { %9619 = vmatprep.subr.bf16.mxu1 %v15639_v34  ;;  %v6233_v34 = vld [vmem:[#allocation13 + $0x938] sm:$0xff]  ;;  %v15693_v23 = vcombine.high %v6228_v18, %v6232_v21 }
 0x5b2   :  { %v15695_v0 = vcombine.high %v6229_v22, %v6233_v34  ;;  %v15694_v8 = vcombine.low %v6229_v22, %v6233_v34  ;;  %v6284_v34 = vld [vmem:[#allocation13 + $0xad0] sm:$0xff] }
 0x5b3   :  { %9456 = vmatpush1.bf16.msra.mxu0 %v15636_v25  ;;  %v6240_v25 = vld [vmem:[#allocation13 + $0x970] sm:$0xff] }
 0x5b4   :  { %9620 = vmatpush1.bf16.msra.mxu1 %v15638_v27  ;;  %9457 = vmatprep.subr.bf16.mxu0 %v15645_v29  ;;  %v6237_v27 = vld [vmem:[#allocation13 + $0x958] sm:$0xff]  ;;  %v15701_v37 = vcombine.high %v6236_v24, %v6240_v25 }
 0x5b5   :  { %9621 = vmatprep.subr.bf16.mxu1 %v15647_v30  ;;  %v6241_v29 = vld [vmem:[#allocation13 + $0x978] sm:$0xff]  ;;  %v15692_v30 = vcombine.low %v6228_v18, %v6232_v21 }
 0x5b6   :  { %v15703_v31 = vcombine.high %v6237_v27, %v6241_v29  ;;  %v15702_v43 = vcombine.low %v6237_v27, %v6241_v29  ;;  %v6292_v29 = vld [vmem:[#allocation13 + $0xb10] sm:$0xff] }
 0x5b7   :  { %9458 = vmatpush1.bf16.msra.mxu0 %v15644_v38  ;;  %v6248_v38 = vld [vmem:[#allocation13 + $0x9b0] sm:$0xff] }
 0x5b8   :  { %9622 = vmatpush1.bf16.msra.mxu1 %v15646_v39  ;;  %9459 = vmatprep.subr.bf16.mxu0 %v15653_v40  ;;  %v6245_v39 = vld [vmem:[#allocation13 + $0x998] sm:$0xff]  ;;  %v15709_v46 = vcombine.high %v6244_v36, %v6248_v38 }
 0x5b9   :  { %9623 = vmatprep.subr.bf16.mxu1 %v15655_v17  ;;  %v6249_v40 = vld [vmem:[#allocation13 + $0x9b8] sm:$0xff]  ;;  %v15700_v17 = vcombine.low %v6236_v24, %v6240_v25 }
 0x5ba   :  { %v15711_v48 = vcombine.high %v6245_v39, %v6249_v40  ;;  %v15710_v44 = vcombine.low %v6245_v39, %v6249_v40  ;;  %v6300_v40 = vld [vmem:[#allocation13 + $0xb50] sm:$0xff] }
 0x5bb   :  { %9460 = vmatpush1.bf16.msra.mxu0 %v15652_v4  ;;  %v6256_v4 = vld [vmem:[#allocation13 + $0x9f0] sm:$0xff] }
 0x5bc   :  { %9624 = vmatpush1.bf16.msra.mxu1 %v15654_v49  ;;  %9470 = vmatprep.subr.bf16.mxu0 %v15661_v50  ;;  %v6253_v49 = vld [vmem:[#allocation13 + $0x9d8] sm:$0xff]  ;;  %v15717_v15 = vcombine.high %v6252_v42, %v6256_v4  ;;  %v15716_v54 = vcombine.low %v6252_v42, %v6256_v4 }
 0x5bd   :  { %9634 = vmatprep.subr.bf16.mxu1 %v15663_v12  ;;  %v6257_v50 = vld [vmem:[#allocation13 + $0x9f8] sm:$0xff]  ;;  %v15708_v12 = vcombine.low %v6244_v36, %v6248_v38 }
 0x5be   :  { %9462 = vmatmul.mubr.bf16.vlgmr.msra.gmra.mrb[20].mxu0 %v18433_v10  ;;  %v15718_v1 = vcombine.low %v6253_v49, %v6257_v50 }
 0x5bf   :  { %9626 = vmatmul.mubr.bf16.vlgmr.msra.gmra.mrb[20].mxu1 %v18433_v10  ;;  %9471 = vmatpush1.bf16.msra.mxu0 %v15660_v47  ;;  %v15678_v10 = vcombine.low %v6213_v57, %v6217_v41  ;;  %v15719_v47 = vcombine.high %v6253_v49, %v6257_v50  ;;  %v6268_v41 = vld [vmem:[#allocation13 + $0xa50] sm:$0xff] }
 0x5c0   :  { %9502 = vmatprep.mubr.bf16.mxu0 %v18447_v56  ;;  %9635 = vmatpush1.bf16.msra.mxu1 %v15662_v53  ;;  %v6261_v53 = vld [vmem:[#allocation13 + $0xa18] sm:$0xff]  ;;  %v6308_v50 = vld [vmem:[#allocation13 + $0xb90] sm:$0xff] }
 0x5c1   :  { %9666 = vmatprep.mubr.bf16.mxu1 %v18447_v56  ;;  %9472 = vmatprep.subr.bf16.mxu0 %v15669_v28  ;;  %v15684_v56 = vcombine.low %v6220_v2, %v6224_v3  ;;  %v6265_v28 = vld [vmem:[#allocation13 + $0xa38] sm:$0xff] }
 0x5c2   :  { %9636 = vmatprep.subr.bf16.mxu1 %v15671_v61  ;;  %v15725_v61 = vcombine.high %v6260_v51, %v6264_v52  ;;  %v15727_v57 = vcombine.high %v6261_v53, %v6265_v28  ;;  %v15726_v2 = vcombine.low %v6261_v53, %v6265_v28  ;;  %v6316_v28 = vld [vmem:[#allocation13 + $0xbd0] sm:$0xff] }
 0x5c3   :  { %9473 = vmatpush1.bf16.msra.mxu0 %v15668_v59  ;;  %v6272_v59 = vld [vmem:[#allocation13 + $0xa70] sm:$0xff] }
 0x5c4   :  { %9637 = vmatpush1.bf16.msra.mxu1 %v15670_v60  ;;  %9474 = vmatprep.subr.bf16.mxu0 %v15677_v9  ;;  %v6269_v60 = vld [vmem:[#allocation13 + $0xa58] sm:$0xff]  ;;  %v15733_v3 = vcombine.high %v6268_v41, %v6272_v59 }
 0x5c5   :  { %9638 = vmatprep.subr.bf16.mxu1 %v15679_v63  ;;  %v6273_v9 = vld [vmem:[#allocation13 + $0xa78] sm:$0xff]  ;;  %v15724_v63 = vcombine.low %v6260_v51, %v6264_v52 }
 0x5c6   :  { %v15735_v11 = vcombine.high %v6269_v60, %v6273_v9  ;;  %v15734_v18 = vcombine.low %v6269_v60, %v6273_v9  ;;  %v6324_v9 = vld [vmem:[#allocation13 + $0xc10] sm:$0xff] }
 0x5c7   :  { %9475 = vmatpush1.bf16.msra.mxu0 %v15676_v19  ;;  %v6280_v19 = vld [vmem:[#allocation13 + $0xab0] sm:$0xff] }
 0x5c8   :  { %9639 = vmatpush1.bf16.msra.mxu1 %v15678_v10  ;;  %9476 = vmatprep.subr.bf16.mxu0 %v15685_v62  ;;  %v6277_v10 = vld [vmem:[#allocation13 + $0xa98] sm:$0xff]  ;;  %v15741_v21 = vcombine.high %v6276_v14, %v6280_v19 }
 0x5c9   :  { %9640 = vmatprep.subr.bf16.mxu1 %v15687_v55  ;;  %v6281_v62 = vld [vmem:[#allocation13 + $0xab8] sm:$0xff]  ;;  %v15732_v55 = vcombine.low %v6268_v41, %v6272_v59 }
 0x5ca   :  { %v15743_v22 = vcombine.high %v6277_v10, %v6281_v62  ;;  %v15742_v24 = vcombine.low %v6277_v10, %v6281_v62  ;;  %v6332_v62 = vld [vmem:[#allocation13 + $0xc50] sm:$0xff] }
 0x5cb   :  { %9477 = vmatpush1.bf16.msra.mxu0 %v15684_v56  ;;  %v6288_v56 = vld [vmem:[#allocation13 + $0xaf0] sm:$0xff] }
 0x5cc   :  { %9641 = vmatpush1.bf16.msra.mxu1 %v15686_v32  ;;  %9478 = vmatprep.subr.bf16.mxu0 %v15693_v23  ;;  %v6285_v32 = vld [vmem:[#allocation13 + $0xad8] sm:$0xff]  ;;  %v15749_v25 = vcombine.high %v6284_v34, %v6288_v56 }
 0x5cd   :  { %9642 = vmatprep.subr.bf16.mxu1 %v15695_v0  ;;  %v6289_v23 = vld [vmem:[#allocation13 + $0xaf8] sm:$0xff]  ;;  %v15740_v0 = vcombine.low %v6276_v14, %v6280_v19 }
 0x5ce   :  { %v15751_v27 = vcombine.high %v6285_v32, %v6289_v23  ;;  %v15750_v36 = vcombine.low %v6285_v32, %v6289_v23  ;;  %v6340_v32 = vld [vmem:[#allocation13 + $0xc90] sm:$0xff] }
 0x5cf   :  { %9479 = vmatpush1.bf16.msra.mxu0 %v15692_v30  ;;  %v6296_v30 = vld [vmem:[#allocation13 + $0xb30] sm:$0xff] }
 0x5d0   :  { %9643 = vmatpush1.bf16.msra.mxu1 %v15694_v8  ;;  %9480 = vmatprep.subr.bf16.mxu0 %v15701_v37  ;;  %v6293_v8 = vld [vmem:[#allocation13 + $0xb18] sm:$0xff]  ;;  %v15757_v38 = vcombine.high %v6292_v29, %v6296_v30  ;;  %v6344_v23 = vld [vmem:[#allocation13 + $0xcb0] sm:$0xff] }
 0x5d1   :  { %9644 = vmatprep.subr.bf16.mxu1 %v15703_v31  ;;  %v6297_v37 = vld [vmem:[#allocation13 + $0xb38] sm:$0xff]  ;;  %v15748_v31 = vcombine.low %v6284_v34, %v6288_v56 }
 0x5d2   :  { %v15759_v39 = vcombine.high %v6293_v8, %v6297_v37  ;;  %v15758_v42 = vcombine.low %v6293_v8, %v6297_v37  ;;  %v6348_v37 = vld [vmem:[#allocation13 + $0xcd0] sm:$0xff] }
 0x5d3   :  { %9481 = vmatpush1.bf16.msra.mxu0 %v15700_v17  ;;  %v6304_v17 = vld [vmem:[#allocation13 + $0xb70] sm:$0xff] }
 0x5d4   :  { %9645 = vmatpush1.bf16.msra.mxu1 %v15702_v43  ;;  %9482 = vmatprep.subr.bf16.mxu0 %v15709_v46  ;;  %v6301_v43 = vld [vmem:[#allocation13 + $0xb58] sm:$0xff]  ;;  %v15765_v4 = vcombine.high %v6300_v40, %v6304_v17 }
 0x5d5   :  { %9646 = vmatprep.subr.bf16.mxu1 %v15711_v48  ;;  %v6305_v46 = vld [vmem:[#allocation13 + $0xb78] sm:$0xff]  ;;  %v15756_v48 = vcombine.low %v6292_v29, %v6296_v30  ;;  %v15805_v30 = vcombine.high %v6340_v32, %v6344_v23 }
 0x5d6   :  { %v15767_v49 = vcombine.high %v6301_v43, %v6305_v46  ;;  %v15766_v51 = vcombine.low %v6301_v43, %v6305_v46  ;;  %v6356_v43 = vld [vmem:[#allocation13 + $0xd10] sm:$0xff] }
 0x5d7   :  { %9483 = vmatpush1.bf16.msra.mxu0 %v15708_v12  ;;  %v6312_v12 = vld [vmem:[#allocation13 + $0xbb0] sm:$0xff] }
 0x5d8   :  { %9647 = vmatpush1.bf16.msra.mxu1 %v15710_v44  ;;  %9484 = vmatprep.subr.bf16.mxu0 %v15717_v15  ;;  %v6309_v44 = vld [vmem:[#allocation13 + $0xb98] sm:$0xff]  ;;  %v15773_v52 = vcombine.high %v6308_v50, %v6312_v12  ;;  %v6360_v46 = vld [vmem:[#allocation13 + $0xd30] sm:$0xff] }
 0x5d9   :  { %9648 = vmatprep.subr.bf16.mxu1 %v15719_v47  ;;  %v6313_v15 = vld [vmem:[#allocation13 + $0xbb8] sm:$0xff]  ;;  %v15764_v47 = vcombine.low %v6300_v40, %v6304_v17 }
 0x5da   :  { %v15775_v53 = vcombine.high %v6309_v44, %v6313_v15  ;;  %v15774_v41 = vcombine.low %v6309_v44, %v6313_v15  ;;  %v6368_v44 = vld [vmem:[#allocation13 + $0xd70] sm:$0xff]  ;;  %v6365_v15 = vld [vmem:[#allocation13 + $0xd58] sm:$0xff] }
 0x5db   :  { %9485 = vmatpush1.bf16.msra.mxu0 %v15716_v54  ;;  %v6320_v54 = vld [vmem:[#allocation13 + $0xbf0] sm:$0xff] }
 0x5dc   :  { %9649 = vmatpush1.bf16.msra.mxu1 %v15718_v1  ;;  %9486 = vmatprep.subr.bf16.mxu0 %v15725_v61  ;;  %v6317_v1 = vld [vmem:[#allocation13 + $0xbd8] sm:$0xff]  ;;  %v15781_v59 = vcombine.high %v6316_v28, %v6320_v54 }
 0x5dd   :  { %9650 = vmatprep.subr.bf16.mxu1 %v15727_v57  ;;  %v6321_v61 = vld [vmem:[#allocation13 + $0xbf8] sm:$0xff]  ;;  %v15772_v57 = vcombine.low %v6308_v50, %v6312_v12  ;;  %v6364_v12 = vld [vmem:[#allocation13 + $0xd50] sm:$0xff] }
 0x5de   :  { %v15783_v60 = vcombine.high %v6317_v1, %v6321_v61  ;;  %v15782_v14 = vcombine.low %v6317_v1, %v6321_v61  ;;  %v6376_v1 = vld [vmem:[#allocation13 + $0xdb0] sm:$0xff]  ;;  %v6373_v61 = vld [vmem:[#allocation13 + $0xd98] sm:$0xff] }
 0x5df   :  { %9487 = vmatpush1.bf16.msra.mxu0 %v15724_v63  ;;  %v6328_v63 = vld [vmem:[#allocation13 + $0xc30] sm:$0xff] }
 0x5e0   :  { %9651 = vmatpush1.bf16.msra.mxu1 %v15726_v2  ;;  %9488 = vmatprep.subr.bf16.mxu0 %v15733_v3  ;;  %v6325_v2 = vld [vmem:[#allocation13 + $0xc18] sm:$0xff]  ;;  %v15789_v19 = vcombine.high %v6324_v9, %v6328_v63 }
 0x5e1   :  { %9652 = vmatprep.subr.bf16.mxu1 %v15735_v11  ;;  %v6329_v3 = vld [vmem:[#allocation13 + $0xc38] sm:$0xff]  ;;  %v15780_v11 = vcombine.low %v6316_v28, %v6320_v54  ;;  %v6372_v54 = vld [vmem:[#allocation13 + $0xd90] sm:$0xff] }
 0x5e2   :  { %v15791_v10 = vcombine.high %v6325_v2, %v6329_v3  ;;  %v15790_v34 = vcombine.low %v6325_v2, %v6329_v3  ;;  %v6380_v3 = vld [vmem:[#allocation13 + $0xdd0] sm:$0xff] }
 0x5e3   :  { %9489 = vmatpush1.bf16.msra.mxu0 %v15732_v55  ;;  %v6336_v55 = vld [vmem:[#allocation13 + $0xc70] sm:$0xff] }
 0x5e4   :  { %9653 = vmatpush1.bf16.msra.mxu1 %v15734_v18  ;;  %9490 = vmatprep.subr.bf16.mxu0 %v15741_v21  ;;  %v15788_v18 = vcombine.low %v6324_v9, %v6328_v63  ;;  %v6333_v21 = vld [vmem:[#allocation13 + $0xc58] sm:$0xff]  ;;  %v15797_v56 = vcombine.high %v6332_v62, %v6336_v55 }
 0x5e5   :  { %9654 = vmatprep.subr.bf16.mxu1 %v15743_v22  ;;  %v6337_v22 = vld [vmem:[#allocation13 + $0xc78] sm:$0xff] }
 0x5e6   :  { %v15798_v29 = vcombine.low %v6333_v21, %v6337_v22 }
 0x5e7   :  { %9491 = vmatpush1.bf16.msra.mxu0 %v15740_v0  ;;  %v15799_v0 = vcombine.high %v6333_v21, %v6337_v22  ;;  %v15836_v21 = vcombine.low %v6372_v54, %v6376_v1 }
 0x5e8   :  { %9655 = vmatpush1.bf16.msra.mxu1 %v15742_v24  ;;  %9492 = vmatprep.subr.bf16.mxu0 %v15749_v25  ;;  %v6341_v24 = vld [vmem:[#allocation13 + $0xc98] sm:$0xff] }
 0x5e9   :  { %9656 = vmatprep.subr.bf16.mxu1 %v15751_v27  ;;  %v6345_v25 = vld [vmem:[#allocation13 + $0xcb8] sm:$0xff]  ;;  %v15796_v27 = vcombine.low %v6332_v62, %v6336_v55 }
 0x5ea   :  { %v15807_v8 = vcombine.high %v6341_v24, %v6345_v25  ;;  %v6385_v62 = vld [vmem:[#allocation13 + $0xdf8] sm:$0xff] }
 0x5eb   :  { %9493 = vmatpush1.bf16.msra.mxu0 %v15748_v31  ;;  %v6352_v31 = vld [vmem:[#allocation13 + $0xcf0] sm:$0xff] }
 0x5ec   :  { %9657 = vmatpush1.bf16.msra.mxu1 %v15750_v36  ;;  %9494 = vmatprep.subr.bf16.mxu0 %v15757_v38  ;;  %v6349_v36 = vld [vmem:[#allocation13 + $0xcd8] sm:$0xff]  ;;  %v15813_v40 = vcombine.high %v6348_v37, %v6352_v31 }
 0x5ed   :  { %9658 = vmatprep.subr.bf16.mxu1 %v15759_v39  ;;  %v6353_v38 = vld [vmem:[#allocation13 + $0xcf8] sm:$0xff]  ;;  %v15804_v39 = vcombine.low %v6340_v32, %v6344_v23 }
 0x5ee   :  { %v15815_v17 = vcombine.high %v6349_v36, %v6353_v38 }
 0x5ef   :  { %9495 = vmatpush1.bf16.msra.mxu0 %v15756_v48  ;;  %v6357_v48 = vld [vmem:[#allocation13 + $0xd18] sm:$0xff] }
 0x5f0   :  { %9659 = vmatpush1.bf16.msra.mxu1 %v15758_v42  ;;  %9496 = vmatprep.subr.bf16.mxu0 %v15765_v4  ;;  %v6361_v42 = vld [vmem:[#allocation13 + $0xd38] sm:$0xff]  ;;  %v15814_v4 = vcombine.low %v6349_v36, %v6353_v38  ;;  %v6400_v36 = vld [vmem:[#allocation13 + $0xe70] sm:$0xff] }
 0x5f1   :  { %9660 = vmatprep.subr.bf16.mxu1 %v15767_v49  ;;  %v15821_v49 = vcombine.high %v6356_v43, %v6360_v46  ;;  %v15823_v50 = vcombine.high %v6357_v48, %v6361_v42  ;;  %v6397_v38 = vld [vmem:[#allocation13 + $0xe58] sm:$0xff] }
 0x5f3   :  { %9497 = vmatpush1.bf16.msra.mxu0 %v15764_v47  ;;  %v6369_v47 = vld [vmem:[#allocation13 + $0xd78] sm:$0xff] }
 0x5f4   :  { %9661 = vmatpush1.bf16.msra.mxu1 %v15766_v51  ;;  %9498 = vmatprep.subr.bf16.mxu0 %v15773_v52  ;;  %v15820_v51 = vcombine.low %v6356_v43, %v6360_v46  ;;  %v15822_v52 = vcombine.low %v6357_v48, %v6361_v42  ;;  %v15831_v28 = vcombine.high %v6365_v15, %v6369_v47  ;;  %v6404_v46 = vld [vmem:[#allocation13 + $0xe90] sm:$0xff]  ;;  %v6405_v42 = vld [vmem:[#allocation13 + $0xe98] sm:$0xff] }
 0x5f5   :  { %9662 = vmatprep.subr.bf16.mxu1 %v15775_v53  ;;  %v15829_v53 = vcombine.high %v6364_v12, %v6368_v44  ;;  %v6408_v48 = vld [vmem:[#allocation13 + $0xeb0] sm:$0xff] }
 0x5f7   :  { %9499 = vmatpush1.bf16.msra.mxu0 %v15772_v57  ;;  %v6377_v57 = vld [vmem:[#allocation13 + $0xdb8] sm:$0xff] }
 0x5f8   :  { %9663 = vmatpush1.bf16.msra.mxu1 %v15774_v41  ;;  %9500 = vmatprep.subr.bf16.mxu0 %v15781_v59  ;;  %v15828_v41 = vcombine.low %v6364_v12, %v6368_v44  ;;  %v15830_v59 = vcombine.low %v6365_v15, %v6369_v47  ;;  %v15839_v2 = vcombine.high %v6373_v61, %v6377_v57  ;;  %v6412_v44 = vld [vmem:[#allocation13 + $0xed0] sm:$0xff]  ;;  %v6413_v47 = vld [vmem:[#allocation13 + $0xed8] sm:$0xff] }
 0x5f9   :  { %9664 = vmatprep.subr.bf16.mxu1 %v15783_v60  ;;  %v15837_v60 = vcombine.high %v6372_v54, %v6376_v1  ;;  %v6416_v15 = vld [vmem:[#allocation13 + $0xef0] sm:$0xff] }
 0x5fa   :  { %v6420_v1 = vld [vmem:[#allocation13 + $0xf10] sm:$0xff] }
 0x5fb   :  { %9501 = vmatpush1.bf16.msra.mxu0 %v15780_v11  ;;  %v6384_v11 = vld [vmem:[#allocation13 + $0xdf0] sm:$0xff] }
 0x5fc   :  { %9665 = vmatpush1.bf16.msra.mxu1 %v15782_v14  ;;  %9511 = vmatprep.subr.bf16.mxu0 %v15789_v19  ;;  %v15845_v32 = vcombine.high %v6380_v3, %v6384_v11 }
 0x5fd   :  { %9675 = vmatprep.subr.bf16.mxu1 %v15791_v10  ;;  %v6381_v10 = vld [vmem:[#allocation13 + $0xdd8] sm:$0xff] }
 0x5fe   :  { %9503 = vmatmul.mubr.bf16.vlgmr.msra.gmra.mrb[20].mxu0 %v18449_v26  ;;  %v15847_v23 = vcombine.high %v6381_v10, %v6385_v62 }
 0x5ff   :  { %9667 = vmatmul.mubr.bf16.vlgmr.msra.gmra.mrb[20].mxu1 %v18449_v26  ;;  %9512 = vmatpush1.bf16.msra.mxu0 %v15788_v18  ;;  %v15806_v26 = vcombine.low %v6341_v24, %v6345_v25  ;;  %v6392_v24 = vld [vmem:[#allocation13 + $0xe30] sm:$0xff]  ;;  %v6389_v25 = vld [vmem:[#allocation13 + $0xe18] sm:$0xff] }
 0x600   :  { %9543 = vmatprep.mubr.bf16.mxu0 %v18453_v6  ;;  %9676 = vmatpush1.bf16.msra.mxu1 %v15790_v34 }
 0x601   :  { %9707 = vmatprep.mubr.bf16.mxu1 %v18453_v6  ;;  %9513 = vmatprep.subr.bf16.mxu0 %v15797_v56  ;;  %v15812_v6 = vcombine.low %v6348_v37, %v6352_v31  ;;  %v15838_v56 = vcombine.low %v6373_v61, %v6377_v57  ;;  %v6396_v31 = vld [vmem:[#allocation13 + $0xe50] sm:$0xff]  ;;  %v6421_v57 = vld [vmem:[#allocation13 + $0xf18] sm:$0xff] }
 0x602   :  { %9677 = vmatprep.subr.bf16.mxu1 %v15799_v0  ;;  %v6388_v0 = vld [vmem:[#allocation13 + $0xe10] sm:$0xff] }
 0x603   :  { %9514 = vmatpush1.bf16.msra.mxu0 %v15796_v27  ;;  %v6393_v27 = vld [vmem:[#allocation13 + $0xe38] sm:$0xff]  ;;  %v6424_v61 = vld [vmem:[#allocation13 + $0xf30] sm:$0xff] }
 0x604   :  { %9678 = vmatpush1.bf16.msra.mxu1 %v15798_v29  ;;  %9515 = vmatprep.subr.bf16.mxu0 %v15805_v30  ;;  %v15844_v29 = vcombine.low %v6380_v3, %v6384_v11  ;;  %v15846_v30 = vcombine.low %v6381_v10, %v6385_v62  ;;  %v15855_v37 = vcombine.high %v6389_v25, %v6393_v27  ;;  %v6428_v11 = vld [vmem:[#allocation13 + $0xf50] sm:$0xff]  ;;  %v6429_v62 = vld [vmem:[#allocation13 + $0xf58] sm:$0xff] }
 0x605   :  { %9679 = vmatprep.subr.bf16.mxu1 %v15807_v8  ;;  %v15853_v8 = vcombine.high %v6388_v0, %v6392_v24  ;;  %v6432_v10 = vld [vmem:[#allocation13 + $0xf70] sm:$0xff] }
 0x607   :  { %9516 = vmatpush1.bf16.msra.mxu0 %v15804_v39  ;;  %v6401_v39 = vld [vmem:[#allocation13 + $0xe78] sm:$0xff] }
 0x608   :  { %9680 = vmatpush1.bf16.msra.mxu1 %v15806_v26  ;;  %9517 = vmatprep.subr.bf16.mxu0 %v15813_v40  ;;  %v15852_v26 = vcombine.low %v6388_v0, %v6392_v24  ;;  %v15854_v40 = vcombine.low %v6389_v25, %v6393_v27  ;;  %v15863_v43 = vcombine.high %v6397_v38, %v6401_v39  ;;  %v6441_v0 = vld [vmem:[#allocation13 + $0xfb8] sm:$0xff]  ;;  %v18488_v24 = vld [vmem:[#allocation14] sm:$0xff] }
 0x609   :  { %9681 = vmatprep.subr.bf16.mxu1 %v15815_v17  ;;  %v15861_v17 = vcombine.high %v6396_v31, %v6400_v36  ;;  %v15892_v25 = vcombine.low %v6428_v11, %v6432_v10 }
 0x60b   :  { %9518 = vmatpush1.bf16.msra.mxu0 %v15812_v6  ;;  %v6409_v6 = vld [vmem:[#allocation13 + $0xeb8] sm:$0xff] }
 0x60c   :  { %9682 = vmatpush1.bf16.msra.mxu1 %v15814_v4  ;;  %9519 = vmatprep.subr.bf16.mxu0 %v15821_v49  ;;  %v15860_v4 = vcombine.low %v6396_v31, %v6400_v36  ;;  %v15862_v49 = vcombine.low %v6397_v38, %v6401_v39  ;;  %v15871_v12 = vcombine.high %v6405_v42, %v6409_v6  ;;  %v6445_v36 = vld [vmem:[#allocation13 + $0xfd8] sm:$0xff] }
 0x60d   :  { %9683 = vmatprep.subr.bf16.mxu1 %v15823_v50  ;;  %v15869_v50 = vcombine.high %v6404_v46, %v6408_v48  ;;  %v6467_v31 = vrot.slane %v18488_v24, %v18310_v35  ;;  %v6449_v38 = vld [vmem:[#allocation13 + $0xff8] sm:$0xff] }
 0x60f   :  { %9520 = vmatpush1.bf16.msra.mxu0 %v15820_v51  ;;  %v6417_v51 = vld [vmem:[#allocation13 + $0xef8] sm:$0xff] }
 0x610   :  { %9684 = vmatpush1.bf16.msra.mxu1 %v15822_v52  ;;  %9521 = vmatprep.subr.bf16.mxu0 %v15829_v53  ;;  %v15868_v52 = vcombine.low %v6404_v46, %v6408_v48  ;;  %v15870_v53 = vcombine.low %v6405_v42, %v6409_v6  ;;  %v15879_v54 = vcombine.high %v6413_v47, %v6417_v51  ;;  %v16769_v42 = vld [vmem:[#allocation16 + $0x4] ss:$16 sps:$4 sm:$0xff]   ;;  %v16772_v6 = vld [vmem:[#allocation16 + $0xc] ss:$16 sps:$4 sm:$0xff]  }
 0x611   :  { %v18480_v9 = vpop.f32.mrb[16].mxu0  ;;  %v18482_v63 = vpop.f32.mrb[16].mxu1  ;;  %9685 = vmatprep.subr.bf16.mxu1 %v15831_v28  ;;  %v15877_v28 = vcombine.high %v6412_v44, %v6416_v15  ;;  %v15910_v48 = vcombine.low %v6445_v36, %v6449_v38 }
 0x612   :  { %v18484_v14 = vpop.f32.mrb[17].mxu0  ;;  %v18486_v19 = vpop.f32.mrb[17].mxu1 }
 0x613   :  { %v9221_v55 = vpop.f32.mrb[18].mxu0  ;;  %v9385_v18 = vpop.f32.mrb[18].mxu1  ;;  %9522 = vmatpush1.bf16.msra.mxu0 %v15828_v41  ;;  %v6425_v41 = vld [vmem:[#allocation13 + $0xf38] sm:$0xff] }
 0x614   :  { %9686 = vmatpush1.bf16.msra.mxu1 %v15830_v59  ;;  %v9222_v22 = vpop.f32.mrb[19].mxu0  ;;  %v9386_v34 = vpop.f32.mrb[19].mxu1  ;;  %9523 = vmatprep.subr.bf16.mxu0 %v15837_v60  ;;  %v15876_v59 = vcombine.low %v6412_v44, %v6416_v15  ;;  %v15878_v60 = vcombine.low %v6413_v47, %v6417_v51  ;;  %v15887_v3 = vcombine.high %v6421_v57, %v6425_v41  ;;  %v6433_v55 = vld [vmem:[#allocation13 + $0xf78] sm:$0xff]  ;;  %v16776_v47 = vld [vmem:[#allocation16 + $0x28] ss:$16 sps:$4 sm:$0xff]  }
 0x615   :  { %9687 = vmatprep.subr.bf16.mxu1 %v15839_v2  ;;  %v15885_v2 = vcombine.high %v6420_v1, %v6424_v61  ;;  %v15884_v18 = vcombine.low %v6420_v1, %v6424_v61  ;;  %v15893_v22 = vcombine.high %v6428_v11, %v6432_v10  ;;  %v15895_v34 = vcombine.high %v6429_v62, %v6433_v55  ;;  %v16773_v15 = vld [vmem:[#allocation16 + $0x20] ss:$16 sps:$4 sm:$0xff]   ;;  %v16781_v51 = vld [vmem:[#allocation16 + $0x44] ss:$16 sps:$4 sm:$0xff]   ;;  %v16790_v1 = vld [vmem:[#allocation16 + $0x6c] ss:$16 sps:$4 sm:$0xff]  }
 0x616   :  { %v15894_v27 = vcombine.low %v6429_v62, %v6433_v55  ;;  %v16788_v61 = vld [vmem:[#allocation16 + $0x68] ss:$16 sps:$4 sm:$0xff]   ;;  %v16797_v11 = vld [vmem:[#allocation16 + $0xa0] ss:$16 sps:$4 sm:$0xff]   ;;  %v16805_v62 = vld [vmem:[#allocation16 + $0xc4] ss:$16 sps:$4 sm:$0xff]  }
 0x617   :  { %9524 = vmatpush1.bf16.msra.mxu0 %v15836_v21  ;;  %v15886_v21 = vcombine.low %v6421_v57, %v6425_v41  ;;  %v16793_v57 = vld [vmem:[#allocation16 + $0x84] ss:$16 sps:$4 sm:$0xff]   ;;  %v16796_v41 = vld [vmem:[#allocation16 + $0x8c] ss:$16 sps:$4 sm:$0xff]   ;;  %v16800_v10 = vld [vmem:[#allocation16 + $0xa8] ss:$16 sps:$4 sm:$0xff]  }
 0x618   :  { %9688 = vmatpush1.bf16.msra.mxu1 %v15838_v56  ;;  %9525 = vmatprep.subr.bf16.mxu0 %v15845_v32  ;;  %v6436_v56 = vld [vmem:[#allocation13 + $0xf90] sm:$0xff] }
 0x619   :  { %9689 = vmatprep.subr.bf16.mxu1 %v15847_v23  ;;  %v6440_v32 = vld [vmem:[#allocation13 + $0xfb0] sm:$0xff]  ;;  %v6437_v23 = vld [vmem:[#allocation13 + $0xf98] sm:$0xff] }
 0x61a   :  { %v15900_v39 = vcombine.low %v6436_v56, %v6440_v32  ;;  %v16808_v55 = vld [vmem:[#allocation16 + $0xcc] ss:$16 sps:$4 sm:$0xff]  }
 0x61b   :  { %9526 = vmatpush1.bf16.msra.mxu0 %v15844_v29  ;;  %v15901_v29 = vcombine.high %v6436_v56, %v6440_v32  ;;  %v16809_v56 = vld [vmem:[#allocation16 + $0xe0] ss:$16 sps:$4 sm:$0xff]   ;;  %v16812_v32 = vld [vmem:[#allocation16 + $0xe8] ss:$16 sps:$4 sm:$0xff]  }
 0x61c   :  { %9690 = vmatpush1.bf16.msra.mxu1 %v15846_v30  ;;  %9527 = vmatprep.subr.bf16.mxu0 %v15853_v8  ;;  %v15903_v30 = vcombine.high %v6437_v23, %v6441_v0  ;;  %v6444_v8 = vld [vmem:[#allocation13 + $0xfd0] sm:$0xff] }
 0x61d   :  { %9691 = vmatprep.subr.bf16.mxu1 %v15855_v37  ;;  %v6448_v37 = vld [vmem:[#allocation13 + $0xff0] sm:$0xff] }
 0x61e   :  { %v15908_v46 = vcombine.low %v6444_v8, %v6448_v37 }
 0x61f   :  { %9528 = vmatpush1.bf16.msra.mxu0 %v15852_v26  ;;  %v15902_v26 = vcombine.low %v6437_v23, %v6441_v0  ;;  %v16817_v23 = vld [vmem:[#allocation16 + $0x104] ss:$16 sps:$4 sm:$0xff]   ;;  %v16820_v0 = vld [vmem:[#allocation16 + $0x10c] ss:$16 sps:$4 sm:$0xff]  }
 0x620   :  { %9692 = vmatpush1.bf16.msra.mxu1 %v15854_v40  ;;  %9529 = vmatprep.subr.bf16.mxu0 %v15861_v17  ;;  %v15909_v40 = vcombine.high %v6444_v8, %v6448_v37  ;;  %v15911_v17 = vcombine.high %v6445_v36, %v6449_v38  ;;  %v16821_v8 = vld [vmem:[#allocation16 + $0x120] ss:$16 sps:$4 sm:$0xff]   ;;  %v16824_v37 = vld [vmem:[#allocation16 + $0x128] ss:$16 sps:$4 sm:$0xff]   ;;  %v16832_v36 = vld [vmem:[#allocation16 + $0x14c] ss:$16 sps:$4 sm:$0xff]  }
 0x621   :  { %9693 = vmatprep.subr.bf16.mxu1 %v15863_v43  ;;  %v16569_v43 = vadd.f32 %v18484_v14, %v6467_v31  ;;  %v16778_v14 = vld [vmem:[#allocation16 + $0x2c] ss:$16 sps:$4 sm:$0xff]   ;;  %v16829_v31 = vld [vmem:[#allocation16 + $0x144] ss:$16 sps:$4 sm:$0xff]   ;;  %v16827_v38 = vld [vmem:[#allocation16 + $0x140] ss:$16 sps:$4 sm:$0xff]  }
 0x623   :  { %9530 = vmatpush1.bf16.msra.mxu0 %v15860_v4  ;;  %v9717_v4 = vmax.f32 %v16569_v43, 0.0  ;;  %v16836_v43 = vld [vmem:[#allocation16 + $0x168] ss:$16 sps:$4 sm:$0xff]  }
 0x624   :  { %9694 = vmatpush1.bf16.msra.mxu1 %v15862_v49  ;;  %9531 = vmatprep.subr.bf16.mxu0 %v15869_v50  ;;  %v16767_v49 = vld [vmem:[#allocation16] ss:$16 sps:$4 sm:$0xff]   ;;  %v16770_v50 = vld [vmem:[#allocation16 + $0x8] ss:$16 sps:$4 sm:$0xff]  }
 0x625   :  { %9695 = vmatprep.subr.bf16.mxu1 %v15871_v12  ;;  %v16775_v12 = vld [vmem:[#allocation16 + $0x24] ss:$16 sps:$4 sm:$0xff]   ;;  %v9981_v44 = vpack.c.bf16 %v9717_v4, %v9717_v4 }
 0x626   :  { %v16847_v4 = vld [vmem:[#allocation16 + $0x1a4] ss:$16 sps:$4 sm:$0xff]  }
 0x627   :  { %9532 = vmatpush1.bf16.msra.mxu0 %v15868_v52  ;;  %v16784_v52 = vld [vmem:[#allocation16 + $0x4c] ss:$16 sps:$4 sm:$0xff]  }
 0x628   :  { %9696 = vmatpush1.bf16.msra.mxu1 %v15870_v53  ;;  %9533 = vmatprep.subr.bf16.mxu0 %v15877_v28  ;;  %v16779_v53 = vld [vmem:[#allocation16 + $0x40] ss:$16 sps:$4 sm:$0xff]   ;;  %v16782_v28 = vld [vmem:[#allocation16 + $0x48] ss:$16 sps:$4 sm:$0xff]  }
 0x629   :  { %9697 = vmatprep.subr.bf16.mxu1 %v15879_v54  ;;  %v16787_v54 = vld [vmem:[#allocation16 + $0x64] ss:$16 sps:$4 sm:$0xff]  }
 0x62b   :  { %9534 = vmatpush1.bf16.msra.mxu0 %v15876_v59  ;;  %v16791_v59 = vld [vmem:[#allocation16 + $0x80] ss:$16 sps:$4 sm:$0xff]  }
 0x62c   :  { %9698 = vmatpush1.bf16.msra.mxu1 %v15878_v60  ;;  %9535 = vmatprep.subr.bf16.mxu0 %v15885_v2  ;;  %v16794_v60 = vld [vmem:[#allocation16 + $0x88] ss:$16 sps:$4 sm:$0xff]   ;;  %v16799_v2 = vld [vmem:[#allocation16 + $0xa4] ss:$16 sps:$4 sm:$0xff]  }
 0x62d   :  { %9699 = vmatprep.subr.bf16.mxu1 %v15887_v3  ;;  %v16802_v3 = vld [vmem:[#allocation16 + $0xac] ss:$16 sps:$4 sm:$0xff]  }
 0x62f   :  { %9536 = vmatpush1.bf16.msra.mxu0 %v15884_v18  ;;  %v16803_v18 = vld [vmem:[#allocation16 + $0xc0] ss:$16 sps:$4 sm:$0xff]  }
 0x630   :  { %9700 = vmatpush1.bf16.msra.mxu1 %v15886_v21  ;;  %9537 = vmatprep.subr.bf16.mxu0 %v15893_v22  ;;  %v16806_v21 = vld [vmem:[#allocation16 + $0xc8] ss:$16 sps:$4 sm:$0xff]   ;;  %v16811_v22 = vld [vmem:[#allocation16 + $0xe4] ss:$16 sps:$4 sm:$0xff]  }
 0x631   :  { %9701 = vmatprep.subr.bf16.mxu1 %v15895_v34  ;;  %v16814_v34 = vld [vmem:[#allocation16 + $0xec] ss:$16 sps:$4 sm:$0xff]  }
 0x633   :  { %9538 = vmatpush1.bf16.msra.mxu0 %v15892_v25  ;;  %v16815_v25 = vld [vmem:[#allocation16 + $0x100] ss:$16 sps:$4 sm:$0xff]  }
 0x634   :  { %9702 = vmatpush1.bf16.msra.mxu1 %v15894_v27  ;;  %9539 = vmatprep.subr.bf16.mxu0 %v15901_v29  ;;  %v16818_v27 = vld [vmem:[#allocation16 + $0x108] ss:$16 sps:$4 sm:$0xff]   ;;  %v16823_v29 = vld [vmem:[#allocation16 + $0x124] ss:$16 sps:$4 sm:$0xff]  }
 0x635   :  { %9703 = vmatprep.subr.bf16.mxu1 %v15903_v30  ;;  %v16826_v30 = vld [vmem:[#allocation16 + $0x12c] ss:$16 sps:$4 sm:$0xff]  }
 0x637   :  { %9540 = vmatpush1.bf16.msra.mxu0 %v15900_v39  ;;  %v16830_v39 = vld [vmem:[#allocation16 + $0x148] ss:$16 sps:$4 sm:$0xff]  }
 0x638   :  { %9704 = vmatpush1.bf16.msra.mxu1 %v15902_v26  ;;  %9541 = vmatprep.subr.bf16.mxu0 %v15909_v40  ;;  %v16835_v26 = vld [vmem:[#allocation16 + $0x164] ss:$16 sps:$4 sm:$0xff]   ;;  %v16838_v40 = vld [vmem:[#allocation16 + $0x16c] ss:$16 sps:$4 sm:$0xff]  }
 0x639   :  { %9705 = vmatprep.subr.bf16.mxu1 %v15911_v17  ;;  %v16833_v17 = vld [vmem:[#allocation16 + $0x160] ss:$16 sps:$4 sm:$0xff]  }
 0x63b   :  { %9542 = vmatpush1.bf16.msra.mxu0 %v15908_v46  ;;  %v16841_v46 = vld [vmem:[#allocation16 + $0x184] ss:$16 sps:$4 sm:$0xff]  }
 0x63c   :  { %9706 = vmatpush1.bf16.msra.mxu1 %v15910_v48  ;;  %11290 = vmatprep.subr.bf16.mxu0 %v16769_v42  ;;  %v16844_v48 = vld [vmem:[#allocation16 + $0x18c] ss:$16 sps:$4 sm:$0xff]   ;;  %v16839_v42 = vld [vmem:[#allocation16 + $0x180] ss:$16 sps:$4 sm:$0xff]  }
 0x63d   :  { %11454 = vmatprep.subr.bf16.mxu1 %v16772_v6  ;;  %v16842_v6 = vld [vmem:[#allocation16 + $0x188] ss:$16 sps:$4 sm:$0xff]  }
 0x63e   :  { %9544 = vmatmul.mubr.bf16.vlgmr.msra.gmra.mrb[20].mxu0 %v18462_v58 }
 0x63f   :  { %9708 = vmatmul.mubr.bf16.vlgmr.msra.gmra.mrb[20].mxu1 %v18462_v58  ;;  %11291 = vmatpush1.bf16.msra.mxu0 %v16767_v49  ;;  %v16785_v58 = vld [vmem:[#allocation16 + $0x60] ss:$16 sps:$4 sm:$0xff]   ;;  %v16850_v49 = vld [vmem:[#allocation16 + $0x1ac] ss:$16 sps:$4 sm:$0xff]  }
 0x640   :  { %11322 = vmatprep.mubr.bf16.mxu0 %v9981_v44  ;;  %11455 = vmatpush1.bf16.msra.mxu1 %v16770_v50  ;;  %v16845_v50 = vld [vmem:[#allocation16 + $0x1a0] ss:$16 sps:$4 sm:$0xff]  }
 0x641   :  { %11486 = vmatprep.mubr.bf16.mxu1 %v9981_v44  ;;  %11292 = vmatprep.subr.bf16.mxu0 %v16775_v12  ;;  %v6463_v12 = vrot.slane %v18488_v24, %v18305_v33  ;;  %v16848_v44 = vld [vmem:[#allocation16 + $0x1a8] ss:$16 sps:$4 sm:$0xff]  }
 0x642   :  { %11456 = vmatprep.subr.bf16.mxu1 %v16778_v14  ;;  %v16853_v14 = vld [vmem:[#allocation16 + $0x1c4] ss:$16 sps:$4 sm:$0xff]  }
 0x643   :  { %11293 = vmatpush1.bf16.msra.mxu0 %v16773_v15  ;;  %v16856_v15 = vld [vmem:[#allocation16 + $0x1cc] ss:$16 sps:$4 sm:$0xff]  }
 0x644   :  { %11457 = vmatpush1.bf16.msra.mxu1 %v16776_v47  ;;  %11294 = vmatprep.subr.bf16.mxu0 %v16781_v51  ;;  %v6475_v47 = vrot.slane %v18488_v24, %v18313_v7  ;;  %v16851_v51 = vld [vmem:[#allocation16 + $0x1c0] ss:$16 sps:$4 sm:$0xff]  }
 0x645   :  { %11458 = vmatprep.subr.bf16.mxu1 %v16784_v52  ;;  %v16568_v52 = vadd.f32 %v18480_v9, %v6463_v12  ;;  %v16863_v9 = vld [vmem:[#allocation16 + $0x200] ss:$16 sps:$4 sm:$0xff]   ;;  %v16922_v12 = vld [vmem:[#allocation16 + $0x32c] ss:$16 sps:$4 sm:$0xff]  }
 0x647   :  { %11295 = vmatpush1.bf16.msra.mxu0 %v16779_v53  ;;  %v16854_v53 = vld [vmem:[#allocation16 + $0x1c8] ss:$16 sps:$4 sm:$0xff]  }
 0x648   :  { %11459 = vmatpush1.bf16.msra.mxu1 %v16782_v28  ;;  %11296 = vmatprep.subr.bf16.mxu0 %v16787_v54  ;;  %v16859_v28 = vld [vmem:[#allocation16 + $0x1e4] ss:$16 sps:$4 sm:$0xff]   ;;  %v16862_v54 = vld [vmem:[#allocation16 + $0x1ec] ss:$16 sps:$4 sm:$0xff]  }
 0x649   :  { %11460 = vmatprep.subr.bf16.mxu1 %v16790_v1  ;;  %v16571_v1 = vadd.f32 %v18486_v19, %v6475_v47  ;;  %v16874_v19 = vld [vmem:[#allocation16 + $0x22c] ss:$16 sps:$4 sm:$0xff]  }
 0x64a   :  { %v16928_v47 = vld [vmem:[#allocation16 + $0x34c] ss:$16 sps:$4 sm:$0xff]  }
 0x64b   :  { %11297 = vmatpush1.bf16.msra.mxu0 %v16785_v58  ;;  %v16857_v58 = vld [vmem:[#allocation16 + $0x1e0] ss:$16 sps:$4 sm:$0xff]  }
 0x64c   :  { %11461 = vmatpush1.bf16.msra.mxu1 %v16788_v61  ;;  %11298 = vmatprep.subr.bf16.mxu0 %v16793_v57  ;;  %v9716_v61 = vmax.f32 %v16568_v52, 0.0  ;;  %v16860_v57 = vld [vmem:[#allocation16 + $0x1e8] ss:$16 sps:$4 sm:$0xff]  }
 0x64d   :  { %11462 = vmatprep.subr.bf16.mxu1 %v16796_v41  ;;  %v16865_v41 = vld [vmem:[#allocation16 + $0x204] ss:$16 sps:$4 sm:$0xff]   ;;  %v16926_v52 = vld [vmem:[#allocation16 + $0x348] ss:$16 sps:$4 sm:$0xff]  }
 0x64f   :  { %11299 = vmatpush1.bf16.msra.mxu0 %v16791_v59  ;;  %v16868_v59 = vld [vmem:[#allocation16 + $0x20c] ss:$16 sps:$4 sm:$0xff]  }
 0x650   :  { %11463 = vmatpush1.bf16.msra.mxu1 %v16794_v60  ;;  %11300 = vmatprep.subr.bf16.mxu0 %v16799_v2  ;;  %v9719_v60 = vmax.f32 %v16571_v1, 0.0  ;;  %v9980_v2 = vpack.c.bf16 %v9716_v61, %v9716_v61  ;;  %v16932_v1 = vld [vmem:[#allocation16 + $0x368] ss:$16 sps:$4 sm:$0xff]   ;;  %v16940_v61 = vld [vmem:[#allocation16 + $0x38c] ss:$16 sps:$4 sm:$0xff]  }
 0x651   :  { %11464 = vmatprep.subr.bf16.mxu1 %v16802_v3  ;;  %v16866_v3 = vld [vmem:[#allocation16 + $0x208] ss:$16 sps:$4 sm:$0xff]  }
 0x653   :  { %11301 = vmatpush1.bf16.msra.mxu0 %v16797_v11  ;;  %v16871_v11 = vld [vmem:[#allocation16 + $0x224] ss:$16 sps:$4 sm:$0xff]  }
 0x654   :  { %11465 = vmatpush1.bf16.msra.mxu1 %v16800_v10  ;;  %11302 = vmatprep.subr.bf16.mxu0 %v16805_v62  ;;  %v9983_v10 = vpack.c.bf16 %v9719_v60, %v9719_v60  ;;  %v16869_v62 = vld [vmem:[#allocation16 + $0x220] ss:$16 sps:$4 sm:$0xff]   ;;  %v16946_v60 = vld [vmem:[#allocation16 + $0x3ac] ss:$16 sps:$4 sm:$0xff]  }
 0x655   :  { %11466 = vmatprep.subr.bf16.mxu1 %v16808_v55  ;;  %v16872_v55 = vld [vmem:[#allocation16 + $0x228] ss:$16 sps:$4 sm:$0xff]  }
 0x657   :  { %11303 = vmatpush1.bf16.msra.mxu0 %v16803_v18  ;;  %v16877_v18 = vld [vmem:[#allocation16 + $0x244] ss:$16 sps:$4 sm:$0xff]  }
 0x658   :  { %11467 = vmatpush1.bf16.msra.mxu1 %v16806_v21  ;;  %11304 = vmatprep.subr.bf16.mxu0 %v16811_v22  ;;  %v16880_v21 = vld [vmem:[#allocation16 + $0x24c] ss:$16 sps:$4 sm:$0xff]   ;;  %v16875_v22 = vld [vmem:[#allocation16 + $0x240] ss:$16 sps:$4 sm:$0xff]  }
 0x659   :  { %11468 = vmatprep.subr.bf16.mxu1 %v16814_v34  ;;  %v16878_v34 = vld [vmem:[#allocation16 + $0x248] ss:$16 sps:$4 sm:$0xff]  }
 0x65b   :  { %11305 = vmatpush1.bf16.msra.mxu0 %v16809_v56  ;;  %v16883_v56 = vld [vmem:[#allocation16 + $0x264] ss:$16 sps:$4 sm:$0xff]  }
 0x65c   :  { %11469 = vmatpush1.bf16.msra.mxu1 %v16812_v32  ;;  %11306 = vmatprep.subr.bf16.mxu0 %v16817_v23  ;;  %v16886_v32 = vld [vmem:[#allocation16 + $0x26c] ss:$16 sps:$4 sm:$0xff]   ;;  %v16881_v23 = vld [vmem:[#allocation16 + $0x260] ss:$16 sps:$4 sm:$0xff]  }
 0x65d   :  { %11470 = vmatprep.subr.bf16.mxu1 %v16820_v0  ;;  %v16884_v0 = vld [vmem:[#allocation16 + $0x268] ss:$16 sps:$4 sm:$0xff]  }
 0x65f   :  { %11307 = vmatpush1.bf16.msra.mxu0 %v16815_v25  ;;  %v16889_v25 = vld [vmem:[#allocation16 + $0x284] ss:$16 sps:$4 sm:$0xff]  }
 0x660   :  { %11471 = vmatpush1.bf16.msra.mxu1 %v16818_v27  ;;  %11308 = vmatprep.subr.bf16.mxu0 %v16823_v29  ;;  %v16892_v27 = vld [vmem:[#allocation16 + $0x28c] ss:$16 sps:$4 sm:$0xff]   ;;  %v16887_v29 = vld [vmem:[#allocation16 + $0x280] ss:$16 sps:$4 sm:$0xff]  }
 0x661   :  { %11472 = vmatprep.subr.bf16.mxu1 %v16826_v30  ;;  %v16890_v30 = vld [vmem:[#allocation16 + $0x288] ss:$16 sps:$4 sm:$0xff]  }
 0x663   :  { %11309 = vmatpush1.bf16.msra.mxu0 %v16821_v8  ;;  %v16895_v8 = vld [vmem:[#allocation16 + $0x2a4] ss:$16 sps:$4 sm:$0xff]  }
 0x664   :  { %11473 = vmatpush1.bf16.msra.mxu1 %v16824_v37  ;;  %11310 = vmatprep.subr.bf16.mxu0 %v16829_v31  ;;  %v16898_v37 = vld [vmem:[#allocation16 + $0x2ac] ss:$16 sps:$4 sm:$0xff]   ;;  %v16893_v31 = vld [vmem:[#allocation16 + $0x2a0] ss:$16 sps:$4 sm:$0xff]  }
 0x665   :  { %11474 = vmatprep.subr.bf16.mxu1 %v16832_v36  ;;  %v16896_v36 = vld [vmem:[#allocation16 + $0x2a8] ss:$16 sps:$4 sm:$0xff]  }
 0x667   :  { %11311 = vmatpush1.bf16.msra.mxu0 %v16827_v38  ;;  %v16901_v38 = vld [vmem:[#allocation16 + $0x2c4] ss:$16 sps:$4 sm:$0xff]  }
 0x668   :  { %11475 = vmatpush1.bf16.msra.mxu1 %v16830_v39  ;;  %11312 = vmatprep.subr.bf16.mxu0 %v16835_v26  ;;  %v16904_v39 = vld [vmem:[#allocation16 + $0x2cc] ss:$16 sps:$4 sm:$0xff]   ;;  %v16899_v26 = vld [vmem:[#allocation16 + $0x2c0] ss:$16 sps:$4 sm:$0xff]  }
 0x669   :  { %11476 = vmatprep.subr.bf16.mxu1 %v16838_v40  ;;  %v16902_v40 = vld [vmem:[#allocation16 + $0x2c8] ss:$16 sps:$4 sm:$0xff]  }
 0x66b   :  { %11313 = vmatpush1.bf16.msra.mxu0 %v16833_v17  ;;  %v16907_v17 = vld [vmem:[#allocation16 + $0x2e4] ss:$16 sps:$4 sm:$0xff]  }
 0x66c   :  { %11477 = vmatpush1.bf16.msra.mxu1 %v16836_v43  ;;  %11314 = vmatprep.subr.bf16.mxu0 %v16841_v46  ;;  %v16910_v43 = vld [vmem:[#allocation16 + $0x2ec] ss:$16 sps:$4 sm:$0xff]   ;;  %v16905_v46 = vld [vmem:[#allocation16 + $0x2e0] ss:$16 sps:$4 sm:$0xff]  }
 0x66d   :  { %11478 = vmatprep.subr.bf16.mxu1 %v16844_v48  ;;  %v16908_v48 = vld [vmem:[#allocation16 + $0x2e8] ss:$16 sps:$4 sm:$0xff]  }
 0x66f   :  { %11315 = vmatpush1.bf16.msra.mxu0 %v16839_v42  ;;  %v16913_v42 = vld [vmem:[#allocation16 + $0x304] ss:$16 sps:$4 sm:$0xff]  }
 0x670   :  { %11479 = vmatpush1.bf16.msra.mxu1 %v16842_v6  ;;  %11316 = vmatprep.subr.bf16.mxu0 %v16847_v4  ;;  %v16916_v6 = vld [vmem:[#allocation16 + $0x30c] ss:$16 sps:$4 sm:$0xff]   ;;  %v16911_v4 = vld [vmem:[#allocation16 + $0x300] ss:$16 sps:$4 sm:$0xff]  }
 0x671   :  { %11480 = vmatprep.subr.bf16.mxu1 %v16850_v49  ;;  %v16914_v49 = vld [vmem:[#allocation16 + $0x308] ss:$16 sps:$4 sm:$0xff]  }
 0x673   :  { %11317 = vmatpush1.bf16.msra.mxu0 %v16845_v50  ;;  %v16919_v50 = vld [vmem:[#allocation16 + $0x324] ss:$16 sps:$4 sm:$0xff]  }
 0x674   :  { %11481 = vmatpush1.bf16.msra.mxu1 %v16848_v44  ;;  %11318 = vmatprep.subr.bf16.mxu0 %v16853_v14  ;;  %v16917_v44 = vld [vmem:[#allocation16 + $0x320] ss:$16 sps:$4 sm:$0xff]   ;;  %v16920_v14 = vld [vmem:[#allocation16 + $0x328] ss:$16 sps:$4 sm:$0xff]  }
 0x675   :  { %11482 = vmatprep.subr.bf16.mxu1 %v16856_v15  ;;  %v16925_v15 = vld [vmem:[#allocation16 + $0x344] ss:$16 sps:$4 sm:$0xff]  }
 0x677   :  { %11319 = vmatpush1.bf16.msra.mxu0 %v16851_v51  ;;  %v16923_v51 = vld [vmem:[#allocation16 + $0x340] ss:$16 sps:$4 sm:$0xff]  }
 0x678   :  { %11483 = vmatpush1.bf16.msra.mxu1 %v16854_v53  ;;  %11320 = vmatprep.subr.bf16.mxu0 %v16859_v28  ;;  %v16931_v53 = vld [vmem:[#allocation16 + $0x364] ss:$16 sps:$4 sm:$0xff]   ;;  %v16934_v28 = vld [vmem:[#allocation16 + $0x36c] ss:$16 sps:$4 sm:$0xff]  }
 0x679   :  { %11484 = vmatprep.subr.bf16.mxu1 %v16862_v54  ;;  %v16929_v54 = vld [vmem:[#allocation16 + $0x360] ss:$16 sps:$4 sm:$0xff]  }
 0x67b   :  { %11321 = vmatpush1.bf16.msra.mxu0 %v16857_v58  ;;  %v16937_v58 = vld [vmem:[#allocation16 + $0x384] ss:$16 sps:$4 sm:$0xff]  }
 0x67c   :  { %11485 = vmatpush1.bf16.msra.mxu1 %v16860_v57  ;;  %11331 = vmatprep.subr.bf16.mxu0 %v16865_v41  ;;  %v16935_v57 = vld [vmem:[#allocation16 + $0x380] ss:$16 sps:$4 sm:$0xff]   ;;  %v16938_v41 = vld [vmem:[#allocation16 + $0x388] ss:$16 sps:$4 sm:$0xff]  }
 0x67d   :  { %11495 = vmatprep.subr.bf16.mxu1 %v16868_v59  ;;  %v16943_v59 = vld [vmem:[#allocation16 + $0x3a4] ss:$16 sps:$4 sm:$0xff]  }
 0x67e   :  { %11323 = vmatmul.mubr.bf16.vlgmr.msra.gmra.mrb[24].mxu0 %v9980_v2 }
 0x67f   :  { %11487 = vmatmul.mubr.bf16.vlgmr.msra.gmra.mrb[24].mxu1 %v9980_v2  ;;  %11332 = vmatpush1.bf16.msra.mxu0 %v16863_v9  ;;  %v16941_v9 = vld [vmem:[#allocation16 + $0x3a0] ss:$16 sps:$4 sm:$0xff]   ;;  %v6471_v2 = vrot.slane %v18488_v24, %v18336_v45 }
 0x680   :  { %11363 = vmatprep.mubr.bf16.mxu0 %v9983_v10  ;;  %11496 = vmatpush1.bf16.msra.mxu1 %v16866_v3  ;;  %v16944_v3 = vld [vmem:[#allocation16 + $0x3a8] ss:$16 sps:$4 sm:$0xff]  }
 0x681   :  { %11527 = vmatprep.mubr.bf16.mxu1 %v9983_v10  ;;  %11333 = vmatprep.subr.bf16.mxu0 %v16871_v11  ;;  %v16949_v11 = vld [vmem:[#allocation16 + $0x3c4] ss:$16 sps:$4 sm:$0xff]   ;;  %v16952_v10 = vld [vmem:[#allocation16 + $0x3cc] ss:$16 sps:$4 sm:$0xff]  }
 0x682   :  { %11497 = vmatprep.subr.bf16.mxu1 %v16874_v19  ;;  %v16947_v19 = vld [vmem:[#allocation16 + $0x3c0] ss:$16 sps:$4 sm:$0xff]  }
 0x683   :  { %11334 = vmatpush1.bf16.msra.mxu0 %v16869_v62  ;;  %v16570_v62 = vadd.f32 %v18482_v63, %v6471_v2  ;;  %v16962_v63 = vld [vmem:[#allocation16 + $0x408] ss:$16 sps:$4 sm:$0xff]   ;;  %v17019_v2 = vld [vmem:[#allocation16 + $0x540] ss:$16 sps:$4 sm:$0xff]  }
 0x684   :  { %11498 = vmatpush1.bf16.msra.mxu1 %v16872_v55  ;;  %11335 = vmatprep.subr.bf16.mxu0 %v16877_v18  ;;  %v16950_v55 = vld [vmem:[#allocation16 + $0x3c8] ss:$16 sps:$4 sm:$0xff]   ;;  %v16955_v18 = vld [vmem:[#allocation16 + $0x3e4] ss:$16 sps:$4 sm:$0xff]  }
 0x685   :  { %11499 = vmatprep.subr.bf16.mxu1 %v16880_v21  ;;  %v16958_v21 = vld [vmem:[#allocation16 + $0x3ec] ss:$16 sps:$4 sm:$0xff]  }
 0x687   :  { %11336 = vmatpush1.bf16.msra.mxu0 %v16875_v22  ;;  %v16953_v22 = vld [vmem:[#allocation16 + $0x3e0] ss:$16 sps:$4 sm:$0xff]  }
 0x688   :  { %11500 = vmatpush1.bf16.msra.mxu1 %v16878_v34  ;;  %11337 = vmatprep.subr.bf16.mxu0 %v16883_v56  ;;  %v9718_v34 = vmax.f32 %v16570_v62, 0.0  ;;  %v16956_v56 = vld [vmem:[#allocation16 + $0x3e8] ss:$16 sps:$4 sm:$0xff]  }
 0x689   :  { %11501 = vmatprep.subr.bf16.mxu1 %v16886_v32  ;;  %v16961_v32 = vld [vmem:[#allocation16 + $0x404] ss:$16 sps:$4 sm:$0xff]   ;;  %v17028_v62 = vld [vmem:[#allocation16 + $0x568] ss:$16 sps:$4 sm:$0xff]  }
 0x68b   :  { %11338 = vmatpush1.bf16.msra.mxu0 %v16881_v23  ;;  %v16964_v23 = vld [vmem:[#allocation16 + $0x40c] ss:$16 sps:$4 sm:$0xff]  }
 0x68c   :  { %11502 = vmatpush1.bf16.msra.mxu1 %v16884_v0  ;;  %11339 = vmatprep.subr.bf16.mxu0 %v16889_v25  ;;  %v16959_v0 = vld [vmem:[#allocation16 + $0x400] ss:$16 sps:$4 sm:$0xff]   ;;  %v9982_v25 = vpack.c.bf16 %v9718_v34, %v9718_v34  ;;  %v17039_v34 = vld [vmem:[#allocation16 + $0x5a4] ss:$16 sps:$4 sm:$0xff]  }
 0x68d   :  { %11503 = vmatprep.subr.bf16.mxu1 %v16892_v27  ;;  %v16967_v27 = vld [vmem:[#allocation16 + $0x424] ss:$16 sps:$4 sm:$0xff]  }
 0x68f   :  { %11340 = vmatpush1.bf16.msra.mxu0 %v16887_v29  ;;  %v16970_v29 = vld [vmem:[#allocation16 + $0x42c] ss:$16 sps:$4 sm:$0xff]  }
 0x690   :  { %11504 = vmatpush1.bf16.msra.mxu1 %v16890_v30  ;;  %11341 = vmatprep.subr.bf16.mxu0 %v16895_v8  ;;  %v16965_v30 = vld [vmem:[#allocation16 + $0x420] ss:$16 sps:$4 sm:$0xff]   ;;  %v16968_v8 = vld [vmem:[#allocation16 + $0x428] ss:$16 sps:$4 sm:$0xff]  }
 0x691   :  { %11505 = vmatprep.subr.bf16.mxu1 %v16898_v37  ;;  %v16973_v37 = vld [vmem:[#allocation16 + $0x444] ss:$16 sps:$4 sm:$0xff]  }
 0x693   :  { %11342 = vmatpush1.bf16.msra.mxu0 %v16893_v31  ;;  %v16976_v31 = vld [vmem:[#allocation16 + $0x44c] ss:$16 sps:$4 sm:$0xff]  }
 0x694   :  { %11506 = vmatpush1.bf16.msra.mxu1 %v16896_v36  ;;  %11343 = vmatprep.subr.bf16.mxu0 %v16901_v38  ;;  %v16971_v36 = vld [vmem:[#allocation16 + $0x440] ss:$16 sps:$4 sm:$0xff]   ;;  %v16974_v38 = vld [vmem:[#allocation16 + $0x448] ss:$16 sps:$4 sm:$0xff]  }
 0x695   :  { %11507 = vmatprep.subr.bf16.mxu1 %v16904_v39  ;;  %v16979_v39 = vld [vmem:[#allocation16 + $0x464] ss:$16 sps:$4 sm:$0xff]  }
 0x697   :  { %11344 = vmatpush1.bf16.msra.mxu0 %v16899_v26  ;;  %v16982_v26 = vld [vmem:[#allocation16 + $0x46c] ss:$16 sps:$4 sm:$0xff]  }
 0x698   :  { %11508 = vmatpush1.bf16.msra.mxu1 %v16902_v40  ;;  %11345 = vmatprep.subr.bf16.mxu0 %v16907_v17  ;;  %v16977_v40 = vld [vmem:[#allocation16 + $0x460] ss:$16 sps:$4 sm:$0xff]   ;;  %v16980_v17 = vld [vmem:[#allocation16 + $0x468] ss:$16 sps:$4 sm:$0xff]  }
 0x699   :  { %11509 = vmatprep.subr.bf16.mxu1 %v16910_v43  ;;  %v16985_v43 = vld [vmem:[#allocation16 + $0x484] ss:$16 sps:$4 sm:$0xff]  }
 0x69b   :  { %11346 = vmatpush1.bf16.msra.mxu0 %v16905_v46  ;;  %v16988_v46 = vld [vmem:[#allocation16 + $0x48c] ss:$16 sps:$4 sm:$0xff]  }
 0x69c   :  { %11510 = vmatpush1.bf16.msra.mxu1 %v16908_v48  ;;  %11347 = vmatprep.subr.bf16.mxu0 %v16913_v42  ;;  %v16983_v48 = vld [vmem:[#allocation16 + $0x480] ss:$16 sps:$4 sm:$0xff]   ;;  %v16986_v42 = vld [vmem:[#allocation16 + $0x488] ss:$16 sps:$4 sm:$0xff]  }
 0x69d   :  { %11511 = vmatprep.subr.bf16.mxu1 %v16916_v6  ;;  %v16991_v6 = vld [vmem:[#allocation16 + $0x4a4] ss:$16 sps:$4 sm:$0xff]  }
 0x69f   :  { %11348 = vmatpush1.bf16.msra.mxu0 %v16911_v4  ;;  %v16994_v4 = vld [vmem:[#allocation16 + $0x4ac] ss:$16 sps:$4 sm:$0xff]  }
 0x6a0   :  { %11512 = vmatpush1.bf16.msra.mxu1 %v16914_v49  ;;  %11349 = vmatprep.subr.bf16.mxu0 %v16919_v50  ;;  %v16989_v49 = vld [vmem:[#allocation16 + $0x4a0] ss:$16 sps:$4 sm:$0xff]   ;;  %v16992_v50 = vld [vmem:[#allocation16 + $0x4a8] ss:$16 sps:$4 sm:$0xff]  }
 0x6a1   :  { %11513 = vmatprep.subr.bf16.mxu1 %v16922_v12  ;;  %v16997_v12 = vld [vmem:[#allocation16 + $0x4c4] ss:$16 sps:$4 sm:$0xff]  }
 0x6a3   :  { %11350 = vmatpush1.bf16.msra.mxu0 %v16917_v44  ;;  %v17000_v44 = vld [vmem:[#allocation16 + $0x4cc] ss:$16 sps:$4 sm:$0xff]  }
 0x6a4   :  { %11514 = vmatpush1.bf16.msra.mxu1 %v16920_v14  ;;  %11351 = vmatprep.subr.bf16.mxu0 %v16925_v15  ;;  %v16995_v14 = vld [vmem:[#allocation16 + $0x4c0] ss:$16 sps:$4 sm:$0xff]   ;;  %v16998_v15 = vld [vmem:[#allocation16 + $0x4c8] ss:$16 sps:$4 sm:$0xff]  }
 0x6a5   :  { %11515 = vmatprep.subr.bf16.mxu1 %v16928_v47  ;;  %v17003_v47 = vld [vmem:[#allocation16 + $0x4e4] ss:$16 sps:$4 sm:$0xff]  }
 0x6a7   :  { %11352 = vmatpush1.bf16.msra.mxu0 %v16923_v51  ;;  %v17006_v51 = vld [vmem:[#allocation16 + $0x4ec] ss:$16 sps:$4 sm:$0xff]  }
 0x6a8   :  { %11516 = vmatpush1.bf16.msra.mxu1 %v16926_v52  ;;  %11353 = vmatprep.subr.bf16.mxu0 %v16931_v53  ;;  %v17001_v52 = vld [vmem:[#allocation16 + $0x4e0] ss:$16 sps:$4 sm:$0xff]   ;;  %v17004_v53 = vld [vmem:[#allocation16 + $0x4e8] ss:$16 sps:$4 sm:$0xff]  }
 0x6a9   :  { %11517 = vmatprep.subr.bf16.mxu1 %v16934_v28  ;;  %v17009_v28 = vld [vmem:[#allocation16 + $0x504] ss:$16 sps:$4 sm:$0xff]  }
 0x6ab   :  { %11354 = vmatpush1.bf16.msra.mxu0 %v16929_v54  ;;  %v17012_v54 = vld [vmem:[#allocation16 + $0x50c] ss:$16 sps:$4 sm:$0xff]  }
 0x6ac   :  { %11518 = vmatpush1.bf16.msra.mxu1 %v16932_v1  ;;  %11355 = vmatprep.subr.bf16.mxu0 %v16937_v58  ;;  %v17007_v1 = vld [vmem:[#allocation16 + $0x500] ss:$16 sps:$4 sm:$0xff]   ;;  %v17010_v58 = vld [vmem:[#allocation16 + $0x508] ss:$16 sps:$4 sm:$0xff]  }
 0x6ad   :  { %11519 = vmatprep.subr.bf16.mxu1 %v16940_v61  ;;  %v17015_v61 = vld [vmem:[#allocation16 + $0x524] ss:$16 sps:$4 sm:$0xff]  }
 0x6af   :  { %11356 = vmatpush1.bf16.msra.mxu0 %v16935_v57  ;;  %v17018_v57 = vld [vmem:[#allocation16 + $0x52c] ss:$16 sps:$4 sm:$0xff]  }
 0x6b0   :  { %11520 = vmatpush1.bf16.msra.mxu1 %v16938_v41  ;;  %11357 = vmatprep.subr.bf16.mxu0 %v16943_v59  ;;  %v17013_v41 = vld [vmem:[#allocation16 + $0x520] ss:$16 sps:$4 sm:$0xff]   ;;  %v17016_v59 = vld [vmem:[#allocation16 + $0x528] ss:$16 sps:$4 sm:$0xff]  }
 0x6b1   :  { %11521 = vmatprep.subr.bf16.mxu1 %v16946_v60  ;;  %v17021_v60 = vld [vmem:[#allocation16 + $0x544] ss:$16 sps:$4 sm:$0xff]  }
 0x6b3   :  { %11358 = vmatpush1.bf16.msra.mxu0 %v16941_v9  ;;  %v17024_v9 = vld [vmem:[#allocation16 + $0x54c] ss:$16 sps:$4 sm:$0xff]  }
 0x6b4   :  { %11522 = vmatpush1.bf16.msra.mxu1 %v16944_v3  ;;  %11359 = vmatprep.subr.bf16.mxu0 %v16949_v11  ;;  %v17022_v3 = vld [vmem:[#allocation16 + $0x548] ss:$16 sps:$4 sm:$0xff]   ;;  %v17027_v11 = vld [vmem:[#allocation16 + $0x564] ss:$16 sps:$4 sm:$0xff]  }
 0x6b5   :  { %11523 = vmatprep.subr.bf16.mxu1 %v16952_v10  ;;  %v17030_v10 = vld [vmem:[#allocation16 + $0x56c] ss:$16 sps:$4 sm:$0xff]  }
 0x6b7   :  { %11360 = vmatpush1.bf16.msra.mxu0 %v16947_v19  ;;  %v17025_v19 = vld [vmem:[#allocation16 + $0x560] ss:$16 sps:$4 sm:$0xff]  }
 0x6b8   :  { %11524 = vmatpush1.bf16.msra.mxu1 %v16950_v55  ;;  %11361 = vmatprep.subr.bf16.mxu0 %v16955_v18  ;;  %v17033_v55 = vld [vmem:[#allocation16 + $0x584] ss:$16 sps:$4 sm:$0xff]   ;;  %v17036_v18 = vld [vmem:[#allocation16 + $0x58c] ss:$16 sps:$4 sm:$0xff]  }
 0x6b9   :  { %11525 = vmatprep.subr.bf16.mxu1 %v16958_v21  ;;  %v17031_v21 = vld [vmem:[#allocation16 + $0x580] ss:$16 sps:$4 sm:$0xff]  }
 0x6bb   :  { %11362 = vmatpush1.bf16.msra.mxu0 %v16953_v22  ;;  %v17034_v22 = vld [vmem:[#allocation16 + $0x588] ss:$16 sps:$4 sm:$0xff]  }
 0x6bc   :  { %11526 = vmatpush1.bf16.msra.mxu1 %v16956_v56  ;;  %11372 = vmatprep.subr.bf16.mxu0 %v16961_v32  ;;  %v17042_v56 = vld [vmem:[#allocation16 + $0x5ac] ss:$16 sps:$4 sm:$0xff]   ;;  %v17037_v32 = vld [vmem:[#allocation16 + $0x5a0] ss:$16 sps:$4 sm:$0xff]  }
 0x6bd   :  { %11536 = vmatprep.subr.bf16.mxu1 %v16964_v23  ;;  %v17040_v23 = vld [vmem:[#allocation16 + $0x5a8] ss:$16 sps:$4 sm:$0xff]  }
 0x6be   :  { %11364 = vmatmul.mubr.bf16.vlgmr.msra.gmra.mrb[24].mxu0 %v9982_v25 }
 0x6bf   :  { %11528 = vmatmul.mubr.bf16.vlgmr.msra.gmra.mrb[24].mxu1 %v9982_v25  ;;  %11373 = vmatpush1.bf16.msra.mxu0 %v16959_v0  ;;  %v17045_v0 = vld [vmem:[#allocation16 + $0x5c4] ss:$16 sps:$4 sm:$0xff]   ;;  %v17048_v25 = vld [vmem:[#allocation16 + $0x5cc] ss:$16 sps:$4 sm:$0xff]  }
 0x6c0   :  { %11537 = vmatpush1.bf16.msra.mxu1 %v16962_v63  ;;  %11374 = vmatprep.subr.bf16.mxu0 %v16967_v27  ;;  %v17043_v63 = vld [vmem:[#allocation16 + $0x5c0] ss:$16 sps:$4 sm:$0xff]   ;;  %v17046_v27 = vld [vmem:[#allocation16 + $0x5c8] ss:$16 sps:$4 sm:$0xff]  }
 0x6c1   :  { %11538 = vmatprep.subr.bf16.mxu1 %v16970_v29  ;;  %v17051_v29 = vld [vmem:[#allocation16 + $0x5e4] ss:$16 sps:$4 sm:$0xff]  }
 0x6c3   :  { %11375 = vmatpush1.bf16.msra.mxu0 %v16965_v30  ;;  %v17054_v30 = vld [vmem:[#allocation16 + $0x5ec] ss:$16 sps:$4 sm:$0xff]  }
 0x6c4   :  { %11539 = vmatpush1.bf16.msra.mxu1 %v16968_v8  ;;  %11376 = vmatprep.subr.bf16.mxu0 %v16973_v37  ;;  %v17049_v8 = vld [vmem:[#allocation16 + $0x5e0] ss:$16 sps:$4 sm:$0xff]   ;;  %v17052_v37 = vld [vmem:[#allocation16 + $0x5e8] ss:$16 sps:$4 sm:$0xff]  }
 0x6c5   :  { %11540 = vmatprep.subr.bf16.mxu1 %v16976_v31  ;;  %v17057_v31 = vld [vmem:[#allocation16 + $0x604] ss:$16 sps:$4 sm:$0xff]  }
 0x6c7   :  { %11377 = vmatpush1.bf16.msra.mxu0 %v16971_v36  ;;  %v17060_v36 = vld [vmem:[#allocation16 + $0x60c] ss:$16 sps:$4 sm:$0xff]  }
 0x6c8   :  { %11541 = vmatpush1.bf16.msra.mxu1 %v16974_v38  ;;  %11378 = vmatprep.subr.bf16.mxu0 %v16979_v39  ;;  %v6479_v38 = vrot.slane %v18488_v24, %v18346_v13  ;;  %v6483_v39 = vrot.slane %v18488_v24, %v18349_v16 }
 0x6c9   :  { %11542 = vmatprep.subr.bf16.mxu1 %v16982_v26  ;;  %v6491_v26 = vrot.slane %v18488_v24, %v18352_v20  ;;  %v17063_v24 = vld [vmem:[#allocation16 + $0x624] ss:$16 sps:$4 sm:$0xff]  }
 0x6cb   :  { %11379 = vmatpush1.bf16.msra.mxu0 %v16977_v40 }
 0x6cc   :  { %11543 = vmatpush1.bf16.msra.mxu1 %v16980_v17  ;;  %11380 = vmatprep.subr.bf16.mxu0 %v16985_v43 }
 0x6cd   :  { %11544 = vmatprep.subr.bf16.mxu1 %v16988_v46 }
 0x6cf   :  { %11381 = vmatpush1.bf16.msra.mxu0 %v16983_v48 }
 0x6d0   :  { %11545 = vmatpush1.bf16.msra.mxu1 %v16986_v42  ;;  %11382 = vmatprep.subr.bf16.mxu0 %v16991_v6 }
 0x6d1   :  { %11546 = vmatprep.subr.bf16.mxu1 %v16994_v4 }
 0x6d3   :  { %11383 = vmatpush1.bf16.msra.mxu0 %v16989_v49 }
 0x6d4   :  { %11547 = vmatpush1.bf16.msra.mxu1 %v16992_v50  ;;  %11384 = vmatprep.subr.bf16.mxu0 %v16997_v12 }
 0x6d5   :  { %11548 = vmatprep.subr.bf16.mxu1 %v17000_v44 }
 0x6d7   :  { %11385 = vmatpush1.bf16.msra.mxu0 %v16995_v14 }
 0x6d8   :  { %11549 = vmatpush1.bf16.msra.mxu1 %v16998_v15  ;;  %11386 = vmatprep.subr.bf16.mxu0 %v17003_v47 }
 0x6d9   :  { %11550 = vmatprep.subr.bf16.mxu1 %v17006_v51  ;;  %v17055_v51 = vld [vmem:[#allocation16 + $0x600] ss:$16 sps:$4 sm:$0xff]  }
 0x6db   :  { %11387 = vmatpush1.bf16.msra.mxu0 %v17001_v52  ;;  %v17058_v52 = vld [vmem:[#allocation16 + $0x608] ss:$16 sps:$4 sm:$0xff]  }
 0x6dc   :  { %11551 = vmatpush1.bf16.msra.mxu1 %v17004_v53  ;;  %11388 = vmatprep.subr.bf16.mxu0 %v17009_v28  ;;  %v17066_v28 = vld [vmem:[#allocation16 + $0x62c] ss:$16 sps:$4 sm:$0xff]  }
 0x6dd   :  { %11552 = vmatprep.subr.bf16.mxu1 %v17012_v54 }
 0x6df   :  { %11389 = vmatpush1.bf16.msra.mxu0 %v17007_v1  ;;  %v17061_v1 = vld [vmem:[#allocation16 + $0x620] ss:$16 sps:$4 sm:$0xff]  }
 0x6e0   :  { %11553 = vmatpush1.bf16.msra.mxu1 %v17010_v58  ;;  %11390 = vmatprep.subr.bf16.mxu0 %v17015_v61  ;;  %v17064_v58 = vld [vmem:[#allocation16 + $0x628] ss:$16 sps:$4 sm:$0xff]   ;;  %v17069_v61 = vld [vmem:[#allocation16 + $0x644] ss:$16 sps:$4 sm:$0xff]  }
 0x6e1   :  { %11554 = vmatprep.subr.bf16.mxu1 %v17018_v57  ;;  %v17072_v57 = vld [vmem:[#allocation16 + $0x64c] ss:$16 sps:$4 sm:$0xff]  }
 0x6e3   :  { %11391 = vmatpush1.bf16.msra.mxu0 %v17013_v41  ;;  %v17067_v41 = vld [vmem:[#allocation16 + $0x640] ss:$16 sps:$4 sm:$0xff]  }
 0x6e4   :  { %11555 = vmatpush1.bf16.msra.mxu1 %v17016_v59  ;;  %11392 = vmatprep.subr.bf16.mxu0 %v17021_v60  ;;  %v17070_v59 = vld [vmem:[#allocation16 + $0x648] ss:$16 sps:$4 sm:$0xff]   ;;  %v17075_v60 = vld [vmem:[#allocation16 + $0x664] ss:$16 sps:$4 sm:$0xff]  }
 0x6e5   :  { %11556 = vmatprep.subr.bf16.mxu1 %v17024_v9  ;;  %v17078_v9 = vld [vmem:[#allocation16 + $0x66c] ss:$16 sps:$4 sm:$0xff]  }
 0x6e7   :  { %11393 = vmatpush1.bf16.msra.mxu0 %v17019_v2  ;;  %v17073_v2 = vld [vmem:[#allocation16 + $0x660] ss:$16 sps:$4 sm:$0xff]  }
 0x6e8   :  { %11557 = vmatpush1.bf16.msra.mxu1 %v17022_v3  ;;  %11394 = vmatprep.subr.bf16.mxu0 %v17027_v11  ;;  %v17076_v3 = vld [vmem:[#allocation16 + $0x668] ss:$16 sps:$4 sm:$0xff]   ;;  %v17081_v11 = vld [vmem:[#allocation16 + $0x684] ss:$16 sps:$4 sm:$0xff]  }
 0x6e9   :  { %11558 = vmatprep.subr.bf16.mxu1 %v17030_v10  ;;  %v17084_v10 = vld [vmem:[#allocation16 + $0x68c] ss:$16 sps:$4 sm:$0xff]  }
 0x6eb   :  { %11395 = vmatpush1.bf16.msra.mxu0 %v17025_v19  ;;  %v17079_v19 = vld [vmem:[#allocation16 + $0x680] ss:$16 sps:$4 sm:$0xff]  }
 0x6ec   :  { %11559 = vmatpush1.bf16.msra.mxu1 %v17028_v62  ;;  %11396 = vmatprep.subr.bf16.mxu0 %v17033_v55  ;;  %v17082_v62 = vld [vmem:[#allocation16 + $0x688] ss:$16 sps:$4 sm:$0xff]   ;;  %v17087_v55 = vld [vmem:[#allocation16 + $0x6a4] ss:$16 sps:$4 sm:$0xff]  }
 0x6ed   :  { %11560 = vmatprep.subr.bf16.mxu1 %v17036_v18  ;;  %v17090_v18 = vld [vmem:[#allocation16 + $0x6ac] ss:$16 sps:$4 sm:$0xff]  }
 0x6ef   :  { %11397 = vmatpush1.bf16.msra.mxu0 %v17031_v21  ;;  %v17085_v21 = vld [vmem:[#allocation16 + $0x6a0] ss:$16 sps:$4 sm:$0xff]  }
 0x6f0   :  { %11561 = vmatpush1.bf16.msra.mxu1 %v17034_v22  ;;  %11398 = vmatprep.subr.bf16.mxu0 %v17039_v34  ;;  %v17088_v22 = vld [vmem:[#allocation16 + $0x6a8] ss:$16 sps:$4 sm:$0xff]   ;;  %v17093_v34 = vld [vmem:[#allocation16 + $0x6c4] ss:$16 sps:$4 sm:$0xff]  }
 0x6f1   :  { %11562 = vmatprep.subr.bf16.mxu1 %v17042_v56  ;;  %v17096_v56 = vld [vmem:[#allocation16 + $0x6cc] ss:$16 sps:$4 sm:$0xff]  }
 0x6f3   :  { %11399 = vmatpush1.bf16.msra.mxu0 %v17037_v32  ;;  %v17091_v32 = vld [vmem:[#allocation16 + $0x6c0] ss:$16 sps:$4 sm:$0xff]  }
 0x6f4   :  { %11563 = vmatpush1.bf16.msra.mxu1 %v17040_v23  ;;  %11400 = vmatprep.subr.bf16.mxu0 %v17045_v0  ;;  %v17094_v23 = vld [vmem:[#allocation16 + $0x6c8] ss:$16 sps:$4 sm:$0xff]   ;;  %v17099_v0 = vld [vmem:[#allocation16 + $0x6e4] ss:$16 sps:$4 sm:$0xff]  }
 0x6f5   :  { %11564 = vmatprep.subr.bf16.mxu1 %v17048_v25  ;;  %v17102_v25 = vld [vmem:[#allocation16 + $0x6ec] ss:$16 sps:$4 sm:$0xff]  }
 0x6f7   :  { %11401 = vmatpush1.bf16.msra.mxu0 %v17043_v63  ;;  %v17097_v63 = vld [vmem:[#allocation16 + $0x6e0] ss:$16 sps:$4 sm:$0xff]  }
 0x6f8   :  { %11565 = vmatpush1.bf16.msra.mxu1 %v17046_v27  ;;  %11402 = vmatprep.subr.bf16.mxu0 %v17051_v29  ;;  %v17100_v27 = vld [vmem:[#allocation16 + $0x6e8] ss:$16 sps:$4 sm:$0xff]   ;;  %v17105_v29 = vld [vmem:[#allocation16 + $0x704] ss:$16 sps:$4 sm:$0xff]  }
 0x6f9   :  { %11566 = vmatprep.subr.bf16.mxu1 %v17054_v30  ;;  %v17108_v30 = vld [vmem:[#allocation16 + $0x70c] ss:$16 sps:$4 sm:$0xff]  }
 0x6fb   :  { %11403 = vmatpush1.bf16.msra.mxu0 %v17049_v8  ;;  %v17103_v8 = vld [vmem:[#allocation16 + $0x700] ss:$16 sps:$4 sm:$0xff]  }
 0x6fc   :  { %11567 = vmatpush1.bf16.msra.mxu1 %v17052_v37  ;;  %11413 = vmatprep.subr.bf16.mxu0 %v17057_v31  ;;  %v17106_v37 = vld [vmem:[#allocation16 + $0x708] ss:$16 sps:$4 sm:$0xff]   ;;  %v17111_v31 = vld [vmem:[#allocation16 + $0x724] ss:$16 sps:$4 sm:$0xff]  }
 0x6fd   :  { %11577 = vmatprep.subr.bf16.mxu1 %v17060_v36  ;;  %v17114_v36 = vld [vmem:[#allocation16 + $0x72c] ss:$16 sps:$4 sm:$0xff]  }
 0x711   :  { %v9545_v40 = vpop.f32.mrb[20].mxu0 }
 0x712   :  { %v16572_v17 = vadd.f32 %v9545_v40, %v6479_v38  ;;  %v18510_v43 = vpop.f32.mrb[20].mxu1  ;;  %v9547_v46 = vpop.f32.mrb[21].mxu0  ;;  %v17109_v38 = vld [vmem:[#allocation16 + $0x720] ss:$16 sps:$4 sm:$0xff]   ;;  %v17120_v40 = vld [vmem:[#allocation16 + $0x74c] ss:$16 sps:$4 sm:$0xff]  }
 0x713   :  { %v16573_v48 = vadd.f32 %v9547_v46, %v6483_v39  ;;  %v9711_v42 = vpop.f32.mrb[21].mxu1  ;;  %v9549_v6 = vpop.f32.mrb[22].mxu0  ;;  %v17112_v39 = vld [vmem:[#allocation16 + $0x728] ss:$16 sps:$4 sm:$0xff]  }
 0x714   :  { %v9720_v4 = vmax.f32 %v16572_v17, 0.0  ;;  %v16575_v49 = vadd.f32 %v9711_v42, %v6491_v26  ;;  %v9713_v50 = vpop.f32.mrb[22].mxu1  ;;  %v9550_v12 = vpop.f32.mrb[23].mxu0  ;;  %v17117_v26 = vld [vmem:[#allocation16 + $0x744] ss:$16 sps:$4 sm:$0xff]  }
 0x715   :  { %v9721_v44 = vmax.f32 %v16573_v48, 0.0  ;;  %v9714_v14 = vpop.f32.mrb[23].mxu1  ;;  %v17115_v17 = vld [vmem:[#allocation16 + $0x740] ss:$16 sps:$4 sm:$0xff]   ;;  %v17118_v46 = vld [vmem:[#allocation16 + $0x748] ss:$16 sps:$4 sm:$0xff]  }
 0x716   :  { %v9723_v15 = vmax.f32 %v16575_v49, 0.0  ;;  %v9984_v53 = vpack.c.bf16 %v9720_v4, %v9720_v4  ;;  %v17123_v48 = vld [vmem:[#allocation16 + $0x764] ss:$16 sps:$4 sm:$0xff]   ;;  %v17126_v42 = vld [vmem:[#allocation16 + $0x76c] ss:$16 sps:$4 sm:$0xff]  }
 0x717   :  { %v9985_v47 = vpack.c.bf16 %v9721_v44, %v9721_v44  ;;  %v17121_v6 = vld [vmem:[#allocation16 + $0x760] ss:$16 sps:$4 sm:$0xff]   ;;  %v17124_v4 = vld [vmem:[#allocation16 + $0x768] ss:$16 sps:$4 sm:$0xff]   ;;  %v17129_v49 = vld [vmem:[#allocation16 + $0x784] ss:$16 sps:$4 sm:$0xff]  }
 0x718   :  { %v9987_v54 = vpack.c.bf16 %v9723_v15, %v9723_v15  ;;  %v17132_v50 = vld [vmem:[#allocation16 + $0x78c] ss:$16 sps:$4 sm:$0xff]   ;;  %v17127_v12 = vld [vmem:[#allocation16 + $0x780] ss:$16 sps:$4 sm:$0xff]   ;;  %v17130_v44 = vld [vmem:[#allocation16 + $0x788] ss:$16 sps:$4 sm:$0xff]  }
 0x719   :  { %11404 = vmatprep.mubr.bf16.mxu0 %v9985_v47  ;;  %11568 = vmatprep.mubr.bf16.mxu1 %v9985_v47  ;;  %v17135_v14 = vld [vmem:[#allocation16 + $0x7a4] ss:$16 sps:$4 sm:$0xff]   ;;  %v17138_v15 = vld [vmem:[#allocation16 + $0x7ac] ss:$16 sps:$4 sm:$0xff]   ;;  %v17133_v47 = vld [vmem:[#allocation16 + $0x7a0] ss:$16 sps:$4 sm:$0xff]  }
 0x71a   :  { %11405 = vmatmul.mubr.bf16.vlgmr.msra.gmra.mrb[24].mxu0 %v9984_v53  ;;  %11569 = vmatmul.mubr.bf16.vlgmr.msra.gmra.mrb[24].mxu1 %v9984_v53 }
 0x71b   :  { %11414 = vmatpush1.bf16.msra.mxu0 %v17055_v51  ;;  %11578 = vmatpush1.bf16.msra.mxu1 %v17058_v52  ;;  %v17136_v51 = vld [vmem:[#allocation16 + $0x7a8] ss:$16 sps:$4 sm:$0xff]  }
 0x71c   :  { %11445 = vmatprep.mubr.bf16.mxu0 %v9987_v54  ;;  %11609 = vmatprep.mubr.bf16.mxu1 %v9987_v54  ;;  %v17565_v52 = vld [vmem:[#allocation14] sm:$0xff]  ;;  %v17139_v54 = vld [vmem:[#allocation16 + $0x7c0] ss:$16 sps:$4 sm:$0xff]  }
 0x71d   :  { %11415 = vmatprep.subr.bf16.mxu0 %v17063_v24  ;;  %11579 = vmatprep.subr.bf16.mxu1 %v17066_v28  ;;  %v6487_v53 = vrot.slane %v17565_v52, %v18375_v5  ;;  %v17141_v24 = vld [vmem:[#allocation16 + $0x7c4] ss:$16 sps:$4 sm:$0xff]   ;;  %v17144_v28 = vld [vmem:[#allocation16 + $0x7cc] ss:$16 sps:$4 sm:$0xff]  }
 0x71f   :  { %11416 = vmatpush1.bf16.msra.mxu0 %v17061_v1  ;;  %11580 = vmatpush1.bf16.msra.mxu1 %v17064_v58  ;;  %v17142_v1 = vld [vmem:[#allocation16 + $0x7c8] ss:$16 sps:$4 sm:$0xff]   ;;  %v16574_v58 = vadd.f32 %v18510_v43, %v6487_v53  ;;  %v11710_v53 = vld [vmem:[#allocation19 + $0x168] sm:$0xff] }
 0x720   :  { %11417 = vmatprep.subr.bf16.mxu0 %v17069_v61  ;;  %11581 = vmatprep.subr.bf16.mxu1 %v17072_v57  ;;  %v17147_v61 = vld [vmem:[#allocation16 + $0x7e4] ss:$16 sps:$4 sm:$0xff]   ;;  %v17150_v57 = vld [vmem:[#allocation16 + $0x7ec] ss:$16 sps:$4 sm:$0xff]  }
 0x723   :  { %11418 = vmatpush1.bf16.msra.mxu0 %v17067_v41  ;;  %11582 = vmatpush1.bf16.msra.mxu1 %v17070_v59  ;;  %v17145_v41 = vld [vmem:[#allocation16 + $0x7e0] ss:$16 sps:$4 sm:$0xff]   ;;  %v17148_v59 = vld [vmem:[#allocation16 + $0x7e8] ss:$16 sps:$4 sm:$0xff]  }
 0x724   :  { %11419 = vmatprep.subr.bf16.mxu0 %v17075_v60  ;;  %11583 = vmatprep.subr.bf16.mxu1 %v17078_v9  ;;  %v9722_v60 = vmax.f32 %v16574_v58, 0.0  ;;  %v11717_v58 = vld [vmem:[#allocation19 + $0x1a0] sm:$0xff] }
 0x726   :  { %v9986_v9 = vpack.c.bf16 %v9722_v60, %v9722_v60 }
 0x727   :  { %11420 = vmatpush1.bf16.msra.mxu0 %v17073_v2  ;;  %11584 = vmatpush1.bf16.msra.mxu1 %v17076_v3  ;;  %v11665_v2 = vld [vmem:[#allocation19] sm:$0xff] }
 0x728   :  { %11421 = vmatprep.subr.bf16.mxu0 %v17081_v11  ;;  %11585 = vmatprep.subr.bf16.mxu1 %v17084_v10  ;;  %v11669_v3 = vld [vmem:[#allocation19 + $0x20] sm:$0xff]  ;;  %v11666_v11 = vld [vmem:[#allocation19 + $0x8] sm:$0xff] }
 0x729   :  { %v16169_v43 = vcombine.high %v11665_v2, %v11669_v3  ;;  %v11670_v10 = vld [vmem:[#allocation19 + $0x28] sm:$0xff] }
 0x72b   :  { %11422 = vmatpush1.bf16.msra.mxu0 %v17079_v19  ;;  %11586 = vmatpush1.bf16.msra.mxu1 %v17082_v62  ;;  %v16168_v19 = vcombine.low %v11665_v2, %v11669_v3  ;;  %v16170_v62 = vcombine.low %v11666_v11, %v11670_v10  ;;  %v11721_v2 = vld [vmem:[#allocation19 + $0x1c0] sm:$0xff] }
 0x72c   :  { %11423 = vmatprep.subr.bf16.mxu0 %v17087_v55  ;;  %11587 = vmatprep.subr.bf16.mxu1 %v17090_v18  ;;  %v16171_v55 = vcombine.high %v11666_v11, %v11670_v10  ;;  %v11673_v18 = vld [vmem:[#allocation19 + $0x40] sm:$0xff]  ;;  %v11722_v11 = vld [vmem:[#allocation19 + $0x1c8] sm:$0xff] }
 0x72d   :  { %v11725_v3 = vld [vmem:[#allocation19 + $0x1e0] sm:$0xff]  ;;  %v11726_v10 = vld [vmem:[#allocation19 + $0x1e8] sm:$0xff] }
 0x72f   :  { %11424 = vmatpush1.bf16.msra.mxu0 %v17085_v21  ;;  %11588 = vmatpush1.bf16.msra.mxu1 %v17088_v22  ;;  %v11677_v21 = vld [vmem:[#allocation19 + $0x60] sm:$0xff]  ;;  %v11674_v22 = vld [vmem:[#allocation19 + $0x48] sm:$0xff] }
 0x730   :  { %11425 = vmatprep.subr.bf16.mxu0 %v17093_v34  ;;  %11589 = vmatprep.subr.bf16.mxu1 %v17096_v56  ;;  %v16177_v34 = vcombine.high %v11673_v18, %v11677_v21  ;;  %v11678_v56 = vld [vmem:[#allocation19 + $0x68] sm:$0xff] }
 0x733   :  { %11426 = vmatpush1.bf16.msra.mxu0 %v17091_v32  ;;  %11590 = vmatpush1.bf16.msra.mxu1 %v17094_v23  ;;  %v16176_v32 = vcombine.low %v11673_v18, %v11677_v21  ;;  %v16178_v23 = vcombine.low %v11674_v22, %v11678_v56  ;;  %v11729_v18 = vld [vmem:[#allocation19 + $0x200] sm:$0xff] }
 0x734   :  { %11427 = vmatprep.subr.bf16.mxu0 %v17099_v0  ;;  %11591 = vmatprep.subr.bf16.mxu1 %v17102_v25  ;;  %v16179_v0 = vcombine.high %v11674_v22, %v11678_v56  ;;  %v11681_v25 = vld [vmem:[#allocation19 + $0x80] sm:$0xff]  ;;  %v11730_v22 = vld [vmem:[#allocation19 + $0x208] sm:$0xff] }
 0x735   :  { %v11733_v21 = vld [vmem:[#allocation19 + $0x220] sm:$0xff]  ;;  %v11734_v56 = vld [vmem:[#allocation19 + $0x228] sm:$0xff] }
 0x737   :  { %11428 = vmatpush1.bf16.msra.mxu0 %v17097_v63  ;;  %11592 = vmatpush1.bf16.msra.mxu1 %v17100_v27  ;;  %v11685_v63 = vld [vmem:[#allocation19 + $0xa0] sm:$0xff]  ;;  %v11682_v27 = vld [vmem:[#allocation19 + $0x88] sm:$0xff] }
 0x738   :  { %11429 = vmatprep.subr.bf16.mxu0 %v17105_v29  ;;  %11593 = vmatprep.subr.bf16.mxu1 %v17108_v30  ;;  %v16185_v29 = vcombine.high %v11681_v25, %v11685_v63  ;;  %v11686_v30 = vld [vmem:[#allocation19 + $0xa8] sm:$0xff] }
 0x73b   :  { %11430 = vmatpush1.bf16.msra.mxu0 %v17103_v8  ;;  %11594 = vmatpush1.bf16.msra.mxu1 %v17106_v37  ;;  %v16184_v8 = vcombine.low %v11681_v25, %v11685_v63  ;;  %v16186_v37 = vcombine.low %v11682_v27, %v11686_v30  ;;  %v11737_v25 = vld [vmem:[#allocation19 + $0x240] sm:$0xff] }
 0x73c   :  { %11431 = vmatprep.subr.bf16.mxu0 %v17111_v31  ;;  %11595 = vmatprep.subr.bf16.mxu1 %v17114_v36  ;;  %v16187_v31 = vcombine.high %v11682_v27, %v11686_v30  ;;  %v11689_v36 = vld [vmem:[#allocation19 + $0xc0] sm:$0xff]  ;;  %v11738_v27 = vld [vmem:[#allocation19 + $0x248] sm:$0xff] }
 0x73d   :  { %v11741_v63 = vld [vmem:[#allocation19 + $0x260] sm:$0xff]  ;;  %v11742_v30 = vld [vmem:[#allocation19 + $0x268] sm:$0xff] }
 0x73f   :  { %11432 = vmatpush1.bf16.msra.mxu0 %v17109_v38  ;;  %11596 = vmatpush1.bf16.msra.mxu1 %v17112_v39  ;;  %v11693_v38 = vld [vmem:[#allocation19 + $0xe0] sm:$0xff]  ;;  %v11690_v39 = vld [vmem:[#allocation19 + $0xc8] sm:$0xff] }
 0x740   :  { %11433 = vmatprep.subr.bf16.mxu0 %v17117_v26  ;;  %11597 = vmatprep.subr.bf16.mxu1 %v17120_v40  ;;  %v16193_v26 = vcombine.high %v11689_v36, %v11693_v38  ;;  %v11694_v40 = vld [vmem:[#allocation19 + $0xe8] sm:$0xff] }
 0x743   :  { %11434 = vmatpush1.bf16.msra.mxu0 %v17115_v17  ;;  %11598 = vmatpush1.bf16.msra.mxu1 %v17118_v46  ;;  %v16192_v17 = vcombine.low %v11689_v36, %v11693_v38  ;;  %v16194_v46 = vcombine.low %v11690_v39, %v11694_v40  ;;  %v11745_v36 = vld [vmem:[#allocation19 + $0x280] sm:$0xff] }
 0x744   :  { %11435 = vmatprep.subr.bf16.mxu0 %v17123_v48  ;;  %11599 = vmatprep.subr.bf16.mxu1 %v17126_v42  ;;  %v16195_v48 = vcombine.high %v11690_v39, %v11694_v40  ;;  %v11697_v42 = vld [vmem:[#allocation19 + $0x100] sm:$0xff]  ;;  %v11746_v39 = vld [vmem:[#allocation19 + $0x288] sm:$0xff] }
 0x745   :  { %v11749_v38 = vld [vmem:[#allocation19 + $0x2a0] sm:$0xff]  ;;  %v11750_v40 = vld [vmem:[#allocation19 + $0x2a8] sm:$0xff] }
 0x747   :  { %11436 = vmatpush1.bf16.msra.mxu0 %v17121_v6  ;;  %11600 = vmatpush1.bf16.msra.mxu1 %v17124_v4  ;;  %v11701_v6 = vld [vmem:[#allocation19 + $0x120] sm:$0xff]  ;;  %v11698_v4 = vld [vmem:[#allocation19 + $0x108] sm:$0xff] }
 0x748   :  { %11437 = vmatprep.subr.bf16.mxu0 %v17129_v49  ;;  %11601 = vmatprep.subr.bf16.mxu1 %v17132_v50  ;;  %v16201_v49 = vcombine.high %v11697_v42, %v11701_v6  ;;  %v11702_v50 = vld [vmem:[#allocation19 + $0x128] sm:$0xff] }
 0x74b   :  { %11438 = vmatpush1.bf16.msra.mxu0 %v17127_v12  ;;  %11602 = vmatpush1.bf16.msra.mxu1 %v17130_v44  ;;  %v16200_v12 = vcombine.low %v11697_v42, %v11701_v6  ;;  %v16202_v44 = vcombine.low %v11698_v4, %v11702_v50  ;;  %v11753_v42 = vld [vmem:[#allocation19 + $0x2c0] sm:$0xff] }
 0x74c   :  { %11439 = vmatprep.subr.bf16.mxu0 %v17135_v14  ;;  %11603 = vmatprep.subr.bf16.mxu1 %v17138_v15  ;;  %v16203_v14 = vcombine.high %v11698_v4, %v11702_v50  ;;  %v11705_v15 = vld [vmem:[#allocation19 + $0x140] sm:$0xff]  ;;  %v11754_v4 = vld [vmem:[#allocation19 + $0x2c8] sm:$0xff] }
 0x74d   :  { %v11757_v6 = vld [vmem:[#allocation19 + $0x2e0] sm:$0xff] }
 0x74e   :  { %v16257_v50 = vcombine.high %v11753_v42, %v11757_v6 }
 0x74f   :  { %11440 = vmatpush1.bf16.msra.mxu0 %v17133_v47  ;;  %11604 = vmatpush1.bf16.msra.mxu1 %v17136_v51  ;;  %v11709_v47 = vld [vmem:[#allocation19 + $0x160] sm:$0xff]  ;;  %v11706_v51 = vld [vmem:[#allocation19 + $0x148] sm:$0xff] }
 0x750   :  { %11441 = vmatprep.subr.bf16.mxu0 %v17141_v24  ;;  %11605 = vmatprep.subr.bf16.mxu1 %v17144_v28  ;;  %v16209_v52 = vcombine.high %v11705_v15, %v11709_v47  ;;  %v16208_v24 = vcombine.low %v11705_v15, %v11709_v47  ;;  %v16210_v28 = vcombine.low %v11706_v51, %v11710_v53 }
 0x753   :  { %11442 = vmatpush1.bf16.msra.mxu0 %v17139_v54  ;;  %11606 = vmatpush1.bf16.msra.mxu1 %v17142_v1  ;;  %v16211_v54 = vcombine.high %v11706_v51, %v11710_v53  ;;  %v11713_v1 = vld [vmem:[#allocation19 + $0x180] sm:$0xff]  ;;  %v11766_v53 = vld [vmem:[#allocation19 + $0x328] sm:$0xff] }
 0x754   :  { %11443 = vmatprep.subr.bf16.mxu0 %v17147_v61  ;;  %11607 = vmatprep.subr.bf16.mxu1 %v17150_v57  ;;  %v11714_v61 = vld [vmem:[#allocation19 + $0x188] sm:$0xff]  ;;  %v16217_v57 = vcombine.high %v11713_v1, %v11717_v58 }
 0x757   :  { %11444 = vmatpush1.bf16.msra.mxu0 %v17145_v41  ;;  %11608 = vmatpush1.bf16.msra.mxu1 %v17148_v59  ;;  %v11718_v41 = vld [vmem:[#allocation19 + $0x1a8] sm:$0xff]  ;;  %v16216_v59 = vcombine.low %v11713_v1, %v11717_v58 }
 0x758   :  { %12477 = vmatprep.subr.bf16.mxu0 %v16169_v43  ;;  %12518 = vmatprep.subr.bf16.mxu1 %v16171_v55  ;;  %v16218_v60 = vcombine.low %v11714_v61, %v11718_v41  ;;  %v16225_v43 = vcombine.high %v11721_v2, %v11725_v3  ;;  %v16227_v55 = vcombine.high %v11722_v11, %v11726_v10  ;;  %v11770_v1 = vld [vmem:[#allocation19 + $0x348] sm:$0xff] }
 0x759   :  { %v11774_v58 = vld [vmem:[#allocation19 + $0x368] sm:$0xff] }
 0x75a   :  { %11446 = vmatmul.mubr.bf16.vlgmr.msra.gmra.mrb[24].mxu0 %v9986_v9  ;;  %11610 = vmatmul.mubr.bf16.vlgmr.msra.gmra.mrb[24].mxu1 %v9986_v9  ;;  %v16219_v9 = vcombine.high %v11714_v61, %v11718_v41 }
 0x75b   :  { %12478 = vmatpush1.bf16.msra.mxu0 %v16168_v19  ;;  %12519 = vmatpush1.bf16.msra.mxu1 %v16170_v62  ;;  %v16224_v19 = vcombine.low %v11721_v2, %v11725_v3  ;;  %v16226_v62 = vcombine.low %v11722_v11, %v11726_v10  ;;  %v11778_v2 = vld [vmem:[#allocation19 + $0x388] sm:$0xff] }
 0x75c   :  { %12479 = vmatprep.subr.bf16.mxu0 %v16177_v34  ;;  %12520 = vmatprep.subr.bf16.mxu1 %v16179_v0  ;;  %v16233_v34 = vcombine.high %v11729_v18, %v11733_v21  ;;  %v16235_v0 = vcombine.high %v11730_v22, %v11734_v56  ;;  %v11782_v3 = vld [vmem:[#allocation19 + $0x3a8] sm:$0xff] }
 0x75f   :  { %12480 = vmatpush1.bf16.msra.mxu0 %v16176_v32  ;;  %12521 = vmatpush1.bf16.msra.mxu1 %v16178_v23  ;;  %v16232_v32 = vcombine.low %v11729_v18, %v11733_v21  ;;  %v16234_v23 = vcombine.low %v11730_v22, %v11734_v56  ;;  %v11786_v18 = vld [vmem:[#allocation19 + $0x3c8] sm:$0xff] }
 0x760   :  { %12481 = vmatprep.subr.bf16.mxu0 %v16185_v29  ;;  %12522 = vmatprep.subr.bf16.mxu1 %v16187_v31  ;;  %v16241_v29 = vcombine.high %v11737_v25, %v11741_v63  ;;  %v16243_v31 = vcombine.high %v11738_v27, %v11742_v30  ;;  %v11790_v21 = vld [vmem:[#allocation19 + $0x3e8] sm:$0xff] }
 0x763   :  { %12482 = vmatpush1.bf16.msra.mxu0 %v16184_v8  ;;  %12523 = vmatpush1.bf16.msra.mxu1 %v16186_v37  ;;  %v16240_v8 = vcombine.low %v11737_v25, %v11741_v63  ;;  %v16242_v37 = vcombine.low %v11738_v27, %v11742_v30  ;;  %v18514_v25 = vld [vmem:[#allocation19 + $0x10] sm:$0xff]  ;;  %v18518_v27 = vld [vmem:[#allocation19 + $0x18] sm:$0xff] }
 0x764   :  { %12483 = vmatprep.subr.bf16.mxu0 %v16193_v26  ;;  %12524 = vmatprep.subr.bf16.mxu1 %v16195_v48  ;;  %v16249_v26 = vcombine.high %v11745_v36, %v11749_v38  ;;  %v16251_v48 = vcombine.high %v11746_v39, %v11750_v40  ;;  %v18516_v63 = vld [vmem:[#allocation19 + $0x30] sm:$0xff]  ;;  %v18522_v30 = vld [vmem:[#allocation19 + $0x38] sm:$0xff] }
 0x767   :  { %12484 = vmatpush1.bf16.msra.mxu0 %v16192_v17  ;;  %12525 = vmatpush1.bf16.msra.mxu1 %v16194_v46  ;;  %v16248_v17 = vcombine.low %v11745_v36, %v11749_v38  ;;  %v16250_v46 = vcombine.low %v11746_v39, %v11750_v40  ;;  %v9988_v36 = vld [vmem:[#allocation17] sm:$0xf] }
 0x768   :  { %12485 = vmatprep.subr.bf16.mxu0 %v16201_v49  ;;  %12526 = vmatprep.subr.bf16.mxu1 %v16203_v14  ;;  %v16256_v49 = vcombine.low %v11753_v42, %v11757_v6  ;;  %v11765_v14 = vld [vmem:[#allocation19 + $0x320] sm:$0xff]  ;;  %v9993_v38 = vrot.slane %v9988_v36, %v18305_v33  ;;  %v10001_v39 = vrot.slane %v9988_v36, %v18336_v45 }
 0x769   :  { %v10005_v40 = vrot.slane %v9988_v36, %v18313_v7 }
 0x76b   :  { %12486 = vmatpush1.bf16.msra.mxu0 %v16200_v12  ;;  %12527 = vmatpush1.bf16.msra.mxu1 %v16202_v44  ;;  %v11758_v12 = vld [vmem:[#allocation19 + $0x2e8] sm:$0xff]  ;;  %v11761_v44 = vld [vmem:[#allocation19 + $0x300] sm:$0xff] }
 0x76c   :  { %12487 = vmatprep.subr.bf16.mxu0 %v16209_v52  ;;  %12528 = vmatprep.subr.bf16.mxu1 %v16211_v54  ;;  %v16258_v15 = vcombine.low %v11754_v4, %v11758_v12  ;;  %v16259_v47 = vcombine.high %v11754_v4, %v11758_v12  ;;  %v16265_v51 = vcombine.high %v11761_v44, %v11765_v14  ;;  %v11762_v52 = vld [vmem:[#allocation19 + $0x308] sm:$0xff]  ;;  %v11773_v54 = vld [vmem:[#allocation19 + $0x360] sm:$0xff] }
 0x76d   :  { %v16264_v61 = vcombine.low %v11761_v44, %v11765_v14 }
 0x76f   :  { %12488 = vmatpush1.bf16.msra.mxu0 %v16208_v24  ;;  %12529 = vmatpush1.bf16.msra.mxu1 %v16210_v28  ;;  %v11769_v24 = vld [vmem:[#allocation19 + $0x340] sm:$0xff]  ;;  %v16267_v28 = vcombine.high %v11762_v52, %v11766_v53 }
 0x770   :  { %12489 = vmatprep.subr.bf16.mxu0 %v16217_v57  ;;  %12530 = vmatprep.subr.bf16.mxu1 %v16219_v9  ;;  %v16266_v57 = vcombine.low %v11762_v52, %v11766_v53  ;;  %v16273_v41 = vcombine.high %v11769_v24, %v11773_v54  ;;  %v11781_v9 = vld [vmem:[#allocation19 + $0x3a0] sm:$0xff]  ;;  %v16272_v11 = vcombine.low %v11769_v24, %v11773_v54 }
 0x773   :  { %12490 = vmatpush1.bf16.msra.mxu0 %v16216_v59  ;;  %12531 = vmatpush1.bf16.msra.mxu1 %v16218_v60  ;;  %v16275_v59 = vcombine.high %v11770_v1, %v11774_v58  ;;  %v11777_v60 = vld [vmem:[#allocation19 + $0x380] sm:$0xff] }
 0x774   :  { %12491 = vmatprep.subr.bf16.mxu0 %v16225_v43  ;;  %12532 = vmatprep.subr.bf16.mxu1 %v16227_v55  ;;  %v16274_v43 = vcombine.low %v11770_v1, %v11774_v58  ;;  %v16281_v10 = vcombine.high %v11777_v60, %v11781_v9  ;;  %v11789_v55 = vld [vmem:[#allocation19 + $0x3e0] sm:$0xff]  ;;  %v16280_v22 = vcombine.low %v11777_v60, %v11781_v9 }
 0x777   :  { %12492 = vmatpush1.bf16.msra.mxu0 %v16224_v19  ;;  %12533 = vmatpush1.bf16.msra.mxu1 %v16226_v62  ;;  %v16283_v19 = vcombine.high %v11778_v2, %v11782_v3  ;;  %v11785_v62 = vld [vmem:[#allocation19 + $0x3c0] sm:$0xff] }
 0x778   :  { %12493 = vmatprep.subr.bf16.mxu0 %v16233_v34  ;;  %12534 = vmatprep.subr.bf16.mxu1 %v16235_v0  ;;  %v16282_v34 = vcombine.low %v11778_v2, %v11782_v3  ;;  %v16289_v56 = vcombine.high %v11785_v62, %v11789_v55  ;;  %v16290_v0 = vcombine.low %v11786_v18, %v11790_v21 }
 0x77b   :  { %12494 = vmatpush1.bf16.msra.mxu0 %v16232_v32  ;;  %12535 = vmatpush1.bf16.msra.mxu1 %v16234_v23  ;;  %v16291_v32 = vcombine.high %v11786_v18, %v11790_v21  ;;  %v16288_v23 = vcombine.low %v11785_v62, %v11789_v55 }
 0x77c   :  { %12495 = vmatprep.subr.bf16.mxu0 %v16241_v29  ;;  %12536 = vmatprep.subr.bf16.mxu1 %v16243_v31  ;;  %v16173_v29 = vcombine.high %v18514_v25, %v18516_v63  ;;  %v16175_v31 = vcombine.high %v18518_v27, %v18522_v30 }
 0x77f   :  { %12496 = vmatpush1.bf16.msra.mxu0 %v16240_v8  ;;  %12537 = vmatpush1.bf16.msra.mxu1 %v16242_v37  ;;  %v16172_v8 = vcombine.low %v18514_v25, %v18516_v63  ;;  %v16174_v37 = vcombine.low %v18518_v27, %v18522_v30 }
 0x780   :  { %12497 = vmatprep.subr.bf16.mxu0 %v16249_v26  ;;  %12538 = vmatprep.subr.bf16.mxu1 %v16251_v48  ;;  %v9997_v26 = vrot.slane %v9988_v36, %v18310_v35 }
 0x783   :  { %12498 = vmatpush1.bf16.msra.mxu0 %v16248_v17  ;;  %12539 = vmatpush1.bf16.msra.mxu1 %v16250_v46 }
 0x784   :  { %12499 = vmatprep.subr.bf16.mxu0 %v16257_v50  ;;  %12540 = vmatprep.subr.bf16.mxu1 %v16259_v47 }
 0x787   :  { %12500 = vmatpush1.bf16.msra.mxu0 %v16256_v49  ;;  %12541 = vmatpush1.bf16.msra.mxu1 %v16258_v15 }
 0x788   :  { %12501 = vmatprep.subr.bf16.mxu0 %v16265_v51  ;;  %12542 = vmatprep.subr.bf16.mxu1 %v16267_v28 }
 0x78b   :  { %12502 = vmatpush1.bf16.msra.mxu0 %v16264_v61  ;;  %12543 = vmatpush1.bf16.msra.mxu1 %v16266_v57 }
 0x78c   :  { %12503 = vmatprep.subr.bf16.mxu0 %v16273_v41  ;;  %12544 = vmatprep.subr.bf16.mxu1 %v16275_v59 }
 0x78f   :  { %12504 = vmatpush1.bf16.msra.mxu0 %v16272_v11  ;;  %12545 = vmatpush1.bf16.msra.mxu1 %v16274_v43 }
 0x790   :  { %12505 = vmatprep.subr.bf16.mxu0 %v16281_v10  ;;  %12546 = vmatprep.subr.bf16.mxu1 %v16283_v19 }
 0x793   :  { %12506 = vmatpush1.bf16.msra.mxu0 %v16280_v22  ;;  %12547 = vmatpush1.bf16.msra.mxu1 %v16282_v34 }
 0x794   :  { %12507 = vmatprep.subr.bf16.mxu0 %v16289_v56  ;;  %12548 = vmatprep.subr.bf16.mxu1 %v16291_v32 }
 0x797   :  { %12508 = vmatpush1.bf16.msra.mxu0 %v16288_v23  ;;  %12549 = vmatpush1.bf16.msra.mxu1 %v16290_v0 }
 0x798   :  { %12559 = vmatprep.subr.bf16.mxu0 %v16173_v29  ;;  %12600 = vmatprep.subr.bf16.mxu1 %v16175_v31 }
 0x82d   :  { %v11447_v17 = vpop.f32.mrb[24].mxu0  ;;  %v11611_v46 = vpop.f32.mrb[24].mxu1 }
 0x82e   :  { %v16576_v48 = vadd.f32 %v11447_v17, %v9993_v38  ;;  %v16578_v42 = vadd.f32 %v11611_v46, %v10001_v39  ;;  %v11449_v6 = vpop.f32.mrb[25].mxu0  ;;  %v11613_v4 = vpop.f32.mrb[25].mxu1 }
 0x82f   :  { %v16577_v49 = vadd.f32 %v11449_v6, %v9997_v26  ;;  %v16579_v50 = vadd.f32 %v11613_v4, %v10005_v40  ;;  %v11451_v12 = vpop.f32.mrb[26].mxu0  ;;  %v11615_v44 = vpop.f32.mrb[26].mxu1  ;;  %v11648_v26 = vld [vmem:[#allocation5] sm:$0xff]  ;;  %v11675_v4 = vld [vmem:[#allocation19 + $0x50] sm:$0xff] }
 0x830   :  { %v11620_v14 = vand.u32 2147483647, %v16578_v42  ;;  %v11452_v15 = vpop.f32.mrb[27].mxu0  ;;  %v11616_v47 = vpop.f32.mrb[27].mxu1  ;;  %v11618_v62 = vmax.f32 %v16578_v42, 0.0  ;;  %v11676_v12 = vld [vmem:[#allocation19 + $0x58] sm:$0xff] }
 0x831   :  { %v14575_v51 = vcombine.low %v16576_v48, %v16577_v49  ;;  %v11621_v52 = vand.u32 2147483647, %v16579_v50  ;;  %v11619_v22 = vmax.f32 %v16579_v50, 0.0  ;;  %v11679_v50 = vld [vmem:[#allocation19 + $0x70] sm:$0xff]  ;;  %v11680_v44 = vld [vmem:[#allocation19 + $0x78] sm:$0xff] }
 0x832   :  { %v11622_v53 = vsub.f32 0.0, %v11620_v14  ;;  %v11683_v47 = vld [vmem:[#allocation19 + $0x90] sm:$0xff] }
 0x833   :  { %14577 = vst [vmem:[#allocation26] sm:$0xff] %v14575_v51  ;;  %v11623_v24 = vsub.f32 0.0, %v11621_v52  ;;  %v16181_v51 = vcombine.high %v11675_v4, %v11679_v50  ;;  %v16183_v52 = vcombine.high %v11676_v12, %v11680_v44 }
 0x834   :  { %v11624_v28 = vmul.f32 1.442695, %v11622_v53  ;;  %v11687_v53 = vld [vmem:[#allocation19 + $0xb0] sm:$0xff] }
 0x835   :  { %v11626_v54 = vmul.f32 1.442695, %v11623_v24  ;;  %v11684_v24 = vld [vmem:[#allocation19 + $0x98] sm:$0xff]  ;;  %v16188_v25 = vcombine.low %v11683_v47, %v11687_v53 }
 0x836   :  { %17535 = vpow2.f32 %v11624_v28  ;;  %v11688_v28 = vld [vmem:[#allocation19 + $0xb8] sm:$0xff] }
 0x837   :  { %17537 = vpow2.f32 %v11626_v54  ;;  %v16189_v54 = vcombine.high %v11683_v47, %v11687_v53  ;;  %v16190_v63 = vcombine.low %v11684_v24, %v11688_v28  ;;  %v11739_v53 = vld [vmem:[#allocation19 + $0x250] sm:$0xff] }
 0x840   :  { %v17536_v1 = vpop.eup %17535 }
 0x841   :  { %v17538_v58 = vpop.eup %17537  ;;  %v11628_v61 = vadd.f32 1.0, %v17536_v1  ;;  %v11631_v41 = vmul.f32 -0.5, %v17536_v1  ;;  %v11634_v9 = vand.u32 2147483647, %v17536_v1 }
 0x842   :  { %v11637_v57 = vadd.f32 1.0, %v17538_v58  ;;  %v11640_v59 = vmul.f32 -0.5, %v17538_v58  ;;  %v11643_v3 = vand.u32 2147483647, %v17538_v58 }
 0x843   :  { %17539 = vlog2.f32 %v11628_v61  ;;  %v11632_v60 = vadd.f32 1.0, %v11631_v41  ;;  %vm11635_vm0 = vcmp.lt.f32.partialorder %v11634_v9, 0.0004427343  ;;  %v11695_v61 = vld [vmem:[#allocation19 + $0xf0] sm:$0xff]  ;;  %v11696_v41 = vld [vmem:[#allocation19 + $0xf8] sm:$0xff] }
 0x844   :  { %17541 = vlog2.f32 %v11637_v57  ;;  %v11641_v2 = vadd.f32 1.0, %v11640_v59  ;;  %vm11644_vm1 = vcmp.lt.f32.partialorder %v11643_v3, 0.0004427343  ;;  %v11692_v57 = vld [vmem:[#allocation19 + $0xd8] sm:$0xff] }
 0x845   :  { %v11633_v19 = vmul.f32 %v17536_v1, %v11632_v60  ;;  %v16191_v1 = vcombine.high %v11684_v24, %v11688_v28  ;;  %v16199_v30 = vcombine.high %v11692_v57, %v11696_v41  ;;  %v11700_v59 = vld [vmem:[#allocation19 + $0x118] sm:$0xff]  ;;  %v11743_v24 = vld [vmem:[#allocation19 + $0x270] sm:$0xff] }
 0x846   :  { %v11642_v18 = vmul.f32 %v17538_v58, %v11641_v2  ;;  %v11691_v58 = vld [vmem:[#allocation19 + $0xd0] sm:$0xff]  ;;  %v11704_v60 = vld [vmem:[#allocation19 + $0x138] sm:$0xff]  ;;  %v16198_v2 = vcombine.low %v11692_v57, %v11696_v41 }
 0x847   :  { %v16197_v27 = vcombine.high %v11691_v58, %v11695_v61  ;;  %v16196_v9 = vcombine.low %v11691_v58, %v11695_v61  ;;  %v11740_v28 = vld [vmem:[#allocation19 + $0x258] sm:$0xff]  ;;  %v11747_v61 = vld [vmem:[#allocation19 + $0x290] sm:$0xff] }
 0x848   :  { %v11751_v57 = vld [vmem:[#allocation19 + $0x2b0] sm:$0xff]  ;;  %v11748_v41 = vld [vmem:[#allocation19 + $0x298] sm:$0xff] }
 0x84d   :  { %v17540_v11 = vpop.eup %17539 }
 0x84e   :  { %v17542_v43 = vpop.eup %17541  ;;  %v11630_v10 = vmul.f32 0.6931472, %v17540_v11  ;;  %v16207_v11 = vcombine.high %v11700_v59, %v11704_v60 }
 0x84f   :  { %v11639_v55 = vmul.f32 0.6931472, %v17542_v43  ;;  %v11707_v43 = vld [vmem:[#allocation19 + $0x150] sm:$0xff] }
 0x850   :  { %v11636_v21 = vsel %vm11635_vm0, %v11633_v19, %v11630_v10  ;;  %v11711_v10 = vld [vmem:[#allocation19 + $0x170] sm:$0xff]  ;;  %v11708_v19 = vld [vmem:[#allocation19 + $0x158] sm:$0xff] }
 0x851   :  { %v11646_v34 = vadd.f32 %v11636_v21, %v11618_v62  ;;  %v11645_v56 = vsel %vm11644_vm1, %v11642_v18, %v11639_v55  ;;  %v11712_v62 = vld [vmem:[#allocation19 + $0x178] sm:$0xff]  ;;  %v16206_v18 = vcombine.low %v11700_v59, %v11704_v60  ;;  %v16213_v21 = vcombine.high %v11707_v43, %v11711_v10  ;;  %v11759_v59 = vld [vmem:[#allocation19 + $0x2f0] sm:$0xff] }
 0x852   :  { %v11647_v32 = vadd.f32 %v11645_v56, %v11619_v22  ;;  %v16215_v22 = vcombine.high %v11708_v19, %v11712_v62  ;;  %v11719_v56 = vld [vmem:[#allocation19 + $0x1b0] sm:$0xff]  ;;  %v11756_v60 = vld [vmem:[#allocation19 + $0x2d8] sm:$0xff] }
 0x853   :  { %v11649_v23 = vmul.f32 0.5, %v11646_v34 }
 0x854   :  { %v11650_v0 = vmul.f32 0.5, %v11647_v32  ;;  %v14580_v29 = vcombine.low %v11646_v34, %v11647_v32  ;;  %v11715_v34 = vld [vmem:[#allocation19 + $0x190] sm:$0xff]  ;;  %v11716_v32 = vld [vmem:[#allocation19 + $0x198] sm:$0xff] }
 0x855   :  { %v11651_v31 = vmul.f32 1.442695, %v11649_v23  ;;  %v11720_v23 = vld [vmem:[#allocation19 + $0x1b8] sm:$0xff] }
 0x856   :  { %v11653_v36 = vmul.f32 1.442695, %v11650_v0  ;;  %14582 = vst [vmem:[#allocation28] sm:$0xff] %v14580_v29  ;;  %v16212_v0 = vcombine.low %v11707_v43, %v11711_v10  ;;  %v16214_v29 = vcombine.low %v11708_v19, %v11712_v62  ;;  %v11763_v10 = vld [vmem:[#allocation19 + $0x310] sm:$0xff]  ;;  %v11764_v62 = vld [vmem:[#allocation19 + $0x318] sm:$0xff] }
 0x857   :  { %17543 = vpow2.f32 %v11651_v31  ;;  %v16221_v31 = vcombine.high %v11715_v34, %v11719_v56  ;;  %v11767_v19 = vld [vmem:[#allocation19 + $0x330] sm:$0xff] }
 0x858   :  { %17545 = vpow2.f32 %v11653_v36  ;;  %v16223_v36 = vcombine.high %v11716_v32, %v11720_v23 }
 0x861   :  { %v17544_v38 = vpop.eup %17543 }
 0x862   :  { %v17546_v39 = vpop.eup %17545 }
 0x863   :  { %v11657_v40 = vcombine.low %v17544_v38, %v17546_v39  ;;  %v11723_v38 = vld [vmem:[#allocation19 + $0x1d0] sm:$0xff] }
 0x864   :  { %v11727_v39 = vld [vmem:[#allocation19 + $0x1f0] sm:$0xff] }
 0x865   :  { %v11659_v17 = vmul.f32 %v11657_v40, %v11648_v26  ;;  %v11724_v26 = vld [vmem:[#allocation19 + $0x1d8] sm:$0xff] }
 0x866   :  { %v11728_v40 = vld [vmem:[#allocation19 + $0x1f8] sm:$0xff] }
 0x867   :  { %v11661_v46 = vcombine.high %v11659_v17, %v11659_v17  ;;  %v11663_v42 = vadd.f32 %v16576_v48, %v11659_v17  ;;  %v16180_v48 = vcombine.low %v11675_v4, %v11679_v50  ;;  %v16220_v17 = vcombine.low %v11715_v34, %v11719_v56  ;;  %v11731_v4 = vld [vmem:[#allocation19 + $0x210] sm:$0xff] }
 0x868   :  { %v11735_v50 = vld [vmem:[#allocation19 + $0x230] sm:$0xff]  ;;  %v16230_v47 = vcombine.low %v11724_v26, %v11728_v40 }
 0x869   :  { %v11664_v6 = vadd.f32 %v16577_v49, %v11661_v46  ;;  %v18534_v15 = vpack.c.bf16 %v11663_v42, %v11663_v42  ;;  %v16182_v49 = vcombine.low %v11676_v12, %v11680_v44  ;;  %v16222_v46 = vcombine.low %v11716_v32, %v11720_v23  ;;  %v11732_v12 = vld [vmem:[#allocation19 + $0x218] sm:$0xff]  ;;  %v11771_v56 = vld [vmem:[#allocation19 + $0x350] sm:$0xff] }
 0x86a   :  { %v16229_v42 = vcombine.high %v11723_v38, %v11727_v39  ;;  %v11736_v44 = vld [vmem:[#allocation19 + $0x238] sm:$0xff]  ;;  %v11775_v32 = vld [vmem:[#allocation19 + $0x370] sm:$0xff] }
 0x86b   :  { %v11794_v14 = vpack.c.bf16 %v11664_v6, %v11664_v6  ;;  %v16231_v6 = vcombine.high %v11724_v26, %v11728_v40  ;;  %v11772_v23 = vld [vmem:[#allocation19 + $0x358] sm:$0xff]  ;;  %v11783_v26 = vld [vmem:[#allocation19 + $0x3b0] sm:$0xff] }
 0x86c   :  { %v11780_v40 = vld [vmem:[#allocation19 + $0x398] sm:$0xff] }
 0x86d   :  { %12509 = vmatprep.mubr.bf16.mxu0 %v11794_v14  ;;  %12550 = vmatprep.mubr.bf16.mxu1 %v11794_v14 }
 0x86e   :  { %12510 = vmatmul.mubr.bf16.vlgmr.msra.gmra.mrb[28].mxu0 %v18534_v15  ;;  %12551 = vmatmul.mubr.bf16.vlgmr.msra.gmra.mrb[28].mxu1 %v18534_v15 }
 0x86f   :  { %12560 = vmatpush1.bf16.msra.mxu0 %v16172_v8  ;;  %12601 = vmatpush1.bf16.msra.mxu1 %v16174_v37  ;;  %v11699_v8 = vld [vmem:[#allocation19 + $0x110] sm:$0xff] }
 0x870   :  { %12591 = vmatprep.mubr.bf16.mxu0 %v11794_v14  ;;  %12632 = vmatprep.mubr.bf16.mxu1 %v11794_v14  ;;  %v11703_v37 = vld [vmem:[#allocation19 + $0x130] sm:$0xff]  ;;  %v16228_v14 = vcombine.low %v11723_v38, %v11727_v39 }
 0x871   :  { %12561 = vmatprep.subr.bf16.mxu0 %v16181_v51  ;;  %12602 = vmatprep.subr.bf16.mxu1 %v16183_v52  ;;  %v16205_v3 = vcombine.high %v11699_v8, %v11703_v37  ;;  %v16204_v55 = vcombine.low %v11699_v8, %v11703_v37  ;;  %v16237_v51 = vcombine.high %v11731_v4, %v11735_v50  ;;  %v11755_v37 = vld [vmem:[#allocation19 + $0x2d0] sm:$0xff] }
 0x872   :  { %v16239_v52 = vcombine.high %v11732_v12, %v11736_v44  ;;  %v11779_v39 = vld [vmem:[#allocation19 + $0x390] sm:$0xff] }
 0x873   :  { %12562 = vmatpush1.bf16.msra.mxu0 %v16180_v48  ;;  %12603 = vmatpush1.bf16.msra.mxu1 %v16182_v49  ;;  %v11744_v48 = vld [vmem:[#allocation19 + $0x278] sm:$0xff]  ;;  %v16236_v49 = vcombine.low %v11731_v4, %v11735_v50  ;;  %v11787_v50 = vld [vmem:[#allocation19 + $0x3d0] sm:$0xff] }
 0x874   :  { %12563 = vmatprep.subr.bf16.mxu0 %v16189_v54  ;;  %12604 = vmatprep.subr.bf16.mxu1 %v16191_v1  ;;  %v16238_v54 = vcombine.low %v11732_v12, %v11736_v44  ;;  %v16245_v1 = vcombine.high %v11739_v53, %v11743_v24  ;;  %v16247_v58 = vcombine.high %v11740_v28, %v11744_v48  ;;  %v11791_v12 = vld [vmem:[#allocation19 + $0x3f0] sm:$0xff]  ;;  %v11788_v44 = vld [vmem:[#allocation19 + $0x3d8] sm:$0xff] }
 0x877   :  { %12564 = vmatpush1.bf16.msra.mxu0 %v16188_v25  ;;  %12605 = vmatpush1.bf16.msra.mxu1 %v16190_v63  ;;  %v11752_v25 = vld [vmem:[#allocation19 + $0x2b8] sm:$0xff]  ;;  %v16244_v63 = vcombine.low %v11739_v53, %v11743_v24  ;;  %v16292_v24 = vcombine.low %v11787_v50, %v11791_v12 }
 0x878   :  { %12565 = vmatprep.subr.bf16.mxu0 %v16197_v27  ;;  %12606 = vmatprep.subr.bf16.mxu1 %v16199_v30  ;;  %v16246_v27 = vcombine.low %v11740_v28, %v11744_v48  ;;  %v16253_v30 = vcombine.high %v11747_v61, %v11751_v57  ;;  %v16255_v8 = vcombine.high %v11748_v41, %v11752_v25  ;;  %v17153_v48 = vld [vmem:[#allocation22 + $0x4] ss:$16 sps:$4 sm:$0xff]  }
 0x87b   :  { %12566 = vmatpush1.bf16.msra.mxu0 %v16196_v9  ;;  %12607 = vmatpush1.bf16.msra.mxu1 %v16198_v2  ;;  %v11760_v9 = vld [vmem:[#allocation19 + $0x2f8] sm:$0xff]  ;;  %v16252_v2 = vcombine.low %v11747_v61, %v11751_v57  ;;  %v17162_v61 = vld [vmem:[#allocation22 + $0x2c] ss:$16 sps:$4 sm:$0xff]  }
 0x87c   :  { %12567 = vmatprep.subr.bf16.mxu0 %v16205_v3  ;;  %12608 = vmatprep.subr.bf16.mxu1 %v16207_v11  ;;  %v16254_v3 = vcombine.low %v11748_v41, %v11752_v25  ;;  %v16261_v11 = vcombine.high %v11755_v37, %v11759_v59  ;;  %v16263_v43 = vcombine.high %v11756_v60, %v11760_v9  ;;  %v17157_v57 = vld [vmem:[#allocation22 + $0x20] ss:$16 sps:$4 sm:$0xff]   ;;  %v17160_v41 = vld [vmem:[#allocation22 + $0x28] ss:$16 sps:$4 sm:$0xff]   ;;  %v17165_v25 = vld [vmem:[#allocation22 + $0x44] ss:$16 sps:$4 sm:$0xff]  }
 0x87f   :  { %12568 = vmatpush1.bf16.msra.mxu0 %v16204_v55  ;;  %12609 = vmatpush1.bf16.msra.mxu1 %v16206_v18  ;;  %v11768_v55 = vld [vmem:[#allocation19 + $0x338] sm:$0xff]  ;;  %v16260_v18 = vcombine.low %v11755_v37, %v11759_v59  ;;  %v17174_v37 = vld [vmem:[#allocation22 + $0x6c] ss:$16 sps:$4 sm:$0xff]  }
 0x880   :  { %12569 = vmatprep.subr.bf16.mxu0 %v16213_v21  ;;  %12610 = vmatprep.subr.bf16.mxu1 %v16215_v22  ;;  %v16262_v21 = vcombine.low %v11756_v60, %v11760_v9  ;;  %v16269_v22 = vcombine.high %v11763_v10, %v11767_v19  ;;  %v16271_v34 = vcombine.high %v11764_v62, %v11768_v55  ;;  %v17169_v59 = vld [vmem:[#allocation22 + $0x60] ss:$16 sps:$4 sm:$0xff]   ;;  %v17177_v60 = vld [vmem:[#allocation22 + $0x84] ss:$16 sps:$4 sm:$0xff]   ;;  %v17180_v9 = vld [vmem:[#allocation22 + $0x8c] ss:$16 sps:$4 sm:$0xff]  }
 0x883   :  { %12570 = vmatpush1.bf16.msra.mxu0 %v16212_v0  ;;  %12611 = vmatpush1.bf16.msra.mxu1 %v16214_v29  ;;  %v11776_v0 = vld [vmem:[#allocation19 + $0x378] sm:$0xff]  ;;  %v16268_v29 = vcombine.low %v11763_v10, %v11767_v19  ;;  %v17184_v19 = vld [vmem:[#allocation22 + $0xa8] ss:$16 sps:$4 sm:$0xff]  }
 0x884   :  { %12571 = vmatprep.subr.bf16.mxu0 %v16221_v31  ;;  %12612 = vmatprep.subr.bf16.mxu1 %v16223_v36  ;;  %v16270_v31 = vcombine.low %v11764_v62, %v11768_v55  ;;  %v16277_v36 = vcombine.high %v11771_v56, %v11775_v32  ;;  %v16279_v38 = vcombine.high %v11772_v23, %v11776_v0  ;;  %v17181_v10 = vld [vmem:[#allocation22 + $0xa0] ss:$16 sps:$4 sm:$0xff]   ;;  %v17189_v62 = vld [vmem:[#allocation22 + $0xc4] ss:$16 sps:$4 sm:$0xff]   ;;  %v17192_v55 = vld [vmem:[#allocation22 + $0xcc] ss:$16 sps:$4 sm:$0xff]  }
 0x887   :  { %12572 = vmatpush1.bf16.msra.mxu0 %v16220_v17  ;;  %12613 = vmatpush1.bf16.msra.mxu1 %v16222_v46  ;;  %v11784_v17 = vld [vmem:[#allocation19 + $0x3b8] sm:$0xff]  ;;  %v16276_v46 = vcombine.low %v11771_v56, %v11775_v32  ;;  %v17196_v32 = vld [vmem:[#allocation22 + $0xe8] ss:$16 sps:$4 sm:$0xff]  }
 0x888   :  { %12573 = vmatprep.subr.bf16.mxu0 %v16229_v42  ;;  %12614 = vmatprep.subr.bf16.mxu1 %v16231_v6  ;;  %v16278_v42 = vcombine.low %v11772_v23, %v11776_v0  ;;  %v16285_v6 = vcombine.high %v11779_v39, %v11783_v26  ;;  %v16287_v4 = vcombine.high %v11780_v40, %v11784_v17  ;;  %v17193_v56 = vld [vmem:[#allocation22 + $0xe0] ss:$16 sps:$4 sm:$0xff]   ;;  %v17201_v23 = vld [vmem:[#allocation22 + $0x104] ss:$16 sps:$4 sm:$0xff]   ;;  %v17204_v0 = vld [vmem:[#allocation22 + $0x10c] ss:$16 sps:$4 sm:$0xff]  }
 0x88b   :  { %12574 = vmatpush1.bf16.msra.mxu0 %v16228_v14  ;;  %12615 = vmatpush1.bf16.msra.mxu1 %v16230_v47  ;;  %v11792_v14 = vld [vmem:[#allocation19 + $0x3f8] sm:$0xff]  ;;  %v16284_v47 = vcombine.low %v11779_v39, %v11783_v26  ;;  %v17208_v26 = vld [vmem:[#allocation22 + $0x128] ss:$16 sps:$4 sm:$0xff]  }
 0x88c   :  { %12575 = vmatprep.subr.bf16.mxu0 %v16237_v51  ;;  %12616 = vmatprep.subr.bf16.mxu1 %v16239_v52  ;;  %v16286_v51 = vcombine.low %v11780_v40, %v11784_v17  ;;  %v16293_v52 = vcombine.high %v11787_v50, %v11791_v12  ;;  %v16295_v53 = vcombine.high %v11788_v44, %v11792_v14  ;;  %v17205_v39 = vld [vmem:[#allocation22 + $0x120] ss:$16 sps:$4 sm:$0xff]   ;;  %v17213_v40 = vld [vmem:[#allocation22 + $0x144] ss:$16 sps:$4 sm:$0xff]   ;;  %v17216_v17 = vld [vmem:[#allocation22 + $0x14c] ss:$16 sps:$4 sm:$0xff]  }
 0x88d   :  { %v16294_v28 = vcombine.low %v11788_v44, %v11792_v14  ;;  %v17217_v50 = vld [vmem:[#allocation22 + $0x160] ss:$16 sps:$4 sm:$0xff]   ;;  %v17220_v12 = vld [vmem:[#allocation22 + $0x168] ss:$16 sps:$4 sm:$0xff]   ;;  %v17225_v44 = vld [vmem:[#allocation22 + $0x184] ss:$16 sps:$4 sm:$0xff]  }
 0x88e   :  { %v17228_v14 = vld [vmem:[#allocation22 + $0x18c] ss:$16 sps:$4 sm:$0xff]  }
 0x88f   :  { %12576 = vmatpush1.bf16.msra.mxu0 %v16236_v49  ;;  %12617 = vmatpush1.bf16.msra.mxu1 %v16238_v54  ;;  %v17156_v49 = vld [vmem:[#allocation22 + $0xc] ss:$16 sps:$4 sm:$0xff]   ;;  %v17151_v54 = vld [vmem:[#allocation22] ss:$16 sps:$4 sm:$0xff]  }
 0x890   :  { %12577 = vmatprep.subr.bf16.mxu0 %v16245_v1  ;;  %12618 = vmatprep.subr.bf16.mxu1 %v16247_v58  ;;  %v17154_v1 = vld [vmem:[#allocation22 + $0x8] ss:$16 sps:$4 sm:$0xff]   ;;  %v17159_v58 = vld [vmem:[#allocation22 + $0x24] ss:$16 sps:$4 sm:$0xff]  }
 0x893   :  { %12578 = vmatpush1.bf16.msra.mxu0 %v16244_v63  ;;  %12619 = vmatpush1.bf16.msra.mxu1 %v16246_v27  ;;  %v17168_v63 = vld [vmem:[#allocation22 + $0x4c] ss:$16 sps:$4 sm:$0xff]   ;;  %v17163_v27 = vld [vmem:[#allocation22 + $0x40] ss:$16 sps:$4 sm:$0xff]  }
 0x894   :  { %12579 = vmatprep.subr.bf16.mxu0 %v16253_v30  ;;  %12620 = vmatprep.subr.bf16.mxu1 %v16255_v8  ;;  %v17166_v30 = vld [vmem:[#allocation22 + $0x48] ss:$16 sps:$4 sm:$0xff]   ;;  %v17171_v8 = vld [vmem:[#allocation22 + $0x64] ss:$16 sps:$4 sm:$0xff]  }
 0x897   :  { %12580 = vmatpush1.bf16.msra.mxu0 %v16252_v2  ;;  %12621 = vmatpush1.bf16.msra.mxu1 %v16254_v3  ;;  %v17175_v2 = vld [vmem:[#allocation22 + $0x80] ss:$16 sps:$4 sm:$0xff]   ;;  %v17178_v3 = vld [vmem:[#allocation22 + $0x88] ss:$16 sps:$4 sm:$0xff]  }
 0x898   :  { %12581 = vmatprep.subr.bf16.mxu0 %v16261_v11  ;;  %12622 = vmatprep.subr.bf16.mxu1 %v16263_v43  ;;  %v17183_v11 = vld [vmem:[#allocation22 + $0xa4] ss:$16 sps:$4 sm:$0xff]   ;;  %v17186_v43 = vld [vmem:[#allocation22 + $0xac] ss:$16 sps:$4 sm:$0xff]  }
 0x89b   :  { %12582 = vmatpush1.bf16.msra.mxu0 %v16260_v18  ;;  %12623 = vmatpush1.bf16.msra.mxu1 %v16262_v21  ;;  %v17187_v18 = vld [vmem:[#allocation22 + $0xc0] ss:$16 sps:$4 sm:$0xff]   ;;  %v17190_v21 = vld [vmem:[#allocation22 + $0xc8] ss:$16 sps:$4 sm:$0xff]  }
 0x89c   :  { %12583 = vmatprep.subr.bf16.mxu0 %v16269_v22  ;;  %12624 = vmatprep.subr.bf16.mxu1 %v16271_v34  ;;  %v17195_v22 = vld [vmem:[#allocation22 + $0xe4] ss:$16 sps:$4 sm:$0xff]   ;;  %v17198_v34 = vld [vmem:[#allocation22 + $0xec] ss:$16 sps:$4 sm:$0xff]  }
 0x89f   :  { %12584 = vmatpush1.bf16.msra.mxu0 %v16268_v29  ;;  %12625 = vmatpush1.bf16.msra.mxu1 %v16270_v31  ;;  %v17199_v29 = vld [vmem:[#allocation22 + $0x100] ss:$16 sps:$4 sm:$0xff]   ;;  %v17202_v31 = vld [vmem:[#allocation22 + $0x108] ss:$16 sps:$4 sm:$0xff]  }
 0x8a0   :  { %12585 = vmatprep.subr.bf16.mxu0 %v16277_v36  ;;  %12626 = vmatprep.subr.bf16.mxu1 %v16279_v38  ;;  %v17207_v36 = vld [vmem:[#allocation22 + $0x124] ss:$16 sps:$4 sm:$0xff]   ;;  %v17210_v38 = vld [vmem:[#allocation22 + $0x12c] ss:$16 sps:$4 sm:$0xff]  }
 0x8a3   :  { %12586 = vmatpush1.bf16.msra.mxu0 %v16276_v46  ;;  %12627 = vmatpush1.bf16.msra.mxu1 %v16278_v42  ;;  %v17211_v46 = vld [vmem:[#allocation22 + $0x140] ss:$16 sps:$4 sm:$0xff]   ;;  %v17214_v42 = vld [vmem:[#allocation22 + $0x148] ss:$16 sps:$4 sm:$0xff]  }
 0x8a4   :  { %12587 = vmatprep.subr.bf16.mxu0 %v16285_v6  ;;  %12628 = vmatprep.subr.bf16.mxu1 %v16287_v4  ;;  %v17219_v6 = vld [vmem:[#allocation22 + $0x164] ss:$16 sps:$4 sm:$0xff]   ;;  %v17222_v4 = vld [vmem:[#allocation22 + $0x16c] ss:$16 sps:$4 sm:$0xff]  }
 0x8a7   :  { %12588 = vmatpush1.bf16.msra.mxu0 %v16284_v47  ;;  %12629 = vmatpush1.bf16.msra.mxu1 %v16286_v51  ;;  %v17223_v47 = vld [vmem:[#allocation22 + $0x180] ss:$16 sps:$4 sm:$0xff]   ;;  %v17226_v51 = vld [vmem:[#allocation22 + $0x188] ss:$16 sps:$4 sm:$0xff]  }
 0x8a8   :  { %12589 = vmatprep.subr.bf16.mxu0 %v16293_v52  ;;  %12630 = vmatprep.subr.bf16.mxu1 %v16295_v53  ;;  %v17231_v52 = vld [vmem:[#allocation22 + $0x1a4] ss:$16 sps:$4 sm:$0xff]   ;;  %v17234_v53 = vld [vmem:[#allocation22 + $0x1ac] ss:$16 sps:$4 sm:$0xff]  }
 0x8ab   :  { %12590 = vmatpush1.bf16.msra.mxu0 %v16292_v24  ;;  %12631 = vmatpush1.bf16.msra.mxu1 %v16294_v28  ;;  %v17229_v24 = vld [vmem:[#allocation22 + $0x1a0] ss:$16 sps:$4 sm:$0xff]   ;;  %v17232_v28 = vld [vmem:[#allocation22 + $0x1a8] ss:$16 sps:$4 sm:$0xff]  }
 0x8ac   :  { %14215 = vmatprep.subr.bf16.mxu0 %v17153_v48  ;;  %14379 = vmatprep.subr.bf16.mxu1 %v17156_v49  ;;  %v17237_v48 = vld [vmem:[#allocation22 + $0x1c4] ss:$16 sps:$4 sm:$0xff]   ;;  %v17240_v49 = vld [vmem:[#allocation22 + $0x1cc] ss:$16 sps:$4 sm:$0xff]  }
 0x8ae   :  { %12592 = vmatmul.mubr.bf16.vlgmr.msra.gmra.mrb[32].mxu0 %v18534_v15  ;;  %12633 = vmatmul.mubr.bf16.vlgmr.msra.gmra.mrb[32].mxu1 %v18534_v15  ;;  %v17172_v15 = vld [vmem:[#allocation22 + $0x68] ss:$16 sps:$4 sm:$0xff]  }
 0x8af   :  { %14216 = vmatpush1.bf16.msra.mxu0 %v17151_v54  ;;  %14380 = vmatpush1.bf16.msra.mxu1 %v17154_v1  ;;  %v17235_v54 = vld [vmem:[#allocation22 + $0x1c0] ss:$16 sps:$4 sm:$0xff]   ;;  %v17238_v1 = vld [vmem:[#allocation22 + $0x1c8] ss:$16 sps:$4 sm:$0xff]  }
 0x8b0   :  { %14217 = vmatprep.subr.bf16.mxu0 %v17159_v58  ;;  %14381 = vmatprep.subr.bf16.mxu1 %v17162_v61  ;;  %v17243_v58 = vld [vmem:[#allocation22 + $0x1e4] ss:$16 sps:$4 sm:$0xff]   ;;  %v17246_v61 = vld [vmem:[#allocation22 + $0x1ec] ss:$16 sps:$4 sm:$0xff]  }
 0x8b3   :  { %14218 = vmatpush1.bf16.msra.mxu0 %v17157_v57  ;;  %14382 = vmatpush1.bf16.msra.mxu1 %v17160_v41  ;;  %v17241_v57 = vld [vmem:[#allocation22 + $0x1e0] ss:$16 sps:$4 sm:$0xff]   ;;  %v17244_v41 = vld [vmem:[#allocation22 + $0x1e8] ss:$16 sps:$4 sm:$0xff]  }
 0x8b4   :  { %14219 = vmatprep.subr.bf16.mxu0 %v17165_v25  ;;  %14383 = vmatprep.subr.bf16.mxu1 %v17168_v63  ;;  %v17249_v25 = vld [vmem:[#allocation22 + $0x204] ss:$16 sps:$4 sm:$0xff]   ;;  %v17252_v63 = vld [vmem:[#allocation22 + $0x20c] ss:$16 sps:$4 sm:$0xff]  }
 0x8b7   :  { %14220 = vmatpush1.bf16.msra.mxu0 %v17163_v27  ;;  %14384 = vmatpush1.bf16.msra.mxu1 %v17166_v30  ;;  %v18546_v27 = vld [vmem:[#allocation20] sm:$0xff] }
 0x8b8   :  { %14221 = vmatprep.subr.bf16.mxu0 %v17171_v8  ;;  %14385 = vmatprep.subr.bf16.mxu1 %v17174_v37  ;;  %v11800_v30 = vrot.slane %v18546_v27, %v18305_v33  ;;  %v11804_v8 = vrot.slane %v18546_v27, %v18310_v35  ;;  %v11812_v37 = vrot.slane %v18546_v27, %v18313_v7 }
 0x8bb   :  { %14222 = vmatpush1.bf16.msra.mxu0 %v17169_v59  ;;  %14386 = vmatpush1.bf16.msra.mxu1 %v17172_v15 }
 0x8bc   :  { %14223 = vmatprep.subr.bf16.mxu0 %v17177_v60  ;;  %14387 = vmatprep.subr.bf16.mxu1 %v17180_v9 }
 0x8bf   :  { %14224 = vmatpush1.bf16.msra.mxu0 %v17175_v2  ;;  %14388 = vmatpush1.bf16.msra.mxu1 %v17178_v3 }
 0x8c0   :  { %14225 = vmatprep.subr.bf16.mxu0 %v17183_v11  ;;  %14389 = vmatprep.subr.bf16.mxu1 %v17186_v43 }
 0x8c3   :  { %14226 = vmatpush1.bf16.msra.mxu0 %v17181_v10  ;;  %14390 = vmatpush1.bf16.msra.mxu1 %v17184_v19 }
 0x8c4   :  { %14227 = vmatprep.subr.bf16.mxu0 %v17189_v62  ;;  %14391 = vmatprep.subr.bf16.mxu1 %v17192_v55 }
 0x8c7   :  { %14228 = vmatpush1.bf16.msra.mxu0 %v17187_v18  ;;  %14392 = vmatpush1.bf16.msra.mxu1 %v17190_v21 }
 0x8c8   :  { %14229 = vmatprep.subr.bf16.mxu0 %v17195_v22  ;;  %14393 = vmatprep.subr.bf16.mxu1 %v17198_v34  ;;  %v17247_v34 = vld [vmem:[#allocation22 + $0x200] ss:$16 sps:$4 sm:$0xff]  }
 0x8cb   :  { %14230 = vmatpush1.bf16.msra.mxu0 %v17193_v56  ;;  %14394 = vmatpush1.bf16.msra.mxu1 %v17196_v32  ;;  %v17250_v56 = vld [vmem:[#allocation22 + $0x208] ss:$16 sps:$4 sm:$0xff]  }
 0x8cc   :  { %14231 = vmatprep.subr.bf16.mxu0 %v17201_v23  ;;  %14395 = vmatprep.subr.bf16.mxu1 %v17204_v0  ;;  %v17255_v23 = vld [vmem:[#allocation22 + $0x224] ss:$16 sps:$4 sm:$0xff]   ;;  %v17258_v0 = vld [vmem:[#allocation22 + $0x22c] ss:$16 sps:$4 sm:$0xff]  }
 0x8cf   :  { %14232 = vmatpush1.bf16.msra.mxu0 %v17199_v29  ;;  %14396 = vmatpush1.bf16.msra.mxu1 %v17202_v31  ;;  %v17253_v31 = vld [vmem:[#allocation22 + $0x220] ss:$16 sps:$4 sm:$0xff]  }
 0x8d0   :  { %14233 = vmatprep.subr.bf16.mxu0 %v17207_v36  ;;  %14397 = vmatprep.subr.bf16.mxu1 %v17210_v38  ;;  %v17256_v36 = vld [vmem:[#allocation22 + $0x228] ss:$16 sps:$4 sm:$0xff]   ;;  %v17261_v38 = vld [vmem:[#allocation22 + $0x244] ss:$16 sps:$4 sm:$0xff]  }
 0x8d3   :  { %14234 = vmatpush1.bf16.msra.mxu0 %v17205_v39  ;;  %14398 = vmatpush1.bf16.msra.mxu1 %v17208_v26  ;;  %v17264_v39 = vld [vmem:[#allocation22 + $0x24c] ss:$16 sps:$4 sm:$0xff]   ;;  %v17259_v26 = vld [vmem:[#allocation22 + $0x240] ss:$16 sps:$4 sm:$0xff]  }
 0x8d4   :  { %14235 = vmatprep.subr.bf16.mxu0 %v17213_v40  ;;  %14399 = vmatprep.subr.bf16.mxu1 %v17216_v17  ;;  %v17262_v40 = vld [vmem:[#allocation22 + $0x248] ss:$16 sps:$4 sm:$0xff]   ;;  %v17267_v17 = vld [vmem:[#allocation22 + $0x264] ss:$16 sps:$4 sm:$0xff]  }
 0x8d7   :  { %14236 = vmatpush1.bf16.msra.mxu0 %v17211_v46  ;;  %14400 = vmatpush1.bf16.msra.mxu1 %v17214_v42  ;;  %v17270_v46 = vld [vmem:[#allocation22 + $0x26c] ss:$16 sps:$4 sm:$0xff]   ;;  %v17265_v42 = vld [vmem:[#allocation22 + $0x260] ss:$16 sps:$4 sm:$0xff]  }
 0x8d8   :  { %14237 = vmatprep.subr.bf16.mxu0 %v17219_v6  ;;  %14401 = vmatprep.subr.bf16.mxu1 %v17222_v4  ;;  %v17268_v6 = vld [vmem:[#allocation22 + $0x268] ss:$16 sps:$4 sm:$0xff]   ;;  %v17273_v4 = vld [vmem:[#allocation22 + $0x284] ss:$16 sps:$4 sm:$0xff]  }
 0x8db   :  { %14238 = vmatpush1.bf16.msra.mxu0 %v17217_v50  ;;  %14402 = vmatpush1.bf16.msra.mxu1 %v17220_v12  ;;  %v17276_v50 = vld [vmem:[#allocation22 + $0x28c] ss:$16 sps:$4 sm:$0xff]   ;;  %v17271_v12 = vld [vmem:[#allocation22 + $0x280] ss:$16 sps:$4 sm:$0xff]  }
 0x8dc   :  { %14239 = vmatprep.subr.bf16.mxu0 %v17225_v44  ;;  %14403 = vmatprep.subr.bf16.mxu1 %v17228_v14  ;;  %v17274_v44 = vld [vmem:[#allocation22 + $0x288] ss:$16 sps:$4 sm:$0xff]   ;;  %v17279_v14 = vld [vmem:[#allocation22 + $0x2a4] ss:$16 sps:$4 sm:$0xff]  }
 0x8df   :  { %14240 = vmatpush1.bf16.msra.mxu0 %v17223_v47  ;;  %14404 = vmatpush1.bf16.msra.mxu1 %v17226_v51  ;;  %v17282_v47 = vld [vmem:[#allocation22 + $0x2ac] ss:$16 sps:$4 sm:$0xff]   ;;  %v17277_v51 = vld [vmem:[#allocation22 + $0x2a0] ss:$16 sps:$4 sm:$0xff]  }
 0x8e0   :  { %14241 = vmatprep.subr.bf16.mxu0 %v17231_v52  ;;  %14405 = vmatprep.subr.bf16.mxu1 %v17234_v53  ;;  %v17280_v52 = vld [vmem:[#allocation22 + $0x2a8] ss:$16 sps:$4 sm:$0xff]   ;;  %v17285_v53 = vld [vmem:[#allocation22 + $0x2c4] ss:$16 sps:$4 sm:$0xff]  }
 0x8e3   :  { %14242 = vmatpush1.bf16.msra.mxu0 %v17229_v24  ;;  %14406 = vmatpush1.bf16.msra.mxu1 %v17232_v28  ;;  %v17288_v24 = vld [vmem:[#allocation22 + $0x2cc] ss:$16 sps:$4 sm:$0xff]   ;;  %v17283_v28 = vld [vmem:[#allocation22 + $0x2c0] ss:$16 sps:$4 sm:$0xff]  }
 0x8e4   :  { %14243 = vmatprep.subr.bf16.mxu0 %v17237_v48  ;;  %14407 = vmatprep.subr.bf16.mxu1 %v17240_v49  ;;  %v17286_v48 = vld [vmem:[#allocation22 + $0x2c8] ss:$16 sps:$4 sm:$0xff]   ;;  %v17291_v49 = vld [vmem:[#allocation22 + $0x2e4] ss:$16 sps:$4 sm:$0xff]  }
 0x8e7   :  { %14244 = vmatpush1.bf16.msra.mxu0 %v17235_v54  ;;  %14408 = vmatpush1.bf16.msra.mxu1 %v17238_v1  ;;  %v17294_v54 = vld [vmem:[#allocation22 + $0x2ec] ss:$16 sps:$4 sm:$0xff]   ;;  %v17289_v1 = vld [vmem:[#allocation22 + $0x2e0] ss:$16 sps:$4 sm:$0xff]  }
 0x8e8   :  { %14245 = vmatprep.subr.bf16.mxu0 %v17243_v58  ;;  %14409 = vmatprep.subr.bf16.mxu1 %v17246_v61  ;;  %v17292_v58 = vld [vmem:[#allocation22 + $0x2e8] ss:$16 sps:$4 sm:$0xff]   ;;  %v17297_v61 = vld [vmem:[#allocation22 + $0x304] ss:$16 sps:$4 sm:$0xff]  }
 0x8eb   :  { %14246 = vmatpush1.bf16.msra.mxu0 %v17241_v57  ;;  %14410 = vmatpush1.bf16.msra.mxu1 %v17244_v41  ;;  %v17300_v57 = vld [vmem:[#allocation22 + $0x30c] ss:$16 sps:$4 sm:$0xff]   ;;  %v17295_v41 = vld [vmem:[#allocation22 + $0x300] ss:$16 sps:$4 sm:$0xff]  }
 0x8ec   :  { %14256 = vmatprep.subr.bf16.mxu0 %v17249_v25  ;;  %14420 = vmatprep.subr.bf16.mxu1 %v17252_v63  ;;  %v17298_v25 = vld [vmem:[#allocation22 + $0x308] ss:$16 sps:$4 sm:$0xff]   ;;  %v17303_v63 = vld [vmem:[#allocation22 + $0x324] ss:$16 sps:$4 sm:$0xff]  }
 0x941   :  { %v12511_v59 = vpop.f32.mrb[28].mxu0  ;;  %v18554_v15 = vpop.f32.mrb[28].mxu1 }
 0x942   :  { %v12512_v60 = vadd.f32 %v12511_v59, %v11800_v30  ;;  %v12513_v9 = vpop.f32.mrb[29].mxu0  ;;  %v12554_v2 = vpop.f32.mrb[29].mxu1  ;;  %v17306_v30 = vld [vmem:[#allocation22 + $0x32c] ss:$16 sps:$4 sm:$0xff]   ;;  %v17309_v59 = vld [vmem:[#allocation22 + $0x344] ss:$16 sps:$4 sm:$0xff]  }
 0x943   :  { %v12514_v3 = vadd.f32 %v12513_v9, %v11804_v8  ;;  %v12555_v11 = vadd.f32 %v12554_v2, %v11812_v37  ;;  %v12515_v43 = vpop.f32.mrb[30].mxu0  ;;  %v12556_v10 = vpop.f32.mrb[30].mxu1  ;;  %v17301_v8 = vld [vmem:[#allocation22 + $0x320] ss:$16 sps:$4 sm:$0xff]   ;;  %v17304_v37 = vld [vmem:[#allocation22 + $0x328] ss:$16 sps:$4 sm:$0xff]  }
 0x944   :  { %v12641_v19 = vmax.f32 %v12512_v60, 0.0  ;;  %v12516_v62 = vpop.f32.mrb[31].mxu0  ;;  %v12557_v55 = vpop.f32.mrb[31].mxu1  ;;  %v17312_v60 = vld [vmem:[#allocation22 + $0x34c] ss:$16 sps:$4 sm:$0xff]  }
 0x945   :  { %v12642_v18 = vmax.f32 %v12514_v3, 0.0  ;;  %v12644_v21 = vmax.f32 %v12555_v11, 0.0  ;;  %v17307_v9 = vld [vmem:[#allocation22 + $0x340] ss:$16 sps:$4 sm:$0xff]   ;;  %v17310_v2 = vld [vmem:[#allocation22 + $0x348] ss:$16 sps:$4 sm:$0xff]  }
 0x946   :  { %v12905_v32 = vpack.c.bf16 %v12641_v19, %v12641_v19  ;;  %v17315_v3 = vld [vmem:[#allocation22 + $0x364] ss:$16 sps:$4 sm:$0xff]   ;;  %v17318_v11 = vld [vmem:[#allocation22 + $0x36c] ss:$16 sps:$4 sm:$0xff]   ;;  %v17313_v43 = vld [vmem:[#allocation22 + $0x360] ss:$16 sps:$4 sm:$0xff]  }
 0x947   :  { %v12906_v22 = vpack.c.bf16 %v12642_v18, %v12642_v18  ;;  %v12908_v29 = vpack.c.bf16 %v12644_v21, %v12644_v21  ;;  %v17316_v10 = vld [vmem:[#allocation22 + $0x368] ss:$16 sps:$4 sm:$0xff]   ;;  %v17321_v19 = vld [vmem:[#allocation22 + $0x384] ss:$16 sps:$4 sm:$0xff]   ;;  %v17324_v62 = vld [vmem:[#allocation22 + $0x38c] ss:$16 sps:$4 sm:$0xff]  }
 0x948   :  { %v17319_v55 = vld [vmem:[#allocation22 + $0x380] ss:$16 sps:$4 sm:$0xff]   ;;  %v17322_v18 = vld [vmem:[#allocation22 + $0x388] ss:$16 sps:$4 sm:$0xff]   ;;  %v17327_v21 = vld [vmem:[#allocation22 + $0x3a4] ss:$16 sps:$4 sm:$0xff]  }
 0x949   :  { %14247 = vmatprep.mubr.bf16.mxu0 %v12906_v22  ;;  %14411 = vmatprep.mubr.bf16.mxu1 %v12906_v22  ;;  %v17330_v22 = vld [vmem:[#allocation22 + $0x3ac] ss:$16 sps:$4 sm:$0xff]  }
 0x94a   :  { %14248 = vmatmul.mubr.bf16.vlgmr.msra.gmra.mrb[36].mxu0 %v12905_v32  ;;  %14412 = vmatmul.mubr.bf16.vlgmr.msra.gmra.mrb[36].mxu1 %v12905_v32  ;;  %v11808_v32 = vrot.slane %v18546_v27, %v18336_v45 }
 0x94b   :  { %14257 = vmatpush1.bf16.msra.mxu0 %v17247_v34  ;;  %14421 = vmatpush1.bf16.msra.mxu1 %v17250_v56  ;;  %v17325_v34 = vld [vmem:[#allocation22 + $0x3a0] ss:$16 sps:$4 sm:$0xff]   ;;  %v17328_v56 = vld [vmem:[#allocation22 + $0x3a8] ss:$16 sps:$4 sm:$0xff]  }
 0x94c   :  { %14288 = vmatprep.mubr.bf16.mxu0 %v12908_v29  ;;  %14452 = vmatprep.mubr.bf16.mxu1 %v12908_v29  ;;  %v11820_v29 = vrot.slane %v18546_v27, %v18349_v16  ;;  %v17340_v16 = vld [vmem:[#allocation22 + $0x3e8] ss:$16 sps:$4 sm:$0xff]  }
 0x94d   :  { %14258 = vmatprep.subr.bf16.mxu0 %v17255_v23  ;;  %14422 = vmatprep.subr.bf16.mxu1 %v17258_v0  ;;  %v17333_v23 = vld [vmem:[#allocation22 + $0x3c4] ss:$16 sps:$4 sm:$0xff]   ;;  %v17336_v0 = vld [vmem:[#allocation22 + $0x3cc] ss:$16 sps:$4 sm:$0xff]  }
 0x94f   :  { %14259 = vmatpush1.bf16.msra.mxu0 %v17253_v31  ;;  %14423 = vmatpush1.bf16.msra.mxu1 %v17256_v36  ;;  %v17331_v31 = vld [vmem:[#allocation22 + $0x3c0] ss:$16 sps:$4 sm:$0xff]   ;;  %v17334_v36 = vld [vmem:[#allocation22 + $0x3c8] ss:$16 sps:$4 sm:$0xff]  }
 0x950   :  { %14260 = vmatprep.subr.bf16.mxu0 %v17261_v38  ;;  %14424 = vmatprep.subr.bf16.mxu1 %v17264_v39  ;;  %v12553_v38 = vadd.f32 %v18554_v15, %v11808_v32  ;;  %v17339_v39 = vld [vmem:[#allocation22 + $0x3e4] ss:$16 sps:$4 sm:$0xff]  }
 0x951   :  { %v17393_v32 = vld [vmem:[#allocation22 + $0x504] ss:$16 sps:$4 sm:$0xff]  }
 0x952   :  { %v12643_v15 = vmax.f32 %v12553_v38, 0.0  ;;  %v17397_v38 = vld [vmem:[#allocation22 + $0x520] ss:$16 sps:$4 sm:$0xff]  }
 0x953   :  { %14261 = vmatpush1.bf16.msra.mxu0 %v17259_v26  ;;  %14425 = vmatpush1.bf16.msra.mxu1 %v17262_v40  ;;  %v17342_v26 = vld [vmem:[#allocation22 + $0x3ec] ss:$16 sps:$4 sm:$0xff]  }
 0x954   :  { %14262 = vmatprep.subr.bf16.mxu0 %v17267_v17  ;;  %14426 = vmatprep.subr.bf16.mxu1 %v17270_v46 }
 0x957   :  { %14263 = vmatpush1.bf16.msra.mxu0 %v17265_v42  ;;  %14427 = vmatpush1.bf16.msra.mxu1 %v17268_v6  ;;  %v17337_v6 = vld [vmem:[#allocation22 + $0x3e0] ss:$16 sps:$4 sm:$0xff]  }
 0x958   :  { %14264 = vmatprep.subr.bf16.mxu0 %v17273_v4  ;;  %14428 = vmatprep.subr.bf16.mxu1 %v17276_v50 }
 0x95b   :  { %14265 = vmatpush1.bf16.msra.mxu0 %v17271_v12  ;;  %14429 = vmatpush1.bf16.msra.mxu1 %v17274_v44  ;;  %v17345_v44 = vld [vmem:[#allocation22 + $0x404] ss:$16 sps:$4 sm:$0xff]  }
 0x95c   :  { %14266 = vmatprep.subr.bf16.mxu0 %v17279_v14  ;;  %14430 = vmatprep.subr.bf16.mxu1 %v17282_v47 }
 0x95f   :  { %14267 = vmatpush1.bf16.msra.mxu0 %v17277_v51  ;;  %14431 = vmatpush1.bf16.msra.mxu1 %v17280_v52  ;;  %v17348_v51 = vld [vmem:[#allocation22 + $0x40c] ss:$16 sps:$4 sm:$0xff]  }
 0x960   :  { %14268 = vmatprep.subr.bf16.mxu0 %v17285_v53  ;;  %14432 = vmatprep.subr.bf16.mxu1 %v17288_v24  ;;  %v17343_v53 = vld [vmem:[#allocation22 + $0x400] ss:$16 sps:$4 sm:$0xff]   ;;  %v12907_v24 = vpack.c.bf16 %v12643_v15, %v12643_v15  ;;  %v17417_v15 = vld [vmem:[#allocation22 + $0x584] ss:$16 sps:$4 sm:$0xff]  }
 0x963   :  { %14269 = vmatpush1.bf16.msra.mxu0 %v17283_v28  ;;  %14433 = vmatpush1.bf16.msra.mxu1 %v17286_v48  ;;  %v17346_v28 = vld [vmem:[#allocation22 + $0x408] ss:$16 sps:$4 sm:$0xff]  }
 0x964   :  { %14270 = vmatprep.subr.bf16.mxu0 %v17291_v49  ;;  %14434 = vmatprep.subr.bf16.mxu1 %v17294_v54  ;;  %v17351_v49 = vld [vmem:[#allocation22 + $0x424] ss:$16 sps:$4 sm:$0xff]   ;;  %v17354_v54 = vld [vmem:[#allocation22 + $0x42c] ss:$16 sps:$4 sm:$0xff]  }
 0x967   :  { %14271 = vmatpush1.bf16.msra.mxu0 %v17289_v1  ;;  %14435 = vmatpush1.bf16.msra.mxu1 %v17292_v58  ;;  %v17349_v1 = vld [vmem:[#allocation22 + $0x420] ss:$16 sps:$4 sm:$0xff]   ;;  %v17352_v58 = vld [vmem:[#allocation22 + $0x428] ss:$16 sps:$4 sm:$0xff]  }
 0x968   :  { %14272 = vmatprep.subr.bf16.mxu0 %v17297_v61  ;;  %14436 = vmatprep.subr.bf16.mxu1 %v17300_v57  ;;  %v17357_v61 = vld [vmem:[#allocation22 + $0x444] ss:$16 sps:$4 sm:$0xff]   ;;  %v17360_v57 = vld [vmem:[#allocation22 + $0x44c] ss:$16 sps:$4 sm:$0xff]  }
 0x96b   :  { %14273 = vmatpush1.bf16.msra.mxu0 %v17295_v41  ;;  %14437 = vmatpush1.bf16.msra.mxu1 %v17298_v25  ;;  %v17355_v41 = vld [vmem:[#allocation22 + $0x440] ss:$16 sps:$4 sm:$0xff]   ;;  %v17358_v25 = vld [vmem:[#allocation22 + $0x448] ss:$16 sps:$4 sm:$0xff]  }
 0x96c   :  { %14274 = vmatprep.subr.bf16.mxu0 %v17303_v63  ;;  %14438 = vmatprep.subr.bf16.mxu1 %v17306_v30  ;;  %v17363_v63 = vld [vmem:[#allocation22 + $0x464] ss:$16 sps:$4 sm:$0xff]   ;;  %v17366_v30 = vld [vmem:[#allocation22 + $0x46c] ss:$16 sps:$4 sm:$0xff]  }
 0x96f   :  { %14275 = vmatpush1.bf16.msra.mxu0 %v17301_v8  ;;  %14439 = vmatpush1.bf16.msra.mxu1 %v17304_v37  ;;  %v17361_v8 = vld [vmem:[#allocation22 + $0x460] ss:$16 sps:$4 sm:$0xff]   ;;  %v17364_v37 = vld [vmem:[#allocation22 + $0x468] ss:$16 sps:$4 sm:$0xff]  }
 0x970   :  { %14276 = vmatprep.subr.bf16.mxu0 %v17309_v59  ;;  %14440 = vmatprep.subr.bf16.mxu1 %v17312_v60  ;;  %v17369_v59 = vld [vmem:[#allocation22 + $0x484] ss:$16 sps:$4 sm:$0xff]   ;;  %v17372_v60 = vld [vmem:[#allocation22 + $0x48c] ss:$16 sps:$4 sm:$0xff]  }
 0x973   :  { %14277 = vmatpush1.bf16.msra.mxu0 %v17307_v9  ;;  %14441 = vmatpush1.bf16.msra.mxu1 %v17310_v2  ;;  %v17367_v9 = vld [vmem:[#allocation22 + $0x480] ss:$16 sps:$4 sm:$0xff]   ;;  %v17370_v2 = vld [vmem:[#allocation22 + $0x488] ss:$16 sps:$4 sm:$0xff]  }
 0x974   :  { %14278 = vmatprep.subr.bf16.mxu0 %v17315_v3  ;;  %14442 = vmatprep.subr.bf16.mxu1 %v17318_v11  ;;  %v17375_v3 = vld [vmem:[#allocation22 + $0x4a4] ss:$16 sps:$4 sm:$0xff]   ;;  %v17378_v11 = vld [vmem:[#allocation22 + $0x4ac] ss:$16 sps:$4 sm:$0xff]  }
 0x977   :  { %14279 = vmatpush1.bf16.msra.mxu0 %v17313_v43  ;;  %14443 = vmatpush1.bf16.msra.mxu1 %v17316_v10  ;;  %v17373_v43 = vld [vmem:[#allocation22 + $0x4a0] ss:$16 sps:$4 sm:$0xff]   ;;  %v17376_v10 = vld [vmem:[#allocation22 + $0x4a8] ss:$16 sps:$4 sm:$0xff]  }
 0x978   :  { %14280 = vmatprep.subr.bf16.mxu0 %v17321_v19  ;;  %14444 = vmatprep.subr.bf16.mxu1 %v17324_v62  ;;  %v17381_v19 = vld [vmem:[#allocation22 + $0x4c4] ss:$16 sps:$4 sm:$0xff]   ;;  %v17384_v62 = vld [vmem:[#allocation22 + $0x4cc] ss:$16 sps:$4 sm:$0xff]  }
 0x97b   :  { %14281 = vmatpush1.bf16.msra.mxu0 %v17319_v55  ;;  %14445 = vmatpush1.bf16.msra.mxu1 %v17322_v18  ;;  %v17379_v55 = vld [vmem:[#allocation22 + $0x4c0] ss:$16 sps:$4 sm:$0xff]   ;;  %v17382_v18 = vld [vmem:[#allocation22 + $0x4c8] ss:$16 sps:$4 sm:$0xff]  }
 0x97c   :  { %14282 = vmatprep.subr.bf16.mxu0 %v17327_v21  ;;  %14446 = vmatprep.subr.bf16.mxu1 %v17330_v22  ;;  %v17387_v21 = vld [vmem:[#allocation22 + $0x4e4] ss:$16 sps:$4 sm:$0xff]   ;;  %v17390_v22 = vld [vmem:[#allocation22 + $0x4ec] ss:$16 sps:$4 sm:$0xff]  }
 0x97f   :  { %14283 = vmatpush1.bf16.msra.mxu0 %v17325_v34  ;;  %14447 = vmatpush1.bf16.msra.mxu1 %v17328_v56  ;;  %v17385_v34 = vld [vmem:[#allocation22 + $0x4e0] ss:$16 sps:$4 sm:$0xff]   ;;  %v17388_v56 = vld [vmem:[#allocation22 + $0x4e8] ss:$16 sps:$4 sm:$0xff]  }
 0x980   :  { %14284 = vmatprep.subr.bf16.mxu0 %v17333_v23  ;;  %14448 = vmatprep.subr.bf16.mxu1 %v17336_v0  ;;  %v17396_v23 = vld [vmem:[#allocation22 + $0x50c] ss:$16 sps:$4 sm:$0xff]   ;;  %v17391_v0 = vld [vmem:[#allocation22 + $0x500] ss:$16 sps:$4 sm:$0xff]  }
 0x981   :  { %v18561_v40 = vpop.f32.mrb[32].mxu0  ;;  %v18563_v17 = vpop.f32.mrb[32].mxu1 }
 0x982   :  { %v12595_v46 = vpop.f32.mrb[33].mxu0  ;;  %v18565_v42 = vpop.f32.mrb[33].mxu1 }
 0x983   :  { %v12596_v4 = vadd.f32 %v12595_v46, %v11820_v29  ;;  %v12597_v50 = vpop.f32.mrb[34].mxu0  ;;  %v12638_v12 = vpop.f32.mrb[34].mxu1  ;;  %14285 = vmatpush1.bf16.msra.mxu0 %v17331_v31  ;;  %14449 = vmatpush1.bf16.msra.mxu1 %v17334_v36  ;;  %v17394_v29 = vld [vmem:[#allocation22 + $0x508] ss:$16 sps:$4 sm:$0xff]   ;;  %v17399_v31 = vld [vmem:[#allocation22 + $0x524] ss:$16 sps:$4 sm:$0xff]  }
 0x984   :  { %v12598_v14 = vpop.f32.mrb[35].mxu0  ;;  %v12639_v47 = vpop.f32.mrb[35].mxu1  ;;  %14286 = vmatprep.subr.bf16.mxu0 %v17339_v39  ;;  %14450 = vmatprep.subr.bf16.mxu1 %v17342_v26  ;;  %v17402_v36 = vld [vmem:[#allocation22 + $0x52c] ss:$16 sps:$4 sm:$0xff]   ;;  %v17400_v39 = vld [vmem:[#allocation22 + $0x528] ss:$16 sps:$4 sm:$0xff]  }
 0x985   :  { %v12646_v52 = vmax.f32 %v12596_v4, 0.0  ;;  %v17405_v26 = vld [vmem:[#allocation22 + $0x544] ss:$16 sps:$4 sm:$0xff]   ;;  %v17408_v46 = vld [vmem:[#allocation22 + $0x54c] ss:$16 sps:$4 sm:$0xff]  }
 0x986   :  { %v17406_v4 = vld [vmem:[#allocation22 + $0x548] ss:$16 sps:$4 sm:$0xff]   ;;  %v17411_v50 = vld [vmem:[#allocation22 + $0x564] ss:$16 sps:$4 sm:$0xff]   ;;  %v17414_v12 = vld [vmem:[#allocation22 + $0x56c] ss:$16 sps:$4 sm:$0xff]  }
 0x987   :  { %14287 = vmatpush1.bf16.msra.mxu0 %v17337_v6  ;;  %14451 = vmatpush1.bf16.msra.mxu1 %v17340_v16  ;;  %v12910_v48 = vpack.c.bf16 %v12646_v52, %v12646_v52  ;;  %v17403_v6 = vld [vmem:[#allocation22 + $0x540] ss:$16 sps:$4 sm:$0xff]   ;;  %v17420_v14 = vld [vmem:[#allocation22 + $0x58c] ss:$16 sps:$4 sm:$0xff]   ;;  %v17423_v52 = vld [vmem:[#allocation22 + $0x5a4] ss:$16 sps:$4 sm:$0xff]  }
 0x988   :  { %14297 = vmatprep.subr.bf16.mxu0 %v17345_v44  ;;  %14461 = vmatprep.subr.bf16.mxu1 %v17348_v51  ;;  %v17409_v16 = vld [vmem:[#allocation22 + $0x560] ss:$16 sps:$4 sm:$0xff]   ;;  %v17412_v44 = vld [vmem:[#allocation22 + $0x568] ss:$16 sps:$4 sm:$0xff]  }
 0x989   :  { %v17415_v47 = vld [vmem:[#allocation22 + $0x580] ss:$16 sps:$4 sm:$0xff]   ;;  %v17418_v51 = vld [vmem:[#allocation22 + $0x588] ss:$16 sps:$4 sm:$0xff]  }
 0x98a   :  { %14289 = vmatmul.mubr.bf16.vlgmr.msra.gmra.mrb[36].mxu0 %v12907_v24  ;;  %14453 = vmatmul.mubr.bf16.vlgmr.msra.gmra.mrb[36].mxu1 %v12907_v24  ;;  %v17421_v24 = vld [vmem:[#allocation22 + $0x5a0] ss:$16 sps:$4 sm:$0xff]  }
 0x98b   :  { %14298 = vmatpush1.bf16.msra.mxu0 %v17343_v53  ;;  %14329 = vmatprep.mubr.bf16.mxu0 %v12910_v48  ;;  %v17426_v53 = vld [vmem:[#allocation22 + $0x5ac] ss:$16 sps:$4 sm:$0xff]  }
 0x98c   :  { %14462 = vmatpush1.bf16.msra.mxu1 %v17346_v28  ;;  %14493 = vmatprep.mubr.bf16.mxu1 %v12910_v48  ;;  %v11816_v28 = vrot.slane %v18546_v27, %v18346_v13  ;;  %v17424_v48 = vld [vmem:[#allocation22 + $0x5a8] ss:$16 sps:$4 sm:$0xff]  }
 0x98d   :  { %14299 = vmatprep.subr.bf16.mxu0 %v17351_v49  ;;  %14463 = vmatprep.subr.bf16.mxu1 %v17354_v54  ;;  %v17429_v49 = vld [vmem:[#allocation22 + $0x5c4] ss:$16 sps:$4 sm:$0xff]   ;;  %v17432_v54 = vld [vmem:[#allocation22 + $0x5cc] ss:$16 sps:$4 sm:$0xff]  }
 0x98f   :  { %14300 = vmatpush1.bf16.msra.mxu0 %v17349_v1  ;;  %v11828_v1 = vrot.slane %v18546_v27, %v18352_v20  ;;  %v17444_v20 = vld [vmem:[#allocation22 + $0x60c] ss:$16 sps:$4 sm:$0xff]  }
 0x990   :  { %14464 = vmatpush1.bf16.msra.mxu1 %v17352_v58  ;;  %14301 = vmatprep.subr.bf16.mxu0 %v17357_v61  ;;  %v17427_v58 = vld [vmem:[#allocation22 + $0x5c0] ss:$16 sps:$4 sm:$0xff]   ;;  %v12594_v61 = vadd.f32 %v18561_v40, %v11816_v28  ;;  %v17501_v28 = vld [vmem:[#allocation22 + $0x744] ss:$16 sps:$4 sm:$0xff]  }
 0x991   :  { %14465 = vmatprep.subr.bf16.mxu1 %v17360_v57  ;;  %v17430_v57 = vld [vmem:[#allocation22 + $0x5c8] ss:$16 sps:$4 sm:$0xff]   ;;  %v12637_v13 = vadd.f32 %v18565_v42, %v11828_v1  ;;  %v17439_v40 = vld [vmem:[#allocation22 + $0x600] ss:$16 sps:$4 sm:$0xff]   ;;  %v17450_v42 = vld [vmem:[#allocation22 + $0x62c] ss:$16 sps:$4 sm:$0xff]  }
 0x992   :  { %v17507_v1 = vld [vmem:[#allocation22 + $0x764] ss:$16 sps:$4 sm:$0xff]  }
 0x993   :  { %14302 = vmatpush1.bf16.msra.mxu0 %v17355_v41  ;;  %v17435_v41 = vld [vmem:[#allocation22 + $0x5e4] ss:$16 sps:$4 sm:$0xff]  }
 0x994   :  { %14466 = vmatpush1.bf16.msra.mxu1 %v17358_v25  ;;  %14303 = vmatprep.subr.bf16.mxu0 %v17363_v63  ;;  %v17438_v25 = vld [vmem:[#allocation22 + $0x5ec] ss:$16 sps:$4 sm:$0xff]   ;;  %v17433_v63 = vld [vmem:[#allocation22 + $0x5e0] ss:$16 sps:$4 sm:$0xff]  }
 0x995   :  { %14467 = vmatprep.subr.bf16.mxu1 %v17366_v30  ;;  %v12645_v30 = vmax.f32 %v12594_v61, 0.0  ;;  %v17505_v61 = vld [vmem:[#allocation22 + $0x760] ss:$16 sps:$4 sm:$0xff]  }
 0x997   :  { %14304 = vmatpush1.bf16.msra.mxu0 %v17361_v8  ;;  %v17436_v8 = vld [vmem:[#allocation22 + $0x5e8] ss:$16 sps:$4 sm:$0xff]  }
 0x998   :  { %14468 = vmatpush1.bf16.msra.mxu1 %v17364_v37  ;;  %14305 = vmatprep.subr.bf16.mxu0 %v17369_v59  ;;  %v17441_v37 = vld [vmem:[#allocation22 + $0x604] ss:$16 sps:$4 sm:$0xff]   ;;  %v12648_v59 = vmax.f32 %v12637_v13, 0.0  ;;  %v17511_v13 = vld [vmem:[#allocation22 + $0x780] ss:$16 sps:$4 sm:$0xff]  }
 0x999   :  { %14469 = vmatprep.subr.bf16.mxu1 %v17372_v60  ;;  %v12909_v60 = vpack.c.bf16 %v12645_v30, %v12645_v30  ;;  %v17519_v30 = vld [vmem:[#allocation22 + $0x7a4] ss:$16 sps:$4 sm:$0xff]  }
 0x99b   :  { %14306 = vmatpush1.bf16.msra.mxu0 %v17367_v9  ;;  %v17442_v9 = vld [vmem:[#allocation22 + $0x608] ss:$16 sps:$4 sm:$0xff]  }
 0x99c   :  { %14470 = vmatpush1.bf16.msra.mxu1 %v17370_v2  ;;  %14307 = vmatprep.subr.bf16.mxu0 %v17375_v3  ;;  %v17447_v2 = vld [vmem:[#allocation22 + $0x624] ss:$16 sps:$4 sm:$0xff]   ;;  %v12912_v3 = vpack.c.bf16 %v12648_v59, %v12648_v59  ;;  %v17520_v59 = vld [vmem:[#allocation22 + $0x7a8] ss:$16 sps:$4 sm:$0xff]  }
 0x99d   :  { %14471 = vmatprep.subr.bf16.mxu1 %v17378_v11  ;;  %v17445_v11 = vld [vmem:[#allocation22 + $0x620] ss:$16 sps:$4 sm:$0xff]  }
 0x99f   :  { %14308 = vmatpush1.bf16.msra.mxu0 %v17373_v43  ;;  %v17448_v43 = vld [vmem:[#allocation22 + $0x628] ss:$16 sps:$4 sm:$0xff]  }
 0x9a0   :  { %14472 = vmatpush1.bf16.msra.mxu1 %v17376_v10  ;;  %14309 = vmatprep.subr.bf16.mxu0 %v17381_v19  ;;  %v17453_v10 = vld [vmem:[#allocation22 + $0x644] ss:$16 sps:$4 sm:$0xff]   ;;  %v17456_v19 = vld [vmem:[#allocation22 + $0x64c] ss:$16 sps:$4 sm:$0xff]  }
 0x9a1   :  { %14473 = vmatprep.subr.bf16.mxu1 %v17384_v62  ;;  %v17451_v62 = vld [vmem:[#allocation22 + $0x640] ss:$16 sps:$4 sm:$0xff]  }
 0x9a3   :  { %14310 = vmatpush1.bf16.msra.mxu0 %v17379_v55  ;;  %v17454_v55 = vld [vmem:[#allocation22 + $0x648] ss:$16 sps:$4 sm:$0xff]  }
 0x9a4   :  { %14474 = vmatpush1.bf16.msra.mxu1 %v17382_v18  ;;  %14311 = vmatprep.subr.bf16.mxu0 %v17387_v21  ;;  %v17459_v18 = vld [vmem:[#allocation22 + $0x664] ss:$16 sps:$4 sm:$0xff]   ;;  %v17462_v21 = vld [vmem:[#allocation22 + $0x66c] ss:$16 sps:$4 sm:$0xff]  }
 0x9a5   :  { %14475 = vmatprep.subr.bf16.mxu1 %v17390_v22  ;;  %v17457_v22 = vld [vmem:[#allocation22 + $0x660] ss:$16 sps:$4 sm:$0xff]  }
 0x9a7   :  { %14312 = vmatpush1.bf16.msra.mxu0 %v17385_v34  ;;  %v17460_v34 = vld [vmem:[#allocation22 + $0x668] ss:$16 sps:$4 sm:$0xff]  }
 0x9a8   :  { %14476 = vmatpush1.bf16.msra.mxu1 %v17388_v56  ;;  %14313 = vmatprep.subr.bf16.mxu0 %v17393_v32  ;;  %v17465_v56 = vld [vmem:[#allocation22 + $0x684] ss:$16 sps:$4 sm:$0xff]   ;;  %v17468_v32 = vld [vmem:[#allocation22 + $0x68c] ss:$16 sps:$4 sm:$0xff]  }
 0x9a9   :  { %14477 = vmatprep.subr.bf16.mxu1 %v17396_v23  ;;  %v17463_v23 = vld [vmem:[#allocation22 + $0x680] ss:$16 sps:$4 sm:$0xff]  }
 0x9ab   :  { %14314 = vmatpush1.bf16.msra.mxu0 %v17391_v0  ;;  %v17466_v0 = vld [vmem:[#allocation22 + $0x688] ss:$16 sps:$4 sm:$0xff]  }
 0x9ac   :  { %14478 = vmatpush1.bf16.msra.mxu1 %v17394_v29  ;;  %14315 = vmatprep.subr.bf16.mxu0 %v17399_v31  ;;  %v17471_v29 = vld [vmem:[#allocation22 + $0x6a4] ss:$16 sps:$4 sm:$0xff]   ;;  %v17474_v31 = vld [vmem:[#allocation22 + $0x6ac] ss:$16 sps:$4 sm:$0xff]  }
 0x9ad   :  { %14479 = vmatprep.subr.bf16.mxu1 %v17402_v36  ;;  %v17469_v36 = vld [vmem:[#allocation22 + $0x6a0] ss:$16 sps:$4 sm:$0xff]  }
 0x9af   :  { %14316 = vmatpush1.bf16.msra.mxu0 %v17397_v38  ;;  %v17472_v38 = vld [vmem:[#allocation22 + $0x6a8] ss:$16 sps:$4 sm:$0xff]  }
 0x9b0   :  { %14480 = vmatpush1.bf16.msra.mxu1 %v17400_v39  ;;  %14317 = vmatprep.subr.bf16.mxu0 %v17405_v26  ;;  %v17477_v39 = vld [vmem:[#allocation22 + $0x6c4] ss:$16 sps:$4 sm:$0xff]   ;;  %v17480_v26 = vld [vmem:[#allocation22 + $0x6cc] ss:$16 sps:$4 sm:$0xff]  }
 0x9b1   :  { %14481 = vmatprep.subr.bf16.mxu1 %v17408_v46  ;;  %v17475_v46 = vld [vmem:[#allocation22 + $0x6c0] ss:$16 sps:$4 sm:$0xff]  }
 0x9b3   :  { %14318 = vmatpush1.bf16.msra.mxu0 %v17403_v6  ;;  %v17478_v6 = vld [vmem:[#allocation22 + $0x6c8] ss:$16 sps:$4 sm:$0xff]  }
 0x9b4   :  { %14482 = vmatpush1.bf16.msra.mxu1 %v17406_v4  ;;  %14319 = vmatprep.subr.bf16.mxu0 %v17411_v50  ;;  %v17483_v4 = vld [vmem:[#allocation22 + $0x6e4] ss:$16 sps:$4 sm:$0xff]   ;;  %v17486_v50 = vld [vmem:[#allocation22 + $0x6ec] ss:$16 sps:$4 sm:$0xff]  }
 0x9b5   :  { %14483 = vmatprep.subr.bf16.mxu1 %v17414_v12  ;;  %v17481_v12 = vld [vmem:[#allocation22 + $0x6e0] ss:$16 sps:$4 sm:$0xff]  }
 0x9b7   :  { %14320 = vmatpush1.bf16.msra.mxu0 %v17409_v16  ;;  %v17484_v16 = vld [vmem:[#allocation22 + $0x6e8] ss:$16 sps:$4 sm:$0xff]  }
 0x9b8   :  { %14484 = vmatpush1.bf16.msra.mxu1 %v17412_v44  ;;  %14321 = vmatprep.subr.bf16.mxu0 %v17417_v15  ;;  %v17489_v44 = vld [vmem:[#allocation22 + $0x704] ss:$16 sps:$4 sm:$0xff]   ;;  %v17492_v15 = vld [vmem:[#allocation22 + $0x70c] ss:$16 sps:$4 sm:$0xff]  }
 0x9b9   :  { %14485 = vmatprep.subr.bf16.mxu1 %v17420_v14  ;;  %v17487_v14 = vld [vmem:[#allocation22 + $0x700] ss:$16 sps:$4 sm:$0xff]  }
 0x9bb   :  { %14322 = vmatpush1.bf16.msra.mxu0 %v17415_v47  ;;  %v17490_v47 = vld [vmem:[#allocation22 + $0x708] ss:$16 sps:$4 sm:$0xff]  }
 0x9bc   :  { %14486 = vmatpush1.bf16.msra.mxu1 %v17418_v51  ;;  %14323 = vmatprep.subr.bf16.mxu0 %v17423_v52  ;;  %v17495_v51 = vld [vmem:[#allocation22 + $0x724] ss:$16 sps:$4 sm:$0xff]   ;;  %v17498_v52 = vld [vmem:[#allocation22 + $0x72c] ss:$16 sps:$4 sm:$0xff]  }
 0x9bd   :  { %14487 = vmatprep.subr.bf16.mxu1 %v17426_v53  ;;  %v17493_v53 = vld [vmem:[#allocation22 + $0x720] ss:$16 sps:$4 sm:$0xff]  }
 0x9bf   :  { %14324 = vmatpush1.bf16.msra.mxu0 %v17421_v24  ;;  %v17496_v24 = vld [vmem:[#allocation22 + $0x728] ss:$16 sps:$4 sm:$0xff]  }
 0x9c0   :  { %14488 = vmatpush1.bf16.msra.mxu1 %v17424_v48  ;;  %14325 = vmatprep.subr.bf16.mxu0 %v17429_v49  ;;  %v17504_v48 = vld [vmem:[#allocation22 + $0x74c] ss:$16 sps:$4 sm:$0xff]   ;;  %v17499_v49 = vld [vmem:[#allocation22 + $0x740] ss:$16 sps:$4 sm:$0xff]  }
 0x9c1   :  { %14489 = vmatprep.subr.bf16.mxu1 %v17432_v54  ;;  %v17502_v54 = vld [vmem:[#allocation22 + $0x748] ss:$16 sps:$4 sm:$0xff]  }
 0x9c3   :  { %14326 = vmatpush1.bf16.msra.mxu0 %v17427_v58  ;;  %v17510_v58 = vld [vmem:[#allocation22 + $0x76c] ss:$16 sps:$4 sm:$0xff]  }
 0x9c4   :  { %14490 = vmatpush1.bf16.msra.mxu1 %v17430_v57  ;;  %14327 = vmatprep.subr.bf16.mxu0 %v17435_v41  ;;  %v17508_v57 = vld [vmem:[#allocation22 + $0x768] ss:$16 sps:$4 sm:$0xff]   ;;  %v17513_v41 = vld [vmem:[#allocation22 + $0x784] ss:$16 sps:$4 sm:$0xff]  }
 0x9c5   :  { %14491 = vmatprep.subr.bf16.mxu1 %v17438_v25  ;;  %v17516_v25 = vld [vmem:[#allocation22 + $0x78c] ss:$16 sps:$4 sm:$0xff]  }
 0x9c7   :  { %14328 = vmatpush1.bf16.msra.mxu0 %v17433_v63  ;;  %v17514_v63 = vld [vmem:[#allocation22 + $0x788] ss:$16 sps:$4 sm:$0xff]  }
 0x9c8   :  { %14492 = vmatpush1.bf16.msra.mxu1 %v17436_v8  ;;  %14338 = vmatprep.subr.bf16.mxu0 %v17441_v37  ;;  %v17522_v8 = vld [vmem:[#allocation22 + $0x7ac] ss:$16 sps:$4 sm:$0xff]   ;;  %v17517_v37 = vld [vmem:[#allocation22 + $0x7a0] ss:$16 sps:$4 sm:$0xff]  }
 0x9c9   :  { %14502 = vmatprep.subr.bf16.mxu1 %v17444_v20  ;;  %v11824_v20 = vrot.slane %v18546_v27, %v18375_v5  ;;  %v17532_v5 = vld [vmem:[#allocation22 + $0x7e8] ss:$16 sps:$4 sm:$0xff]  }
 0x9ca   :  { %14330 = vmatmul.mubr.bf16.vlgmr.msra.gmra.mrb[36].mxu0 %v12909_v60 }
 0x9cb   :  { %14494 = vmatmul.mubr.bf16.vlgmr.msra.gmra.mrb[36].mxu1 %v12909_v60  ;;  %14339 = vmatpush1.bf16.msra.mxu0 %v17439_v40  ;;  %v17525_v40 = vld [vmem:[#allocation22 + $0x7c4] ss:$16 sps:$4 sm:$0xff]   ;;  %v17528_v60 = vld [vmem:[#allocation22 + $0x7cc] ss:$16 sps:$4 sm:$0xff]  }
 0x9cc   :  { %14370 = vmatprep.mubr.bf16.mxu0 %v12912_v3  ;;  %14503 = vmatpush1.bf16.msra.mxu1 %v17442_v9  ;;  %v17523_v9 = vld [vmem:[#allocation22 + $0x7c0] ss:$16 sps:$4 sm:$0xff]  }
 0x9cd   :  { %14534 = vmatprep.mubr.bf16.mxu1 %v12912_v3  ;;  %14340 = vmatprep.subr.bf16.mxu0 %v17447_v2  ;;  %v12635_v2 = vadd.f32 %v18563_v17, %v11824_v20  ;;  %v17526_v3 = vld [vmem:[#allocation22 + $0x7c8] ss:$16 sps:$4 sm:$0xff]  }
 0x9ce   :  { %14504 = vmatprep.subr.bf16.mxu1 %v17450_v42  ;;  %v17531_v42 = vld [vmem:[#allocation22 + $0x7e4] ss:$16 sps:$4 sm:$0xff]  }
 0x9cf   :  { %14341 = vmatpush1.bf16.msra.mxu0 %v17445_v11  ;;  %v17534_v11 = vld [vmem:[#allocation22 + $0x7ec] ss:$16 sps:$4 sm:$0xff]  }
 0x9d0   :  { %14505 = vmatpush1.bf16.msra.mxu1 %v17448_v43  ;;  %14342 = vmatprep.subr.bf16.mxu0 %v17453_v10  ;;  %v17529_v43 = vld [vmem:[#allocation22 + $0x7e0] ss:$16 sps:$4 sm:$0xff]   ;;  %v12647_v10 = vmax.f32 %v12635_v2, 0.0 }
 0x9d1   :  { %14506 = vmatprep.subr.bf16.mxu1 %v17456_v19 }
 0x9d2   :  { %v12911_v27 = vpack.c.bf16 %v12647_v10, %v12647_v10 }
 0x9d3   :  { %14343 = vmatpush1.bf16.msra.mxu0 %v17451_v62 }
 0x9d4   :  { %14507 = vmatpush1.bf16.msra.mxu1 %v17454_v55  ;;  %14344 = vmatprep.subr.bf16.mxu0 %v17459_v18 }
 0x9d5   :  { %14508 = vmatprep.subr.bf16.mxu1 %v17462_v21 }
 0x9d7   :  { %14345 = vmatpush1.bf16.msra.mxu0 %v17457_v22 }
 0x9d8   :  { %14509 = vmatpush1.bf16.msra.mxu1 %v17460_v34  ;;  %14346 = vmatprep.subr.bf16.mxu0 %v17465_v56 }
 0x9d9   :  { %14510 = vmatprep.subr.bf16.mxu1 %v17468_v32 }
 0x9db   :  { %14347 = vmatpush1.bf16.msra.mxu0 %v17463_v23 }
 0x9dc   :  { %14511 = vmatpush1.bf16.msra.mxu1 %v17466_v0  ;;  %14348 = vmatprep.subr.bf16.mxu0 %v17471_v29 }
 0x9dd   :  { %14512 = vmatprep.subr.bf16.mxu1 %v17474_v31 }
 0x9df   :  { %14349 = vmatpush1.bf16.msra.mxu0 %v17469_v36 }
 0x9e0   :  { %14513 = vmatpush1.bf16.msra.mxu1 %v17472_v38  ;;  %14350 = vmatprep.subr.bf16.mxu0 %v17477_v39 }
 0x9e1   :  { %14514 = vmatprep.subr.bf16.mxu1 %v17480_v26 }
 0x9e3   :  { %14351 = vmatpush1.bf16.msra.mxu0 %v17475_v46 }
 0x9e4   :  { %14515 = vmatpush1.bf16.msra.mxu1 %v17478_v6  ;;  %14352 = vmatprep.subr.bf16.mxu0 %v17483_v4 }
 0x9e5   :  { %14516 = vmatprep.subr.bf16.mxu1 %v17486_v50 }
 0x9e7   :  { %14353 = vmatpush1.bf16.msra.mxu0 %v17481_v12 }
 0x9e8   :  { %14517 = vmatpush1.bf16.msra.mxu1 %v17484_v16  ;;  %14354 = vmatprep.subr.bf16.mxu0 %v17489_v44 }
 0x9e9   :  { %14518 = vmatprep.subr.bf16.mxu1 %v17492_v15 }
 0x9eb   :  { %14355 = vmatpush1.bf16.msra.mxu0 %v17487_v14 }
 0x9ec   :  { %14519 = vmatpush1.bf16.msra.mxu1 %v17490_v47  ;;  %14356 = vmatprep.subr.bf16.mxu0 %v17495_v51 }
 0x9ed   :  { %14520 = vmatprep.subr.bf16.mxu1 %v17498_v52 }
 0x9ef   :  { %14357 = vmatpush1.bf16.msra.mxu0 %v17493_v53 }
 0x9f0   :  { %14521 = vmatpush1.bf16.msra.mxu1 %v17496_v24  ;;  %14358 = vmatprep.subr.bf16.mxu0 %v17501_v28 }
 0x9f1   :  { %14522 = vmatprep.subr.bf16.mxu1 %v17504_v48 }
 0x9f3   :  { %14359 = vmatpush1.bf16.msra.mxu0 %v17499_v49 }
 0x9f4   :  { %14523 = vmatpush1.bf16.msra.mxu1 %v17502_v54  ;;  %14360 = vmatprep.subr.bf16.mxu0 %v17507_v1 }
 0x9f5   :  { %14524 = vmatprep.subr.bf16.mxu1 %v17510_v58 }
 0x9f7   :  { %14361 = vmatpush1.bf16.msra.mxu0 %v17505_v61 }
 0x9f8   :  { %14525 = vmatpush1.bf16.msra.mxu1 %v17508_v57  ;;  %14362 = vmatprep.subr.bf16.mxu0 %v17513_v41 }
 0x9f9   :  { %14526 = vmatprep.subr.bf16.mxu1 %v17516_v25 }
 0x9fb   :  { %14363 = vmatpush1.bf16.msra.mxu0 %v17511_v13 }
 0x9fc   :  { %14527 = vmatpush1.bf16.msra.mxu1 %v17514_v63  ;;  %14364 = vmatprep.subr.bf16.mxu0 %v17519_v30 }
 0x9fd   :  { %14528 = vmatprep.subr.bf16.mxu1 %v17522_v8 }
 0x9ff   :  { %14365 = vmatpush1.bf16.msra.mxu0 %v17517_v37 }
 0xa00   :  { %14529 = vmatpush1.bf16.msra.mxu1 %v17520_v59  ;;  %14366 = vmatprep.subr.bf16.mxu0 %v17525_v40 }
 0xa01   :  { %14530 = vmatprep.subr.bf16.mxu1 %v17528_v60 }
 0xa03   :  { %14367 = vmatpush1.bf16.msra.mxu0 %v17523_v9 }
 0xa04   :  { %14531 = vmatpush1.bf16.msra.mxu1 %v17526_v3  ;;  %14368 = vmatprep.subr.bf16.mxu0 %v17531_v42 }
 0xa05   :  { %14532 = vmatprep.subr.bf16.mxu1 %v17534_v11 }
 0xa07   :  { %14369 = vmatpush1.bf16.msra.mxu0 %v17529_v43 }
 0xa08   :  { %14533 = vmatpush1.bf16.msra.mxu1 %v17532_v5 }
 0xa0a   :  { %14371 = vmatmul.mubr.bf16.vlgmr.msra.gmra.mrb[36].mxu0 %v12911_v27 }
 0xa0b   :  { %14535 = vmatmul.mubr.bf16.vlgmr.msra.gmra.mrb[36].mxu1 %v12911_v27 }
 0xa0c   :  { %17885 = shalt.err (!%p17882_p4)
}
 0xa0d   :  { %s17886_s0 = scalar_lea.hbm %s18631_s15, 128 }
 0xa0e   :  { %p17887_p5 = scmp.ne.s32.totalorder %s18631_s15, %s17886_s0  ;;  %p17890_p6 = scmp.lt.u32.totalorder %s17886_s0, %s18631_s15 }
 0xa10   :  { %p17892_p7 = pnand %p17890_p6, %p17887_p5 }
 0xa12   :  { %17895 = shalt.err (!%p17892_p7)
}
 0xa13   :  { %14602 = dma.vmem_to_hbm [thread:$0]  %s14600_s20, 128, %s18631_s15, [#allocation27]  }
 0xa14   :  { %s17979_s25 = smov [#allocation28]  }
 0xa15   :  { %s14609_s24 = sshll.u32 %s17979_s25, 4  ;;  %s14610_s24 = int_to_ptr.vmem [resolvable:$true] %s14609_s24 }
 0xa16   :  { %s17896_s10 = scalar_lea.vmem %s14610_s24, 128  ;;  %p17901_p9 = scmp.lt.s32.totalorder %s14610_s24, %s14610_s24 }
 0xa17   :  { %p17897_p8 = scmp.ne.s32.totalorder %s14610_s24, %s17896_s10  ;;  %p17902_p10 = scmp.lt.s32.totalorder %s17896_s10, %s17896_s10 }
 0xa19   :  { %p17903_p11 = por %p17902_p10, %p17901_p9 }
 0xa1b   :  { %p17904_p12 = pnand %p17903_p11, %p17897_p8 }
 0xa1d   :  { %17907 = shalt.err (!%p17904_p12)
}
 0xa1e   :  { %s17908_s29 = scalar_lea.hbm %s18632_s16, 128 }
 0xa1f   :  { %p17909_p13 = scmp.ne.s32.totalorder %s18632_s16, %s17908_s29  ;;  %p17912_p0 = scmp.lt.u32.totalorder %s17908_s29, %s18632_s16 }
 0xa21   :  { %p17914_p1 = pnand %p17912_p0, %p17909_p13 }
 0xa23   :  { %17917 = shalt.err (!%p17914_p1)
}
 0xa24   :  { %14612 = dma.vmem_to_hbm [thread:$0]  %s14610_s24, 128, %s18632_s16, [#allocation27]   ;;  %v12913_v17 = vld [vmem:[#allocation23] sm:$0xf] }
 0xa25   :  { %v12918_v19 = vrot.slane %v12913_v17, %v18305_v33  ;;  %v12926_v62 = vrot.slane %v12913_v17, %v18336_v45  ;;  %v12922_v55 = vrot.slane %v12913_v17, %v18310_v35  ;;  %v12930_v18 = vrot.slane %v12913_v17, %v18313_v7  ;;  %s17980_s16 = smov [#allocation25]  }
 0xa26   :  { %s14589_s21 = sshll.u32 %s17980_s16, 4  ;;  %s14590_s21 = int_to_ptr.vmem [resolvable:$true] %s14589_s21 }
 0xa27   :  { %s17918_s27 = scalar_lea.vmem %s14590_s21, 256  ;;  %p17923_p3 = scmp.lt.s32.totalorder %s14590_s21, %s14590_s21 }
 0xa28   :  { %p17919_p2 = scmp.ne.s32.totalorder %s14590_s21, %s17918_s27  ;;  %p17924_p4 = scmp.lt.s32.totalorder %s17918_s27, %s17918_s27 }
 0xa2a   :  { %p17925_p5 = por %p17924_p4, %p17923_p3 }
 0xa2c   :  { %p17926_p6 = pnand %p17925_p5, %p17919_p2 }
 0xadd   :  { %v14372_v21 = vpop.f32.mrb[36].mxu0 }
 0xade   :  { %v16580_v22 = vadd.f32 %v14372_v21, %v12918_v19  ;;  %v14536_v34 = vpop.f32.mrb[36].mxu1  ;;  %v14374_v56 = vpop.f32.mrb[37].mxu0 }
 0xadf   :  { %v16582_v32 = vadd.f32 %v14536_v34, %v12926_v62  ;;  %v16581_v23 = vadd.f32 %v14374_v56, %v12922_v55  ;;  %v14538_v0 = vpop.f32.mrb[37].mxu1  ;;  %v14376_v29 = vpop.f32.mrb[38].mxu0 }
 0xae0   :  { %v14543_v31 = vsub.f32 0.0, %v16580_v22  ;;  %v16583_v36 = vadd.f32 %v14538_v0, %v12930_v18  ;;  %v14540_v38 = vpop.f32.mrb[38].mxu1  ;;  %v14377_v39 = vpop.f32.mrb[39].mxu0 }
 0xae1   :  { %v14545_v26 = vsub.f32 0.0, %v16582_v32  ;;  %v14544_v33 = vsub.f32 0.0, %v16581_v23  ;;  %v14541_v46 = vpop.f32.mrb[39].mxu1 }
 0xae2   :  { %v14547_v45 = vmul.f32 1.442695, %v14543_v31  ;;  %v14546_v6 = vsub.f32 0.0, %v16583_v36 }
 0xae3   :  { %v14551_v35 = vmul.f32 1.442695, %v14545_v26  ;;  %v14549_v4 = vmul.f32 1.442695, %v14544_v33 }
 0xae4   :  { %17547 = vpow2.f32 %v14547_v45  ;;  %v14553_v7 = vmul.f32 1.442695, %v14546_v6 }
 0xae5   :  { %17549 = vpow2.f32 %v14551_v35 }
 0xae6   :  { %17551 = vpow2.f32 %v14549_v4 }
 0xae7   :  { %17553 = vpow2.f32 %v14553_v7 }
 0xaee   :  { %v17548_v50 = vpop.eup %17547 }
 0xaef   :  { %v17550_v12 = vpop.eup %17549  ;;  %v14555_v16 = vadd.f32 1.0, %v17548_v50 }
 0xaf0   :  { %v17552_v44 = vpop.eup %17551  ;;  %v14557_v15 = vadd.f32 1.0, %v17550_v12 }
 0xaf1   :  { %v17554_v14 = vpop.eup %17553  ;;  %17555 = vrcp.f32 %v14555_v16  ;;  %v14556_v47 = vadd.f32 1.0, %v17552_v44 }
 0xaf2   :  { %17557 = vrcp.f32 %v14557_v15  ;;  %v14558_v51 = vadd.f32 1.0, %v17554_v14 }
 0xaf3   :  { %17559 = vrcp.f32 %v14556_v47 }
 0xaf4   :  { %17561 = vrcp.f32 %v14558_v51 }
 0xafb   :  { %v17556_v52 = vpop.eup %17555 }
 0xafc   :  { %v17558_v53 = vpop.eup %17557 }
 0xafd   :  { %v17560_v24 = vpop.eup %17559 }
 0xafe   :  { %v17562_v28 = vpop.eup %17561  ;;  %v14567_v48 = vcombine.low %v17556_v52, %v17560_v24 }
 0xaff   :  { %v14568_v49 = vcombine.low %v17558_v53, %v17562_v28 }
 0xb00   :  { %14571 = vst [vmem:[#allocation25] sm:$0xff] %v14567_v48 }
 0xb01   :  { %14572 = vst [vmem:[#allocation25 + $0x8] sm:$0xff] %v14568_v49 }
 0xb02   :  { %17929 = shalt.err (!%p17926_p6)
}
 0xb03   :  { %s17930_s6 = scalar_lea.hbm %s18630_s14, 256 }
 0xb04   :  { %p17931_p7 = scmp.ne.s32.totalorder %s18630_s14, %s17930_s6  ;;  %p17934_p8 = scmp.lt.u32.totalorder %s17930_s6, %s18630_s14 }
 0xb06   :  { %p17936_p9 = pnand %p17934_p8, %p17931_p7 }
 0xb08   :  { %17939 = shalt.err (!%p17936_p9)
}
 0xb09   :  { %14592 = dma.vmem_to_hbm [thread:$0]  %s14590_s21, 256, %s18630_s14, [#allocation4]  }
 0xb0a   :  { %17956 = dma.done.wait [#allocation4], 256  }
 0xb0b   :  { %17957 = vsyncadd [#allocation4], 4294967040 }
 0xb0c   :  { %17958 = dma.done.wait [#allocation27], 256  }
 0xb0d   :  { %17959 = vsyncadd [#allocation27], 4294967040 }
 0xb0e   :  { %14622 = vsyncpa [#allocation3], 1 }
 0xb0f   :  { %14623 = vsyncpa [#allocation6], 1 }
 0xb10   :  { %14624 = vsyncpa [#allocation9], 1 }
 0xb11   :  { %14625 = vsyncpa [#allocation12], 1 }
 0xb12   :  { %14626 = vsyncpa [#allocation15], 1 }
 0xb13   :  { %14627 = vsyncpa [#allocation18], 1 }
 0xb14   :  { %14628 = vsyncpa [#allocation21], 1 }
 0xb15   :  { %14629 = vsyncpa [#allocation24], 1 }
 0xb16   :  { %14630 = vsyncpa [#allocation4], 1 }
 0xb17   :  { %14631 = vsyncpa [#allocation27], 1 }

</bundles_post_ra>
